<compile_context>
chip_gen: v5e
topology: v5e:2x2
jax: 0.10.0
libtpu: 0.0.40
codegen_flags: <defaults>
</compile_context>

<pallas_src>
import functools

import jax
import jax.numpy as jnp
from jax import lax
from jax.experimental import pallas as pl
from jax.experimental.pallas import tpu as pltpu


def _round_up(x, m):
    return ((x + m - 1) // m) * m


# ----------------------------- Pallas kernel ------------------------------- #
def _lstm_fc_kernel(*refs, num_layers, use_bf16):
    """Multi-layer LSTM recurrence + final FC for one batch tile.

    Ref order (inputs, outputs, scratch):
      x_ref     : (T, TB, Ip)       time-major input tile (Ip = input padded to 128)
      w_ih0_ref : (Ip, 4*Gp)        layer-0 input->gate weights (padded, transposed)
      b0_ref    : (1, 4*Gp)         layer-0 combined bias
      w_ihr_ref : (L-1, Gp, 4*Gp)   layers 1..L-1 input->gate weights   [only if L > 1]
      b_r_ref   : (L-1, 1, 4*Gp)    layers 1..L-1 combined biases       [only if L > 1]
      w_hh_ref  : (L, Gp, 4*Gp)     hidden->gate weights (padded)
      fc_w_ref  : (Gp, Cp)          final linear weight (padded, transposed)
      fc_b_ref  : (1, Cp)           final linear bias (padded)
      out_ref   : (TB, Cp)          logits for this batch tile (lane-dense store)
      seq_ref   : (T*TB, Gp)        scratch: current layer's hidden sequence [only if L > 1]
      proj_ref  : (TC*TB, 4*Gp)     scratch: T-chunked bulk input projection
    Gate order along the 4*Gp axis is PyTorch's [i, f, g, o], each block Gp lanes wide.
    """
    if num_layers > 1:
        (x_ref, w_ih0_ref, b0_ref, w_ihr_ref, b_r_ref, w_hh_ref,
         fc_w_ref, fc_b_ref, out_ref, seq_ref, proj_ref) = refs
    else:
        (x_ref, w_ih0_ref, b0_ref, w_hh_ref, fc_w_ref, fc_b_ref,
         out_ref, proj_ref) = refs
        w_ihr_ref = b_r_ref = seq_ref = None

    f32 = jnp.float32
    T, TB, Ip = x_ref.shape
    Gp = w_hh_ref.shape[1]
    TC = proj_ref.shape[0] // TB          # time-chunk length (steps per bulk GEMM)

    def cast_w(w):                        # optional bf16 MXU operands (v6e/v7x)
        return w.astype(jnp.bfloat16) if use_bf16 else w

    def mm(a, b):
        if use_bf16:
            a = a.astype(jnp.bfloat16)
        return jnp.dot(a, b, preferred_element_type=f32)

    def sigmoid1(v):                      # single EUP op instead of exp + divide
        return 0.5 * jnp.tanh(0.5 * v) + 0.5

    def run_layer(read_input, w_ih_l, b_l, w_hh_l, write_seq):
        """read_input(start_step, steps) -> (steps*TB, K) chunk of this layer's input."""

        def do_chunk(start, steps, carry):
            rows = steps * TB
            # Bulk input projection for this T-chunk: one MXU-friendly GEMM.
            proj = mm(read_input(start, steps), w_ih_l) + b_l
            if rows == proj_ref.shape[0]:
                proj_ref[...] = proj
            else:
                proj_ref[pl.ds(0, rows), :] = proj

            def step(tl, c2):
                h, c = c2
                r = pl.multiple_of(tl * TB, TB)
                # Only the recurrent matmul + gate elementwise stay on the serial
                # critical path; the input projection was precomputed above.
                gates = mm(h, w_hh_l) + proj_ref[pl.ds(r, TB), :]
                i = sigmoid1(gates[:, 0 * Gp:1 * Gp])
                f = sigmoid1(gates[:, 1 * Gp:2 * Gp])
                g = jnp.tanh(gates[:, 2 * Gp:3 * Gp])
                o = sigmoid1(gates[:, 3 * Gp:4 * Gp])
                c_new = f * c + i * g
                h_new = o * jnp.tanh(c_new)
                if write_seq:
                    off = pl.multiple_of((start + tl) * TB, TB)
                    seq_ref[pl.ds(off, TB), :] = h_new
                return h_new, c_new

            # Partial unroll for long chunks; full unroll only when small.
            unroll = steps if steps <= 16 else 8
            return lax.fori_loop(0, steps, step, carry, unroll=unroll)

        zeros = jnp.zeros((TB, Gp), f32)
        carry = (zeros, zeros)
        n_full = T // TC
        rem = T - n_full * TC
        if n_full == 1 and rem == 0:
            carry = do_chunk(0, TC, carry)
        elif n_full > 0:
            carry = lax.fori_loop(
                0, n_full, lambda ci, c2: do_chunk(ci * TC, TC, c2), carry)
        if rem > 0:
            carry = do_chunk(n_full * TC, rem, carry)
        return carry

    # ---- layer 0: projection straight from x (no HBM proj round trip) ----
    def read_x(start, steps):
        return x_ref[pl.ds(start, steps)].reshape(steps * TB, Ip)

    h, _ = run_layer(read_x, cast_w(w_ih0_ref[...]), b0_ref[...],
                     cast_w(w_hh_ref[0]), write_seq=(num_layers > 1))

    # ---- layers 1..L-1: input is the previous layer's hidden sequence ----
    if num_layers > 1:
        def read_seq(start, steps):
            off = pl.multiple_of(start * TB, TB)
            return seq_ref[pl.ds(off, steps * TB), :]

        for l in range(1, num_layers):
            h, _ = run_layer(read_seq, cast_w(w_ihr_ref[l - 1]), b_r_ref[l - 1],
                             cast_w(w_hh_ref[l]), write_seq=(l < num_layers - 1))

    # ---- final FC on the last time step of the last layer (== out[:, -1, :]) ----
    logits = mm(h, cast_w(fc_w_ref[...])) + fc_b_ref[...]
    out_ref[...] = logits.astype(out_ref.dtype)


# --------------------------- Parameter packing ------------------------------ #
def pack_params(lstm_pt, fc_pt, input_size, hidden_size, num_classes):
    """PyTorch-layout params -> padded / transposed kernel layout."""
    H = hidden_size
    I = input_size
    Ip = _round_up(I, 128)                 # layer-0 input dim padded to one lane tile
    Gp = _round_up(H, 128)                 # each gate block padded to a 128-lane multiple
    Cp = _round_up(num_classes, 128)       # lane-dense logits store
    L = len(lstm_pt)

    def pad_gate_cols(w_t):                # (in_dim, 4H) -> (in_dim, 4*Gp)
        blocks = [jnp.pad(w_t[:, k * H:(k + 1) * H], ((0, 0), (0, Gp - H)))
                  for k in range(4)]
        return jnp.concatenate(blocks, axis=1)

    biases = [pad_gate_cols((b_ih + b_hh).reshape(1, 4 * H))
              for (_, _, b_ih, b_hh) in lstm_pt]              # each (1, 4Gp)

    w_ih0 = jnp.pad(pad_gate_cols(lstm_pt[0][0].T), ((0, Ip - I), (0, 0)))  # (Ip, 4Gp)
    b0 = biases[0]                                            # (1, 4Gp)
    if L > 1:
        w_ihr = jnp.stack([jnp.pad(pad_gate_cols(lstm_pt[l][0].T),
                                   ((0, Gp - H), (0, 0)))
                           for l in range(1, L)])             # (L-1, Gp, 4Gp)
        b_r = jnp.stack(biases[1:])                           # (L-1, 1, 4Gp)
    else:
        w_ihr = None
        b_r = None
    w_hh = jnp.stack([jnp.pad(pad_gate_cols(lstm_pt[l][1].T),
                              ((0, Gp - H), (0, 0)))
                      for l in range(L)])                     # (L, Gp, 4Gp)

    fc_w, fc_b = fc_pt
    fc_w_p = jnp.pad(fc_w.T, ((0, Gp - H), (0, Cp - num_classes)))          # (Gp, Cp)
    fc_b_p = jnp.pad(fc_b.reshape(1, -1), ((0, 0), (0, Cp - num_classes)))  # (1, Cp)

    return dict(w_ih0=w_ih0, b0=b0, w_ihr=w_ihr, b_r=b_r, w_hh=w_hh,
                fc_w=fc_w_p, fc_b=fc_b_p,
                H=H, C=num_classes, I=I, Ip=Ip, Gp=Gp, Cp=Cp, L=L)


# ------------------------------ Wrapper ------------------------------------ #
@functools.partial(jax.jit, static_argnames=("batch_tile", "chunk_steps",
                                              "use_bf16", "single_buffer_weights"))
def _rnn_forward_impl(x, w_ih0, b0, w_ihr, b_r, w_hh, fc_w, fc_b, *,
                      batch_tile, chunk_steps, use_bf16, single_buffer_weights):
    B, T, I = x.shape
    Ip = w_ih0.shape[0]
    Gp = w_hh.shape[1]
    Cp = fc_w.shape[1]
    L = w_hh.shape[0]

    # ---- batch tiling: fill MXU rows, but keep >=2 tiles for megacore (v7x) ----
    Bp8 = _round_up(max(B, 8), 8)
    if batch_tile is None:
        TB = min(256, Bp8)
        if Bp8 // TB < 2 and Bp8 >= 16:
            TB = _round_up((Bp8 + 1) // 2, 8)
    else:
        TB = _round_up(max(batch_tile, 8), 8)
    Bp = _round_up(Bp8, TB)
    nbt = Bp // TB

    # ---- time chunking for the bulk input-projection scratch ----
    TC = max(1, min(T, chunk_steps))

    # Time-major, batch- and lane-padded input; padded lanes hit zero weight rows.
    x_tm = jnp.pad(jnp.swapaxes(x, 0, 1), ((0, 0), (0, Bp - B), (0, Ip - I)))

    def wspec(shape):
        n = len(shape)
        imap = lambda b: (0,) * n
        if single_buffer_weights:
            # Constant index_map -> double buffering only wastes VMEM.
            return pl.BlockSpec(shape, imap, pipeline_mode=pl.Buffered(1))
        return pl.BlockSpec(shape, imap)

    in_specs = [pl.BlockSpec((T, TB, Ip), lambda b: (0, b, 0)),
                wspec(w_ih0.shape), wspec(b0.shape)]
    inputs = [x_tm, w_ih0, b0]
    if L > 1:
        in_specs += [wspec(w_ihr.shape), wspec(b_r.shape)]
        inputs += [w_ihr, b_r]
    in_specs += [wspec(w_hh.shape), wspec(fc_w.shape), wspec(fc_b.shape)]
    inputs += [w_hh, fc_w, fc_b]

    scratch_shapes = []
    if L > 1:
        scratch_shapes.append(pltpu.VMEM((T * TB, Gp), jnp.float32))    # hidden seq
    scratch_shapes.append(pltpu.VMEM((TC * TB, 4 * Gp), jnp.float32))   # proj chunk

    # ---- explicit VMEM budget (defaults: 16 MiB v5e / 32 MiB v6e,v7x scoped) ----
    w_elems = sum(int(a.size) for a in (w_ih0, b0, w_hh, fc_w, fc_b))
    if L > 1:
        w_elems += int(w_ihr.size) + int(b_r.size)
    w_elems *= (1 if single_buffer_weights else 2)
    blk_elems = 2 * (T * TB * Ip + TB * Cp)             # double-buffered x + out blocks
    scr_elems = TC * TB * 4 * Gp + (T * TB * Gp if L > 1 else 0)
    needed = 4 * (w_elems + blk_elems + scr_elems)
    try:
        vmem_cap = int(pltpu.get_tpu_info().vmem_capacity_bytes)
    except Exception:
        vmem_cap = 64 * 1024 * 1024
    vmem_limit = int(min(vmem_cap, max(2 * needed + (16 << 20), 32 << 20)))

    kernel = functools.partial(_lstm_fc_kernel, num_layers=L, use_bf16=use_bf16)

    out_p = pl.pallas_call(
        kernel,
        out_shape=jax.ShapeDtypeStruct((Bp, Cp), jnp.float32),
        grid_spec=pltpu.PrefetchScalarGridSpec(
            num_scalar_prefetch=0,
            grid=(nbt,),
            in_specs=in_specs,
            out_specs=pl.BlockSpec((TB, Cp), lambda b: (b, 0)),
            scratch_shapes=scratch_shapes,
        ),
        compiler_params=pltpu.CompilerParams(
            dimension_semantics=("parallel",),
            vmem_limit_bytes=vmem_limit),
    )(*inputs)
    return out_p


def rnn_forward(x, params, *, batch_tile=None, chunk_steps=64,
                use_bf16_matmul=False):
    """x: (B, T, I) batch_first. Returns (B, num_classes) logits."""
    B = x.shape[0]
    args = (x, params["w_ih0"], params["b0"], params["w_ihr"], params["b_r"],
            params["w_hh"], params["fc_w"], params["fc_b"])
    kw = dict(batch_tile=batch_tile, chunk_steps=chunk_steps,
              use_bf16=use_bf16_matmul)
    try:
        # Preferred path: single-buffered constant weight blocks (halves their VMEM).
        out_p = jax.block_until_ready(
            _rnn_forward_impl(*args, single_buffer_weights=True, **kw))
    except Exception:
        # Fallback for JAX builds without BlockSpec(pipeline_mode=pl.Buffered(1)).
        out_p = _rnn_forward_impl(*args, single_buffer_weights=False, **kw)
    return out_p[:B, :params["C"]]


# --------------------- Deterministic parameter init ------------------------ #
def init_params(key, input_size, hidden_size, num_layers, num_classes):
    H = hidden_size
    keys = jax.random.split(key, 4 * num_layers + 2)
    k = 1.0 / jnp.sqrt(jnp.float32(H))
    lstm_pt = []
    idx = 0
    for l in range(num_layers):
        in_dim = input_size if l == 0 else H
        w_ih = jax.random.uniform(keys[idx], (4 * H, in_dim), jnp.float32, -k, k); idx += 1
        w_hh = jax.random.uniform(keys[idx], (4 * H, H), jnp.float32, -k, k); idx += 1
        b_ih = jax.random.uniform(keys[idx], (4 * H,), jnp.float32, -k, k); idx += 1
        b_hh = jax.random.uniform(keys[idx], (4 * H,), jnp.float32, -k, k); idx += 1
        lstm_pt.append((w_ih, w_hh, b_ih, b_hh))
    fc_w = jax.random.uniform(keys[idx], (num_classes, H), jnp.float32, -k, k); idx += 1
    fc_b = jax.random.uniform(keys[idx], (num_classes,), jnp.float32, -k, k); idx += 1
    return lstm_pt, (fc_w, fc_b)


# --------------------------- Pure-JAX reference ----------------------------- #
def rnn_reference(x, lstm_pt, fc_pt, hidden_size):
    B, T, _ = x.shape
    H = hidden_size
    h_seq = x
    for (w_ih, w_hh, b_ih, b_hh) in lstm_pt:
        h = jnp.zeros((B, H), jnp.float32)
        c = jnp.zeros((B, H), jnp.float32)
        outs = []
        for t in range(T):
            gates = h_seq[:, t, :] @ w_ih.T + h @ w_hh.T + b_ih + b_hh
            i = jax.nn.sigmoid(gates[:, 0 * H:1 * H])
            f = jax.nn.sigmoid(gates[:, 1 * H:2 * H])
            g = jnp.tanh(gates[:, 2 * H:3 * H])
            o = jax.nn.sigmoid(gates[:, 3 * H:4 * H])
            c = f * c + i * g
            h = o * jnp.tanh(c)
            outs.append(h)
        h_seq = jnp.stack(outs, axis=1)
    fc_w, fc_b = fc_pt
    return h_seq[:, -1, :] @ fc_w.T + fc_b


# --------------------------------- Main ------------------------------------- #
if __name__ == "__main__":
    input_size = 1          # fixed to 1 in the original script
    hidden_size = 32
    num_layers = 2
    num_classes = 4
    batch, seq_len = 2, 8

    key = jax.random.PRNGKey(0)
    kx, kp = jax.random.split(key)
    x = jax.random.normal(kx, (batch, seq_len, input_size), jnp.float32)

    lstm_pt, fc_pt = init_params(kp, input_size, hidden_size, num_layers, num_classes)
    kernel_params = pack_params(lstm_pt, fc_pt, input_size, hidden_size, num_classes)

    out = rnn_forward(x, kernel_params)
    out = jax.block_until_ready(out)

    ref = rnn_reference(x, lstm_pt, fc_pt, hidden_size)
    assert out.shape == (batch, num_classes)
    assert jnp.allclose(out, ref, rtol=2e-3, atol=2e-3), (out, ref)

    print("KERNEL_OK")
</pallas_src>

<mosaic_0001>
module attributes {stable_mosaic.version = 11 : i64} {
  func.func @_lstm_fc_kernel(%arg0: i32, %arg1: memref<8x8x128xf32, #tpu.memory_space<vmem>>, %arg2: memref<128x512xf32, #tpu.memory_space<vmem>>, %arg3: memref<1x512xf32, #tpu.memory_space<vmem>>, %arg4: memref<1x128x512xf32, #tpu.memory_space<vmem>>, %arg5: memref<1x1x512xf32, #tpu.memory_space<vmem>>, %arg6: memref<2x128x512xf32, #tpu.memory_space<vmem>>, %arg7: memref<128x128xf32, #tpu.memory_space<vmem>>, %arg8: memref<1x128xf32, #tpu.memory_space<vmem>>, %arg9: memref<8x128xf32, #tpu.memory_space<vmem>>, %arg10: memref<64x128xf32, #tpu.memory_space<vmem>>, %arg11: memref<64x512xf32, #tpu.memory_space<vmem>>) attributes {dimension_semantics = [#tpu.dimension_semantics<parallel>], iteration_bounds = array<i64: 1>, scalar_prefetch = 0 : i64, scratch_operands = 2 : i64, tpu.core_type = #tpu.core_type<tc>, window_params = [{transform_indices = @transform_0, window_bounds = array<i64: 8, 8, 128>}, {pipeline_mode = #tpu.pipeline_mode<synchronous>, transform_indices = @transform_1, window_bounds = array<i64: 128, 512>}, {pipeline_mode = #tpu.pipeline_mode<synchronous>, transform_indices = @transform_2, window_bounds = array<i64: 1, 512>}, {pipeline_mode = #tpu.pipeline_mode<synchronous>, transform_indices = @transform_3, window_bounds = array<i64: 1, 128, 512>}, {pipeline_mode = #tpu.pipeline_mode<synchronous>, transform_indices = @transform_4, window_bounds = array<i64: 1, 1, 512>}, {pipeline_mode = #tpu.pipeline_mode<synchronous>, transform_indices = @transform_5, window_bounds = array<i64: 2, 128, 512>}, {pipeline_mode = #tpu.pipeline_mode<synchronous>, transform_indices = @transform_6, window_bounds = array<i64: 128, 128>}, {pipeline_mode = #tpu.pipeline_mode<synchronous>, transform_indices = @transform_7, window_bounds = array<i64: 1, 128>}, {transform_indices = @transform_8, window_bounds = array<i64: 8, 128>}]} {
    %c0 = arith.constant 0 : index
    %c0_0 = arith.constant 0 : index
    %0 = vector.load %arg2[%c0, %c0_0] : memref<128x512xf32, #tpu.memory_space<vmem>>, vector<128x512xf32>
    %c0_1 = arith.constant 0 : index
    %c0_2 = arith.constant 0 : index
    %1 = vector.load %arg3[%c0_1, %c0_2] : memref<1x512xf32, #tpu.memory_space<vmem>>, vector<1x512xf32>
    %c0_3 = arith.constant 0 : index
    %c0_4 = arith.constant 0 : index
    %c0_5 = arith.constant 0 : index
    %2 = vector.load %arg6[%c0_3, %c0_4, %c0_5] : memref<2x128x512xf32, #tpu.memory_space<vmem>>, vector<1x128x512xf32>
    %3 = vector.shape_cast %2 : vector<1x128x512xf32> to vector<128x512xf32>
    %cst = arith.constant 0.000000e+00 : f32
    %4 = vector.broadcast %cst : f32 to vector<8x128xf32>
    %c0_6 = arith.constant 0 : index
    %c0_7 = arith.constant 0 : index
    %c0_8 = arith.constant 0 : index
    %5 = vector.load %arg1[%c0_6, %c0_7, %c0_8] : memref<8x8x128xf32, #tpu.memory_space<vmem>>, vector<8x8x128xf32>
    %6 = vector.shape_cast %5 : vector<8x8x128xf32> to vector<64x128xf32>
    %cst_9 = arith.constant dense<0.000000e+00> : vector<64x512xf32>
    %7 = tpu.matmul %6, %0, %cst_9 {dimension_numbers = #tpu.dot_dimension_numbers<[1], [0], [0], [1], [0, 0, 1, 1], [], []>} : vector<64x128xf32>, vector<128x512xf32>, vector<64x512xf32> -> vector<64x512xf32>
    %8 = vector.broadcast %1 : vector<1x512xf32> to vector<64x512xf32>
    %9 = arith.addf %7, %8 : vector<64x512xf32>
    %c0_10 = arith.constant 0 : index
    %c0_11 = arith.constant 0 : index
    %10 = vector.load %arg11[%c0_10, %c0_11] : memref<64x512xf32, #tpu.memory_space<vmem>>, vector<64x512xf32>
    tpu.vector_store %arg11[%c0_10, %c0_11], %9 {strides = array<i32>} : memref<64x512xf32, #tpu.memory_space<vmem>>, vector<64x512xf32>,
    %c0_i32 = arith.constant 0 : i32
    %c8_i32 = arith.constant 8 : i32
    %11 = arith.muli %c0_i32, %c8_i32 : i32
    %12 = tpu.assume_multiple %11, 8 : i32
    %cst_12 = arith.constant dense<0.000000e+00> : vector<8x512xf32>
    %13 = tpu.matmul %4, %3, %cst_12 {dimension_numbers = #tpu.dot_dimension_numbers<[1], [0], [0], [1], [0, 0, 1, 1], [], []>} : vector<8x128xf32>, vector<128x512xf32>, vector<8x512xf32> -> vector<8x512xf32>
    %14 = arith.index_cast %12 : i32 to index
    %c0_13 = arith.constant 0 : index
    %15 = vector.load %arg11[%14, %c0_13] : memref<64x512xf32, #tpu.memory_space<vmem>>, vector<8x512xf32>
    %16 = arith.addf %13, %15 : vector<8x512xf32>
    %17 = vector.extract_strided_slice %16 {offsets = [0, 0], sizes = [8, 128], strides = [1, 1]} : vector<8x512xf32> to vector<8x128xf32>
    %cst_14 = arith.constant 5.000000e-01 : f32
    %18 = vector.broadcast %cst_14 : f32 to vector<8x128xf32>
    %19 = arith.mulf %18, %17 : vector<8x128xf32>
    %20 = math.tanh %19 : vector<8x128xf32>
    %cst_15 = arith.constant 5.000000e-01 : f32
    %21 = vector.broadcast %cst_15 : f32 to vector<8x128xf32>
    %22 = arith.mulf %21, %20 : vector<8x128xf32>
    %cst_16 = arith.constant 5.000000e-01 : f32
    %23 = vector.broadcast %cst_16 : f32 to vector<8x128xf32>
    %24 = arith.addf %22, %23 : vector<8x128xf32>
    %25 = vector.extract_strided_slice %16 {offsets = [0, 128], sizes = [8, 128], strides = [1, 1]} : vector<8x512xf32> to vector<8x128xf32>
    %cst_17 = arith.constant 5.000000e-01 : f32
    %26 = vector.broadcast %cst_17 : f32 to vector<8x128xf32>
    %27 = arith.mulf %26, %25 : vector<8x128xf32>
    %28 = math.tanh %27 : vector<8x128xf32>
    %cst_18 = arith.constant 5.000000e-01 : f32
    %29 = vector.broadcast %cst_18 : f32 to vector<8x128xf32>
    %30 = arith.mulf %29, %28 : vector<8x128xf32>
    %cst_19 = arith.constant 5.000000e-01 : f32
    %31 = vector.broadcast %cst_19 : f32 to vector<8x128xf32>
    %32 = arith.addf %30, %31 : vector<8x128xf32>
    %33 = vector.extract_strided_slice %16 {offsets = [0, 256], sizes = [8, 128], strides = [1, 1]} : vector<8x512xf32> to vector<8x128xf32>
    %34 = math.tanh %33 : vector<8x128xf32>
    %35 = vector.extract_strided_slice %16 {offsets = [0, 384], sizes = [8, 128], strides = [1, 1]} : vector<8x512xf32> to vector<8x128xf32>
    %cst_20 = arith.constant 5.000000e-01 : f32
    %36 = vector.broadcast %cst_20 : f32 to vector<8x128xf32>
    %37 = arith.mulf %36, %35 : vector<8x128xf32>
    %38 = math.tanh %37 : vector<8x128xf32>
    %cst_21 = arith.constant 5.000000e-01 : f32
    %39 = vector.broadcast %cst_21 : f32 to vector<8x128xf32>
    %40 = arith.mulf %39, %38 : vector<8x128xf32>
    %cst_22 = arith.constant 5.000000e-01 : f32
    %41 = vector.broadcast %cst_22 : f32 to vector<8x128xf32>
    %42 = arith.addf %40, %41 : vector<8x128xf32>
    %43 = arith.mulf %32, %4 : vector<8x128xf32>
    %44 = arith.mulf %24, %34 : vector<8x128xf32>
    %45 = arith.addf %43, %44 : vector<8x128xf32>
    %46 = math.tanh %45 : vector<8x128xf32>
    %47 = arith.mulf %42, %46 : vector<8x128xf32>
    %c0_i32_23 = arith.constant 0 : i32
    %48 = arith.addi %c0_i32_23, %c0_i32 : i32
    %c8_i32_24 = arith.constant 8 : i32
    %49 = arith.muli %48, %c8_i32_24 : i32
    %50 = tpu.assume_multiple %49, 8 : i32
    %51 = arith.index_cast %50 : i32 to index
    %c0_25 = arith.constant 0 : index
    %52 = vector.load %arg10[%51, %c0_25] : memref<64x128xf32, #tpu.memory_space<vmem>>, vector<8x128xf32>
    tpu.vector_store %arg10[%51, %c0_25], %47 {strides = array<i32>} : memref<64x128xf32, #tpu.memory_space<vmem>>, vector<8x128xf32>,
    %c1_i32 = arith.constant 1 : i32
    %c8_i32_26 = arith.constant 8 : i32
    %53 = arith.muli %c1_i32, %c8_i32_26 : i32
    %54 = tpu.assume_multiple %53, 8 : i32
    %cst_27 = arith.constant dense<0.000000e+00> : vector<8x512xf32>
    %55 = tpu.matmul %47, %3, %cst_27 {dimension_numbers = #tpu.dot_dimension_numbers<[1], [0], [0], [1], [0, 0, 1, 1], [], []>} : vector<8x128xf32>, vector<128x512xf32>, vector<8x512xf32> -> vector<8x512xf32>
    %56 = arith.index_cast %54 : i32 to index
    %c0_28 = arith.constant 0 : index
    %57 = vector.load %arg11[%56, %c0_28] : memref<64x512xf32, #tpu.memory_space<vmem>>, vector<8x512xf32>
    %58 = arith.addf %55, %57 : vector<8x512xf32>
    %59 = vector.extract_strided_slice %58 {offsets = [0, 0], sizes = [8, 128], strides = [1, 1]} : vector<8x512xf32> to vector<8x128xf32>
    %cst_29 = arith.constant 5.000000e-01 : f32
    %60 = vector.broadcast %cst_29 : f32 to vector<8x128xf32>
    %61 = arith.mulf %60, %59 : vector<8x128xf32>
    %62 = math.tanh %61 : vector<8x128xf32>
    %cst_30 = arith.constant 5.000000e-01 : f32
    %63 = vector.broadcast %cst_30 : f32 to vector<8x128xf32>
    %64 = arith.mulf %63, %62 : vector<8x128xf32>
    %cst_31 = arith.constant 5.000000e-01 : f32
    %65 = vector.broadcast %cst_31 : f32 to vector<8x128xf32>
    %66 = arith.addf %64, %65 : vector<8x128xf32>
    %67 = vector.extract_strided_slice %58 {offsets = [0, 128], sizes = [8, 128], strides = [1, 1]} : vector<8x512xf32> to vector<8x128xf32>
    %cst_32 = arith.constant 5.000000e-01 : f32
    %68 = vector.broadcast %cst_32 : f32 to vector<8x128xf32>
    %69 = arith.mulf %68, %67 : vector<8x128xf32>
    %70 = math.tanh %69 : vector<8x128xf32>
    %cst_33 = arith.constant 5.000000e-01 : f32
    %71 = vector.broadcast %cst_33 : f32 to vector<8x128xf32>
    %72 = arith.mulf %71, %70 : vector<8x128xf32>
    %cst_34 = arith.constant 5.000000e-01 : f32
    %73 = vector.broadcast %cst_34 : f32 to vector<8x128xf32>
    %74 = arith.addf %72, %73 : vector<8x128xf32>
    %75 = vector.extract_strided_slice %58 {offsets = [0, 256], sizes = [8, 128], strides = [1, 1]} : vector<8x512xf32> to vector<8x128xf32>
    %76 = math.tanh %75 : vector<8x128xf32>
    %77 = vector.extract_strided_slice %58 {offsets = [0, 384], sizes = [8, 128], strides = [1, 1]} : vector<8x512xf32> to vector<8x128xf32>
    %cst_35 = arith.constant 5.000000e-01 : f32
    %78 = vector.broadcast %cst_35 : f32 to vector<8x128xf32>
    %79 = arith.mulf %78, %77 : vector<8x128xf32>
    %80 = math.tanh %79 : vector<8x128xf32>
    %cst_36 = arith.constant 5.000000e-01 : f32
    %81 = vector.broadcast %cst_36 : f32 to vector<8x128xf32>
    %82 = arith.mulf %81, %80 : vector<8x128xf32>
    %cst_37 = arith.constant 5.000000e-01 : f32
    %83 = vector.broadcast %cst_37 : f32 to vector<8x128xf32>
    %84 = arith.addf %82, %83 : vector<8x128xf32>
    %85 = arith.mulf %74, %45 : vector<8x128xf32>
    %86 = arith.mulf %66, %76 : vector<8x128xf32>
    %87 = arith.addf %85, %86 : vector<8x128xf32>
    %88 = math.tanh %87 : vector<8x128xf32>
    %89 = arith.mulf %84, %88 : vector<8x128xf32>
    %c0_i32_38 = arith.constant 0 : i32
    %90 = arith.addi %c0_i32_38, %c1_i32 : i32
    %c8_i32_39 = arith.constant 8 : i32
    %91 = arith.muli %90, %c8_i32_39 : i32
    %92 = tpu.assume_multiple %91, 8 : i32
    %93 = arith.index_cast %92 : i32 to index
    %c0_40 = arith.constant 0 : index
    %94 = vector.load %arg10[%93, %c0_40] : memref<64x128xf32, #tpu.memory_space<vmem>>, vector<8x128xf32>
    tpu.vector_store %arg10[%93, %c0_40], %89 {strides = array<i32>} : memref<64x128xf32, #tpu.memory_space<vmem>>, vector<8x128xf32>,
    %c2_i32 = arith.constant 2 : i32
    %c8_i32_41 = arith.constant 8 : i32
    %95 = arith.muli %c2_i32, %c8_i32_41 : i32
    %96 = tpu.assume_multiple %95, 8 : i32
    %cst_42 = arith.constant dense<0.000000e+00> : vector<8x512xf32>
    %97 = tpu.matmul %89, %3, %cst_42 {dimension_numbers = #tpu.dot_dimension_numbers<[1], [0], [0], [1], [0, 0, 1, 1], [], []>} : vector<8x128xf32>, vector<128x512xf32>, vector<8x512xf32> -> vector<8x512xf32>
    %98 = arith.index_cast %96 : i32 to index
    %c0_43 = arith.constant 0 : index
    %99 = vector.load %arg11[%98, %c0_43] : memref<64x512xf32, #tpu.memory_space<vmem>>, vector<8x512xf32>
    %100 = arith.addf %97, %99 : vector<8x512xf32>
    %101 = vector.extract_strided_slice %100 {offsets = [0, 0], sizes = [8, 128], strides = [1, 1]} : vector<8x512xf32> to vector<8x128xf32>
    %cst_44 = arith.constant 5.000000e-01 : f32
    %102 = vector.broadcast %cst_44 : f32 to vector<8x128xf32>
    %103 = arith.mulf %102, %101 : vector<8x128xf32>
    %104 = math.tanh %103 : vector<8x128xf32>
    %cst_45 = arith.constant 5.000000e-01 : f32
    %105 = vector.broadcast %cst_45 : f32 to vector<8x128xf32>
    %106 = arith.mulf %105, %104 : vector<8x128xf32>
    %cst_46 = arith.constant 5.000000e-01 : f32
    %107 = vector.broadcast %cst_46 : f32 to vector<8x128xf32>
    %108 = arith.addf %106, %107 : vector<8x128xf32>
    %109 = vector.extract_strided_slice %100 {offsets = [0, 128], sizes = [8, 128], strides = [1, 1]} : vector<8x512xf32> to vector<8x128xf32>
    %cst_47 = arith.constant 5.000000e-01 : f32
    %110 = vector.broadcast %cst_47 : f32 to vector<8x128xf32>
    %111 = arith.mulf %110, %109 : vector<8x128xf32>
    %112 = math.tanh %111 : vector<8x128xf32>
    %cst_48 = arith.constant 5.000000e-01 : f32
    %113 = vector.broadcast %cst_48 : f32 to vector<8x128xf32>
    %114 = arith.mulf %113, %112 : vector<8x128xf32>
    %cst_49 = arith.constant 5.000000e-01 : f32
    %115 = vector.broadcast %cst_49 : f32 to vector<8x128xf32>
    %116 = arith.addf %114, %115 : vector<8x128xf32>
    %117 = vector.extract_strided_slice %100 {offsets = [0, 256], sizes = [8, 128], strides = [1, 1]} : vector<8x512xf32> to vector<8x128xf32>
    %118 = math.tanh %117 : vector<8x128xf32>
    %119 = vector.extract_strided_slice %100 {offsets = [0, 384], sizes = [8, 128], strides = [1, 1]} : vector<8x512xf32> to vector<8x128xf32>
    %cst_50 = arith.constant 5.000000e-01 : f32
    %120 = vector.broadcast %cst_50 : f32 to vector<8x128xf32>
    %121 = arith.mulf %120, %119 : vector<8x128xf32>
    %122 = math.tanh %121 : vector<8x128xf32>
    %cst_51 = arith.constant 5.000000e-01 : f32
    %123 = vector.broadcast %cst_51 : f32 to vector<8x128xf32>
    %124 = arith.mulf %123, %122 : vector<8x128xf32>
    %cst_52 = arith.constant 5.000000e-01 : f32
    %125 = vector.broadcast %cst_52 : f32 to vector<8x128xf32>
    %126 = arith.addf %124, %125 : vector<8x128xf32>
    %127 = arith.mulf %116, %87 : vector<8x128xf32>
    %128 = arith.mulf %108, %118 : vector<8x128xf32>
    %129 = arith.addf %127, %128 : vector<8x128xf32>
    %130 = math.tanh %129 : vector<8x128xf32>
    %131 = arith.mulf %126, %130 : vector<8x128xf32>
    %c0_i32_53 = arith.constant 0 : i32
    %132 = arith.addi %c0_i32_53, %c2_i32 : i32
    %c8_i32_54 = arith.constant 8 : i32
    %133 = arith.muli %132, %c8_i32_54 : i32
    %134 = tpu.assume_multiple %133, 8 : i32
    %135 = arith.index_cast %134 : i32 to index
    %c0_55 = arith.constant 0 : index
    %136 = vector.load %arg10[%135, %c0_55] : memref<64x128xf32, #tpu.memory_space<vmem>>, vector<8x128xf32>
    tpu.vector_store %arg10[%135, %c0_55], %131 {strides = array<i32>} : memref<64x128xf32, #tpu.memory_space<vmem>>, vector<8x128xf32>,
    %c3_i32 = arith.constant 3 : i32
    %c8_i32_56 = arith.constant 8 : i32
    %137 = arith.muli %c3_i32, %c8_i32_56 : i32
    %138 = tpu.assume_multiple %137, 8 : i32
    %cst_57 = arith.constant dense<0.000000e+00> : vector<8x512xf32>
    %139 = tpu.matmul %131, %3, %cst_57 {dimension_numbers = #tpu.dot_dimension_numbers<[1], [0], [0], [1], [0, 0, 1, 1], [], []>} : vector<8x128xf32>, vector<128x512xf32>, vector<8x512xf32> -> vector<8x512xf32>
    %140 = arith.index_cast %138 : i32 to index
    %c0_58 = arith.constant 0 : index
    %141 = vector.load %arg11[%140, %c0_58] : memref<64x512xf32, #tpu.memory_space<vmem>>, vector<8x512xf32>
    %142 = arith.addf %139, %141 : vector<8x512xf32>
    %143 = vector.extract_strided_slice %142 {offsets = [0, 0], sizes = [8, 128], strides = [1, 1]} : vector<8x512xf32> to vector<8x128xf32>
    %cst_59 = arith.constant 5.000000e-01 : f32
    %144 = vector.broadcast %cst_59 : f32 to vector<8x128xf32>
    %145 = arith.mulf %144, %143 : vector<8x128xf32>
    %146 = math.tanh %145 : vector<8x128xf32>
    %cst_60 = arith.constant 5.000000e-01 : f32
    %147 = vector.broadcast %cst_60 : f32 to vector<8x128xf32>
    %148 = arith.mulf %147, %146 : vector<8x128xf32>
    %cst_61 = arith.constant 5.000000e-01 : f32
    %149 = vector.broadcast %cst_61 : f32 to vector<8x128xf32>
    %150 = arith.addf %148, %149 : vector<8x128xf32>
    %151 = vector.extract_strided_slice %142 {offsets = [0, 128], sizes = [8, 128], strides = [1, 1]} : vector<8x512xf32> to vector<8x128xf32>
    %cst_62 = arith.constant 5.000000e-01 : f32
    %152 = vector.broadcast %cst_62 : f32 to vector<8x128xf32>
    %153 = arith.mulf %152, %151 : vector<8x128xf32>
    %154 = math.tanh %153 : vector<8x128xf32>
    %cst_63 = arith.constant 5.000000e-01 : f32
    %155 = vector.broadcast %cst_63 : f32 to vector<8x128xf32>
    %156 = arith.mulf %155, %154 : vector<8x128xf32>
    %cst_64 = arith.constant 5.000000e-01 : f32
    %157 = vector.broadcast %cst_64 : f32 to vector<8x128xf32>
    %158 = arith.addf %156, %157 : vector<8x128xf32>
    %159 = vector.extract_strided_slice %142 {offsets = [0, 256], sizes = [8, 128], strides = [1, 1]} : vector<8x512xf32> to vector<8x128xf32>
    %160 = math.tanh %159 : vector<8x128xf32>
    %161 = vector.extract_strided_slice %142 {offsets = [0, 384], sizes = [8, 128], strides = [1, 1]} : vector<8x512xf32> to vector<8x128xf32>
    %cst_65 = arith.constant 5.000000e-01 : f32
    %162 = vector.broadcast %cst_65 : f32 to vector<8x128xf32>
    %163 = arith.mulf %162, %161 : vector<8x128xf32>
    %164 = math.tanh %163 : vector<8x128xf32>
    %cst_66 = arith.constant 5.000000e-01 : f32
    %165 = vector.broadcast %cst_66 : f32 to vector<8x128xf32>
    %166 = arith.mulf %165, %164 : vector<8x128xf32>
    %cst_67 = arith.constant 5.000000e-01 : f32
    %167 = vector.broadcast %cst_67 : f32 to vector<8x128xf32>
    %168 = arith.addf %166, %167 : vector<8x128xf32>
    %169 = arith.mulf %158, %129 : vector<8x128xf32>
    %170 = arith.mulf %150, %160 : vector<8x128xf32>
    %171 = arith.addf %169, %170 : vector<8x128xf32>
    %172 = math.tanh %171 : vector<8x128xf32>
    %173 = arith.mulf %168, %172 : vector<8x128xf32>
    %c0_i32_68 = arith.constant 0 : i32
    %174 = arith.addi %c0_i32_68, %c3_i32 : i32
    %c8_i32_69 = arith.constant 8 : i32
    %175 = arith.muli %174, %c8_i32_69 : i32
    %176 = tpu.assume_multiple %175, 8 : i32
    %177 = arith.index_cast %176 : i32 to index
    %c0_70 = arith.constant 0 : index
    %178 = vector.load %arg10[%177, %c0_70] : memref<64x128xf32, #tpu.memory_space<vmem>>, vector<8x128xf32>
    tpu.vector_store %arg10[%177, %c0_70], %173 {strides = array<i32>} : memref<64x128xf32, #tpu.memory_space<vmem>>, vector<8x128xf32>,
    %c4_i32 = arith.constant 4 : i32
    %c8_i32_71 = arith.constant 8 : i32
    %179 = arith.muli %c4_i32, %c8_i32_71 : i32
    %180 = tpu.assume_multiple %179, 8 : i32
    %cst_72 = arith.constant dense<0.000000e+00> : vector<8x512xf32>
    %181 = tpu.matmul %173, %3, %cst_72 {dimension_numbers = #tpu.dot_dimension_numbers<[1], [0], [0], [1], [0, 0, 1, 1], [], []>} : vector<8x128xf32>, vector<128x512xf32>, vector<8x512xf32> -> vector<8x512xf32>
    %182 = arith.index_cast %180 : i32 to index
    %c0_73 = arith.constant 0 : index
    %183 = vector.load %arg11[%182, %c0_73] : memref<64x512xf32, #tpu.memory_space<vmem>>, vector<8x512xf32>
    %184 = arith.addf %181, %183 : vector<8x512xf32>
    %185 = vector.extract_strided_slice %184 {offsets = [0, 0], sizes = [8, 128], strides = [1, 1]} : vector<8x512xf32> to vector<8x128xf32>
    %cst_74 = arith.constant 5.000000e-01 : f32
    %186 = vector.broadcast %cst_74 : f32 to vector<8x128xf32>
    %187 = arith.mulf %186, %185 : vector<8x128xf32>
    %188 = math.tanh %187 : vector<8x128xf32>
    %cst_75 = arith.constant 5.000000e-01 : f32
    %189 = vector.broadcast %cst_75 : f32 to vector<8x128xf32>
    %190 = arith.mulf %189, %188 : vector<8x128xf32>
    %cst_76 = arith.constant 5.000000e-01 : f32
    %191 = vector.broadcast %cst_76 : f32 to vector<8x128xf32>
    %192 = arith.addf %190, %191 : vector<8x128xf32>
    %193 = vector.extract_strided_slice %184 {offsets = [0, 128], sizes = [8, 128], strides = [1, 1]} : vector<8x512xf32> to vector<8x128xf32>
    %cst_77 = arith.constant 5.000000e-01 : f32
    %194 = vector.broadcast %cst_77 : f32 to vector<8x128xf32>
    %195 = arith.mulf %194, %193 : vector<8x128xf32>
    %196 = math.tanh %195 : vector<8x128xf32>
    %cst_78 = arith.constant 5.000000e-01 : f32
    %197 = vector.broadcast %cst_78 : f32 to vector<8x128xf32>
    %198 = arith.mulf %197, %196 : vector<8x128xf32>
    %cst_79 = arith.constant 5.000000e-01 : f32
    %199 = vector.broadcast %cst_79 : f32 to vector<8x128xf32>
    %200 = arith.addf %198, %199 : vector<8x128xf32>
    %201 = vector.extract_strided_slice %184 {offsets = [0, 256], sizes = [8, 128], strides = [1, 1]} : vector<8x512xf32> to vector<8x128xf32>
    %202 = math.tanh %201 : vector<8x128xf32>
    %203 = vector.extract_strided_slice %184 {offsets = [0, 384], sizes = [8, 128], strides = [1, 1]} : vector<8x512xf32> to vector<8x128xf32>
    %cst_80 = arith.constant 5.000000e-01 : f32
    %204 = vector.broadcast %cst_80 : f32 to vector<8x128xf32>
    %205 = arith.mulf %204, %203 : vector<8x128xf32>
    %206 = math.tanh %205 : vector<8x128xf32>
    %cst_81 = arith.constant 5.000000e-01 : f32
    %207 = vector.broadcast %cst_81 : f32 to vector<8x128xf32>
    %208 = arith.mulf %207, %206 : vector<8x128xf32>
    %cst_82 = arith.constant 5.000000e-01 : f32
    %209 = vector.broadcast %cst_82 : f32 to vector<8x128xf32>
    %210 = arith.addf %208, %209 : vector<8x128xf32>
    %211 = arith.mulf %200, %171 : vector<8x128xf32>
    %212 = arith.mulf %192, %202 : vector<8x128xf32>
    %213 = arith.addf %211, %212 : vector<8x128xf32>
    %214 = math.tanh %213 : vector<8x128xf32>
    %215 = arith.mulf %210, %214 : vector<8x128xf32>
    %c0_i32_83 = arith.constant 0 : i32
    %216 = arith.addi %c0_i32_83, %c4_i32 : i32
    %c8_i32_84 = arith.constant 8 : i32
    %217 = arith.muli %216, %c8_i32_84 : i32
    %218 = tpu.assume_multiple %217, 8 : i32
    %219 = arith.index_cast %218 : i32 to index
    %c0_85 = arith.constant 0 : index
    %220 = vector.load %arg10[%219, %c0_85] : memref<64x128xf32, #tpu.memory_space<vmem>>, vector<8x128xf32>
    tpu.vector_store %arg10[%219, %c0_85], %215 {strides = array<i32>} : memref<64x128xf32, #tpu.memory_space<vmem>>, vector<8x128xf32>,
    %c5_i32 = arith.constant 5 : i32
    %c8_i32_86 = arith.constant 8 : i32
    %221 = arith.muli %c5_i32, %c8_i32_86 : i32
    %222 = tpu.assume_multiple %221, 8 : i32
    %cst_87 = arith.constant dense<0.000000e+00> : vector<8x512xf32>
    %223 = tpu.matmul %215, %3, %cst_87 {dimension_numbers = #tpu.dot_dimension_numbers<[1], [0], [0], [1], [0, 0, 1, 1], [], []>} : vector<8x128xf32>, vector<128x512xf32>, vector<8x512xf32> -> vector<8x512xf32>
    %224 = arith.index_cast %222 : i32 to index
    %c0_88 = arith.constant 0 : index
    %225 = vector.load %arg11[%224, %c0_88] : memref<64x512xf32, #tpu.memory_space<vmem>>, vector<8x512xf32>
    %226 = arith.addf %223, %225 : vector<8x512xf32>
    %227 = vector.extract_strided_slice %226 {offsets = [0, 0], sizes = [8, 128], strides = [1, 1]} : vector<8x512xf32> to vector<8x128xf32>
    %cst_89 = arith.constant 5.000000e-01 : f32
    %228 = vector.broadcast %cst_89 : f32 to vector<8x128xf32>
    %229 = arith.mulf %228, %227 : vector<8x128xf32>
    %230 = math.tanh %229 : vector<8x128xf32>
    %cst_90 = arith.constant 5.000000e-01 : f32
    %231 = vector.broadcast %cst_90 : f32 to vector<8x128xf32>
    %232 = arith.mulf %231, %230 : vector<8x128xf32>
    %cst_91 = arith.constant 5.000000e-01 : f32
    %233 = vector.broadcast %cst_91 : f32 to vector<8x128xf32>
    %234 = arith.addf %232, %233 : vector<8x128xf32>
    %235 = vector.extract_strided_slice %226 {offsets = [0, 128], sizes = [8, 128], strides = [1, 1]} : vector<8x512xf32> to vector<8x128xf32>
    %cst_92 = arith.constant 5.000000e-01 : f32
    %236 = vector.broadcast %cst_92 : f32 to vector<8x128xf32>
    %237 = arith.mulf %236, %235 : vector<8x128xf32>
    %238 = math.tanh %237 : vector<8x128xf32>
    %cst_93 = arith.constant 5.000000e-01 : f32
    %239 = vector.broadcast %cst_93 : f32 to vector<8x128xf32>
    %240 = arith.mulf %239, %238 : vector<8x128xf32>
    %cst_94 = arith.constant 5.000000e-01 : f32
    %241 = vector.broadcast %cst_94 : f32 to vector<8x128xf32>
    %242 = arith.addf %240, %241 : vector<8x128xf32>
    %243 = vector.extract_strided_slice %226 {offsets = [0, 256], sizes = [8, 128], strides = [1, 1]} : vector<8x512xf32> to vector<8x128xf32>
    %244 = math.tanh %243 : vector<8x128xf32>
    %245 = vector.extract_strided_slice %226 {offsets = [0, 384], sizes = [8, 128], strides = [1, 1]} : vector<8x512xf32> to vector<8x128xf32>
    %cst_95 = arith.constant 5.000000e-01 : f32
    %246 = vector.broadcast %cst_95 : f32 to vector<8x128xf32>
    %247 = arith.mulf %246, %245 : vector<8x128xf32>
    %248 = math.tanh %247 : vector<8x128xf32>
    %cst_96 = arith.constant 5.000000e-01 : f32
    %249 = vector.broadcast %cst_96 : f32 to vector<8x128xf32>
    %250 = arith.mulf %249, %248 : vector<8x128xf32>
    %cst_97 = arith.constant 5.000000e-01 : f32
    %251 = vector.broadcast %cst_97 : f32 to vector<8x128xf32>
    %252 = arith.addf %250, %251 : vector<8x128xf32>
    %253 = arith.mulf %242, %213 : vector<8x128xf32>
    %254 = arith.mulf %234, %244 : vector<8x128xf32>
    %255 = arith.addf %253, %254 : vector<8x128xf32>
    %256 = math.tanh %255 : vector<8x128xf32>
    %257 = arith.mulf %252, %256 : vector<8x128xf32>
    %c0_i32_98 = arith.constant 0 : i32
    %258 = arith.addi %c0_i32_98, %c5_i32 : i32
    %c8_i32_99 = arith.constant 8 : i32
    %259 = arith.muli %258, %c8_i32_99 : i32
    %260 = tpu.assume_multiple %259, 8 : i32
    %261 = arith.index_cast %260 : i32 to index
    %c0_100 = arith.constant 0 : index
    %262 = vector.load %arg10[%261, %c0_100] : memref<64x128xf32, #tpu.memory_space<vmem>>, vector<8x128xf32>
    tpu.vector_store %arg10[%261, %c0_100], %257 {strides = array<i32>} : memref<64x128xf32, #tpu.memory_space<vmem>>, vector<8x128xf32>,
    %c6_i32 = arith.constant 6 : i32
    %c8_i32_101 = arith.constant 8 : i32
    %263 = arith.muli %c6_i32, %c8_i32_101 : i32
    %264 = tpu.assume_multiple %263, 8 : i32
    %cst_102 = arith.constant dense<0.000000e+00> : vector<8x512xf32>
    %265 = tpu.matmul %257, %3, %cst_102 {dimension_numbers = #tpu.dot_dimension_numbers<[1], [0], [0], [1], [0, 0, 1, 1], [], []>} : vector<8x128xf32>, vector<128x512xf32>, vector<8x512xf32> -> vector<8x512xf32>
    %266 = arith.index_cast %264 : i32 to index
    %c0_103 = arith.constant 0 : index
    %267 = vector.load %arg11[%266, %c0_103] : memref<64x512xf32, #tpu.memory_space<vmem>>, vector<8x512xf32>
    %268 = arith.addf %265, %267 : vector<8x512xf32>
    %269 = vector.extract_strided_slice %268 {offsets = [0, 0], sizes = [8, 128], strides = [1, 1]} : vector<8x512xf32> to vector<8x128xf32>
    %cst_104 = arith.constant 5.000000e-01 : f32
    %270 = vector.broadcast %cst_104 : f32 to vector<8x128xf32>
    %271 = arith.mulf %270, %269 : vector<8x128xf32>
    %272 = math.tanh %271 : vector<8x128xf32>
    %cst_105 = arith.constant 5.000000e-01 : f32
    %273 = vector.broadcast %cst_105 : f32 to vector<8x128xf32>
    %274 = arith.mulf %273, %272 : vector<8x128xf32>
    %cst_106 = arith.constant 5.000000e-01 : f32
    %275 = vector.broadcast %cst_106 : f32 to vector<8x128xf32>
    %276 = arith.addf %274, %275 : vector<8x128xf32>
    %277 = vector.extract_strided_slice %268 {offsets = [0, 128], sizes = [8, 128], strides = [1, 1]} : vector<8x512xf32> to vector<8x128xf32>
    %cst_107 = arith.constant 5.000000e-01 : f32
    %278 = vector.broadcast %cst_107 : f32 to vector<8x128xf32>
    %279 = arith.mulf %278, %277 : vector<8x128xf32>
    %280 = math.tanh %279 : vector<8x128xf32>
    %cst_108 = arith.constant 5.000000e-01 : f32
    %281 = vector.broadcast %cst_108 : f32 to vector<8x128xf32>
    %282 = arith.mulf %281, %280 : vector<8x128xf32>
    %cst_109 = arith.constant 5.000000e-01 : f32
    %283 = vector.broadcast %cst_109 : f32 to vector<8x128xf32>
    %284 = arith.addf %282, %283 : vector<8x128xf32>
    %285 = vector.extract_strided_slice %268 {offsets = [0, 256], sizes = [8, 128], strides = [1, 1]} : vector<8x512xf32> to vector<8x128xf32>
    %286 = math.tanh %285 : vector<8x128xf32>
    %287 = vector.extract_strided_slice %268 {offsets = [0, 384], sizes = [8, 128], strides = [1, 1]} : vector<8x512xf32> to vector<8x128xf32>
    %cst_110 = arith.constant 5.000000e-01 : f32
    %288 = vector.broadcast %cst_110 : f32 to vector<8x128xf32>
    %289 = arith.mulf %288, %287 : vector<8x128xf32>
    %290 = math.tanh %289 : vector<8x128xf32>
    %cst_111 = arith.constant 5.000000e-01 : f32
    %291 = vector.broadcast %cst_111 : f32 to vector<8x128xf32>
    %292 = arith.mulf %291, %290 : vector<8x128xf32>
    %cst_112 = arith.constant 5.000000e-01 : f32
    %293 = vector.broadcast %cst_112 : f32 to vector<8x128xf32>
    %294 = arith.addf %292, %293 : vector<8x128xf32>
    %295 = arith.mulf %284, %255 : vector<8x128xf32>
    %296 = arith.mulf %276, %286 : vector<8x128xf32>
    %297 = arith.addf %295, %296 : vector<8x128xf32>
    %298 = math.tanh %297 : vector<8x128xf32>
    %299 = arith.mulf %294, %298 : vector<8x128xf32>
    %c0_i32_113 = arith.constant 0 : i32
    %300 = arith.addi %c0_i32_113, %c6_i32 : i32
    %c8_i32_114 = arith.constant 8 : i32
    %301 = arith.muli %300, %c8_i32_114 : i32
    %302 = tpu.assume_multiple %301, 8 : i32
    %303 = arith.index_cast %302 : i32 to index
    %c0_115 = arith.constant 0 : index
    %304 = vector.load %arg10[%303, %c0_115] : memref<64x128xf32, #tpu.memory_space<vmem>>, vector<8x128xf32>
    tpu.vector_store %arg10[%303, %c0_115], %299 {strides = array<i32>} : memref<64x128xf32, #tpu.memory_space<vmem>>, vector<8x128xf32>,
    %c7_i32 = arith.constant 7 : i32
    %c8_i32_116 = arith.constant 8 : i32
    %305 = arith.muli %c7_i32, %c8_i32_116 : i32
    %306 = tpu.assume_multiple %305, 8 : i32
    %cst_117 = arith.constant dense<0.000000e+00> : vector<8x512xf32>
    %307 = tpu.matmul %299, %3, %cst_117 {dimension_numbers = #tpu.dot_dimension_numbers<[1], [0], [0], [1], [0, 0, 1, 1], [], []>} : vector<8x128xf32>, vector<128x512xf32>, vector<8x512xf32> -> vector<8x512xf32>
    %308 = arith.index_cast %306 : i32 to index
    %c0_118 = arith.constant 0 : index
    %309 = vector.load %arg11[%308, %c0_118] : memref<64x512xf32, #tpu.memory_space<vmem>>, vector<8x512xf32>
    %310 = arith.addf %307, %309 : vector<8x512xf32>
    %311 = vector.extract_strided_slice %310 {offsets = [0, 0], sizes = [8, 128], strides = [1, 1]} : vector<8x512xf32> to vector<8x128xf32>
    %cst_119 = arith.constant 5.000000e-01 : f32
    %312 = vector.broadcast %cst_119 : f32 to vector<8x128xf32>
    %313 = arith.mulf %312, %311 : vector<8x128xf32>
    %314 = math.tanh %313 : vector<8x128xf32>
    %cst_120 = arith.constant 5.000000e-01 : f32
    %315 = vector.broadcast %cst_120 : f32 to vector<8x128xf32>
    %316 = arith.mulf %315, %314 : vector<8x128xf32>
    %cst_121 = arith.constant 5.000000e-01 : f32
    %317 = vector.broadcast %cst_121 : f32 to vector<8x128xf32>
    %318 = arith.addf %316, %317 : vector<8x128xf32>
    %319 = vector.extract_strided_slice %310 {offsets = [0, 128], sizes = [8, 128], strides = [1, 1]} : vector<8x512xf32> to vector<8x128xf32>
    %cst_122 = arith.constant 5.000000e-01 : f32
    %320 = vector.broadcast %cst_122 : f32 to vector<8x128xf32>
    %321 = arith.mulf %320, %319 : vector<8x128xf32>
    %322 = math.tanh %321 : vector<8x128xf32>
    %cst_123 = arith.constant 5.000000e-01 : f32
    %323 = vector.broadcast %cst_123 : f32 to vector<8x128xf32>
    %324 = arith.mulf %323, %322 : vector<8x128xf32>
    %cst_124 = arith.constant 5.000000e-01 : f32
    %325 = vector.broadcast %cst_124 : f32 to vector<8x128xf32>
    %326 = arith.addf %324, %325 : vector<8x128xf32>
    %327 = vector.extract_strided_slice %310 {offsets = [0, 256], sizes = [8, 128], strides = [1, 1]} : vector<8x512xf32> to vector<8x128xf32>
    %328 = math.tanh %327 : vector<8x128xf32>
    %329 = vector.extract_strided_slice %310 {offsets = [0, 384], sizes = [8, 128], strides = [1, 1]} : vector<8x512xf32> to vector<8x128xf32>
    %cst_125 = arith.constant 5.000000e-01 : f32
    %330 = vector.broadcast %cst_125 : f32 to vector<8x128xf32>
    %331 = arith.mulf %330, %329 : vector<8x128xf32>
    %332 = math.tanh %331 : vector<8x128xf32>
    %cst_126 = arith.constant 5.000000e-01 : f32
    %333 = vector.broadcast %cst_126 : f32 to vector<8x128xf32>
    %334 = arith.mulf %333, %332 : vector<8x128xf32>
    %cst_127 = arith.constant 5.000000e-01 : f32
    %335 = vector.broadcast %cst_127 : f32 to vector<8x128xf32>
    %336 = arith.addf %334, %335 : vector<8x128xf32>
    %337 = arith.mulf %326, %297 : vector<8x128xf32>
    %338 = arith.mulf %318, %328 : vector<8x128xf32>
    %339 = arith.addf %337, %338 : vector<8x128xf32>
    %340 = math.tanh %339 : vector<8x128xf32>
    %341 = arith.mulf %336, %340 : vector<8x128xf32>
    %c0_i32_128 = arith.constant 0 : i32
    %342 = arith.addi %c0_i32_128, %c7_i32 : i32
    %c8_i32_129 = arith.constant 8 : i32
    %343 = arith.muli %342, %c8_i32_129 : i32
    %344 = tpu.assume_multiple %343, 8 : i32
    %345 = arith.index_cast %344 : i32 to index
    %c0_130 = arith.constant 0 : index
    %346 = vector.load %arg10[%345, %c0_130] : memref<64x128xf32, #tpu.memory_space<vmem>>, vector<8x128xf32>
    tpu.vector_store %arg10[%345, %c0_130], %341 {strides = array<i32>} : memref<64x128xf32, #tpu.memory_space<vmem>>, vector<8x128xf32>,
    %c8_i32_131 = arith.constant 8 : i32
    %c0_132 = arith.constant 0 : index
    %c0_133 = arith.constant 0 : index
    %c0_134 = arith.constant 0 : index
    %347 = vector.load %arg4[%c0_132, %c0_133, %c0_134] : memref<1x128x512xf32, #tpu.memory_space<vmem>>, vector<1x128x512xf32>
    %348 = vector.shape_cast %347 : vector<1x128x512xf32> to vector<128x512xf32>
    %c0_135 = arith.constant 0 : index
    %c0_136 = arith.constant 0 : index
    %c0_137 = arith.constant 0 : index
    %349 = vector.load %arg5[%c0_135, %c0_136, %c0_137] : memref<1x1x512xf32, #tpu.memory_space<vmem>>, vector<1x1x512xf32>
    %350 = vector.shape_cast %349 : vector<1x1x512xf32> to vector<1x512xf32>
    %c1 = arith.constant 1 : index
    %c0_138 = arith.constant 0 : index
    %c0_139 = arith.constant 0 : index
    %351 = vector.load %arg6[%c1, %c0_138, %c0_139] : memref<2x128x512xf32, #tpu.memory_space<vmem>>, vector<1x128x512xf32>
    %352 = vector.shape_cast %351 : vector<1x128x512xf32> to vector<128x512xf32>
    %cst_140 = arith.constant 0.000000e+00 : f32
    %353 = vector.broadcast %cst_140 : f32 to vector<8x128xf32>
    %c0_i32_141 = arith.constant 0 : i32
    %354 = tpu.assume_multiple %c0_i32_141, 8 : i32
    %355 = arith.index_cast %354 : i32 to index
    %c0_142 = arith.constant 0 : index
    %356 = vector.load %arg10[%355, %c0_142] : memref<64x128xf32, #tpu.memory_space<vmem>>, vector<64x128xf32>
    %cst_143 = arith.constant dense<0.000000e+00> : vector<64x512xf32>
    %357 = tpu.matmul %356, %348, %cst_143 {dimension_numbers = #tpu.dot_dimension_numbers<[1], [0], [0], [1], [0, 0, 1, 1], [], []>} : vector<64x128xf32>, vector<128x512xf32>, vector<64x512xf32> -> vector<64x512xf32>
    %358 = vector.broadcast %350 : vector<1x512xf32> to vector<64x512xf32>
    %359 = arith.addf %357, %358 : vector<64x512xf32>
    %c0_144 = arith.constant 0 : index
    %c0_145 = arith.constant 0 : index
    %360 = vector.load %arg11[%c0_144, %c0_145] : memref<64x512xf32, #tpu.memory_space<vmem>>, vector<64x512xf32>
    tpu.vector_store %arg11[%c0_144, %c0_145], %359 {strides = array<i32>} : memref<64x512xf32, #tpu.memory_space<vmem>>, vector<64x512xf32>,
    %c0_i32_146 = arith.constant 0 : i32
    %c8_i32_147 = arith.constant 8 : i32
    %361 = arith.muli %c0_i32_146, %c8_i32_147 : i32
    %362 = tpu.assume_multiple %361, 8 : i32
    %cst_148 = arith.constant dense<0.000000e+00> : vector<8x512xf32>
    %363 = tpu.matmul %353, %352, %cst_148 {dimension_numbers = #tpu.dot_dimension_numbers<[1], [0], [0], [1], [0, 0, 1, 1], [], []>} : vector<8x128xf32>, vector<128x512xf32>, vector<8x512xf32> -> vector<8x512xf32>
    %364 = arith.index_cast %362 : i32 to index
    %c0_149 = arith.constant 0 : index
    %365 = vector.load %arg11[%364, %c0_149] : memref<64x512xf32, #tpu.memory_space<vmem>>, vector<8x512xf32>
    %366 = arith.addf %363, %365 : vector<8x512xf32>
    %367 = vector.extract_strided_slice %366 {offsets = [0, 0], sizes = [8, 128], strides = [1, 1]} : vector<8x512xf32> to vector<8x128xf32>
    %cst_150 = arith.constant 5.000000e-01 : f32
    %368 = vector.broadcast %cst_150 : f32 to vector<8x128xf32>
    %369 = arith.mulf %368, %367 : vector<8x128xf32>
    %370 = math.tanh %369 : vector<8x128xf32>
    %cst_151 = arith.constant 5.000000e-01 : f32
    %371 = vector.broadcast %cst_151 : f32 to vector<8x128xf32>
    %372 = arith.mulf %371, %370 : vector<8x128xf32>
    %cst_152 = arith.constant 5.000000e-01 : f32
    %373 = vector.broadcast %cst_152 : f32 to vector<8x128xf32>
    %374 = arith.addf %372, %373 : vector<8x128xf32>
    %375 = vector.extract_strided_slice %366 {offsets = [0, 128], sizes = [8, 128], strides = [1, 1]} : vector<8x512xf32> to vector<8x128xf32>
    %cst_153 = arith.constant 5.000000e-01 : f32
    %376 = vector.broadcast %cst_153 : f32 to vector<8x128xf32>
    %377 = arith.mulf %376, %375 : vector<8x128xf32>
    %378 = math.tanh %377 : vector<8x128xf32>
    %cst_154 = arith.constant 5.000000e-01 : f32
    %379 = vector.broadcast %cst_154 : f32 to vector<8x128xf32>
    %380 = arith.mulf %379, %378 : vector<8x128xf32>
    %cst_155 = arith.constant 5.000000e-01 : f32
    %381 = vector.broadcast %cst_155 : f32 to vector<8x128xf32>
    %382 = arith.addf %380, %381 : vector<8x128xf32>
    %383 = vector.extract_strided_slice %366 {offsets = [0, 256], sizes = [8, 128], strides = [1, 1]} : vector<8x512xf32> to vector<8x128xf32>
    %384 = math.tanh %383 : vector<8x128xf32>
    %385 = vector.extract_strided_slice %366 {offsets = [0, 384], sizes = [8, 128], strides = [1, 1]} : vector<8x512xf32> to vector<8x128xf32>
    %cst_156 = arith.constant 5.000000e-01 : f32
    %386 = vector.broadcast %cst_156 : f32 to vector<8x128xf32>
    %387 = arith.mulf %386, %385 : vector<8x128xf32>
    %388 = math.tanh %387 : vector<8x128xf32>
    %cst_157 = arith.constant 5.000000e-01 : f32
    %389 = vector.broadcast %cst_157 : f32 to vector<8x128xf32>
    %390 = arith.mulf %389, %388 : vector<8x128xf32>
    %cst_158 = arith.constant 5.000000e-01 : f32
    %391 = vector.broadcast %cst_158 : f32 to vector<8x128xf32>
    %392 = arith.addf %390, %391 : vector<8x128xf32>
    %393 = arith.mulf %382, %353 : vector<8x128xf32>
    %394 = arith.mulf %374, %384 : vector<8x128xf32>
    %395 = arith.addf %393, %394 : vector<8x128xf32>
    %396 = math.tanh %395 : vector<8x128xf32>
    %397 = arith.mulf %392, %396 : vector<8x128xf32>
    %c1_i32_159 = arith.constant 1 : i32
    %c8_i32_160 = arith.constant 8 : i32
    %398 = arith.muli %c1_i32_159, %c8_i32_160 : i32
    %399 = tpu.assume_multiple %398, 8 : i32
    %cst_161 = arith.constant dense<0.000000e+00> : vector<8x512xf32>
    %400 = tpu.matmul %397, %352, %cst_161 {dimension_numbers = #tpu.dot_dimension_numbers<[1], [0], [0], [1], [0, 0, 1, 1], [], []>} : vector<8x128xf32>, vector<128x512xf32>, vector<8x512xf32> -> vector<8x512xf32>
    %401 = arith.index_cast %399 : i32 to index
    %c0_162 = arith.constant 0 : index
    %402 = vector.load %arg11[%401, %c0_162] : memref<64x512xf32, #tpu.memory_space<vmem>>, vector<8x512xf32>
    %403 = arith.addf %400, %402 : vector<8x512xf32>
    %404 = vector.extract_strided_slice %403 {offsets = [0, 0], sizes = [8, 128], strides = [1, 1]} : vector<8x512xf32> to vector<8x128xf32>
    %cst_163 = arith.constant 5.000000e-01 : f32
    %405 = vector.broadcast %cst_163 : f32 to vector<8x128xf32>
    %406 = arith.mulf %405, %404 : vector<8x128xf32>
    %407 = math.tanh %406 : vector<8x128xf32>
    %cst_164 = arith.constant 5.000000e-01 : f32
    %408 = vector.broadcast %cst_164 : f32 to vector<8x128xf32>
    %409 = arith.mulf %408, %407 : vector<8x128xf32>
    %cst_165 = arith.constant 5.000000e-01 : f32
    %410 = vector.broadcast %cst_165 : f32 to vector<8x128xf32>
    %411 = arith.addf %409, %410 : vector<8x128xf32>
    %412 = vector.extract_strided_slice %403 {offsets = [0, 128], sizes = [8, 128], strides = [1, 1]} : vector<8x512xf32> to vector<8x128xf32>
    %cst_166 = arith.constant 5.000000e-01 : f32
    %413 = vector.broadcast %cst_166 : f32 to vector<8x128xf32>
    %414 = arith.mulf %413, %412 : vector<8x128xf32>
    %415 = math.tanh %414 : vector<8x128xf32>
    %cst_167 = arith.constant 5.000000e-01 : f32
    %416 = vector.broadcast %cst_167 : f32 to vector<8x128xf32>
    %417 = arith.mulf %416, %415 : vector<8x128xf32>
    %cst_168 = arith.constant 5.000000e-01 : f32
    %418 = vector.broadcast %cst_168 : f32 to vector<8x128xf32>
    %419 = arith.addf %417, %418 : vector<8x128xf32>
    %420 = vector.extract_strided_slice %403 {offsets = [0, 256], sizes = [8, 128], strides = [1, 1]} : vector<8x512xf32> to vector<8x128xf32>
    %421 = math.tanh %420 : vector<8x128xf32>
    %422 = vector.extract_strided_slice %403 {offsets = [0, 384], sizes = [8, 128], strides = [1, 1]} : vector<8x512xf32> to vector<8x128xf32>
    %cst_169 = arith.constant 5.000000e-01 : f32
    %423 = vector.broadcast %cst_169 : f32 to vector<8x128xf32>
    %424 = arith.mulf %423, %422 : vector<8x128xf32>
    %425 = math.tanh %424 : vector<8x128xf32>
    %cst_170 = arith.constant 5.000000e-01 : f32
    %426 = vector.broadcast %cst_170 : f32 to vector<8x128xf32>
    %427 = arith.mulf %426, %425 : vector<8x128xf32>
    %cst_171 = arith.constant 5.000000e-01 : f32
    %428 = vector.broadcast %cst_171 : f32 to vector<8x128xf32>
    %429 = arith.addf %427, %428 : vector<8x128xf32>
    %430 = arith.mulf %419, %395 : vector<8x128xf32>
    %431 = arith.mulf %411, %421 : vector<8x128xf32>
    %432 = arith.addf %430, %431 : vector<8x128xf32>
    %433 = math.tanh %432 : vector<8x128xf32>
    %434 = arith.mulf %429, %433 : vector<8x128xf32>
    %c2_i32_172 = arith.constant 2 : i32
    %c8_i32_173 = arith.constant 8 : i32
    %435 = arith.muli %c2_i32_172, %c8_i32_173 : i32
    %436 = tpu.assume_multiple %435, 8 : i32
    %cst_174 = arith.constant dense<0.000000e+00> : vector<8x512xf32>
    %437 = tpu.matmul %434, %352, %cst_174 {dimension_numbers = #tpu.dot_dimension_numbers<[1], [0], [0], [1], [0, 0, 1, 1], [], []>} : vector<8x128xf32>, vector<128x512xf32>, vector<8x512xf32> -> vector<8x512xf32>
    %438 = arith.index_cast %436 : i32 to index
    %c0_175 = arith.constant 0 : index
    %439 = vector.load %arg11[%438, %c0_175] : memref<64x512xf32, #tpu.memory_space<vmem>>, vector<8x512xf32>
    %440 = arith.addf %437, %439 : vector<8x512xf32>
    %441 = vector.extract_strided_slice %440 {offsets = [0, 0], sizes = [8, 128], strides = [1, 1]} : vector<8x512xf32> to vector<8x128xf32>
    %cst_176 = arith.constant 5.000000e-01 : f32
    %442 = vector.broadcast %cst_176 : f32 to vector<8x128xf32>
    %443 = arith.mulf %442, %441 : vector<8x128xf32>
    %444 = math.tanh %443 : vector<8x128xf32>
    %cst_177 = arith.constant 5.000000e-01 : f32
    %445 = vector.broadcast %cst_177 : f32 to vector<8x128xf32>
    %446 = arith.mulf %445, %444 : vector<8x128xf32>
    %cst_178 = arith.constant 5.000000e-01 : f32
    %447 = vector.broadcast %cst_178 : f32 to vector<8x128xf32>
    %448 = arith.addf %446, %447 : vector<8x128xf32>
    %449 = vector.extract_strided_slice %440 {offsets = [0, 128], sizes = [8, 128], strides = [1, 1]} : vector<8x512xf32> to vector<8x128xf32>
    %cst_179 = arith.constant 5.000000e-01 : f32
    %450 = vector.broadcast %cst_179 : f32 to vector<8x128xf32>
    %451 = arith.mulf %450, %449 : vector<8x128xf32>
    %452 = math.tanh %451 : vector<8x128xf32>
    %cst_180 = arith.constant 5.000000e-01 : f32
    %453 = vector.broadcast %cst_180 : f32 to vector<8x128xf32>
    %454 = arith.mulf %453, %452 : vector<8x128xf32>
    %cst_181 = arith.constant 5.000000e-01 : f32
    %455 = vector.broadcast %cst_181 : f32 to vector<8x128xf32>
    %456 = arith.addf %454, %455 : vector<8x128xf32>
    %457 = vector.extract_strided_slice %440 {offsets = [0, 256], sizes = [8, 128], strides = [1, 1]} : vector<8x512xf32> to vector<8x128xf32>
    %458 = math.tanh %457 : vector<8x128xf32>
    %459 = vector.extract_strided_slice %440 {offsets = [0, 384], sizes = [8, 128], strides = [1, 1]} : vector<8x512xf32> to vector<8x128xf32>
    %cst_182 = arith.constant 5.000000e-01 : f32
    %460 = vector.broadcast %cst_182 : f32 to vector<8x128xf32>
    %461 = arith.mulf %460, %459 : vector<8x128xf32>
    %462 = math.tanh %461 : vector<8x128xf32>
    %cst_183 = arith.constant 5.000000e-01 : f32
    %463 = vector.broadcast %cst_183 : f32 to vector<8x128xf32>
    %464 = arith.mulf %463, %462 : vector<8x128xf32>
    %cst_184 = arith.constant 5.000000e-01 : f32
    %465 = vector.broadcast %cst_184 : f32 to vector<8x128xf32>
    %466 = arith.addf %464, %465 : vector<8x128xf32>
    %467 = arith.mulf %456, %432 : vector<8x128xf32>
    %468 = arith.mulf %448, %458 : vector<8x128xf32>
    %469 = arith.addf %467, %468 : vector<8x128xf32>
    %470 = math.tanh %469 : vector<8x128xf32>
    %471 = arith.mulf %466, %470 : vector<8x128xf32>
    %c3_i32_185 = arith.constant 3 : i32
    %c8_i32_186 = arith.constant 8 : i32
    %472 = arith.muli %c3_i32_185, %c8_i32_186 : i32
    %473 = tpu.assume_multiple %472, 8 : i32
    %cst_187 = arith.constant dense<0.000000e+00> : vector<8x512xf32>
    %474 = tpu.matmul %471, %352, %cst_187 {dimension_numbers = #tpu.dot_dimension_numbers<[1], [0], [0], [1], [0, 0, 1, 1], [], []>} : vector<8x128xf32>, vector<128x512xf32>, vector<8x512xf32> -> vector<8x512xf32>
    %475 = arith.index_cast %473 : i32 to index
    %c0_188 = arith.constant 0 : index
    %476 = vector.load %arg11[%475, %c0_188] : memref<64x512xf32, #tpu.memory_space<vmem>>, vector<8x512xf32>
    %477 = arith.addf %474, %476 : vector<8x512xf32>
    %478 = vector.extract_strided_slice %477 {offsets = [0, 0], sizes = [8, 128], strides = [1, 1]} : vector<8x512xf32> to vector<8x128xf32>
    %cst_189 = arith.constant 5.000000e-01 : f32
    %479 = vector.broadcast %cst_189 : f32 to vector<8x128xf32>
    %480 = arith.mulf %479, %478 : vector<8x128xf32>
    %481 = math.tanh %480 : vector<8x128xf32>
    %cst_190 = arith.constant 5.000000e-01 : f32
    %482 = vector.broadcast %cst_190 : f32 to vector<8x128xf32>
    %483 = arith.mulf %482, %481 : vector<8x128xf32>
    %cst_191 = arith.constant 5.000000e-01 : f32
    %484 = vector.broadcast %cst_191 : f32 to vector<8x128xf32>
    %485 = arith.addf %483, %484 : vector<8x128xf32>
    %486 = vector.extract_strided_slice %477 {offsets = [0, 128], sizes = [8, 128], strides = [1, 1]} : vector<8x512xf32> to vector<8x128xf32>
    %cst_192 = arith.constant 5.000000e-01 : f32
    %487 = vector.broadcast %cst_192 : f32 to vector<8x128xf32>
    %488 = arith.mulf %487, %486 : vector<8x128xf32>
    %489 = math.tanh %488 : vector<8x128xf32>
    %cst_193 = arith.constant 5.000000e-01 : f32
    %490 = vector.broadcast %cst_193 : f32 to vector<8x128xf32>
    %491 = arith.mulf %490, %489 : vector<8x128xf32>
    %cst_194 = arith.constant 5.000000e-01 : f32
    %492 = vector.broadcast %cst_194 : f32 to vector<8x128xf32>
    %493 = arith.addf %491, %492 : vector<8x128xf32>
    %494 = vector.extract_strided_slice %477 {offsets = [0, 256], sizes = [8, 128], strides = [1, 1]} : vector<8x512xf32> to vector<8x128xf32>
    %495 = math.tanh %494 : vector<8x128xf32>
    %496 = vector.extract_strided_slice %477 {offsets = [0, 384], sizes = [8, 128], strides = [1, 1]} : vector<8x512xf32> to vector<8x128xf32>
    %cst_195 = arith.constant 5.000000e-01 : f32
    %497 = vector.broadcast %cst_195 : f32 to vector<8x128xf32>
    %498 = arith.mulf %497, %496 : vector<8x128xf32>
    %499 = math.tanh %498 : vector<8x128xf32>
    %cst_196 = arith.constant 5.000000e-01 : f32
    %500 = vector.broadcast %cst_196 : f32 to vector<8x128xf32>
    %501 = arith.mulf %500, %499 : vector<8x128xf32>
    %cst_197 = arith.constant 5.000000e-01 : f32
    %502 = vector.broadcast %cst_197 : f32 to vector<8x128xf32>
    %503 = arith.addf %501, %502 : vector<8x128xf32>
    %504 = arith.mulf %493, %469 : vector<8x128xf32>
    %505 = arith.mulf %485, %495 : vector<8x128xf32>
    %506 = arith.addf %504, %505 : vector<8x128xf32>
    %507 = math.tanh %506 : vector<8x128xf32>
    %508 = arith.mulf %503, %507 : vector<8x128xf32>
    %c4_i32_198 = arith.constant 4 : i32
    %c8_i32_199 = arith.constant 8 : i32
    %509 = arith.muli %c4_i32_198, %c8_i32_199 : i32
    %510 = tpu.assume_multiple %509, 8 : i32
    %cst_200 = arith.constant dense<0.000000e+00> : vector<8x512xf32>
    %511 = tpu.matmul %508, %352, %cst_200 {dimension_numbers = #tpu.dot_dimension_numbers<[1], [0], [0], [1], [0, 0, 1, 1], [], []>} : vector<8x128xf32>, vector<128x512xf32>, vector<8x512xf32> -> vector<8x512xf32>
    %512 = arith.index_cast %510 : i32 to index
    %c0_201 = arith.constant 0 : index
    %513 = vector.load %arg11[%512, %c0_201] : memref<64x512xf32, #tpu.memory_space<vmem>>, vector<8x512xf32>
    %514 = arith.addf %511, %513 : vector<8x512xf32>
    %515 = vector.extract_strided_slice %514 {offsets = [0, 0], sizes = [8, 128], strides = [1, 1]} : vector<8x512xf32> to vector<8x128xf32>
    %cst_202 = arith.constant 5.000000e-01 : f32
    %516 = vector.broadcast %cst_202 : f32 to vector<8x128xf32>
    %517 = arith.mulf %516, %515 : vector<8x128xf32>
    %518 = math.tanh %517 : vector<8x128xf32>
    %cst_203 = arith.constant 5.000000e-01 : f32
    %519 = vector.broadcast %cst_203 : f32 to vector<8x128xf32>
    %520 = arith.mulf %519, %518 : vector<8x128xf32>
    %cst_204 = arith.constant 5.000000e-01 : f32
    %521 = vector.broadcast %cst_204 : f32 to vector<8x128xf32>
    %522 = arith.addf %520, %521 : vector<8x128xf32>
    %523 = vector.extract_strided_slice %514 {offsets = [0, 128], sizes = [8, 128], strides = [1, 1]} : vector<8x512xf32> to vector<8x128xf32>
    %cst_205 = arith.constant 5.000000e-01 : f32
    %524 = vector.broadcast %cst_205 : f32 to vector<8x128xf32>
    %525 = arith.mulf %524, %523 : vector<8x128xf32>
    %526 = math.tanh %525 : vector<8x128xf32>
    %cst_206 = arith.constant 5.000000e-01 : f32
    %527 = vector.broadcast %cst_206 : f32 to vector<8x128xf32>
    %528 = arith.mulf %527, %526 : vector<8x128xf32>
    %cst_207 = arith.constant 5.000000e-01 : f32
    %529 = vector.broadcast %cst_207 : f32 to vector<8x128xf32>
    %530 = arith.addf %528, %529 : vector<8x128xf32>
    %531 = vector.extract_strided_slice %514 {offsets = [0, 256], sizes = [8, 128], strides = [1, 1]} : vector<8x512xf32> to vector<8x128xf32>
    %532 = math.tanh %531 : vector<8x128xf32>
    %533 = vector.extract_strided_slice %514 {offsets = [0, 384], sizes = [8, 128], strides = [1, 1]} : vector<8x512xf32> to vector<8x128xf32>
    %cst_208 = arith.constant 5.000000e-01 : f32
    %534 = vector.broadcast %cst_208 : f32 to vector<8x128xf32>
    %535 = arith.mulf %534, %533 : vector<8x128xf32>
    %536 = math.tanh %535 : vector<8x128xf32>
    %cst_209 = arith.constant 5.000000e-01 : f32
    %537 = vector.broadcast %cst_209 : f32 to vector<8x128xf32>
    %538 = arith.mulf %537, %536 : vector<8x128xf32>
    %cst_210 = arith.constant 5.000000e-01 : f32
    %539 = vector.broadcast %cst_210 : f32 to vector<8x128xf32>
    %540 = arith.addf %538, %539 : vector<8x128xf32>
    %541 = arith.mulf %530, %506 : vector<8x128xf32>
    %542 = arith.mulf %522, %532 : vector<8x128xf32>
    %543 = arith.addf %541, %542 : vector<8x128xf32>
    %544 = math.tanh %543 : vector<8x128xf32>
    %545 = arith.mulf %540, %544 : vector<8x128xf32>
    %c5_i32_211 = arith.constant 5 : i32
    %c8_i32_212 = arith.constant 8 : i32
    %546 = arith.muli %c5_i32_211, %c8_i32_212 : i32
    %547 = tpu.assume_multiple %546, 8 : i32
    %cst_213 = arith.constant dense<0.000000e+00> : vector<8x512xf32>
    %548 = tpu.matmul %545, %352, %cst_213 {dimension_numbers = #tpu.dot_dimension_numbers<[1], [0], [0], [1], [0, 0, 1, 1], [], []>} : vector<8x128xf32>, vector<128x512xf32>, vector<8x512xf32> -> vector<8x512xf32>
    %549 = arith.index_cast %547 : i32 to index
    %c0_214 = arith.constant 0 : index
    %550 = vector.load %arg11[%549, %c0_214] : memref<64x512xf32, #tpu.memory_space<vmem>>, vector<8x512xf32>
    %551 = arith.addf %548, %550 : vector<8x512xf32>
    %552 = vector.extract_strided_slice %551 {offsets = [0, 0], sizes = [8, 128], strides = [1, 1]} : vector<8x512xf32> to vector<8x128xf32>
    %cst_215 = arith.constant 5.000000e-01 : f32
    %553 = vector.broadcast %cst_215 : f32 to vector<8x128xf32>
    %554 = arith.mulf %553, %552 : vector<8x128xf32>
    %555 = math.tanh %554 : vector<8x128xf32>
    %cst_216 = arith.constant 5.000000e-01 : f32
    %556 = vector.broadcast %cst_216 : f32 to vector<8x128xf32>
    %557 = arith.mulf %556, %555 : vector<8x128xf32>
    %cst_217 = arith.constant 5.000000e-01 : f32
    %558 = vector.broadcast %cst_217 : f32 to vector<8x128xf32>
    %559 = arith.addf %557, %558 : vector<8x128xf32>
    %560 = vector.extract_strided_slice %551 {offsets = [0, 128], sizes = [8, 128], strides = [1, 1]} : vector<8x512xf32> to vector<8x128xf32>
    %cst_218 = arith.constant 5.000000e-01 : f32
    %561 = vector.broadcast %cst_218 : f32 to vector<8x128xf32>
    %562 = arith.mulf %561, %560 : vector<8x128xf32>
    %563 = math.tanh %562 : vector<8x128xf32>
    %cst_219 = arith.constant 5.000000e-01 : f32
    %564 = vector.broadcast %cst_219 : f32 to vector<8x128xf32>
    %565 = arith.mulf %564, %563 : vector<8x128xf32>
    %cst_220 = arith.constant 5.000000e-01 : f32
    %566 = vector.broadcast %cst_220 : f32 to vector<8x128xf32>
    %567 = arith.addf %565, %566 : vector<8x128xf32>
    %568 = vector.extract_strided_slice %551 {offsets = [0, 256], sizes = [8, 128], strides = [1, 1]} : vector<8x512xf32> to vector<8x128xf32>
    %569 = math.tanh %568 : vector<8x128xf32>
    %570 = vector.extract_strided_slice %551 {offsets = [0, 384], sizes = [8, 128], strides = [1, 1]} : vector<8x512xf32> to vector<8x128xf32>
    %cst_221 = arith.constant 5.000000e-01 : f32
    %571 = vector.broadcast %cst_221 : f32 to vector<8x128xf32>
    %572 = arith.mulf %571, %570 : vector<8x128xf32>
    %573 = math.tanh %572 : vector<8x128xf32>
    %cst_222 = arith.constant 5.000000e-01 : f32
    %574 = vector.broadcast %cst_222 : f32 to vector<8x128xf32>
    %575 = arith.mulf %574, %573 : vector<8x128xf32>
    %cst_223 = arith.constant 5.000000e-01 : f32
    %576 = vector.broadcast %cst_223 : f32 to vector<8x128xf32>
    %577 = arith.addf %575, %576 : vector<8x128xf32>
    %578 = arith.mulf %567, %543 : vector<8x128xf32>
    %579 = arith.mulf %559, %569 : vector<8x128xf32>
    %580 = arith.addf %578, %579 : vector<8x128xf32>
    %581 = math.tanh %580 : vector<8x128xf32>
    %582 = arith.mulf %577, %581 : vector<8x128xf32>
    %c6_i32_224 = arith.constant 6 : i32
    %c8_i32_225 = arith.constant 8 : i32
    %583 = arith.muli %c6_i32_224, %c8_i32_225 : i32
    %584 = tpu.assume_multiple %583, 8 : i32
    %cst_226 = arith.constant dense<0.000000e+00> : vector<8x512xf32>
    %585 = tpu.matmul %582, %352, %cst_226 {dimension_numbers = #tpu.dot_dimension_numbers<[1], [0], [0], [1], [0, 0, 1, 1], [], []>} : vector<8x128xf32>, vector<128x512xf32>, vector<8x512xf32> -> vector<8x512xf32>
    %586 = arith.index_cast %584 : i32 to index
    %c0_227 = arith.constant 0 : index
    %587 = vector.load %arg11[%586, %c0_227] : memref<64x512xf32, #tpu.memory_space<vmem>>, vector<8x512xf32>
    %588 = arith.addf %585, %587 : vector<8x512xf32>
    %589 = vector.extract_strided_slice %588 {offsets = [0, 0], sizes = [8, 128], strides = [1, 1]} : vector<8x512xf32> to vector<8x128xf32>
    %cst_228 = arith.constant 5.000000e-01 : f32
    %590 = vector.broadcast %cst_228 : f32 to vector<8x128xf32>
    %591 = arith.mulf %590, %589 : vector<8x128xf32>
    %592 = math.tanh %591 : vector<8x128xf32>
    %cst_229 = arith.constant 5.000000e-01 : f32
    %593 = vector.broadcast %cst_229 : f32 to vector<8x128xf32>
    %594 = arith.mulf %593, %592 : vector<8x128xf32>
    %cst_230 = arith.constant 5.000000e-01 : f32
    %595 = vector.broadcast %cst_230 : f32 to vector<8x128xf32>
    %596 = arith.addf %594, %595 : vector<8x128xf32>
    %597 = vector.extract_strided_slice %588 {offsets = [0, 128], sizes = [8, 128], strides = [1, 1]} : vector<8x512xf32> to vector<8x128xf32>
    %cst_231 = arith.constant 5.000000e-01 : f32
    %598 = vector.broadcast %cst_231 : f32 to vector<8x128xf32>
    %599 = arith.mulf %598, %597 : vector<8x128xf32>
    %600 = math.tanh %599 : vector<8x128xf32>
    %cst_232 = arith.constant 5.000000e-01 : f32
    %601 = vector.broadcast %cst_232 : f32 to vector<8x128xf32>
    %602 = arith.mulf %601, %600 : vector<8x128xf32>
    %cst_233 = arith.constant 5.000000e-01 : f32
    %603 = vector.broadcast %cst_233 : f32 to vector<8x128xf32>
    %604 = arith.addf %602, %603 : vector<8x128xf32>
    %605 = vector.extract_strided_slice %588 {offsets = [0, 256], sizes = [8, 128], strides = [1, 1]} : vector<8x512xf32> to vector<8x128xf32>
    %606 = math.tanh %605 : vector<8x128xf32>
    %607 = vector.extract_strided_slice %588 {offsets = [0, 384], sizes = [8, 128], strides = [1, 1]} : vector<8x512xf32> to vector<8x128xf32>
    %cst_234 = arith.constant 5.000000e-01 : f32
    %608 = vector.broadcast %cst_234 : f32 to vector<8x128xf32>
    %609 = arith.mulf %608, %607 : vector<8x128xf32>
    %610 = math.tanh %609 : vector<8x128xf32>
    %cst_235 = arith.constant 5.000000e-01 : f32
    %611 = vector.broadcast %cst_235 : f32 to vector<8x128xf32>
    %612 = arith.mulf %611, %610 : vector<8x128xf32>
    %cst_236 = arith.constant 5.000000e-01 : f32
    %613 = vector.broadcast %cst_236 : f32 to vector<8x128xf32>
    %614 = arith.addf %612, %613 : vector<8x128xf32>
    %615 = arith.mulf %604, %580 : vector<8x128xf32>
    %616 = arith.mulf %596, %606 : vector<8x128xf32>
    %617 = arith.addf %615, %616 : vector<8x128xf32>
    %618 = math.tanh %617 : vector<8x128xf32>
    %619 = arith.mulf %614, %618 : vector<8x128xf32>
    %c7_i32_237 = arith.constant 7 : i32
    %c8_i32_238 = arith.constant 8 : i32
    %620 = arith.muli %c7_i32_237, %c8_i32_238 : i32
    %621 = tpu.assume_multiple %620, 8 : i32
    %cst_239 = arith.constant dense<0.000000e+00> : vector<8x512xf32>
    %622 = tpu.matmul %619, %352, %cst_239 {dimension_numbers = #tpu.dot_dimension_numbers<[1], [0], [0], [1], [0, 0, 1, 1], [], []>} : vector<8x128xf32>, vector<128x512xf32>, vector<8x512xf32> -> vector<8x512xf32>
    %623 = arith.index_cast %621 : i32 to index
    %c0_240 = arith.constant 0 : index
    %624 = vector.load %arg11[%623, %c0_240] : memref<64x512xf32, #tpu.memory_space<vmem>>, vector<8x512xf32>
    %625 = arith.addf %622, %624 : vector<8x512xf32>
    %626 = vector.extract_strided_slice %625 {offsets = [0, 0], sizes = [8, 128], strides = [1, 1]} : vector<8x512xf32> to vector<8x128xf32>
    %cst_241 = arith.constant 5.000000e-01 : f32
    %627 = vector.broadcast %cst_241 : f32 to vector<8x128xf32>
    %628 = arith.mulf %627, %626 : vector<8x128xf32>
    %629 = math.tanh %628 : vector<8x128xf32>
    %cst_242 = arith.constant 5.000000e-01 : f32
    %630 = vector.broadcast %cst_242 : f32 to vector<8x128xf32>
    %631 = arith.mulf %630, %629 : vector<8x128xf32>
    %cst_243 = arith.constant 5.000000e-01 : f32
    %632 = vector.broadcast %cst_243 : f32 to vector<8x128xf32>
    %633 = arith.addf %631, %632 : vector<8x128xf32>
    %634 = vector.extract_strided_slice %625 {offsets = [0, 128], sizes = [8, 128], strides = [1, 1]} : vector<8x512xf32> to vector<8x128xf32>
    %cst_244 = arith.constant 5.000000e-01 : f32
    %635 = vector.broadcast %cst_244 : f32 to vector<8x128xf32>
    %636 = arith.mulf %635, %634 : vector<8x128xf32>
    %637 = math.tanh %636 : vector<8x128xf32>
    %cst_245 = arith.constant 5.000000e-01 : f32
    %638 = vector.broadcast %cst_245 : f32 to vector<8x128xf32>
    %639 = arith.mulf %638, %637 : vector<8x128xf32>
    %cst_246 = arith.constant 5.000000e-01 : f32
    %640 = vector.broadcast %cst_246 : f32 to vector<8x128xf32>
    %641 = arith.addf %639, %640 : vector<8x128xf32>
    %642 = vector.extract_strided_slice %625 {offsets = [0, 256], sizes = [8, 128], strides = [1, 1]} : vector<8x512xf32> to vector<8x128xf32>
    %643 = math.tanh %642 : vector<8x128xf32>
    %644 = vector.extract_strided_slice %625 {offsets = [0, 384], sizes = [8, 128], strides = [1, 1]} : vector<8x512xf32> to vector<8x128xf32>
    %cst_247 = arith.constant 5.000000e-01 : f32
    %645 = vector.broadcast %cst_247 : f32 to vector<8x128xf32>
    %646 = arith.mulf %645, %644 : vector<8x128xf32>
    %647 = math.tanh %646 : vector<8x128xf32>
    %cst_248 = arith.constant 5.000000e-01 : f32
    %648 = vector.broadcast %cst_248 : f32 to vector<8x128xf32>
    %649 = arith.mulf %648, %647 : vector<8x128xf32>
    %cst_249 = arith.constant 5.000000e-01 : f32
    %650 = vector.broadcast %cst_249 : f32 to vector<8x128xf32>
    %651 = arith.addf %649, %650 : vector<8x128xf32>
    %652 = arith.mulf %641, %617 : vector<8x128xf32>
    %653 = arith.mulf %633, %643 : vector<8x128xf32>
    %654 = arith.addf %652, %653 : vector<8x128xf32>
    %655 = math.tanh %654 : vector<8x128xf32>
    %656 = arith.mulf %651, %655 : vector<8x128xf32>
    %c8_i32_250 = arith.constant 8 : i32
    %c0_251 = arith.constant 0 : index
    %c0_252 = arith.constant 0 : index
    %657 = vector.load %arg7[%c0_251, %c0_252] : memref<128x128xf32, #tpu.memory_space<vmem>>, vector<128x128xf32>
    %cst_253 = arith.constant dense<0.000000e+00> : vector<8x128xf32>
    %658 = tpu.matmul %656, %657, %cst_253 {dimension_numbers = #tpu.dot_dimension_numbers<[1], [0], [0], [1], [0, 0, 1, 1], [], []>} : vector<8x128xf32>, vector<128x128xf32>, vector<8x128xf32> -> vector<8x128xf32>
    %c0_254 = arith.constant 0 : index
    %c0_255 = arith.constant 0 : index
    %659 = vector.load %arg8[%c0_254, %c0_255] : memref<1x128xf32, #tpu.memory_space<vmem>>, vector<1x128xf32>
    %660 = vector.broadcast %659 : vector<1x128xf32> to vector<8x128xf32>
    %661 = arith.addf %658, %660 : vector<8x128xf32>
    %c0_256 = arith.constant 0 : index
    %c0_257 = arith.constant 0 : index
    %662 = vector.load %arg9[%c0_256, %c0_257] : memref<8x128xf32, #tpu.memory_space<vmem>>, vector<8x128xf32>
    tpu.vector_store %arg9[%c0_256, %c0_257], %661 {strides = array<i32>} : memref<8x128xf32, #tpu.memory_space<vmem>>, vector<8x128xf32>,
    return
  }
  func.func @transform_0(%arg0: i32) -> (i32, i32, i32) {
    %c0_i32 = arith.constant 0 : i32
    %c0_i32_0 = arith.constant 0 : i32
    %c0_i32_1 = arith.constant 0 : i32
    return %c0_i32, %arg0, %c0_i32_0 : i32, i32, i32
  }
  func.func @transform_1(%arg0: i32) -> (i32, i32) {
    %c0_i32 = arith.constant 0 : i32
    %c0_i32_0 = arith.constant 0 : i32
    %c0_i32_1 = arith.constant 0 : i32
    return %c0_i32, %c0_i32_0 : i32, i32
  }
  func.func @transform_2(%arg0: i32) -> (i32, i32) {
    %c0_i32 = arith.constant 0 : i32
    %c0_i32_0 = arith.constant 0 : i32
    %c0_i32_1 = arith.constant 0 : i32
    return %c0_i32, %c0_i32_0 : i32, i32
  }
  func.func @transform_3(%arg0: i32) -> (i32, i32, i32) {
    %c0_i32 = arith.constant 0 : i32
    %c0_i32_0 = arith.constant 0 : i32
    %c0_i32_1 = arith.constant 0 : i32
    %c0_i32_2 = arith.constant 0 : i32
    return %c0_i32, %c0_i32_0, %c0_i32_1 : i32, i32, i32
  }
  func.func @transform_4(%arg0: i32) -> (i32, i32, i32) {
    %c0_i32 = arith.constant 0 : i32
    %c0_i32_0 = arith.constant 0 : i32
    %c0_i32_1 = arith.constant 0 : i32
    %c0_i32_2 = arith.constant 0 : i32
    return %c0_i32, %c0_i32_0, %c0_i32_1 : i32, i32, i32
  }
  func.func @transform_5(%arg0: i32) -> (i32, i32, i32) {
    %c0_i32 = arith.constant 0 : i32
    %c0_i32_0 = arith.constant 0 : i32
    %c0_i32_1 = arith.constant 0 : i32
    %c0_i32_2 = arith.constant 0 : i32
    return %c0_i32, %c0_i32_0, %c0_i32_1 : i32, i32, i32
  }
  func.func @transform_6(%arg0: i32) -> (i32, i32) {
    %c0_i32 = arith.constant 0 : i32
    %c0_i32_0 = arith.constant 0 : i32
    %c0_i32_1 = arith.constant 0 : i32
    return %c0_i32, %c0_i32_0 : i32, i32
  }
  func.func @transform_7(%arg0: i32) -> (i32, i32) {
    %c0_i32 = arith.constant 0 : i32
    %c0_i32_0 = arith.constant 0 : i32
    %c0_i32_1 = arith.constant 0 : i32
    return %c0_i32, %c0_i32_0 : i32, i32
  }
  func.func @transform_8(%arg0: i32) -> (i32, i32) {
    %c0_i32 = arith.constant 0 : i32
    %c0_i32_0 = arith.constant 0 : i32
    return %arg0, %c0_i32 : i32, i32
  }
}

module attributes {stable_mosaic.version = 11 : i64} {
  func.func @_lstm_fc_kernel(%arg0: i32, %arg1: memref<8x8x128xf32, #tpu.memory_space<vmem>>, %arg2: memref<128x512xf32, #tpu.memory_space<vmem>>, %arg3: memref<1x512xf32, #tpu.memory_space<vmem>>, %arg4: memref<1x128x512xf32, #tpu.memory_space<vmem>>, %arg5: memref<1x1x512xf32, #tpu.memory_space<vmem>>, %arg6: memref<2x128x512xf32, #tpu.memory_space<vmem>>, %arg7: memref<128x128xf32, #tpu.memory_space<vmem>>, %arg8: memref<1x128xf32, #tpu.memory_space<vmem>>, %arg9: memref<8x128xf32, #tpu.memory_space<vmem>>, %arg10: memref<64x128xf32, #tpu.memory_space<vmem>>, %arg11: memref<64x512xf32, #tpu.memory_space<vmem>>) attributes {dimension_semantics = [#tpu.dimension_semantics<parallel>], iteration_bounds = array<i64: 1>, scalar_prefetch = 0 : i64, scratch_operands = 2 : i64, tpu.core_type = #tpu.core_type<tc>, window_params = [{transform_indices = @transform_0, window_bounds = array<i64: 8, 8, 128>}, {pipeline_mode = #tpu.pipeline_mode<synchronous>, transform_indices = @transform_1, window_bounds = array<i64: 128, 512>}, {pipeline_mode = #tpu.pipeline_mode<synchronous>, transform_indices = @transform_2, window_bounds = array<i64: 1, 512>}, {pipeline_mode = #tpu.pipeline_mode<synchronous>, transform_indices = @transform_3, window_bounds = array<i64: 1, 128, 512>}, {pipeline_mode = #tpu.pipeline_mode<synchronous>, transform_indices = @transform_4, window_bounds = array<i64: 1, 1, 512>}, {pipeline_mode = #tpu.pipeline_mode<synchronous>, transform_indices = @transform_5, window_bounds = array<i64: 2, 128, 512>}, {pipeline_mode = #tpu.pipeline_mode<synchronous>, transform_indices = @transform_6, window_bounds = array<i64: 128, 128>}, {pipeline_mode = #tpu.pipeline_mode<synchronous>, transform_indices = @transform_7, window_bounds = array<i64: 1, 128>}, {transform_indices = @transform_8, window_bounds = array<i64: 8, 128>}]} {
    %c0 = arith.constant 0 : index
    %c0_0 = arith.constant 0 : index
    %0 = vector.load %arg2[%c0, %c0_0] : memref<128x512xf32, #tpu.memory_space<vmem>>, vector<128x512xf32>
    %c0_1 = arith.constant 0 : index
    %c0_2 = arith.constant 0 : index
    %1 = vector.load %arg3[%c0_1, %c0_2] : memref<1x512xf32, #tpu.memory_space<vmem>>, vector<1x512xf32>
    %c0_3 = arith.constant 0 : index
    %c0_4 = arith.constant 0 : index
    %c0_5 = arith.constant 0 : index
    %2 = vector.load %arg6[%c0_3, %c0_4, %c0_5] : memref<2x128x512xf32, #tpu.memory_space<vmem>>, vector<1x128x512xf32>
    %3 = vector.shape_cast %2 : vector<1x128x512xf32> to vector<128x512xf32>
    %cst = arith.constant 0.000000e+00 : f32
    %4 = vector.broadcast %cst : f32 to vector<8x128xf32>
    %c0_6 = arith.constant 0 : index
    %c0_7 = arith.constant 0 : index
    %c0_8 = arith.constant 0 : index
    %5 = vector.load %arg1[%c0_6, %c0_7, %c0_8] : memref<8x8x128xf32, #tpu.memory_space<vmem>>, vector<8x8x128xf32>
    %6 = vector.shape_cast %5 : vector<8x8x128xf32> to vector<64x128xf32>
    %cst_9 = arith.constant dense<0.000000e+00> : vector<64x512xf32>
    %7 = tpu.matmul %6, %0, %cst_9 {dimension_numbers = #tpu.dot_dimension_numbers<[1], [0], [0], [1], [0, 0, 1, 1], [], []>} : vector<64x128xf32>, vector<128x512xf32>, vector<64x512xf32> -> vector<64x512xf32>
    %8 = vector.broadcast %1 : vector<1x512xf32> to vector<64x512xf32>
    %9 = arith.addf %7, %8 : vector<64x512xf32>
    %c0_10 = arith.constant 0 : index
    %c0_11 = arith.constant 0 : index
    %10 = vector.load %arg11[%c0_10, %c0_11] : memref<64x512xf32, #tpu.memory_space<vmem>>, vector<64x512xf32>
    tpu.vector_store %arg11[%c0_10, %c0_11], %9 {strides = array<i32>} : memref<64x512xf32, #tpu.memory_space<vmem>>, vector<64x512xf32>,
    %c0_i32 = arith.constant 0 : i32
    %c8_i32 = arith.constant 8 : i32
    %11 = arith.muli %c0_i32, %c8_i32 : i32
    %12 = tpu.assume_multiple %11, 8 : i32
    %cst_12 = arith.constant dense<0.000000e+00> : vector<8x512xf32>
    %13 = tpu.matmul %4, %3, %cst_12 {dimension_numbers = #tpu.dot_dimension_numbers<[1], [0], [0], [1], [0, 0, 1, 1], [], []>} : vector<8x128xf32>, vector<128x512xf32>, vector<8x512xf32> -> vector<8x512xf32>
    %14 = arith.index_cast %12 : i32 to index
    %c0_13 = arith.constant 0 : index
    %15 = vector.load %arg11[%14, %c0_13] : memref<64x512xf32, #tpu.memory_space<vmem>>, vector<8x512xf32>
    %16 = arith.addf %13, %15 : vector<8x512xf32>
    %17 = vector.extract_strided_slice %16 {offsets = [0, 0], sizes = [8, 128], strides = [1, 1]} : vector<8x512xf32> to vector<8x128xf32>
    %cst_14 = arith.constant 5.000000e-01 : f32
    %18 = vector.broadcast %cst_14 : f32 to vector<8x128xf32>
    %19 = arith.mulf %18, %17 : vector<8x128xf32>
    %20 = math.tanh %19 : vector<8x128xf32>
    %cst_15 = arith.constant 5.000000e-01 : f32
    %21 = vector.broadcast %cst_15 : f32 to vector<8x128xf32>
    %22 = arith.mulf %21, %20 : vector<8x128xf32>
    %cst_16 = arith.constant 5.000000e-01 : f32
    %23 = vector.broadcast %cst_16 : f32 to vector<8x128xf32>
    %24 = arith.addf %22, %23 : vector<8x128xf32>
    %25 = vector.extract_strided_slice %16 {offsets = [0, 128], sizes = [8, 128], strides = [1, 1]} : vector<8x512xf32> to vector<8x128xf32>
    %cst_17 = arith.constant 5.000000e-01 : f32
    %26 = vector.broadcast %cst_17 : f32 to vector<8x128xf32>
    %27 = arith.mulf %26, %25 : vector<8x128xf32>
    %28 = math.tanh %27 : vector<8x128xf32>
    %cst_18 = arith.constant 5.000000e-01 : f32
    %29 = vector.broadcast %cst_18 : f32 to vector<8x128xf32>
    %30 = arith.mulf %29, %28 : vector<8x128xf32>
    %cst_19 = arith.constant 5.000000e-01 : f32
    %31 = vector.broadcast %cst_19 : f32 to vector<8x128xf32>
    %32 = arith.addf %30, %31 : vector<8x128xf32>
    %33 = vector.extract_strided_slice %16 {offsets = [0, 256], sizes = [8, 128], strides = [1, 1]} : vector<8x512xf32> to vector<8x128xf32>
    %34 = math.tanh %33 : vector<8x128xf32>
    %35 = vector.extract_strided_slice %16 {offsets = [0, 384], sizes = [8, 128], strides = [1, 1]} : vector<8x512xf32> to vector<8x128xf32>
    %cst_20 = arith.constant 5.000000e-01 : f32
    %36 = vector.broadcast %cst_20 : f32 to vector<8x128xf32>
    %37 = arith.mulf %36, %35 : vector<8x128xf32>
    %38 = math.tanh %37 : vector<8x128xf32>
    %cst_21 = arith.constant 5.000000e-01 : f32
    %39 = vector.broadcast %cst_21 : f32 to vector<8x128xf32>
    %40 = arith.mulf %39, %38 : vector<8x128xf32>
    %cst_22 = arith.constant 5.000000e-01 : f32
    %41 = vector.broadcast %cst_22 : f32 to vector<8x128xf32>
    %42 = arith.addf %40, %41 : vector<8x128xf32>
    %43 = arith.mulf %32, %4 : vector<8x128xf32>
    %44 = arith.mulf %24, %34 : vector<8x128xf32>
    %45 = arith.addf %43, %44 : vector<8x128xf32>
    %46 = math.tanh %45 : vector<8x128xf32>
    %47 = arith.mulf %42, %46 : vector<8x128xf32>
    %c0_i32_23 = arith.constant 0 : i32
    %48 = arith.addi %c0_i32_23, %c0_i32 : i32
    %c8_i32_24 = arith.constant 8 : i32
    %49 = arith.muli %48, %c8_i32_24 : i32
    %50 = tpu.assume_multiple %49, 8 : i32
    %51 = arith.index_cast %50 : i32 to index
    %c0_25 = arith.constant 0 : index
    %52 = vector.load %arg10[%51, %c0_25] : memref<64x128xf32, #tpu.memory_space<vmem>>, vector<8x128xf32>
    tpu.vector_store %arg10[%51, %c0_25], %47 {strides = array<i32>} : memref<64x128xf32, #tpu.memory_space<vmem>>, vector<8x128xf32>,
    %c1_i32 = arith.constant 1 : i32
    %c8_i32_26 = arith.constant 8 : i32
    %53 = arith.muli %c1_i32, %c8_i32_26 : i32
    %54 = tpu.assume_multiple %53, 8 : i32
    %cst_27 = arith.constant dense<0.000000e+00> : vector<8x512xf32>
    %55 = tpu.matmul %47, %3, %cst_27 {dimension_numbers = #tpu.dot_dimension_numbers<[1], [0], [0], [1], [0, 0, 1, 1], [], []>} : vector<8x128xf32>, vector<128x512xf32>, vector<8x512xf32> -> vector<8x512xf32>
    %56 = arith.index_cast %54 : i32 to index
    %c0_28 = arith.constant 0 : index
    %57 = vector.load %arg11[%56, %c0_28] : memref<64x512xf32, #tpu.memory_space<vmem>>, vector<8x512xf32>
    %58 = arith.addf %55, %57 : vector<8x512xf32>
    %59 = vector.extract_strided_slice %58 {offsets = [0, 0], sizes = [8, 128], strides = [1, 1]} : vector<8x512xf32> to vector<8x128xf32>
    %cst_29 = arith.constant 5.000000e-01 : f32
    %60 = vector.broadcast %cst_29 : f32 to vector<8x128xf32>
    %61 = arith.mulf %60, %59 : vector<8x128xf32>
    %62 = math.tanh %61 : vector<8x128xf32>
    %cst_30 = arith.constant 5.000000e-01 : f32
    %63 = vector.broadcast %cst_30 : f32 to vector<8x128xf32>
    %64 = arith.mulf %63, %62 : vector<8x128xf32>
    %cst_31 = arith.constant 5.000000e-01 : f32
    %65 = vector.broadcast %cst_31 : f32 to vector<8x128xf32>
    %66 = arith.addf %64, %65 : vector<8x128xf32>
    %67 = vector.extract_strided_slice %58 {offsets = [0, 128], sizes = [8, 128], strides = [1, 1]} : vector<8x512xf32> to vector<8x128xf32>
    %cst_32 = arith.constant 5.000000e-01 : f32
    %68 = vector.broadcast %cst_32 : f32 to vector<8x128xf32>
    %69 = arith.mulf %68, %67 : vector<8x128xf32>
    %70 = math.tanh %69 : vector<8x128xf32>
    %cst_33 = arith.constant 5.000000e-01 : f32
    %71 = vector.broadcast %cst_33 : f32 to vector<8x128xf32>
    %72 = arith.mulf %71, %70 : vector<8x128xf32>
    %cst_34 = arith.constant 5.000000e-01 : f32
    %73 = vector.broadcast %cst_34 : f32 to vector<8x128xf32>
    %74 = arith.addf %72, %73 : vector<8x128xf32>
    %75 = vector.extract_strided_slice %58 {offsets = [0, 256], sizes = [8, 128], strides = [1, 1]} : vector<8x512xf32> to vector<8x128xf32>
    %76 = math.tanh %75 : vector<8x128xf32>
    %77 = vector.extract_strided_slice %58 {offsets = [0, 384], sizes = [8, 128], strides = [1, 1]} : vector<8x512xf32> to vector<8x128xf32>
    %cst_35 = arith.constant 5.000000e-01 : f32
    %78 = vector.broadcast %cst_35 : f32 to vector<8x128xf32>
    %79 = arith.mulf %78, %77 : vector<8x128xf32>
    %80 = math.tanh %79 : vector<8x128xf32>
    %cst_36 = arith.constant 5.000000e-01 : f32
    %81 = vector.broadcast %cst_36 : f32 to vector<8x128xf32>
    %82 = arith.mulf %81, %80 : vector<8x128xf32>
    %cst_37 = arith.constant 5.000000e-01 : f32
    %83 = vector.broadcast %cst_37 : f32 to vector<8x128xf32>
    %84 = arith.addf %82, %83 : vector<8x128xf32>
    %85 = arith.mulf %74, %45 : vector<8x128xf32>
    %86 = arith.mulf %66, %76 : vector<8x128xf32>
    %87 = arith.addf %85, %86 : vector<8x128xf32>
    %88 = math.tanh %87 : vector<8x128xf32>
    %89 = arith.mulf %84, %88 : vector<8x128xf32>
    %c0_i32_38 = arith.constant 0 : i32
    %90 = arith.addi %c0_i32_38, %c1_i32 : i32
    %c8_i32_39 = arith.constant 8 : i32
    %91 = arith.muli %90, %c8_i32_39 : i32
    %92 = tpu.assume_multiple %91, 8 : i32
    %93 = arith.index_cast %92 : i32 to index
    %c0_40 = arith.constant 0 : index
    %94 = vector.load %arg10[%93, %c0_40] : memref<64x128xf32, #tpu.memory_space<vmem>>, vector<8x128xf32>
    tpu.vector_store %arg10[%93, %c0_40], %89 {strides = array<i32>} : memref<64x128xf32, #tpu.memory_space<vmem>>, vector<8x128xf32>,
    %c2_i32 = arith.constant 2 : i32
    %c8_i32_41 = arith.constant 8 : i32
    %95 = arith.muli %c2_i32, %c8_i32_41 : i32
    %96 = tpu.assume_multiple %95, 8 : i32
    %cst_42 = arith.constant dense<0.000000e+00> : vector<8x512xf32>
    %97 = tpu.matmul %89, %3, %cst_42 {dimension_numbers = #tpu.dot_dimension_numbers<[1], [0], [0], [1], [0, 0, 1, 1], [], []>} : vector<8x128xf32>, vector<128x512xf32>, vector<8x512xf32> -> vector<8x512xf32>
    %98 = arith.index_cast %96 : i32 to index
    %c0_43 = arith.constant 0 : index
    %99 = vector.load %arg11[%98, %c0_43] : memref<64x512xf32, #tpu.memory_space<vmem>>, vector<8x512xf32>
    %100 = arith.addf %97, %99 : vector<8x512xf32>
    %101 = vector.extract_strided_slice %100 {offsets = [0, 0], sizes = [8, 128], strides = [1, 1]} : vector<8x512xf32> to vector<8x128xf32>
    %cst_44 = arith.constant 5.000000e-01 : f32
    %102 = vector.broadcast %cst_44 : f32 to vector<8x128xf32>
    %103 = arith.mulf %102, %101 : vector<8x128xf32>
    %104 = math.tanh %103 : vector<8x128xf32>
    %cst_45 = arith.constant 5.000000e-01 : f32
    %105 = vector.broadcast %cst_45 : f32 to vector<8x128xf32>
    %106 = arith.mulf %105, %104 : vector<8x128xf32>
    %cst_46 = arith.constant 5.000000e-01 : f32
    %107 = vector.broadcast %cst_46 : f32 to vector<8x128xf32>
    %108 = arith.addf %106, %107 : vector<8x128xf32>
    %109 = vector.extract_strided_slice %100 {offsets = [0, 128], sizes = [8, 128], strides = [1, 1]} : vector<8x512xf32> to vector<8x128xf32>
    %cst_47 = arith.constant 5.000000e-01 : f32
    %110 = vector.broadcast %cst_47 : f32 to vector<8x128xf32>
    %111 = arith.mulf %110, %109 : vector<8x128xf32>
    %112 = math.tanh %111 : vector<8x128xf32>
    %cst_48 = arith.constant 5.000000e-01 : f32
    %113 = vector.broadcast %cst_48 : f32 to vector<8x128xf32>
    %114 = arith.mulf %113, %112 : vector<8x128xf32>
    %cst_49 = arith.constant 5.000000e-01 : f32
    %115 = vector.broadcast %cst_49 : f32 to vector<8x128xf32>
    %116 = arith.addf %114, %115 : vector<8x128xf32>
    %117 = vector.extract_strided_slice %100 {offsets = [0, 256], sizes = [8, 128], strides = [1, 1]} : vector<8x512xf32> to vector<8x128xf32>
    %118 = math.tanh %117 : vector<8x128xf32>
    %119 = vector.extract_strided_slice %100 {offsets = [0, 384], sizes = [8, 128], strides = [1, 1]} : vector<8x512xf32> to vector<8x128xf32>
    %cst_50 = arith.constant 5.000000e-01 : f32
    %120 = vector.broadcast %cst_50 : f32 to vector<8x128xf32>
    %121 = arith.mulf %120, %119 : vector<8x128xf32>
    %122 = math.tanh %121 : vector<8x128xf32>
    %cst_51 = arith.constant 5.000000e-01 : f32
    %123 = vector.broadcast %cst_51 : f32 to vector<8x128xf32>
    %124 = arith.mulf %123, %122 : vector<8x128xf32>
    %cst_52 = arith.constant 5.000000e-01 : f32
    %125 = vector.broadcast %cst_52 : f32 to vector<8x128xf32>
    %126 = arith.addf %124, %125 : vector<8x128xf32>
    %127 = arith.mulf %116, %87 : vector<8x128xf32>
    %128 = arith.mulf %108, %118 : vector<8x128xf32>
    %129 = arith.addf %127, %128 : vector<8x128xf32>
    %130 = math.tanh %129 : vector<8x128xf32>
    %131 = arith.mulf %126, %130 : vector<8x128xf32>
    %c0_i32_53 = arith.constant 0 : i32
    %132 = arith.addi %c0_i32_53, %c2_i32 : i32
    %c8_i32_54 = arith.constant 8 : i32
    %133 = arith.muli %132, %c8_i32_54 : i32
    %134 = tpu.assume_multiple %133, 8 : i32
    %135 = arith.index_cast %134 : i32 to index
    %c0_55 = arith.constant 0 : index
    %136 = vector.load %arg10[%135, %c0_55] : memref<64x128xf32, #tpu.memory_space<vmem>>, vector<8x128xf32>
    tpu.vector_store %arg10[%135, %c0_55], %131 {strides = array<i32>} : memref<64x128xf32, #tpu.memory_space<vmem>>, vector<8x128xf32>,
    %c3_i32 = arith.constant 3 : i32
    %c8_i32_56 = arith.constant 8 : i32
    %137 = arith.muli %c3_i32, %c8_i32_56 : i32
    %138 = tpu.assume_multiple %137, 8 : i32
    %cst_57 = arith.constant dense<0.000000e+00> : vector<8x512xf32>
    %139 = tpu.matmul %131, %3, %cst_57 {dimension_numbers = #tpu.dot_dimension_numbers<[1], [0], [0], [1], [0, 0, 1, 1], [], []>} : vector<8x128xf32>, vector<128x512xf32>, vector<8x512xf32> -> vector<8x512xf32>
    %140 = arith.index_cast %138 : i32 to index
    %c0_58 = arith.constant 0 : index
    %141 = vector.load %arg11[%140, %c0_58] : memref<64x512xf32, #tpu.memory_space<vmem>>, vector<8x512xf32>
    %142 = arith.addf %139, %141 : vector<8x512xf32>
    %143 = vector.extract_strided_slice %142 {offsets = [0, 0], sizes = [8, 128], strides = [1, 1]} : vector<8x512xf32> to vector<8x128xf32>
    %cst_59 = arith.constant 5.000000e-01 : f32
    %144 = vector.broadcast %cst_59 : f32 to vector<8x128xf32>
    %145 = arith.mulf %144, %143 : vector<8x128xf32>
    %146 = math.tanh %145 : vector<8x128xf32>
    %cst_60 = arith.constant 5.000000e-01 : f32
    %147 = vector.broadcast %cst_60 : f32 to vector<8x128xf32>
    %148 = arith.mulf %147, %146 : vector<8x128xf32>
    %cst_61 = arith.constant 5.000000e-01 : f32
    %149 = vector.broadcast %cst_61 : f32 to vector<8x128xf32>
    %150 = arith.addf %148, %149 : vector<8x128xf32>
    %151 = vector.extract_strided_slice %142 {offsets = [0, 128], sizes = [8, 128], strides = [1, 1]} : vector<8x512xf32> to vector<8x128xf32>
    %cst_62 = arith.constant 5.000000e-01 : f32
    %152 = vector.broadcast %cst_62 : f32 to vector<8x128xf32>
    %153 = arith.mulf %152, %151 : vector<8x128xf32>
    %154 = math.tanh %153 : vector<8x128xf32>
    %cst_63 = arith.constant 5.000000e-01 : f32
    %155 = vector.broadcast %cst_63 : f32 to vector<8x128xf32>
    %156 = arith.mulf %155, %154 : vector<8x128xf32>
    %cst_64 = arith.constant 5.000000e-01 : f32
    %157 = vector.broadcast %cst_64 : f32 to vector<8x128xf32>
    %158 = arith.addf %156, %157 : vector<8x128xf32>
    %159 = vector.extract_strided_slice %142 {offsets = [0, 256], sizes = [8, 128], strides = [1, 1]} : vector<8x512xf32> to vector<8x128xf32>
    %160 = math.tanh %159 : vector<8x128xf32>
    %161 = vector.extract_strided_slice %142 {offsets = [0, 384], sizes = [8, 128], strides = [1, 1]} : vector<8x512xf32> to vector<8x128xf32>
    %cst_65 = arith.constant 5.000000e-01 : f32
    %162 = vector.broadcast %cst_65 : f32 to vector<8x128xf32>
    %163 = arith.mulf %162, %161 : vector<8x128xf32>
    %164 = math.tanh %163 : vector<8x128xf32>
    %cst_66 = arith.constant 5.000000e-01 : f32
    %165 = vector.broadcast %cst_66 : f32 to vector<8x128xf32>
    %166 = arith.mulf %165, %164 : vector<8x128xf32>
    %cst_67 = arith.constant 5.000000e-01 : f32
    %167 = vector.broadcast %cst_67 : f32 to vector<8x128xf32>
    %168 = arith.addf %166, %167 : vector<8x128xf32>
    %169 = arith.mulf %158, %129 : vector<8x128xf32>
    %170 = arith.mulf %150, %160 : vector<8x128xf32>
    %171 = arith.addf %169, %170 : vector<8x128xf32>
    %172 = math.tanh %171 : vector<8x128xf32>
    %173 = arith.mulf %168, %172 : vector<8x128xf32>
    %c0_i32_68 = arith.constant 0 : i32
    %174 = arith.addi %c0_i32_68, %c3_i32 : i32
    %c8_i32_69 = arith.constant 8 : i32
    %175 = arith.muli %174, %c8_i32_69 : i32
    %176 = tpu.assume_multiple %175, 8 : i32
    %177 = arith.index_cast %176 : i32 to index
    %c0_70 = arith.constant 0 : index
    %178 = vector.load %arg10[%177, %c0_70] : memref<64x128xf32, #tpu.memory_space<vmem>>, vector<8x128xf32>
    tpu.vector_store %arg10[%177, %c0_70], %173 {strides = array<i32>} : memref<64x128xf32, #tpu.memory_space<vmem>>, vector<8x128xf32>,
    %c4_i32 = arith.constant 4 : i32
    %c8_i32_71 = arith.constant 8 : i32
    %179 = arith.muli %c4_i32, %c8_i32_71 : i32
    %180 = tpu.assume_multiple %179, 8 : i32
    %cst_72 = arith.constant dense<0.000000e+00> : vector<8x512xf32>
    %181 = tpu.matmul %173, %3, %cst_72 {dimension_numbers = #tpu.dot_dimension_numbers<[1], [0], [0], [1], [0, 0, 1, 1], [], []>} : vector<8x128xf32>, vector<128x512xf32>, vector<8x512xf32> -> vector<8x512xf32>
    %182 = arith.index_cast %180 : i32 to index
    %c0_73 = arith.constant 0 : index
    %183 = vector.load %arg11[%182, %c0_73] : memref<64x512xf32, #tpu.memory_space<vmem>>, vector<8x512xf32>
    %184 = arith.addf %181, %183 : vector<8x512xf32>
    %185 = vector.extract_strided_slice %184 {offsets = [0, 0], sizes = [8, 128], strides = [1, 1]} : vector<8x512xf32> to vector<8x128xf32>
    %cst_74 = arith.constant 5.000000e-01 : f32
    %186 = vector.broadcast %cst_74 : f32 to vector<8x128xf32>
    %187 = arith.mulf %186, %185 : vector<8x128xf32>
    %188 = math.tanh %187 : vector<8x128xf32>
    %cst_75 = arith.constant 5.000000e-01 : f32
    %189 = vector.broadcast %cst_75 : f32 to vector<8x128xf32>
    %190 = arith.mulf %189, %188 : vector<8x128xf32>
    %cst_76 = arith.constant 5.000000e-01 : f32
    %191 = vector.broadcast %cst_76 : f32 to vector<8x128xf32>
    %192 = arith.addf %190, %191 : vector<8x128xf32>
    %193 = vector.extract_strided_slice %184 {offsets = [0, 128], sizes = [8, 128], strides = [1, 1]} : vector<8x512xf32> to vector<8x128xf32>
    %cst_77 = arith.constant 5.000000e-01 : f32
    %194 = vector.broadcast %cst_77 : f32 to vector<8x128xf32>
    %195 = arith.mulf %194, %193 : vector<8x128xf32>
    %196 = math.tanh %195 : vector<8x128xf32>
    %cst_78 = arith.constant 5.000000e-01 : f32
    %197 = vector.broadcast %cst_78 : f32 to vector<8x128xf32>
    %198 = arith.mulf %197, %196 : vector<8x128xf32>
    %cst_79 = arith.constant 5.000000e-01 : f32
    %199 = vector.broadcast %cst_79 : f32 to vector<8x128xf32>
    %200 = arith.addf %198, %199 : vector<8x128xf32>
    %201 = vector.extract_strided_slice %184 {offsets = [0, 256], sizes = [8, 128], strides = [1, 1]} : vector<8x512xf32> to vector<8x128xf32>
    %202 = math.tanh %201 : vector<8x128xf32>
    %203 = vector.extract_strided_slice %184 {offsets = [0, 384], sizes = [8, 128], strides = [1, 1]} : vector<8x512xf32> to vector<8x128xf32>
    %cst_80 = arith.constant 5.000000e-01 : f32
    %204 = vector.broadcast %cst_80 : f32 to vector<8x128xf32>
    %205 = arith.mulf %204, %203 : vector<8x128xf32>
    %206 = math.tanh %205 : vector<8x128xf32>
    %cst_81 = arith.constant 5.000000e-01 : f32
    %207 = vector.broadcast %cst_81 : f32 to vector<8x128xf32>
    %208 = arith.mulf %207, %206 : vector<8x128xf32>
    %cst_82 = arith.constant 5.000000e-01 : f32
    %209 = vector.broadcast %cst_82 : f32 to vector<8x128xf32>
    %210 = arith.addf %208, %209 : vector<8x128xf32>
    %211 = arith.mulf %200, %171 : vector<8x128xf32>
    %212 = arith.mulf %192, %202 : vector<8x128xf32>
    %213 = arith.addf %211, %212 : vector<8x128xf32>
    %214 = math.tanh %213 : vector<8x128xf32>
    %215 = arith.mulf %210, %214 : vector<8x128xf32>
    %c0_i32_83 = arith.constant 0 : i32
    %216 = arith.addi %c0_i32_83, %c4_i32 : i32
    %c8_i32_84 = arith.constant 8 : i32
    %217 = arith.muli %216, %c8_i32_84 : i32
    %218 = tpu.assume_multiple %217, 8 : i32
    %219 = arith.index_cast %218 : i32 to index
    %c0_85 = arith.constant 0 : index
    %220 = vector.load %arg10[%219, %c0_85] : memref<64x128xf32, #tpu.memory_space<vmem>>, vector<8x128xf32>
    tpu.vector_store %arg10[%219, %c0_85], %215 {strides = array<i32>} : memref<64x128xf32, #tpu.memory_space<vmem>>, vector<8x128xf32>,
    %c5_i32 = arith.constant 5 : i32
    %c8_i32_86 = arith.constant 8 : i32
    %221 = arith.muli %c5_i32, %c8_i32_86 : i32
    %222 = tpu.assume_multiple %221, 8 : i32
    %cst_87 = arith.constant dense<0.000000e+00> : vector<8x512xf32>
    %223 = tpu.matmul %215, %3, %cst_87 {dimension_numbers = #tpu.dot_dimension_numbers<[1], [0], [0], [1], [0, 0, 1, 1], [], []>} : vector<8x128xf32>, vector<128x512xf32>, vector<8x512xf32> -> vector<8x512xf32>
    %224 = arith.index_cast %222 : i32 to index
    %c0_88 = arith.constant 0 : index
    %225 = vector.load %arg11[%224, %c0_88] : memref<64x512xf32, #tpu.memory_space<vmem>>, vector<8x512xf32>
    %226 = arith.addf %223, %225 : vector<8x512xf32>
    %227 = vector.extract_strided_slice %226 {offsets = [0, 0], sizes = [8, 128], strides = [1, 1]} : vector<8x512xf32> to vector<8x128xf32>
    %cst_89 = arith.constant 5.000000e-01 : f32
    %228 = vector.broadcast %cst_89 : f32 to vector<8x128xf32>
    %229 = arith.mulf %228, %227 : vector<8x128xf32>
    %230 = math.tanh %229 : vector<8x128xf32>
    %cst_90 = arith.constant 5.000000e-01 : f32
    %231 = vector.broadcast %cst_90 : f32 to vector<8x128xf32>
    %232 = arith.mulf %231, %230 : vector<8x128xf32>
    %cst_91 = arith.constant 5.000000e-01 : f32
    %233 = vector.broadcast %cst_91 : f32 to vector<8x128xf32>
    %234 = arith.addf %232, %233 : vector<8x128xf32>
    %235 = vector.extract_strided_slice %226 {offsets = [0, 128], sizes = [8, 128], strides = [1, 1]} : vector<8x512xf32> to vector<8x128xf32>
    %cst_92 = arith.constant 5.000000e-01 : f32
    %236 = vector.broadcast %cst_92 : f32 to vector<8x128xf32>
    %237 = arith.mulf %236, %235 : vector<8x128xf32>
    %238 = math.tanh %237 : vector<8x128xf32>
    %cst_93 = arith.constant 5.000000e-01 : f32
    %239 = vector.broadcast %cst_93 : f32 to vector<8x128xf32>
    %240 = arith.mulf %239, %238 : vector<8x128xf32>
    %cst_94 = arith.constant 5.000000e-01 : f32
    %241 = vector.broadcast %cst_94 : f32 to vector<8x128xf32>
    %242 = arith.addf %240, %241 : vector<8x128xf32>
    %243 = vector.extract_strided_slice %226 {offsets = [0, 256], sizes = [8, 128], strides = [1, 1]} : vector<8x512xf32> to vector<8x128xf32>
    %244 = math.tanh %243 : vector<8x128xf32>
    %245 = vector.extract_strided_slice %226 {offsets = [0, 384], sizes = [8, 128], strides = [1, 1]} : vector<8x512xf32> to vector<8x128xf32>
    %cst_95 = arith.constant 5.000000e-01 : f32
    %246 = vector.broadcast %cst_95 : f32 to vector<8x128xf32>
    %247 = arith.mulf %246, %245 : vector<8x128xf32>
    %248 = math.tanh %247 : vector<8x128xf32>
    %cst_96 = arith.constant 5.000000e-01 : f32
    %249 = vector.broadcast %cst_96 : f32 to vector<8x128xf32>
    %250 = arith.mulf %249, %248 : vector<8x128xf32>
    %cst_97 = arith.constant 5.000000e-01 : f32
    %251 = vector.broadcast %cst_97 : f32 to vector<8x128xf32>
    %252 = arith.addf %250, %251 : vector<8x128xf32>
    %253 = arith.mulf %242, %213 : vector<8x128xf32>
    %254 = arith.mulf %234, %244 : vector<8x128xf32>
    %255 = arith.addf %253, %254 : vector<8x128xf32>
    %256 = math.tanh %255 : vector<8x128xf32>
    %257 = arith.mulf %252, %256 : vector<8x128xf32>
    %c0_i32_98 = arith.constant 0 : i32
    %258 = arith.addi %c0_i32_98, %c5_i32 : i32
    %c8_i32_99 = arith.constant 8 : i32
    %259 = arith.muli %258, %c8_i32_99 : i32
    %260 = tpu.assume_multiple %259, 8 : i32
    %261 = arith.index_cast %260 : i32 to index
    %c0_100 = arith.constant 0 : index
    %262 = vector.load %arg10[%261, %c0_100] : memref<64x128xf32, #tpu.memory_space<vmem>>, vector<8x128xf32>
    tpu.vector_store %arg10[%261, %c0_100], %257 {strides = array<i32>} : memref<64x128xf32, #tpu.memory_space<vmem>>, vector<8x128xf32>,
    %c6_i32 = arith.constant 6 : i32
    %c8_i32_101 = arith.constant 8 : i32
    %263 = arith.muli %c6_i32, %c8_i32_101 : i32
    %264 = tpu.assume_multiple %263, 8 : i32
    %cst_102 = arith.constant dense<0.000000e+00> : vector<8x512xf32>
    %265 = tpu.matmul %257, %3, %cst_102 {dimension_numbers = #tpu.dot_dimension_numbers<[1], [0], [0], [1], [0, 0, 1, 1], [], []>} : vector<8x128xf32>, vector<128x512xf32>, vector<8x512xf32> -> vector<8x512xf32>
    %266 = arith.index_cast %264 : i32 to index
    %c0_103 = arith.constant 0 : index
    %267 = vector.load %arg11[%266, %c0_103] : memref<64x512xf32, #tpu.memory_space<vmem>>, vector<8x512xf32>
    %268 = arith.addf %265, %267 : vector<8x512xf32>
    %269 = vector.extract_strided_slice %268 {offsets = [0, 0], sizes = [8, 128], strides = [1, 1]} : vector<8x512xf32> to vector<8x128xf32>
    %cst_104 = arith.constant 5.000000e-01 : f32
    %270 = vector.broadcast %cst_104 : f32 to vector<8x128xf32>
    %271 = arith.mulf %270, %269 : vector<8x128xf32>
    %272 = math.tanh %271 : vector<8x128xf32>
    %cst_105 = arith.constant 5.000000e-01 : f32
    %273 = vector.broadcast %cst_105 : f32 to vector<8x128xf32>
    %274 = arith.mulf %273, %272 : vector<8x128xf32>
    %cst_106 = arith.constant 5.000000e-01 : f32
    %275 = vector.broadcast %cst_106 : f32 to vector<8x128xf32>
    %276 = arith.addf %274, %275 : vector<8x128xf32>
    %277 = vector.extract_strided_slice %268 {offsets = [0, 128], sizes = [8, 128], strides = [1, 1]} : vector<8x512xf32> to vector<8x128xf32>
    %cst_107 = arith.constant 5.000000e-01 : f32
    %278 = vector.broadcast %cst_107 : f32 to vector<8x128xf32>
    %279 = arith.mulf %278, %277 : vector<8x128xf32>
    %280 = math.tanh %279 : vector<8x128xf32>
    %cst_108 = arith.constant 5.000000e-01 : f32
    %281 = vector.broadcast %cst_108 : f32 to vector<8x128xf32>
    %282 = arith.mulf %281, %280 : vector<8x128xf32>
    %cst_109 = arith.constant 5.000000e-01 : f32
    %283 = vector.broadcast %cst_109 : f32 to vector<8x128xf32>
    %284 = arith.addf %282, %283 : vector<8x128xf32>
    %285 = vector.extract_strided_slice %268 {offsets = [0, 256], sizes = [8, 128], strides = [1, 1]} : vector<8x512xf32> to vector<8x128xf32>
    %286 = math.tanh %285 : vector<8x128xf32>
    %287 = vector.extract_strided_slice %268 {offsets = [0, 384], sizes = [8, 128], strides = [1, 1]} : vector<8x512xf32> to vector<8x128xf32>
    %cst_110 = arith.constant 5.000000e-01 : f32
    %288 = vector.broadcast %cst_110 : f32 to vector<8x128xf32>
    %289 = arith.mulf %288, %287 : vector<8x128xf32>
    %290 = math.tanh %289 : vector<8x128xf32>
    %cst_111 = arith.constant 5.000000e-01 : f32
    %291 = vector.broadcast %cst_111 : f32 to vector<8x128xf32>
    %292 = arith.mulf %291, %290 : vector<8x128xf32>
    %cst_112 = arith.constant 5.000000e-01 : f32
    %293 = vector.broadcast %cst_112 : f32 to vector<8x128xf32>
    %294 = arith.addf %292, %293 : vector<8x128xf32>
    %295 = arith.mulf %284, %255 : vector<8x128xf32>
    %296 = arith.mulf %276, %286 : vector<8x128xf32>
    %297 = arith.addf %295, %296 : vector<8x128xf32>
    %298 = math.tanh %297 : vector<8x128xf32>
    %299 = arith.mulf %294, %298 : vector<8x128xf32>
    %c0_i32_113 = arith.constant 0 : i32
    %300 = arith.addi %c0_i32_113, %c6_i32 : i32
    %c8_i32_114 = arith.constant 8 : i32
    %301 = arith.muli %300, %c8_i32_114 : i32
    %302 = tpu.assume_multiple %301, 8 : i32
    %303 = arith.index_cast %302 : i32 to index
    %c0_115 = arith.constant 0 : index
    %304 = vector.load %arg10[%303, %c0_115] : memref<64x128xf32, #tpu.memory_space<vmem>>, vector<8x128xf32>
    tpu.vector_store %arg10[%303, %c0_115], %299 {strides = array<i32>} : memref<64x128xf32, #tpu.memory_space<vmem>>, vector<8x128xf32>,
    %c7_i32 = arith.constant 7 : i32
    %c8_i32_116 = arith.constant 8 : i32
    %305 = arith.muli %c7_i32, %c8_i32_116 : i32
    %306 = tpu.assume_multiple %305, 8 : i32
    %cst_117 = arith.constant dense<0.000000e+00> : vector<8x512xf32>
    %307 = tpu.matmul %299, %3, %cst_117 {dimension_numbers = #tpu.dot_dimension_numbers<[1], [0], [0], [1], [0, 0, 1, 1], [], []>} : vector<8x128xf32>, vector<128x512xf32>, vector<8x512xf32> -> vector<8x512xf32>
    %308 = arith.index_cast %306 : i32 to index
    %c0_118 = arith.constant 0 : index
    %309 = vector.load %arg11[%308, %c0_118] : memref<64x512xf32, #tpu.memory_space<vmem>>, vector<8x512xf32>
    %310 = arith.addf %307, %309 : vector<8x512xf32>
    %311 = vector.extract_strided_slice %310 {offsets = [0, 0], sizes = [8, 128], strides = [1, 1]} : vector<8x512xf32> to vector<8x128xf32>
    %cst_119 = arith.constant 5.000000e-01 : f32
    %312 = vector.broadcast %cst_119 : f32 to vector<8x128xf32>
    %313 = arith.mulf %312, %311 : vector<8x128xf32>
    %314 = math.tanh %313 : vector<8x128xf32>
    %cst_120 = arith.constant 5.000000e-01 : f32
    %315 = vector.broadcast %cst_120 : f32 to vector<8x128xf32>
    %316 = arith.mulf %315, %314 : vector<8x128xf32>
    %cst_121 = arith.constant 5.000000e-01 : f32
    %317 = vector.broadcast %cst_121 : f32 to vector<8x128xf32>
    %318 = arith.addf %316, %317 : vector<8x128xf32>
    %319 = vector.extract_strided_slice %310 {offsets = [0, 128], sizes = [8, 128], strides = [1, 1]} : vector<8x512xf32> to vector<8x128xf32>
    %cst_122 = arith.constant 5.000000e-01 : f32
    %320 = vector.broadcast %cst_122 : f32 to vector<8x128xf32>
    %321 = arith.mulf %320, %319 : vector<8x128xf32>
    %322 = math.tanh %321 : vector<8x128xf32>
    %cst_123 = arith.constant 5.000000e-01 : f32
    %323 = vector.broadcast %cst_123 : f32 to vector<8x128xf32>
    %324 = arith.mulf %323, %322 : vector<8x128xf32>
    %cst_124 = arith.constant 5.000000e-01 : f32
    %325 = vector.broadcast %cst_124 : f32 to vector<8x128xf32>
    %326 = arith.addf %324, %325 : vector<8x128xf32>
    %327 = vector.extract_strided_slice %310 {offsets = [0, 256], sizes = [8, 128], strides = [1, 1]} : vector<8x512xf32> to vector<8x128xf32>
    %328 = math.tanh %327 : vector<8x128xf32>
    %329 = vector.extract_strided_slice %310 {offsets = [0, 384], sizes = [8, 128], strides = [1, 1]} : vector<8x512xf32> to vector<8x128xf32>
    %cst_125 = arith.constant 5.000000e-01 : f32
    %330 = vector.broadcast %cst_125 : f32 to vector<8x128xf32>
    %331 = arith.mulf %330, %329 : vector<8x128xf32>
    %332 = math.tanh %331 : vector<8x128xf32>
    %cst_126 = arith.constant 5.000000e-01 : f32
    %333 = vector.broadcast %cst_126 : f32 to vector<8x128xf32>
    %334 = arith.mulf %333, %332 : vector<8x128xf32>
    %cst_127 = arith.constant 5.000000e-01 : f32
    %335 = vector.broadcast %cst_127 : f32 to vector<8x128xf32>
    %336 = arith.addf %334, %335 : vector<8x128xf32>
    %337 = arith.mulf %326, %297 : vector<8x128xf32>
    %338 = arith.mulf %318, %328 : vector<8x128xf32>
    %339 = arith.addf %337, %338 : vector<8x128xf32>
    %340 = math.tanh %339 : vector<8x128xf32>
    %341 = arith.mulf %336, %340 : vector<8x128xf32>
    %c0_i32_128 = arith.constant 0 : i32
    %342 = arith.addi %c0_i32_128, %c7_i32 : i32
    %c8_i32_129 = arith.constant 8 : i32
    %343 = arith.muli %342, %c8_i32_129 : i32
    %344 = tpu.assume_multiple %343, 8 : i32
    %345 = arith.index_cast %344 : i32 to index
    %c0_130 = arith.constant 0 : index
    %346 = vector.load %arg10[%345, %c0_130] : memref<64x128xf32, #tpu.memory_space<vmem>>, vector<8x128xf32>
    tpu.vector_store %arg10[%345, %c0_130], %341 {strides = array<i32>} : memref<64x128xf32, #tpu.memory_space<vmem>>, vector<8x128xf32>,
    %c8_i32_131 = arith.constant 8 : i32
    %c0_132 = arith.constant 0 : index
    %c0_133 = arith.constant 0 : index
    %c0_134 = arith.constant 0 : index
    %347 = vector.load %arg4[%c0_132, %c0_133, %c0_134] : memref<1x128x512xf32, #tpu.memory_space<vmem>>, vector<1x128x512xf32>
    %348 = vector.shape_cast %347 : vector<1x128x512xf32> to vector<128x512xf32>
    %c0_135 = arith.constant 0 : index
    %c0_136 = arith.constant 0 : index
    %c0_137 = arith.constant 0 : index
    %349 = vector.load %arg5[%c0_135, %c0_136, %c0_137] : memref<1x1x512xf32, #tpu.memory_space<vmem>>, vector<1x1x512xf32>
    %350 = vector.shape_cast %349 : vector<1x1x512xf32> to vector<1x512xf32>
    %c1 = arith.constant 1 : index
    %c0_138 = arith.constant 0 : index
    %c0_139 = arith.constant 0 : index
    %351 = vector.load %arg6[%c1, %c0_138, %c0_139] : memref<2x128x512xf32, #tpu.memory_space<vmem>>, vector<1x128x512xf32>
    %352 = vector.shape_cast %351 : vector<1x128x512xf32> to vector<128x512xf32>
    %cst_140 = arith.constant 0.000000e+00 : f32
    %353 = vector.broadcast %cst_140 : f32 to vector<8x128xf32>
    %c0_i32_141 = arith.constant 0 : i32
    %354 = tpu.assume_multiple %c0_i32_141, 8 : i32
    %355 = arith.index_cast %354 : i32 to index
    %c0_142 = arith.constant 0 : index
    %356 = vector.load %arg10[%355, %c0_142] : memref<64x128xf32, #tpu.memory_space<vmem>>, vector<64x128xf32>
    %cst_143 = arith.constant dense<0.000000e+00> : vector<64x512xf32>
    %357 = tpu.matmul %356, %348, %cst_143 {dimension_numbers = #tpu.dot_dimension_numbers<[1], [0], [0], [1], [0, 0, 1, 1], [], []>} : vector<64x128xf32>, vector<128x512xf32>, vector<64x512xf32> -> vector<64x512xf32>
    %358 = vector.broadcast %350 : vector<1x512xf32> to vector<64x512xf32>
    %359 = arith.addf %357, %358 : vector<64x512xf32>
    %c0_144 = arith.constant 0 : index
    %c0_145 = arith.constant 0 : index
    %360 = vector.load %arg11[%c0_144, %c0_145] : memref<64x512xf32, #tpu.memory_space<vmem>>, vector<64x512xf32>
    tpu.vector_store %arg11[%c0_144, %c0_145], %359 {strides = array<i32>} : memref<64x512xf32, #tpu.memory_space<vmem>>, vector<64x512xf32>,
    %c0_i32_146 = arith.constant 0 : i32
    %c8_i32_147 = arith.constant 8 : i32
    %361 = arith.muli %c0_i32_146, %c8_i32_147 : i32
    %362 = tpu.assume_multiple %361, 8 : i32
    %cst_148 = arith.constant dense<0.000000e+00> : vector<8x512xf32>
    %363 = tpu.matmul %353, %352, %cst_148 {dimension_numbers = #tpu.dot_dimension_numbers<[1], [0], [0], [1], [0, 0, 1, 1], [], []>} : vector<8x128xf32>, vector<128x512xf32>, vector<8x512xf32> -> vector<8x512xf32>
    %364 = arith.index_cast %362 : i32 to index
    %c0_149 = arith.constant 0 : index
    %365 = vector.load %arg11[%364, %c0_149] : memref<64x512xf32, #tpu.memory_space<vmem>>, vector<8x512xf32>
    %366 = arith.addf %363, %365 : vector<8x512xf32>
    %367 = vector.extract_strided_slice %366 {offsets = [0, 0], sizes = [8, 128], strides = [1, 1]} : vector<8x512xf32> to vector<8x128xf32>
    %cst_150 = arith.constant 5.000000e-01 : f32
    %368 = vector.broadcast %cst_150 : f32 to vector<8x128xf32>
    %369 = arith.mulf %368, %367 : vector<8x128xf32>
    %370 = math.tanh %369 : vector<8x128xf32>
    %cst_151 = arith.constant 5.000000e-01 : f32
    %371 = vector.broadcast %cst_151 : f32 to vector<8x128xf32>
    %372 = arith.mulf %371, %370 : vector<8x128xf32>
    %cst_152 = arith.constant 5.000000e-01 : f32
    %373 = vector.broadcast %cst_152 : f32 to vector<8x128xf32>
    %374 = arith.addf %372, %373 : vector<8x128xf32>
    %375 = vector.extract_strided_slice %366 {offsets = [0, 128], sizes = [8, 128], strides = [1, 1]} : vector<8x512xf32> to vector<8x128xf32>
    %cst_153 = arith.constant 5.000000e-01 : f32
    %376 = vector.broadcast %cst_153 : f32 to vector<8x128xf32>
    %377 = arith.mulf %376, %375 : vector<8x128xf32>
    %378 = math.tanh %377 : vector<8x128xf32>
    %cst_154 = arith.constant 5.000000e-01 : f32
    %379 = vector.broadcast %cst_154 : f32 to vector<8x128xf32>
    %380 = arith.mulf %379, %378 : vector<8x128xf32>
    %cst_155 = arith.constant 5.000000e-01 : f32
    %381 = vector.broadcast %cst_155 : f32 to vector<8x128xf32>
    %382 = arith.addf %380, %381 : vector<8x128xf32>
    %383 = vector.extract_strided_slice %366 {offsets = [0, 256], sizes = [8, 128], strides = [1, 1]} : vector<8x512xf32> to vector<8x128xf32>
    %384 = math.tanh %383 : vector<8x128xf32>
    %385 = vector.extract_strided_slice %366 {offsets = [0, 384], sizes = [8, 128], strides = [1, 1]} : vector<8x512xf32> to vector<8x128xf32>
    %cst_156 = arith.constant 5.000000e-01 : f32
    %386 = vector.broadcast %cst_156 : f32 to vector<8x128xf32>
    %387 = arith.mulf %386, %385 : vector<8x128xf32>
    %388 = math.tanh %387 : vector<8x128xf32>
    %cst_157 = arith.constant 5.000000e-01 : f32
    %389 = vector.broadcast %cst_157 : f32 to vector<8x128xf32>
    %390 = arith.mulf %389, %388 : vector<8x128xf32>
    %cst_158 = arith.constant 5.000000e-01 : f32
    %391 = vector.broadcast %cst_158 : f32 to vector<8x128xf32>
    %392 = arith.addf %390, %391 : vector<8x128xf32>
    %393 = arith.mulf %382, %353 : vector<8x128xf32>
    %394 = arith.mulf %374, %384 : vector<8x128xf32>
    %395 = arith.addf %393, %394 : vector<8x128xf32>
    %396 = math.tanh %395 : vector<8x128xf32>
    %397 = arith.mulf %392, %396 : vector<8x128xf32>
    %c1_i32_159 = arith.constant 1 : i32
    %c8_i32_160 = arith.constant 8 : i32
    %398 = arith.muli %c1_i32_159, %c8_i32_160 : i32
    %399 = tpu.assume_multiple %398, 8 : i32
    %cst_161 = arith.constant dense<0.000000e+00> : vector<8x512xf32>
    %400 = tpu.matmul %397, %352, %cst_161 {dimension_numbers = #tpu.dot_dimension_numbers<[1], [0], [0], [1], [0, 0, 1, 1], [], []>} : vector<8x128xf32>, vector<128x512xf32>, vector<8x512xf32> -> vector<8x512xf32>
    %401 = arith.index_cast %399 : i32 to index
    %c0_162 = arith.constant 0 : index
    %402 = vector.load %arg11[%401, %c0_162] : memref<64x512xf32, #tpu.memory_space<vmem>>, vector<8x512xf32>
    %403 = arith.addf %400, %402 : vector<8x512xf32>
    %404 = vector.extract_strided_slice %403 {offsets = [0, 0], sizes = [8, 128], strides = [1, 1]} : vector<8x512xf32> to vector<8x128xf32>
    %cst_163 = arith.constant 5.000000e-01 : f32
    %405 = vector.broadcast %cst_163 : f32 to vector<8x128xf32>
    %406 = arith.mulf %405, %404 : vector<8x128xf32>
    %407 = math.tanh %406 : vector<8x128xf32>
    %cst_164 = arith.constant 5.000000e-01 : f32
    %408 = vector.broadcast %cst_164 : f32 to vector<8x128xf32>
    %409 = arith.mulf %408, %407 : vector<8x128xf32>
    %cst_165 = arith.constant 5.000000e-01 : f32
    %410 = vector.broadcast %cst_165 : f32 to vector<8x128xf32>
    %411 = arith.addf %409, %410 : vector<8x128xf32>
    %412 = vector.extract_strided_slice %403 {offsets = [0, 128], sizes = [8, 128], strides = [1, 1]} : vector<8x512xf32> to vector<8x128xf32>
    %cst_166 = arith.constant 5.000000e-01 : f32
    %413 = vector.broadcast %cst_166 : f32 to vector<8x128xf32>
    %414 = arith.mulf %413, %412 : vector<8x128xf32>
    %415 = math.tanh %414 : vector<8x128xf32>
    %cst_167 = arith.constant 5.000000e-01 : f32
    %416 = vector.broadcast %cst_167 : f32 to vector<8x128xf32>
    %417 = arith.mulf %416, %415 : vector<8x128xf32>
    %cst_168 = arith.constant 5.000000e-01 : f32
    %418 = vector.broadcast %cst_168 : f32 to vector<8x128xf32>
    %419 = arith.addf %417, %418 : vector<8x128xf32>
    %420 = vector.extract_strided_slice %403 {offsets = [0, 256], sizes = [8, 128], strides = [1, 1]} : vector<8x512xf32> to vector<8x128xf32>
    %421 = math.tanh %420 : vector<8x128xf32>
    %422 = vector.extract_strided_slice %403 {offsets = [0, 384], sizes = [8, 128], strides = [1, 1]} : vector<8x512xf32> to vector<8x128xf32>
    %cst_169 = arith.constant 5.000000e-01 : f32
    %423 = vector.broadcast %cst_169 : f32 to vector<8x128xf32>
    %424 = arith.mulf %423, %422 : vector<8x128xf32>
    %425 = math.tanh %424 : vector<8x128xf32>
    %cst_170 = arith.constant 5.000000e-01 : f32
    %426 = vector.broadcast %cst_170 : f32 to vector<8x128xf32>
    %427 = arith.mulf %426, %425 : vector<8x128xf32>
    %cst_171 = arith.constant 5.000000e-01 : f32
    %428 = vector.broadcast %cst_171 : f32 to vector<8x128xf32>
    %429 = arith.addf %427, %428 : vector<8x128xf32>
    %430 = arith.mulf %419, %395 : vector<8x128xf32>
    %431 = arith.mulf %411, %421 : vector<8x128xf32>
    %432 = arith.addf %430, %431 : vector<8x128xf32>
    %433 = math.tanh %432 : vector<8x128xf32>
    %434 = arith.mulf %429, %433 : vector<8x128xf32>
    %c2_i32_172 = arith.constant 2 : i32
    %c8_i32_173 = arith.constant 8 : i32
    %435 = arith.muli %c2_i32_172, %c8_i32_173 : i32
    %436 = tpu.assume_multiple %435, 8 : i32
    %cst_174 = arith.constant dense<0.000000e+00> : vector<8x512xf32>
    %437 = tpu.matmul %434, %352, %cst_174 {dimension_numbers = #tpu.dot_dimension_numbers<[1], [0], [0], [1], [0, 0, 1, 1], [], []>} : vector<8x128xf32>, vector<128x512xf32>, vector<8x512xf32> -> vector<8x512xf32>
    %438 = arith.index_cast %436 : i32 to index
    %c0_175 = arith.constant 0 : index
    %439 = vector.load %arg11[%438, %c0_175] : memref<64x512xf32, #tpu.memory_space<vmem>>, vector<8x512xf32>
    %440 = arith.addf %437, %439 : vector<8x512xf32>
    %441 = vector.extract_strided_slice %440 {offsets = [0, 0], sizes = [8, 128], strides = [1, 1]} : vector<8x512xf32> to vector<8x128xf32>
    %cst_176 = arith.constant 5.000000e-01 : f32
    %442 = vector.broadcast %cst_176 : f32 to vector<8x128xf32>
    %443 = arith.mulf %442, %441 : vector<8x128xf32>
    %444 = math.tanh %443 : vector<8x128xf32>
    %cst_177 = arith.constant 5.000000e-01 : f32
    %445 = vector.broadcast %cst_177 : f32 to vector<8x128xf32>
    %446 = arith.mulf %445, %444 : vector<8x128xf32>
    %cst_178 = arith.constant 5.000000e-01 : f32
    %447 = vector.broadcast %cst_178 : f32 to vector<8x128xf32>
    %448 = arith.addf %446, %447 : vector<8x128xf32>
    %449 = vector.extract_strided_slice %440 {offsets = [0, 128], sizes = [8, 128], strides = [1, 1]} : vector<8x512xf32> to vector<8x128xf32>
    %cst_179 = arith.constant 5.000000e-01 : f32
    %450 = vector.broadcast %cst_179 : f32 to vector<8x128xf32>
    %451 = arith.mulf %450, %449 : vector<8x128xf32>
    %452 = math.tanh %451 : vector<8x128xf32>
    %cst_180 = arith.constant 5.000000e-01 : f32
    %453 = vector.broadcast %cst_180 : f32 to vector<8x128xf32>
    %454 = arith.mulf %453, %452 : vector<8x128xf32>
    %cst_181 = arith.constant 5.000000e-01 : f32
    %455 = vector.broadcast %cst_181 : f32 to vector<8x128xf32>
    %456 = arith.addf %454, %455 : vector<8x128xf32>
    %457 = vector.extract_strided_slice %440 {offsets = [0, 256], sizes = [8, 128], strides = [1, 1]} : vector<8x512xf32> to vector<8x128xf32>
    %458 = math.tanh %457 : vector<8x128xf32>
    %459 = vector.extract_strided_slice %440 {offsets = [0, 384], sizes = [8, 128], strides = [1, 1]} : vector<8x512xf32> to vector<8x128xf32>
    %cst_182 = arith.constant 5.000000e-01 : f32
    %460 = vector.broadcast %cst_182 : f32 to vector<8x128xf32>
    %461 = arith.mulf %460, %459 : vector<8x128xf32>
    %462 = math.tanh %461 : vector<8x128xf32>
    %cst_183 = arith.constant 5.000000e-01 : f32
    %463 = vector.broadcast %cst_183 : f32 to vector<8x128xf32>
    %464 = arith.mulf %463, %462 : vector<8x128xf32>
    %cst_184 = arith.constant 5.000000e-01 : f32
    %465 = vector.broadcast %cst_184 : f32 to vector<8x128xf32>
    %466 = arith.addf %464, %465 : vector<8x128xf32>
    %467 = arith.mulf %456, %432 : vector<8x128xf32>
    %468 = arith.mulf %448, %458 : vector<8x128xf32>
    %469 = arith.addf %467, %468 : vector<8x128xf32>
    %470 = math.tanh %469 : vector<8x128xf32>
    %471 = arith.mulf %466, %470 : vector<8x128xf32>
    %c3_i32_185 = arith.constant 3 : i32
    %c8_i32_186 = arith.constant 8 : i32
    %472 = arith.muli %c3_i32_185, %c8_i32_186 : i32
    %473 = tpu.assume_multiple %472, 8 : i32
    %cst_187 = arith.constant dense<0.000000e+00> : vector<8x512xf32>
    %474 = tpu.matmul %471, %352, %cst_187 {dimension_numbers = #tpu.dot_dimension_numbers<[1], [0], [0], [1], [0, 0, 1, 1], [], []>} : vector<8x128xf32>, vector<128x512xf32>, vector<8x512xf32> -> vector<8x512xf32>
    %475 = arith.index_cast %473 : i32 to index
    %c0_188 = arith.constant 0 : index
    %476 = vector.load %arg11[%475, %c0_188] : memref<64x512xf32, #tpu.memory_space<vmem>>, vector<8x512xf32>
    %477 = arith.addf %474, %476 : vector<8x512xf32>
    %478 = vector.extract_strided_slice %477 {offsets = [0, 0], sizes = [8, 128], strides = [1, 1]} : vector<8x512xf32> to vector<8x128xf32>
    %cst_189 = arith.constant 5.000000e-01 : f32
    %479 = vector.broadcast %cst_189 : f32 to vector<8x128xf32>
    %480 = arith.mulf %479, %478 : vector<8x128xf32>
    %481 = math.tanh %480 : vector<8x128xf32>
    %cst_190 = arith.constant 5.000000e-01 : f32
    %482 = vector.broadcast %cst_190 : f32 to vector<8x128xf32>
    %483 = arith.mulf %482, %481 : vector<8x128xf32>
    %cst_191 = arith.constant 5.000000e-01 : f32
    %484 = vector.broadcast %cst_191 : f32 to vector<8x128xf32>
    %485 = arith.addf %483, %484 : vector<8x128xf32>
    %486 = vector.extract_strided_slice %477 {offsets = [0, 128], sizes = [8, 128], strides = [1, 1]} : vector<8x512xf32> to vector<8x128xf32>
    %cst_192 = arith.constant 5.000000e-01 : f32
    %487 = vector.broadcast %cst_192 : f32 to vector<8x128xf32>
    %488 = arith.mulf %487, %486 : vector<8x128xf32>
    %489 = math.tanh %488 : vector<8x128xf32>
    %cst_193 = arith.constant 5.000000e-01 : f32
    %490 = vector.broadcast %cst_193 : f32 to vector<8x128xf32>
    %491 = arith.mulf %490, %489 : vector<8x128xf32>
    %cst_194 = arith.constant 5.000000e-01 : f32
    %492 = vector.broadcast %cst_194 : f32 to vector<8x128xf32>
    %493 = arith.addf %491, %492 : vector<8x128xf32>
    %494 = vector.extract_strided_slice %477 {offsets = [0, 256], sizes = [8, 128], strides = [1, 1]} : vector<8x512xf32> to vector<8x128xf32>
    %495 = math.tanh %494 : vector<8x128xf32>
    %496 = vector.extract_strided_slice %477 {offsets = [0, 384], sizes = [8, 128], strides = [1, 1]} : vector<8x512xf32> to vector<8x128xf32>
    %cst_195 = arith.constant 5.000000e-01 : f32
    %497 = vector.broadcast %cst_195 : f32 to vector<8x128xf32>
    %498 = arith.mulf %497, %496 : vector<8x128xf32>
    %499 = math.tanh %498 : vector<8x128xf32>
    %cst_196 = arith.constant 5.000000e-01 : f32
    %500 = vector.broadcast %cst_196 : f32 to vector<8x128xf32>
    %501 = arith.mulf %500, %499 : vector<8x128xf32>
    %cst_197 = arith.constant 5.000000e-01 : f32
    %502 = vector.broadcast %cst_197 : f32 to vector<8x128xf32>
    %503 = arith.addf %501, %502 : vector<8x128xf32>
    %504 = arith.mulf %493, %469 : vector<8x128xf32>
    %505 = arith.mulf %485, %495 : vector<8x128xf32>
    %506 = arith.addf %504, %505 : vector<8x128xf32>
    %507 = math.tanh %506 : vector<8x128xf32>
    %508 = arith.mulf %503, %507 : vector<8x128xf32>
    %c4_i32_198 = arith.constant 4 : i32
    %c8_i32_199 = arith.constant 8 : i32
    %509 = arith.muli %c4_i32_198, %c8_i32_199 : i32
    %510 = tpu.assume_multiple %509, 8 : i32
    %cst_200 = arith.constant dense<0.000000e+00> : vector<8x512xf32>
    %511 = tpu.matmul %508, %352, %cst_200 {dimension_numbers = #tpu.dot_dimension_numbers<[1], [0], [0], [1], [0, 0, 1, 1], [], []>} : vector<8x128xf32>, vector<128x512xf32>, vector<8x512xf32> -> vector<8x512xf32>
    %512 = arith.index_cast %510 : i32 to index
    %c0_201 = arith.constant 0 : index
    %513 = vector.load %arg11[%512, %c0_201] : memref<64x512xf32, #tpu.memory_space<vmem>>, vector<8x512xf32>
    %514 = arith.addf %511, %513 : vector<8x512xf32>
    %515 = vector.extract_strided_slice %514 {offsets = [0, 0], sizes = [8, 128], strides = [1, 1]} : vector<8x512xf32> to vector<8x128xf32>
    %cst_202 = arith.constant 5.000000e-01 : f32
    %516 = vector.broadcast %cst_202 : f32 to vector<8x128xf32>
    %517 = arith.mulf %516, %515 : vector<8x128xf32>
    %518 = math.tanh %517 : vector<8x128xf32>
    %cst_203 = arith.constant 5.000000e-01 : f32
    %519 = vector.broadcast %cst_203 : f32 to vector<8x128xf32>
    %520 = arith.mulf %519, %518 : vector<8x128xf32>
    %cst_204 = arith.constant 5.000000e-01 : f32
    %521 = vector.broadcast %cst_204 : f32 to vector<8x128xf32>
    %522 = arith.addf %520, %521 : vector<8x128xf32>
    %523 = vector.extract_strided_slice %514 {offsets = [0, 128], sizes = [8, 128], strides = [1, 1]} : vector<8x512xf32> to vector<8x128xf32>
    %cst_205 = arith.constant 5.000000e-01 : f32
    %524 = vector.broadcast %cst_205 : f32 to vector<8x128xf32>
    %525 = arith.mulf %524, %523 : vector<8x128xf32>
    %526 = math.tanh %525 : vector<8x128xf32>
    %cst_206 = arith.constant 5.000000e-01 : f32
    %527 = vector.broadcast %cst_206 : f32 to vector<8x128xf32>
    %528 = arith.mulf %527, %526 : vector<8x128xf32>
    %cst_207 = arith.constant 5.000000e-01 : f32
    %529 = vector.broadcast %cst_207 : f32 to vector<8x128xf32>
    %530 = arith.addf %528, %529 : vector<8x128xf32>
    %531 = vector.extract_strided_slice %514 {offsets = [0, 256], sizes = [8, 128], strides = [1, 1]} : vector<8x512xf32> to vector<8x128xf32>
    %532 = math.tanh %531 : vector<8x128xf32>
    %533 = vector.extract_strided_slice %514 {offsets = [0, 384], sizes = [8, 128], strides = [1, 1]} : vector<8x512xf32> to vector<8x128xf32>
    %cst_208 = arith.constant 5.000000e-01 : f32
    %534 = vector.broadcast %cst_208 : f32 to vector<8x128xf32>
    %535 = arith.mulf %534, %533 : vector<8x128xf32>
    %536 = math.tanh %535 : vector<8x128xf32>
    %cst_209 = arith.constant 5.000000e-01 : f32
    %537 = vector.broadcast %cst_209 : f32 to vector<8x128xf32>
    %538 = arith.mulf %537, %536 : vector<8x128xf32>
    %cst_210 = arith.constant 5.000000e-01 : f32
    %539 = vector.broadcast %cst_210 : f32 to vector<8x128xf32>
    %540 = arith.addf %538, %539 : vector<8x128xf32>
    %541 = arith.mulf %530, %506 : vector<8x128xf32>
    %542 = arith.mulf %522, %532 : vector<8x128xf32>
    %543 = arith.addf %541, %542 : vector<8x128xf32>
    %544 = math.tanh %543 : vector<8x128xf32>
    %545 = arith.mulf %540, %544 : vector<8x128xf32>
    %c5_i32_211 = arith.constant 5 : i32
    %c8_i32_212 = arith.constant 8 : i32
    %546 = arith.muli %c5_i32_211, %c8_i32_212 : i32
    %547 = tpu.assume_multiple %546, 8 : i32
    %cst_213 = arith.constant dense<0.000000e+00> : vector<8x512xf32>
    %548 = tpu.matmul %545, %352, %cst_213 {dimension_numbers = #tpu.dot_dimension_numbers<[1], [0], [0], [1], [0, 0, 1, 1], [], []>} : vector<8x128xf32>, vector<128x512xf32>, vector<8x512xf32> -> vector<8x512xf32>
    %549 = arith.index_cast %547 : i32 to index
    %c0_214 = arith.constant 0 : index
    %550 = vector.load %arg11[%549, %c0_214] : memref<64x512xf32, #tpu.memory_space<vmem>>, vector<8x512xf32>
    %551 = arith.addf %548, %550 : vector<8x512xf32>
    %552 = vector.extract_strided_slice %551 {offsets = [0, 0], sizes = [8, 128], strides = [1, 1]} : vector<8x512xf32> to vector<8x128xf32>
    %cst_215 = arith.constant 5.000000e-01 : f32
    %553 = vector.broadcast %cst_215 : f32 to vector<8x128xf32>
    %554 = arith.mulf %553, %552 : vector<8x128xf32>
    %555 = math.tanh %554 : vector<8x128xf32>
    %cst_216 = arith.constant 5.000000e-01 : f32
    %556 = vector.broadcast %cst_216 : f32 to vector<8x128xf32>
    %557 = arith.mulf %556, %555 : vector<8x128xf32>
    %cst_217 = arith.constant 5.000000e-01 : f32
    %558 = vector.broadcast %cst_217 : f32 to vector<8x128xf32>
    %559 = arith.addf %557, %558 : vector<8x128xf32>
    %560 = vector.extract_strided_slice %551 {offsets = [0, 128], sizes = [8, 128], strides = [1, 1]} : vector<8x512xf32> to vector<8x128xf32>
    %cst_218 = arith.constant 5.000000e-01 : f32
    %561 = vector.broadcast %cst_218 : f32 to vector<8x128xf32>
    %562 = arith.mulf %561, %560 : vector<8x128xf32>
    %563 = math.tanh %562 : vector<8x128xf32>
    %cst_219 = arith.constant 5.000000e-01 : f32
    %564 = vector.broadcast %cst_219 : f32 to vector<8x128xf32>
    %565 = arith.mulf %564, %563 : vector<8x128xf32>
    %cst_220 = arith.constant 5.000000e-01 : f32
    %566 = vector.broadcast %cst_220 : f32 to vector<8x128xf32>
    %567 = arith.addf %565, %566 : vector<8x128xf32>
    %568 = vector.extract_strided_slice %551 {offsets = [0, 256], sizes = [8, 128], strides = [1, 1]} : vector<8x512xf32> to vector<8x128xf32>
    %569 = math.tanh %568 : vector<8x128xf32>
    %570 = vector.extract_strided_slice %551 {offsets = [0, 384], sizes = [8, 128], strides = [1, 1]} : vector<8x512xf32> to vector<8x128xf32>
    %cst_221 = arith.constant 5.000000e-01 : f32
    %571 = vector.broadcast %cst_221 : f32 to vector<8x128xf32>
    %572 = arith.mulf %571, %570 : vector<8x128xf32>
    %573 = math.tanh %572 : vector<8x128xf32>
    %cst_222 = arith.constant 5.000000e-01 : f32
    %574 = vector.broadcast %cst_222 : f32 to vector<8x128xf32>
    %575 = arith.mulf %574, %573 : vector<8x128xf32>
    %cst_223 = arith.constant 5.000000e-01 : f32
    %576 = vector.broadcast %cst_223 : f32 to vector<8x128xf32>
    %577 = arith.addf %575, %576 : vector<8x128xf32>
    %578 = arith.mulf %567, %543 : vector<8x128xf32>
    %579 = arith.mulf %559, %569 : vector<8x128xf32>
    %580 = arith.addf %578, %579 : vector<8x128xf32>
    %581 = math.tanh %580 : vector<8x128xf32>
    %582 = arith.mulf %577, %581 : vector<8x128xf32>
    %c6_i32_224 = arith.constant 6 : i32
    %c8_i32_225 = arith.constant 8 : i32
    %583 = arith.muli %c6_i32_224, %c8_i32_225 : i32
    %584 = tpu.assume_multiple %583, 8 : i32
    %cst_226 = arith.constant dense<0.000000e+00> : vector<8x512xf32>
    %585 = tpu.matmul %582, %352, %cst_226 {dimension_numbers = #tpu.dot_dimension_numbers<[1], [0], [0], [1], [0, 0, 1, 1], [], []>} : vector<8x128xf32>, vector<128x512xf32>, vector<8x512xf32> -> vector<8x512xf32>
    %586 = arith.index_cast %584 : i32 to index
    %c0_227 = arith.constant 0 : index
    %587 = vector.load %arg11[%586, %c0_227] : memref<64x512xf32, #tpu.memory_space<vmem>>, vector<8x512xf32>
    %588 = arith.addf %585, %587 : vector<8x512xf32>
    %589 = vector.extract_strided_slice %588 {offsets = [0, 0], sizes = [8, 128], strides = [1, 1]} : vector<8x512xf32> to vector<8x128xf32>
    %cst_228 = arith.constant 5.000000e-01 : f32
    %590 = vector.broadcast %cst_228 : f32 to vector<8x128xf32>
    %591 = arith.mulf %590, %589 : vector<8x128xf32>
    %592 = math.tanh %591 : vector<8x128xf32>
    %cst_229 = arith.constant 5.000000e-01 : f32
    %593 = vector.broadcast %cst_229 : f32 to vector<8x128xf32>
    %594 = arith.mulf %593, %592 : vector<8x128xf32>
    %cst_230 = arith.constant 5.000000e-01 : f32
    %595 = vector.broadcast %cst_230 : f32 to vector<8x128xf32>
    %596 = arith.addf %594, %595 : vector<8x128xf32>
    %597 = vector.extract_strided_slice %588 {offsets = [0, 128], sizes = [8, 128], strides = [1, 1]} : vector<8x512xf32> to vector<8x128xf32>
    %cst_231 = arith.constant 5.000000e-01 : f32
    %598 = vector.broadcast %cst_231 : f32 to vector<8x128xf32>
    %599 = arith.mulf %598, %597 : vector<8x128xf32>
    %600 = math.tanh %599 : vector<8x128xf32>
    %cst_232 = arith.constant 5.000000e-01 : f32
    %601 = vector.broadcast %cst_232 : f32 to vector<8x128xf32>
    %602 = arith.mulf %601, %600 : vector<8x128xf32>
    %cst_233 = arith.constant 5.000000e-01 : f32
    %603 = vector.broadcast %cst_233 : f32 to vector<8x128xf32>
    %604 = arith.addf %602, %603 : vector<8x128xf32>
    %605 = vector.extract_strided_slice %588 {offsets = [0, 256], sizes = [8, 128], strides = [1, 1]} : vector<8x512xf32> to vector<8x128xf32>
    %606 = math.tanh %605 : vector<8x128xf32>
    %607 = vector.extract_strided_slice %588 {offsets = [0, 384], sizes = [8, 128], strides = [1, 1]} : vector<8x512xf32> to vector<8x128xf32>
    %cst_234 = arith.constant 5.000000e-01 : f32
    %608 = vector.broadcast %cst_234 : f32 to vector<8x128xf32>
    %609 = arith.mulf %608, %607 : vector<8x128xf32>
    %610 = math.tanh %609 : vector<8x128xf32>
    %cst_235 = arith.constant 5.000000e-01 : f32
    %611 = vector.broadcast %cst_235 : f32 to vector<8x128xf32>
    %612 = arith.mulf %611, %610 : vector<8x128xf32>
    %cst_236 = arith.constant 5.000000e-01 : f32
    %613 = vector.broadcast %cst_236 : f32 to vector<8x128xf32>
    %614 = arith.addf %612, %613 : vector<8x128xf32>
    %615 = arith.mulf %604, %580 : vector<8x128xf32>
    %616 = arith.mulf %596, %606 : vector<8x128xf32>
    %617 = arith.addf %615, %616 : vector<8x128xf32>
    %618 = math.tanh %617 : vector<8x128xf32>
    %619 = arith.mulf %614, %618 : vector<8x128xf32>
    %c7_i32_237 = arith.constant 7 : i32
    %c8_i32_238 = arith.constant 8 : i32
    %620 = arith.muli %c7_i32_237, %c8_i32_238 : i32
    %621 = tpu.assume_multiple %620, 8 : i32
    %cst_239 = arith.constant dense<0.000000e+00> : vector<8x512xf32>
    %622 = tpu.matmul %619, %352, %cst_239 {dimension_numbers = #tpu.dot_dimension_numbers<[1], [0], [0], [1], [0, 0, 1, 1], [], []>} : vector<8x128xf32>, vector<128x512xf32>, vector<8x512xf32> -> vector<8x512xf32>
    %623 = arith.index_cast %621 : i32 to index
    %c0_240 = arith.constant 0 : index
    %624 = vector.load %arg11[%623, %c0_240] : memref<64x512xf32, #tpu.memory_space<vmem>>, vector<8x512xf32>
    %625 = arith.addf %622, %624 : vector<8x512xf32>
    %626 = vector.extract_strided_slice %625 {offsets = [0, 0], sizes = [8, 128], strides = [1, 1]} : vector<8x512xf32> to vector<8x128xf32>
    %cst_241 = arith.constant 5.000000e-01 : f32
    %627 = vector.broadcast %cst_241 : f32 to vector<8x128xf32>
    %628 = arith.mulf %627, %626 : vector<8x128xf32>
    %629 = math.tanh %628 : vector<8x128xf32>
    %cst_242 = arith.constant 5.000000e-01 : f32
    %630 = vector.broadcast %cst_242 : f32 to vector<8x128xf32>
    %631 = arith.mulf %630, %629 : vector<8x128xf32>
    %cst_243 = arith.constant 5.000000e-01 : f32
    %632 = vector.broadcast %cst_243 : f32 to vector<8x128xf32>
    %633 = arith.addf %631, %632 : vector<8x128xf32>
    %634 = vector.extract_strided_slice %625 {offsets = [0, 128], sizes = [8, 128], strides = [1, 1]} : vector<8x512xf32> to vector<8x128xf32>
    %cst_244 = arith.constant 5.000000e-01 : f32
    %635 = vector.broadcast %cst_244 : f32 to vector<8x128xf32>
    %636 = arith.mulf %635, %634 : vector<8x128xf32>
    %637 = math.tanh %636 : vector<8x128xf32>
    %cst_245 = arith.constant 5.000000e-01 : f32
    %638 = vector.broadcast %cst_245 : f32 to vector<8x128xf32>
    %639 = arith.mulf %638, %637 : vector<8x128xf32>
    %cst_246 = arith.constant 5.000000e-01 : f32
    %640 = vector.broadcast %cst_246 : f32 to vector<8x128xf32>
    %641 = arith.addf %639, %640 : vector<8x128xf32>
    %642 = vector.extract_strided_slice %625 {offsets = [0, 256], sizes = [8, 128], strides = [1, 1]} : vector<8x512xf32> to vector<8x128xf32>
    %643 = math.tanh %642 : vector<8x128xf32>
    %644 = vector.extract_strided_slice %625 {offsets = [0, 384], sizes = [8, 128], strides = [1, 1]} : vector<8x512xf32> to vector<8x128xf32>
    %cst_247 = arith.constant 5.000000e-01 : f32
    %645 = vector.broadcast %cst_247 : f32 to vector<8x128xf32>
    %646 = arith.mulf %645, %644 : vector<8x128xf32>
    %647 = math.tanh %646 : vector<8x128xf32>
    %cst_248 = arith.constant 5.000000e-01 : f32
    %648 = vector.broadcast %cst_248 : f32 to vector<8x128xf32>
    %649 = arith.mulf %648, %647 : vector<8x128xf32>
    %cst_249 = arith.constant 5.000000e-01 : f32
    %650 = vector.broadcast %cst_249 : f32 to vector<8x128xf32>
    %651 = arith.addf %649, %650 : vector<8x128xf32>
    %652 = arith.mulf %641, %617 : vector<8x128xf32>
    %653 = arith.mulf %633, %643 : vector<8x128xf32>
    %654 = arith.addf %652, %653 : vector<8x128xf32>
    %655 = math.tanh %654 : vector<8x128xf32>
    %656 = arith.mulf %651, %655 : vector<8x128xf32>
    %c8_i32_250 = arith.constant 8 : i32
    %c0_251 = arith.constant 0 : index
    %c0_252 = arith.constant 0 : index
    %657 = vector.load %arg7[%c0_251, %c0_252] : memref<128x128xf32, #tpu.memory_space<vmem>>, vector<128x128xf32>
    %cst_253 = arith.constant dense<0.000000e+00> : vector<8x128xf32>
    %658 = tpu.matmul %656, %657, %cst_253 {dimension_numbers = #tpu.dot_dimension_numbers<[1], [0], [0], [1], [0, 0, 1, 1], [], []>} : vector<8x128xf32>, vector<128x128xf32>, vector<8x128xf32> -> vector<8x128xf32>
    %c0_254 = arith.constant 0 : index
    %c0_255 = arith.constant 0 : index
    %659 = vector.load %arg8[%c0_254, %c0_255] : memref<1x128xf32, #tpu.memory_space<vmem>>, vector<1x128xf32>
    %660 = vector.broadcast %659 : vector<1x128xf32> to vector<8x128xf32>
    %661 = arith.addf %658, %660 : vector<8x128xf32>
    %c0_256 = arith.constant 0 : index
    %c0_257 = arith.constant 0 : index
    %662 = vector.load %arg9[%c0_256, %c0_257] : memref<8x128xf32, #tpu.memory_space<vmem>>, vector<8x128xf32>
    tpu.vector_store %arg9[%c0_256, %c0_257], %661 {strides = array<i32>} : memref<8x128xf32, #tpu.memory_space<vmem>>, vector<8x128xf32>,
    return
  }
  func.func @transform_0(%arg0: i32) -> (i32, i32, i32) {
    %c0_i32 = arith.constant 0 : i32
    %c0_i32_0 = arith.constant 0 : i32
    %c0_i32_1 = arith.constant 0 : i32
    return %c0_i32, %arg0, %c0_i32_0 : i32, i32, i32
  }
  func.func @transform_1(%arg0: i32) -> (i32, i32) {
    %c0_i32 = arith.constant 0 : i32
    %c0_i32_0 = arith.constant 0 : i32
    %c0_i32_1 = arith.constant 0 : i32
    return %c0_i32, %c0_i32_0 : i32, i32
  }
  func.func @transform_2(%arg0: i32) -> (i32, i32) {
    %c0_i32 = arith.constant 0 : i32
    %c0_i32_0 = arith.constant 0 : i32
    %c0_i32_1 = arith.constant 0 : i32
    return %c0_i32, %c0_i32_0 : i32, i32
  }
  func.func @transform_3(%arg0: i32) -> (i32, i32, i32) {
    %c0_i32 = arith.constant 0 : i32
    %c0_i32_0 = arith.constant 0 : i32
    %c0_i32_1 = arith.constant 0 : i32
    %c0_i32_2 = arith.constant 0 : i32
    return %c0_i32, %c0_i32_0, %c0_i32_1 : i32, i32, i32
  }
  func.func @transform_4(%arg0: i32) -> (i32, i32, i32) {
    %c0_i32 = arith.constant 0 : i32
    %c0_i32_0 = arith.constant 0 : i32
    %c0_i32_1 = arith.constant 0 : i32
    %c0_i32_2 = arith.constant 0 : i32
    return %c0_i32, %c0_i32_0, %c0_i32_1 : i32, i32, i32
  }
  func.func @transform_5(%arg0: i32) -> (i32, i32, i32) {
    %c0_i32 = arith.constant 0 : i32
    %c0_i32_0 = arith.constant 0 : i32
    %c0_i32_1 = arith.constant 0 : i32
    %c0_i32_2 = arith.constant 0 : i32
    return %c0_i32, %c0_i32_0, %c0_i32_1 : i32, i32, i32
  }
  func.func @transform_6(%arg0: i32) -> (i32, i32) {
    %c0_i32 = arith.constant 0 : i32
    %c0_i32_0 = arith.constant 0 : i32
    %c0_i32_1 = arith.constant 0 : i32
    return %c0_i32, %c0_i32_0 : i32, i32
  }
  func.func @transform_7(%arg0: i32) -> (i32, i32) {
    %c0_i32 = arith.constant 0 : i32
    %c0_i32_0 = arith.constant 0 : i32
    %c0_i32_1 = arith.constant 0 : i32
    return %c0_i32, %c0_i32_0 : i32, i32
  }
  func.func @transform_8(%arg0: i32) -> (i32, i32) {
    %c0_i32 = arith.constant 0 : i32
    %c0_i32_0 = arith.constant 0 : i32
    return %arg0, %c0_i32 : i32, i32
  }
}

</mosaic_0001>

<bundles_post_ra>
// kernel: _rnn_forward_impl.1
= control target key start
LH: loop header
LB: loop body
LE: loop exit
PB: predicated region body
PF: predicated region fallthrough
CT: control target
= control target key end

     0   :  { %13 = vsyncpa [#allocation5], 0  ;;  %s4960_s0 = inlined_call_operand.vmem [shape: f32[8,8,128], index: 0, kind: input, shape index: {}]   ;;  %s4961_s1 = inlined_call_operand.hbm [shape: f32[128,512], index: 1, kind: input, shape index: {}]   ;;  %s4962_s2 = inlined_call_operand.vmem [shape: f32[1,512], index: 2, kind: input, shape index: {}]   ;;  %s4963_s3 = inlined_call_operand.hbm [shape: f32[1,128,512], index: 3, kind: input, shape index: {}]   ;;  %s4964_s4 = inlined_call_operand.vmem [shape: f32[1,1,512], index: 4, kind: input, shape index: {}]   ;;  %s4965_s5 = inlined_call_operand.hbm [shape: f32[2,128,512], index: 5, kind: input, shape index: {}]   ;;  %s4966_s6 = inlined_call_operand.hbm [shape: f32[128,128], index: 6, kind: input, shape index: {}]   ;;  %s4967_s7 = inlined_call_operand.vmem [shape: f32[1,128], index: 7, kind: input, shape index: {}]   ;;  %s4968_s8 = inlined_call_operand.hbm [shape: f32[8,128], index: 8, kind: output, shape index: {}]  }
   0x1   :  { %14 = vsyncpa [#allocation8], 0 }
   0x2   :  { %15 = vsyncpa [#allocation11], 0 }
   0x3   :  { %16 = vsyncpa [#allocation6], 0  ;;  %s38_s29 = sshll.u32 %s4963_s3, 4  ;;  %s2943_s30 = smov [#allocation7]   ;;  %s39_s29 = int_to_ptr.hbm [resolvable:$true] %s38_s29 }
   0x4   :  { %s40_s9 = sshll.u32 %s2943_s30, 4  ;;  %s23_s12 = sshll.u32 %s4961_s1, 4  ;;  %s41_s9 = int_to_ptr.vmem [resolvable:$true] %s40_s9  ;;  %s24_s12 = int_to_ptr.hbm [resolvable:$true] %s23_s12 }
   0x5   :  { %s2944_s13 = smov 512   ;;  %s2945_s14 = smov 32  }
   0x6   :  { %46 = dma.hbm_to_vmem [thread:$0]  %s39_s29, 8192, %s41_s9, [#allocation8], %s2944_s13, %s2944_s13, %s2945_s14  }
   0x7   :  { %s2946_s15 = smov [#allocation4]   ;;  %s53_s19 = sshll.u32 %s4965_s5, 4  ;;  %s54_s19 = int_to_ptr.hbm [resolvable:$true] %s53_s19 }
   0x8   :  { %s25_s16 = sshll.u32 %s2946_s15, 4  ;;  %s66_s21 = sshll.u32 %s4966_s6, 4  ;;  %s26_s16 = int_to_ptr.vmem [resolvable:$true] %s25_s16  ;;  %s67_s21 = int_to_ptr.hbm [resolvable:$true] %s66_s21 }
   0x9   :  { %31 = dma.hbm_to_vmem [thread:$0]  %s24_s12, 8192, %s26_s16, [#allocation5], %s2944_s13, %s2944_s13, %s2945_s14  }
   0xa   :  { %s2947_s22 = smov [#allocation9]   ;;  %s2948_s1 = smov [#allocation10]  }
   0xb   :  { %s55_s23 = sshll.u32 %s2947_s22, 4  ;;  %s68_s24 = sshll.u32 %s2948_s1, 4  ;;  %s56_s23 = int_to_ptr.vmem [resolvable:$true] %s55_s23  ;;  %s69_s24 = int_to_ptr.vmem [resolvable:$true] %s68_s24 }
   0xc   :  { %61 = dma.hbm_to_vmem [thread:$0]  %s54_s19, 16384, %s56_s23, [#allocation8], %s2944_s13, %s2944_s13, %s2945_s14  }
   0xd   :  { %s2949_s25 = smov 128   ;;  %s2950_s26 = smov 8  }
   0xe   :  { %74 = dma.hbm_to_vmem [thread:$0]  %s67_s21, 2048, %s69_s24, [#allocation11], %s2949_s25, %s2949_s25, %s2950_s26  }
   0xf   :  { %2935 = dma.done.wait [#allocation5], 8192  }
  0x10   :  { %2936 = vsyncadd [#allocation5], 4294959104 }
  0x11   :  { %2937 = dma.done.wait [#allocation8], 24576  }
  0x12   :  { %2938 = vsyncadd [#allocation8], 4294942720 }
  0x13   :  { %2939 = dma.done.wait [#allocation11], 2048  }
  0x14   :  { %2940 = vsyncadd [#allocation11], 4294965248  ;;  %v153_v0 = vld [vmem:[#allocation4 + $0x1e0] sm:$0xff]  ;;  %v154_v1 = vld [vmem:[#allocation4 + $0x1e8] sm:$0xff]  ;;  %s2952_s21 = smov [#allocation12]   ;;  %s2497_s24 = sshll.u32 %s4968_s8, 4  ;;  %s2498_s24 = int_to_ptr.hbm [resolvable:$true] %s2497_s24 }
  0x15   :  { %v155_v2 = vld [vmem:[#allocation4 + $0x1f0] sm:$0xff]  ;;  %239 = vmatpush.msra.mxu0 %v153_v0  ;;  %280 = vmatpush.msra.mxu1 %v154_v1  ;;  %v156_v3 = vld [vmem:[#allocation4 + $0x1f8] sm:$0xff]  ;;  %v149_v4 = vld [vmem:[#allocation4 + $0x1c0] sm:$0xff]  ;;  %s2495_s22 = sshll.u32 %s2952_s21, 4  ;;  %s2496_s22 = int_to_ptr.vmem [resolvable:$true] %s2495_s22 }
  0x16   :  { %v150_v5 = vld [vmem:[#allocation4 + $0x1c8] sm:$0xff]  ;;  %321 = vmatpush.msra.mxu2 %v155_v2  ;;  %362 = vmatpush.msra.mxu3 %v156_v3  ;;  %v151_v6 = vld [vmem:[#allocation4 + $0x1d0] sm:$0xff]  ;;  %v152_v7 = vld [vmem:[#allocation4 + $0x1d8] sm:$0xff] }
  0x17   :  { %v145_v8 = vld [vmem:[#allocation4 + $0x1a0] sm:$0xff]  ;;  %240 = vmatpush.msra.mxu0 %v149_v4  ;;  %281 = vmatpush.msra.mxu1 %v150_v5  ;;  %v146_v9 = vld [vmem:[#allocation4 + $0x1a8] sm:$0xff]  ;;  %v147_v10 = vld [vmem:[#allocation4 + $0x1b0] sm:$0xff] }
  0x18   :  { %v148_v11 = vld [vmem:[#allocation4 + $0x1b8] sm:$0xff]  ;;  %322 = vmatpush.msra.mxu2 %v151_v6  ;;  %363 = vmatpush.msra.mxu3 %v152_v7  ;;  %v141_v12 = vld [vmem:[#allocation4 + $0x180] sm:$0xff]  ;;  %v142_v13 = vld [vmem:[#allocation4 + $0x188] sm:$0xff] }
  0x19   :  { %241 = vmatpush.msra.mxu0 %v145_v8  ;;  %282 = vmatpush.msra.mxu1 %v146_v9  ;;  %v143_v14 = vld [vmem:[#allocation4 + $0x190] sm:$0xff]  ;;  %v144_v15 = vld [vmem:[#allocation4 + $0x198] sm:$0xff]  ;;  %v137_v16 = vld [vmem:[#allocation4 + $0x160] sm:$0xff] }
  0x1a   :  { %323 = vmatpush.msra.mxu2 %v147_v10  ;;  %364 = vmatpush.msra.mxu3 %v148_v11  ;;  %v138_v17 = vld [vmem:[#allocation4 + $0x168] sm:$0xff]  ;;  %v139_v18 = vld [vmem:[#allocation4 + $0x170] sm:$0xff]  ;;  %v140_v19 = vld [vmem:[#allocation4 + $0x178] sm:$0xff] }
  0x1b   :  { %242 = vmatpush.msra.mxu0 %v141_v12  ;;  %283 = vmatpush.msra.mxu1 %v142_v13  ;;  %v133_v20 = vld [vmem:[#allocation4 + $0x140] sm:$0xff]  ;;  %v134_v21 = vld [vmem:[#allocation4 + $0x148] sm:$0xff]  ;;  %v135_v22 = vld [vmem:[#allocation4 + $0x150] sm:$0xff] }
  0x1c   :  { %324 = vmatpush.msra.mxu2 %v143_v14  ;;  %365 = vmatpush.msra.mxu3 %v144_v15  ;;  %v136_v23 = vld [vmem:[#allocation4 + $0x158] sm:$0xff]  ;;  %v129_v24 = vld [vmem:[#allocation4 + $0x120] sm:$0xff]  ;;  %v130_v25 = vld [vmem:[#allocation4 + $0x128] sm:$0xff] }
  0x1d   :  { %243 = vmatpush.msra.mxu0 %v137_v16  ;;  %284 = vmatpush.msra.mxu1 %v138_v17  ;;  %v131_v26 = vld [vmem:[#allocation4 + $0x130] sm:$0xff]  ;;  %v132_v27 = vld [vmem:[#allocation4 + $0x138] sm:$0xff]  ;;  %v125_v28 = vld [vmem:[#allocation4 + $0x100] sm:$0xff] }
  0x1e   :  { %325 = vmatpush.msra.mxu2 %v139_v18  ;;  %366 = vmatpush.msra.mxu3 %v140_v19  ;;  %v126_v29 = vld [vmem:[#allocation4 + $0x108] sm:$0xff]  ;;  %v127_v30 = vld [vmem:[#allocation4 + $0x110] sm:$0xff]  ;;  %v128_v31 = vld [vmem:[#allocation4 + $0x118] sm:$0xff] }
  0x1f   :  { %244 = vmatpush.msra.mxu0 %v133_v20  ;;  %285 = vmatpush.msra.mxu1 %v134_v21  ;;  %v121_v32 = vld [vmem:[#allocation4 + $0xe0] sm:$0xff]  ;;  %v122_v33 = vld [vmem:[#allocation4 + $0xe8] sm:$0xff]  ;;  %v123_v34 = vld [vmem:[#allocation4 + $0xf0] sm:$0xff] }
  0x20   :  { %326 = vmatpush.msra.mxu2 %v135_v22  ;;  %367 = vmatpush.msra.mxu3 %v136_v23  ;;  %v124_v35 = vld [vmem:[#allocation4 + $0xf8] sm:$0xff]  ;;  %v117_v36 = vld [vmem:[#allocation4 + $0xc0] sm:$0xff]  ;;  %v118_v37 = vld [vmem:[#allocation4 + $0xc8] sm:$0xff] }
  0x21   :  { %245 = vmatpush.msra.mxu0 %v129_v24  ;;  %286 = vmatpush.msra.mxu1 %v130_v25  ;;  %v119_v38 = vld [vmem:[#allocation4 + $0xd0] sm:$0xff]  ;;  %v120_v39 = vld [vmem:[#allocation4 + $0xd8] sm:$0xff]  ;;  %v113_v40 = vld [vmem:[#allocation4 + $0xa0] sm:$0xff] }
  0x22   :  { %327 = vmatpush.msra.mxu2 %v131_v26  ;;  %368 = vmatpush.msra.mxu3 %v132_v27  ;;  %v114_v41 = vld [vmem:[#allocation4 + $0xa8] sm:$0xff]  ;;  %v115_v42 = vld [vmem:[#allocation4 + $0xb0] sm:$0xff]  ;;  %v116_v43 = vld [vmem:[#allocation4 + $0xb8] sm:$0xff] }
  0x23   :  { %246 = vmatpush.msra.mxu0 %v125_v28  ;;  %287 = vmatpush.msra.mxu1 %v126_v29  ;;  %v109_v44 = vld [vmem:[#allocation4 + $0x80] sm:$0xff]  ;;  %v110_v45 = vld [vmem:[#allocation4 + $0x88] sm:$0xff]  ;;  %v111_v46 = vld [vmem:[#allocation4 + $0x90] sm:$0xff] }
  0x24   :  { %328 = vmatpush.msra.mxu2 %v127_v30  ;;  %369 = vmatpush.msra.mxu3 %v128_v31  ;;  %v112_v47 = vld [vmem:[#allocation4 + $0x98] sm:$0xff]  ;;  %v105_v48 = vld [vmem:[#allocation4 + $0x60] sm:$0xff]  ;;  %v106_v49 = vld [vmem:[#allocation4 + $0x68] sm:$0xff] }
  0x25   :  { %247 = vmatpush.msra.mxu0 %v121_v32  ;;  %288 = vmatpush.msra.mxu1 %v122_v33  ;;  %v107_v50 = vld [vmem:[#allocation4 + $0x70] sm:$0xff]  ;;  %v108_v51 = vld [vmem:[#allocation4 + $0x78] sm:$0xff]  ;;  %v101_v52 = vld [vmem:[#allocation4 + $0x40] sm:$0xff] }
  0x26   :  { %329 = vmatpush.msra.mxu2 %v123_v34  ;;  %370 = vmatpush.msra.mxu3 %v124_v35  ;;  %v102_v53 = vld [vmem:[#allocation4 + $0x48] sm:$0xff]  ;;  %v103_v54 = vld [vmem:[#allocation4 + $0x50] sm:$0xff]  ;;  %v104_v55 = vld [vmem:[#allocation4 + $0x58] sm:$0xff] }
  0x27   :  { %248 = vmatpush.msra.mxu0 %v117_v36  ;;  %289 = vmatpush.msra.mxu1 %v118_v37  ;;  %v97_v56 = vld [vmem:[#allocation4 + $0x20] sm:$0xff]  ;;  %v98_v57 = vld [vmem:[#allocation4 + $0x28] sm:$0xff]  ;;  %v99_v58 = vld [vmem:[#allocation4 + $0x30] sm:$0xff] }
  0x28   :  { %330 = vmatpush.msra.mxu2 %v119_v38  ;;  %371 = vmatpush.msra.mxu3 %v120_v39  ;;  %v100_v59 = vld [vmem:[#allocation4 + $0x38] sm:$0xff]  ;;  %v93_v60 = vld [vmem:[#allocation4] sm:$0xff]  ;;  %v94_v61 = vld [vmem:[#allocation4 + $0x8] sm:$0xff] }
  0x29   :  { %249 = vmatpush.msra.mxu0 %v113_v40  ;;  %290 = vmatpush.msra.mxu1 %v114_v41  ;;  %v95_v62 = vld [vmem:[#allocation4 + $0x10] sm:$0xff]  ;;  %v96_v63 = vld [vmem:[#allocation4 + $0x18] sm:$0xff]  ;;  %v222_v0 = vld [vmem:[%s4960_s0] sm:$0xff] }
  0x2a   :  { %331 = vmatpush.msra.mxu2 %v115_v42  ;;  %372 = vmatpush.msra.mxu3 %v116_v43  ;;  %v3013_v1 = vld [vmem:[#allocation9 + $0x1e0] sm:$0xff]  ;;  %v3015_v2 = vld [vmem:[#allocation9 + $0x1e8] sm:$0xff]  ;;  %v3017_v3 = vld [vmem:[#allocation9 + $0x1f0] sm:$0xff] }
  0x2b   :  { %250 = vmatpush.msra.mxu0 %v109_v44  ;;  %291 = vmatpush.msra.mxu1 %v110_v45  ;;  %v3019_v4 = vld [vmem:[#allocation9 + $0x1f8] sm:$0xff]  ;;  %v3021_v5 = vld [vmem:[#allocation9 + $0x1c0] sm:$0xff]  ;;  %v3023_v6 = vld [vmem:[#allocation9 + $0x1c8] sm:$0xff] }
  0x2c   :  { %332 = vmatpush.msra.mxu2 %v111_v46  ;;  %373 = vmatpush.msra.mxu3 %v112_v47  ;;  %v3027_v7 = vld [vmem:[#allocation9 + $0x1d0] sm:$0xff]  ;;  %v3029_v8 = vld [vmem:[#allocation9 + $0x1d8] sm:$0xff]  ;;  %v3033_v9 = vld [vmem:[#allocation9 + $0x1a0] sm:$0xff] }
  0x2d   :  { %251 = vmatpush.msra.mxu0 %v105_v48  ;;  %292 = vmatpush.msra.mxu1 %v106_v49  ;;  %v3035_v10 = vld [vmem:[#allocation9 + $0x1a8] sm:$0xff]  ;;  %v3039_v11 = vld [vmem:[#allocation9 + $0x1b0] sm:$0xff]  ;;  %v3041_v12 = vld [vmem:[#allocation9 + $0x1b8] sm:$0xff] }
  0x2e   :  { %333 = vmatpush.msra.mxu2 %v107_v50  ;;  %374 = vmatpush.msra.mxu3 %v108_v51  ;;  %v223_v13 = vld [vmem:[%s4960_s0 + $0x8] sm:$0xff]  ;;  %v3051_v14 = vld [vmem:[#allocation9 + $0x180] sm:$0xff]  ;;  %v3056_v16 = vld [vmem:[#allocation9 + $0x190] sm:$0xff] }
  0x2f   :  { %252 = vmatpush.msra.mxu0 %v101_v52  ;;  %293 = vmatpush.msra.mxu1 %v102_v53  ;;  %v3053_v15 = vld [vmem:[#allocation9 + $0x188] sm:$0xff]  ;;  %v3058_v17 = vld [vmem:[#allocation9 + $0x198] sm:$0xff]  ;;  %v3060_v18 = vld [vmem:[#allocation9 + $0x160] sm:$0xff] }
  0x30   :  { %334 = vmatpush.msra.mxu2 %v103_v54  ;;  %375 = vmatpush.msra.mxu3 %v104_v55  ;;  %v3062_v19 = vld [vmem:[#allocation9 + $0x168] sm:$0xff]  ;;  %v3066_v20 = vld [vmem:[#allocation9 + $0x170] sm:$0xff]  ;;  %v3068_v21 = vld [vmem:[#allocation9 + $0x178] sm:$0xff] }
  0x31   :  { %253 = vmatpush.msra.mxu0 %v97_v56  ;;  %294 = vmatpush.msra.mxu1 %v98_v57  ;;  %v3072_v22 = vld [vmem:[#allocation9 + $0x140] sm:$0xff]  ;;  %v3074_v23 = vld [vmem:[#allocation9 + $0x148] sm:$0xff]  ;;  %v3078_v24 = vld [vmem:[#allocation9 + $0x150] sm:$0xff] }
  0x32   :  { %335 = vmatpush.msra.mxu2 %v99_v58  ;;  %376 = vmatpush.msra.mxu3 %v100_v59  ;;  %v3080_v25 = vld [vmem:[#allocation9 + $0x158] sm:$0xff]  ;;  %v224_v26 = vld [vmem:[%s4960_s0 + $0x10] sm:$0xff]  ;;  %v3090_v27 = vld [vmem:[#allocation9 + $0x120] sm:$0xff] }
  0x33   :  { %254 = vmatpush.msra.mxu0 %v93_v60  ;;  %295 = vmatpush.msra.mxu1 %v94_v61  ;;  %v3092_v28 = vld [vmem:[#allocation9 + $0x128] sm:$0xff]  ;;  %v3095_v29 = vld [vmem:[#allocation9 + $0x130] sm:$0xff]  ;;  %v3097_v30 = vld [vmem:[#allocation9 + $0x138] sm:$0xff] }
  0x34   :  { %336 = vmatpush.msra.mxu2 %v95_v62  ;;  %377 = vmatpush.msra.mxu3 %v96_v63  ;;  %v3099_v31 = vld [vmem:[#allocation9 + $0x100] sm:$0xff]  ;;  %v3101_v32 = vld [vmem:[#allocation9 + $0x108] sm:$0xff]  ;;  %v3105_v33 = vld [vmem:[#allocation9 + $0x110] sm:$0xff] }
  0x35   :  { %255 = vmatmul.f32.vlgmr.msra.gmra.mxu0 %v222_v0  ;;  %296 = vmatmul.f32.vlgmr.msra.gmra.mxu1 %v222_v0  ;;  %v3107_v34 = vld [vmem:[#allocation9 + $0x118] sm:$0xff]  ;;  %v3111_v35 = vld [vmem:[#allocation9 + $0xe0] sm:$0xff]  ;;  %v3113_v36 = vld [vmem:[#allocation9 + $0xe8] sm:$0xff] }
  0x36   :  { %337 = vmatmul.f32.vlgmr.msra.gmra.mxu2 %v222_v0  ;;  %378 = vmatmul.f32.vlgmr.msra.gmra.mxu3 %v222_v0  ;;  %v3117_v37 = vld [vmem:[#allocation9 + $0xf0] sm:$0xff]  ;;  %v3119_v38 = vld [vmem:[#allocation9 + $0xf8] sm:$0xff]  ;;  %v3129_v40 = vld [vmem:[#allocation9 + $0xc0] sm:$0xff] }
  0x37   :  { %442 = vmatpush.msrb.mxu0 %v3013_v1  ;;  %462 = vmatpush.msrb.mxu1 %v3015_v2  ;;  %v225_v39 = vld [vmem:[%s4960_s0 + $0x18] sm:$0xff]  ;;  %v3131_v41 = vld [vmem:[#allocation9 + $0xc8] sm:$0xff]  ;;  %v3134_v42 = vld [vmem:[#allocation9 + $0xd0] sm:$0xff] }
  0x38   :  { %482 = vmatpush.msrb.mxu2 %v3017_v3  ;;  %502 = vmatpush.msrb.mxu3 %v3019_v4  ;;  %v3136_v43 = vld [vmem:[#allocation9 + $0xd8] sm:$0xff]  ;;  %v3138_v44 = vld [vmem:[#allocation9 + $0xa0] sm:$0xff]  ;;  %v3140_v45 = vld [vmem:[#allocation9 + $0xa8] sm:$0xff] }
  0x39   :  { %443 = vmatpush.msrb.mxu0 %v3021_v5  ;;  %463 = vmatpush.msrb.mxu1 %v3023_v6  ;;  %v3144_v46 = vld [vmem:[#allocation9 + $0xb0] sm:$0xff]  ;;  %v3146_v47 = vld [vmem:[#allocation9 + $0xb8] sm:$0xff]  ;;  %v3150_v48 = vld [vmem:[#allocation9 + $0x80] sm:$0xff] }
  0x3a   :  { %483 = vmatpush.msrb.mxu2 %v3027_v7  ;;  %503 = vmatpush.msrb.mxu3 %v3029_v8  ;;  %5171 = vst [vmem:[#allocation17_spill] sm:$0xff] %v3144_v46  ;;  %v3152_v49 = vld [vmem:[#allocation9 + $0x88] sm:$0xff]  ;;  %v3156_v50 = vld [vmem:[#allocation9 + $0x90] sm:$0xff]  ;;  %v3158_v51 = vld [vmem:[#allocation9 + $0x98] sm:$0xff] }
  0x3b   :  { %444 = vmatpush.msrb.mxu0 %v3033_v9  ;;  %464 = vmatpush.msrb.mxu1 %v3035_v10  ;;  %5172 = vst [vmem:[#allocation18_spill] sm:$0xff] %v3146_v47  ;;  %v226_v52 = vld [vmem:[%s4960_s0 + $0x20] sm:$0xff]  ;;  %v3170_v54 = vld [vmem:[#allocation9 + $0x68] sm:$0xff]  ;;  %v3173_v55 = vld [vmem:[#allocation9 + $0x70] sm:$0xff] }
  0x3c   :  { %484 = vmatpush.msrb.mxu2 %v3039_v11  ;;  %504 = vmatpush.msrb.mxu3 %v3041_v12  ;;  %5173 = vst [vmem:[#allocation19_spill] sm:$0xff] %v3150_v48  ;;  %v3168_v53 = vld [vmem:[#allocation9 + $0x60] sm:$0xff]  ;;  %v3175_v56 = vld [vmem:[#allocation9 + $0x78] sm:$0xff]  ;;  %v3179_v58 = vld [vmem:[#allocation9 + $0x48] sm:$0xff] }
  0x3d   :  { %258 = vmatmul.f32.gmra.mxu0 %v223_v13  ;;  %299 = vmatmul.f32.gmra.mxu1 %v223_v13  ;;  %5174 = vst [vmem:[#allocation20_spill] sm:$0xff] %v3152_v49  ;;  %v3177_v57 = vld [vmem:[#allocation9 + $0x40] sm:$0xff]  ;;  %v3183_v59 = vld [vmem:[#allocation9 + $0x50] sm:$0xff]  ;;  %v3185_v60 = vld [vmem:[#allocation9 + $0x58] sm:$0xff] }
  0x3e   :  { %340 = vmatmul.f32.gmra.mxu2 %v223_v13  ;;  %381 = vmatmul.f32.gmra.mxu3 %v223_v13  ;;  %5175 = vst [vmem:[#allocation21_spill] sm:$0xff] %v3156_v50  ;;  %v3189_v61 = vld [vmem:[#allocation9 + $0x20] sm:$0xff]  ;;  %v3191_v62 = vld [vmem:[#allocation9 + $0x28] sm:$0xff]  ;;  %v3195_v63 = vld [vmem:[#allocation9 + $0x30] sm:$0xff] }
  0x3f   :  { %445 = vmatpush.msrb.mxu0 %v3051_v14  ;;  %465 = vmatpush.msrb.mxu1 %v3053_v15  ;;  %5176 = vst [vmem:[#allocation22_spill] sm:$0xff] %v3158_v51  ;;  %v3197_v0 = vld [vmem:[#allocation9 + $0x38] sm:$0xff]  ;;  %v227_v13 = vld [vmem:[%s4960_s0 + $0x28] sm:$0xff] }
  0x40   :  { %485 = vmatpush.msrb.mxu2 %v3056_v16  ;;  %505 = vmatpush.msrb.mxu3 %v3058_v17  ;;  %5177 = vst [vmem:[#allocation23_spill] sm:$0xff] %v3168_v53 }
  0x41   :  { %446 = vmatpush.msrb.mxu0 %v3060_v18  ;;  %466 = vmatpush.msrb.mxu1 %v3062_v19  ;;  %5178 = vst [vmem:[#allocation24_spill] sm:$0xff] %v3170_v54 }
  0x42   :  { %486 = vmatpush.msrb.mxu2 %v3066_v20  ;;  %506 = vmatpush.msrb.mxu3 %v3068_v21  ;;  %5179 = vst [vmem:[#allocation25_spill] sm:$0xff] %v3173_v55 }
  0x43   :  { %447 = vmatpush.msrb.mxu0 %v3072_v22  ;;  %467 = vmatpush.msrb.mxu1 %v3074_v23  ;;  %5180 = vst [vmem:[#allocation26_spill] sm:$0xff] %v3175_v56 }
  0x44   :  { %487 = vmatpush.msrb.mxu2 %v3078_v24  ;;  %507 = vmatpush.msrb.mxu3 %v3080_v25  ;;  %5181 = vst [vmem:[#allocation27_spill] sm:$0xff] %v3177_v57 }
  0x45   :  { %261 = vmatmul.f32.gmra.mxu0 %v224_v26  ;;  %302 = vmatmul.f32.gmra.mxu1 %v224_v26  ;;  %5182 = vst [vmem:[#allocation28_spill] sm:$0xff] %v3179_v58 }
  0x46   :  { %343 = vmatmul.f32.gmra.mxu2 %v224_v26  ;;  %384 = vmatmul.f32.gmra.mxu3 %v224_v26  ;;  %5183 = vst [vmem:[#allocation29_spill] sm:$0xff] %v3183_v59  ;;  %v3207_v26 = vld [vmem:[#allocation9] sm:$0xff] }
  0x47   :  { %448 = vmatpush.msrb.mxu0 %v3090_v27  ;;  %468 = vmatpush.msrb.mxu1 %v3092_v28  ;;  %5184 = vst [vmem:[#allocation30_spill] sm:$0xff] %v3185_v60 }
  0x48   :  { %488 = vmatpush.msrb.mxu2 %v3095_v29  ;;  %508 = vmatpush.msrb.mxu3 %v3097_v30  ;;  %5185 = vst [vmem:[#allocation31_spill] sm:$0xff] %v3189_v61 }
  0x49   :  { %449 = vmatpush.msrb.mxu0 %v3099_v31  ;;  %469 = vmatpush.msrb.mxu1 %v3101_v32  ;;  %5186 = vst [vmem:[#allocation32_spill] sm:$0xff] %v3191_v62 }
  0x4a   :  { %489 = vmatpush.msrb.mxu2 %v3105_v33  ;;  %509 = vmatpush.msrb.mxu3 %v3107_v34  ;;  %5187 = vst [vmem:[#allocation33_spill] sm:$0xff] %v3195_v63 }
  0x4b   :  { %450 = vmatpush.msrb.mxu0 %v3111_v35  ;;  %470 = vmatpush.msrb.mxu1 %v3113_v36  ;;  %5188 = vst [vmem:[#allocation34_spill] sm:$0xff] %v3197_v0 }
  0x4c   :  { %490 = vmatpush.msrb.mxu2 %v3117_v37  ;;  %510 = vmatpush.msrb.mxu3 %v3119_v38  ;;  %5189 = vst [vmem:[#allocation35_spill] sm:$0xff] %v3207_v26 }
  0x4d   :  { %264 = vmatmul.f32.gmra.mxu0 %v225_v39  ;;  %305 = vmatmul.f32.gmra.mxu1 %v225_v39 }
  0x4e   :  { %346 = vmatmul.f32.gmra.mxu2 %v225_v39  ;;  %387 = vmatmul.f32.gmra.mxu3 %v225_v39  ;;  %v3209_v39 = vld [vmem:[#allocation9 + $0x8] sm:$0xff] }
  0x4f   :  { %451 = vmatpush.msrb.mxu0 %v3129_v40  ;;  %471 = vmatpush.msrb.mxu1 %v3131_v41  ;;  %5190 = vst [vmem:[#allocation36_spill] sm:$0xff] %v3209_v39 }
  0x50   :  { %491 = vmatpush.msrb.mxu2 %v3134_v42  ;;  %511 = vmatpush.msrb.mxu3 %v3136_v43 }
  0x51   :  { %452 = vmatpush.msrb.mxu0 %v3138_v44  ;;  %472 = vmatpush.msrb.mxu1 %v3140_v45 }
  0x52   :  { %492 = vmatpush.msrb.mxu2 %v3144_v46  ;;  %512 = vmatpush.msrb.mxu3 %v3146_v47 }
  0x53   :  { %453 = vmatpush.msrb.mxu0 %v3150_v48  ;;  %473 = vmatpush.msrb.mxu1 %v3152_v49 }
  0x54   :  { %493 = vmatpush.msrb.mxu2 %v3156_v50  ;;  %513 = vmatpush.msrb.mxu3 %v3158_v51 }
  0x55   :  { %267 = vmatmul.f32.gmra.mxu0 %v226_v52  ;;  %308 = vmatmul.f32.gmra.mxu1 %v226_v52 }
  0x56   :  { %349 = vmatmul.f32.gmra.mxu2 %v226_v52  ;;  %390 = vmatmul.f32.gmra.mxu3 %v226_v52  ;;  %v3212_v52 = vld [vmem:[#allocation9 + $0x10] sm:$0xff] }
  0x57   :  { %454 = vmatpush.msrb.mxu0 %v3168_v53  ;;  %474 = vmatpush.msrb.mxu1 %v3170_v54  ;;  %5191 = vst [vmem:[#allocation37_spill] sm:$0xff] %v3212_v52 }
  0x58   :  { %494 = vmatpush.msrb.mxu2 %v3173_v55  ;;  %514 = vmatpush.msrb.mxu3 %v3175_v56 }
  0x59   :  { %455 = vmatpush.msrb.mxu0 %v3177_v57  ;;  %475 = vmatpush.msrb.mxu1 %v3179_v58  ;;  %v3214_v58 = vld [vmem:[#allocation9 + $0x18] sm:$0xff] }
  0x5a   :  { %495 = vmatpush.msrb.mxu2 %v3183_v59  ;;  %515 = vmatpush.msrb.mxu3 %v3185_v60  ;;  %5192 = vst [vmem:[#allocation38_spill] sm:$0xff] %v3214_v58 }
  0x5b   :  { %456 = vmatpush.msrb.mxu0 %v3189_v61  ;;  %476 = vmatpush.msrb.mxu1 %v3191_v62 }
  0x5c   :  { %496 = vmatpush.msrb.mxu2 %v3195_v63  ;;  %516 = vmatpush.msrb.mxu3 %v3197_v0  ;;  %v228_v0 = vld [vmem:[%s4960_s0 + $0x30] sm:$0xff] }
  0x5d   :  { %270 = vmatmul.f32.gmra.mxu0 %v227_v13  ;;  %311 = vmatmul.f32.gmra.mxu1 %v227_v13 }
  0x5e   :  { %352 = vmatmul.f32.gmra.mxu2 %v227_v13  ;;  %393 = vmatmul.f32.gmra.mxu3 %v227_v13  ;;  %v229_v13 = vld [vmem:[%s4960_s0 + $0x38] sm:$0xff] }
  0x5f   :  { %457 = vmatpush.msrb.mxu0 %v3207_v26  ;;  %477 = vmatpush.msrb.mxu1 %v3209_v39 }
  0x60   :  { %497 = vmatpush.msrb.mxu2 %v3212_v52  ;;  %517 = vmatpush.msrb.mxu3 %v3214_v58 }
  0x61   :  { %548 = vmatpush.msra.mxu0 %v3013_v1  ;;  %568 = vmatpush.msra.mxu1 %v3015_v2 }
  0x62   :  { %588 = vmatpush.msra.mxu2 %v3017_v3  ;;  %608 = vmatpush.msra.mxu3 %v3019_v4 }
  0x63   :  { %549 = vmatpush.msra.mxu0 %v3021_v5  ;;  %569 = vmatpush.msra.mxu1 %v3023_v6 }
  0x64   :  { %589 = vmatpush.msra.mxu2 %v3027_v7  ;;  %609 = vmatpush.msra.mxu3 %v3029_v8 }
  0x65   :  { %273 = vmatmul.f32.gmra.mxu0 %v228_v0  ;;  %314 = vmatmul.f32.gmra.mxu1 %v228_v0 }
  0x66   :  { %355 = vmatmul.f32.gmra.mxu2 %v228_v0  ;;  %396 = vmatmul.f32.gmra.mxu3 %v228_v0  ;;  %v4973_v0 = vmov 0.0  }
  0x67   :  { %550 = vmatpush.msra.mxu0 %v3033_v9  ;;  %570 = vmatpush.msra.mxu1 %v3035_v10 }
  0x68   :  { %590 = vmatpush.msra.mxu2 %v3039_v11  ;;  %610 = vmatpush.msra.mxu3 %v3041_v12 }
  0x69   :  { %551 = vmatpush.msra.mxu0 %v3051_v14  ;;  %571 = vmatpush.msra.mxu1 %v3053_v15 }
  0x6a   :  { %591 = vmatpush.msra.mxu2 %v3056_v16  ;;  %611 = vmatpush.msra.mxu3 %v3058_v17 }
  0x6b   :  { %552 = vmatpush.msra.mxu0 %v3060_v18  ;;  %572 = vmatpush.msra.mxu1 %v3062_v19 }
  0x6c   :  { %592 = vmatpush.msra.mxu2 %v3066_v20  ;;  %612 = vmatpush.msra.mxu3 %v3068_v21 }
  0x6d   :  { %276 = vmatmul.f32.gmra.mxu0 %v229_v13  ;;  %317 = vmatmul.f32.gmra.mxu1 %v229_v13 }
  0x6e   :  { %358 = vmatmul.f32.gmra.mxu2 %v229_v13  ;;  %399 = vmatmul.f32.gmra.mxu3 %v229_v13  ;;  %v5193_v13 = vld [vmem:[#allocation28_spill] sm:$0xff] }
  0x6f   :  { %553 = vmatpush.msra.mxu0 %v3072_v22  ;;  %573 = vmatpush.msra.mxu1 %v3074_v23 }
  0x70   :  { %593 = vmatpush.msra.mxu2 %v3078_v24  ;;  %613 = vmatpush.msra.mxu3 %v3080_v25 }
  0x71   :  { %554 = vmatpush.msra.mxu0 %v3090_v27  ;;  %574 = vmatpush.msra.mxu1 %v3092_v28 }
  0x72   :  { %594 = vmatpush.msra.mxu2 %v3095_v29  ;;  %614 = vmatpush.msra.mxu3 %v3097_v30 }
  0x73   :  { %555 = vmatpush.msra.mxu0 %v3099_v31  ;;  %575 = vmatpush.msra.mxu1 %v3101_v32 }
  0x74   :  { %595 = vmatpush.msra.mxu2 %v3105_v33  ;;  %615 = vmatpush.msra.mxu3 %v3107_v34 }
  0x75   :  { %458 = vmatmul.f32.vlgmr.msrb.gmra.mxu0 %v4973_v0  ;;  %478 = vmatmul.f32.vlgmr.msrb.gmra.mxu1 %v4973_v0 }
  0x76   :  { %498 = vmatmul.f32.vlgmr.msrb.gmra.mxu2 %v4973_v0  ;;  %518 = vmatmul.f32.vlgmr.msrb.gmra.mxu3 %v4973_v0  ;;  %v5194_v0 = vld [vmem:[#allocation34_spill] sm:$0xff] }
  0x77   :  { %556 = vmatpush.msra.mxu0 %v3111_v35  ;;  %576 = vmatpush.msra.mxu1 %v3113_v36 }
  0x78   :  { %596 = vmatpush.msra.mxu2 %v3117_v37  ;;  %616 = vmatpush.msra.mxu3 %v3119_v38 }
  0x79   :  { %557 = vmatpush.msra.mxu0 %v3129_v40  ;;  %577 = vmatpush.msra.mxu1 %v3131_v41 }
  0x7a   :  { %597 = vmatpush.msra.mxu2 %v3134_v42  ;;  %617 = vmatpush.msra.mxu3 %v3136_v43 }
  0x7b   :  { %558 = vmatpush.msra.mxu0 %v3138_v44  ;;  %578 = vmatpush.msra.mxu1 %v3140_v45 }
  0x7c   :  { %598 = vmatpush.msra.mxu2 %v3144_v46  ;;  %618 = vmatpush.msra.mxu3 %v3146_v47 }
  0x7d   :  { %559 = vmatpush.msra.mxu0 %v3150_v48  ;;  %579 = vmatpush.msra.mxu1 %v3152_v49 }
  0x7e   :  { %599 = vmatpush.msra.mxu2 %v3156_v50  ;;  %619 = vmatpush.msra.mxu3 %v3158_v51 }
  0x7f   :  { %560 = vmatpush.msra.mxu0 %v3168_v53  ;;  %580 = vmatpush.msra.mxu1 %v3170_v54 }
  0x80   :  { %600 = vmatpush.msra.mxu2 %v3173_v55  ;;  %620 = vmatpush.msra.mxu3 %v3175_v56 }
  0x81   :  { %561 = vmatpush.msra.mxu0 %v3177_v57  ;;  %581 = vmatpush.msra.mxu1 %v5193_v13 }
  0x82   :  { %601 = vmatpush.msra.mxu2 %v3183_v59  ;;  %621 = vmatpush.msra.mxu3 %v3185_v60 }
  0x83   :  { %562 = vmatpush.msra.mxu0 %v3189_v61  ;;  %582 = vmatpush.msra.mxu1 %v3191_v62 }
  0x84   :  { %602 = vmatpush.msra.mxu2 %v3195_v63  ;;  %622 = vmatpush.msra.mxu3 %v5194_v0 }
  0x85   :  { %563 = vmatpush.msra.mxu0 %v3207_v26  ;;  %583 = vmatpush.msra.mxu1 %v3209_v39 }
  0x86   :  { %603 = vmatpush.msra.mxu2 %v3212_v52  ;;  %623 = vmatpush.msra.mxu3 %v3214_v58 }
  0x87   :  { %655 = vmatpush.msrb.mxu0 %v3013_v1  ;;  %675 = vmatpush.msrb.mxu1 %v3015_v2 }
  0x88   :  { %695 = vmatpush.msrb.mxu2 %v3017_v3  ;;  %715 = vmatpush.msrb.mxu3 %v3019_v4 }
  0x89   :  { %656 = vmatpush.msrb.mxu0 %v3021_v5  ;;  %676 = vmatpush.msrb.mxu1 %v3023_v6 }
  0x8a   :  { %696 = vmatpush.msrb.mxu2 %v3027_v7  ;;  %716 = vmatpush.msrb.mxu3 %v3029_v8 }
  0x8b   :  { %657 = vmatpush.msrb.mxu0 %v3033_v9  ;;  %677 = vmatpush.msrb.mxu1 %v3035_v10 }
  0x8c   :  { %697 = vmatpush.msrb.mxu2 %v3039_v11  ;;  %717 = vmatpush.msrb.mxu3 %v3041_v12 }
  0x8d   :  { %658 = vmatpush.msrb.mxu0 %v3051_v14  ;;  %678 = vmatpush.msrb.mxu1 %v3053_v15 }
  0x8e   :  { %698 = vmatpush.msrb.mxu2 %v3056_v16  ;;  %718 = vmatpush.msrb.mxu3 %v3058_v17 }
  0x8f   :  { %659 = vmatpush.msrb.mxu0 %v3060_v18  ;;  %679 = vmatpush.msrb.mxu1 %v3062_v19 }
  0x90   :  { %699 = vmatpush.msrb.mxu2 %v3066_v20  ;;  %719 = vmatpush.msrb.mxu3 %v3068_v21 }
  0x91   :  { %660 = vmatpush.msrb.mxu0 %v3072_v22  ;;  %680 = vmatpush.msrb.mxu1 %v3074_v23 }
  0x92   :  { %700 = vmatpush.msrb.mxu2 %v3078_v24  ;;  %720 = vmatpush.msrb.mxu3 %v3080_v25 }
  0x93   :  { %661 = vmatpush.msrb.mxu0 %v3090_v27  ;;  %681 = vmatpush.msrb.mxu1 %v3092_v28 }
  0x94   :  { %701 = vmatpush.msrb.mxu2 %v3095_v29  ;;  %721 = vmatpush.msrb.mxu3 %v3097_v30 }
  0x95   :  { %662 = vmatpush.msrb.mxu0 %v3099_v31  ;;  %682 = vmatpush.msrb.mxu1 %v3101_v32 }
  0x96   :  { %702 = vmatpush.msrb.mxu2 %v3105_v33  ;;  %722 = vmatpush.msrb.mxu3 %v3107_v34 }
  0x97   :  { %663 = vmatpush.msrb.mxu0 %v3111_v35  ;;  %683 = vmatpush.msrb.mxu1 %v3113_v36 }
  0x98   :  { %703 = vmatpush.msrb.mxu2 %v3117_v37  ;;  %723 = vmatpush.msrb.mxu3 %v3119_v38 }
  0x99   :  { %664 = vmatpush.msrb.mxu0 %v3129_v40  ;;  %684 = vmatpush.msrb.mxu1 %v3131_v41 }
  0x9a   :  { %704 = vmatpush.msrb.mxu2 %v3134_v42  ;;  %724 = vmatpush.msrb.mxu3 %v3136_v43 }
  0x9b   :  { %665 = vmatpush.msrb.mxu0 %v3138_v44  ;;  %685 = vmatpush.msrb.mxu1 %v3140_v45 }
  0x9c   :  { %705 = vmatpush.msrb.mxu2 %v3144_v46  ;;  %725 = vmatpush.msrb.mxu3 %v3146_v47 }
  0x9d   :  { %666 = vmatpush.msrb.mxu0 %v3150_v48  ;;  %686 = vmatpush.msrb.mxu1 %v3152_v49 }
  0x9e   :  { %706 = vmatpush.msrb.mxu2 %v3156_v50  ;;  %726 = vmatpush.msrb.mxu3 %v3158_v51 }
  0x9f   :  { %667 = vmatpush.msrb.mxu0 %v3168_v53  ;;  %687 = vmatpush.msrb.mxu1 %v3170_v54 }
  0xa0   :  { %707 = vmatpush.msrb.mxu2 %v3173_v55  ;;  %727 = vmatpush.msrb.mxu3 %v3175_v56 }
  0xa1   :  { %668 = vmatpush.msrb.mxu0 %v3177_v57  ;;  %688 = vmatpush.msrb.mxu1 %v5193_v13 }
  0xa2   :  { %708 = vmatpush.msrb.mxu2 %v3183_v59  ;;  %728 = vmatpush.msrb.mxu3 %v3185_v60 }
  0xa3   :  { %669 = vmatpush.msrb.mxu0 %v3189_v61  ;;  %689 = vmatpush.msrb.mxu1 %v3191_v62 }
  0xa4   :  { %709 = vmatpush.msrb.mxu2 %v3195_v63  ;;  %729 = vmatpush.msrb.mxu3 %v5194_v0 }
  0xa5   :  { %670 = vmatpush.msrb.mxu0 %v3207_v26  ;;  %690 = vmatpush.msrb.mxu1 %v3209_v39 }
  0xa6   :  { %710 = vmatpush.msrb.mxu2 %v3212_v52  ;;  %730 = vmatpush.msrb.mxu3 %v3214_v58 }
  0xb2   :  { %v256_v13 = vpop.f32.mrf.mxu0  ;;  %v297_v59 = vpop.f32.mrf.mxu1 }
  0xb9   :  { %v338_v57 = vpop.f32.mrf.mxu2  ;;  %v379_v60 = vpop.f32.mrf.mxu3 }
  0xba   :  { %v3358_v56 = vpop.f32.mrf.mxu0  ;;  %v3360_v61 = vpop.f32.mrf.mxu1 }
  0xbb   :  { %5195 = vst [vmem:[#allocation39_spill] sm:$0xff] %v3358_v56 }
  0xbc   :  { %5196 = vst [vmem:[#allocation40_spill] sm:$0xff] %v3360_v61 }
  0xc1   :  { %v3362_v62 = vpop.f32.mrf.mxu2  ;;  %v3364_v63 = vpop.f32.mrf.mxu3 }
  0xc2   :  { %5197 = vst [vmem:[#allocation41_spill] sm:$0xff] %v3362_v62  ;;  %v3366_v0 = vpop.f32.mrf.mxu0  ;;  %v3368_v26 = vpop.f32.mrf.mxu1 }
  0xc3   :  { %5198 = vst [vmem:[#allocation42_spill] sm:$0xff] %v3364_v63 }
  0xc4   :  { %5199 = vst [vmem:[#allocation43_spill] sm:$0xff] %v3366_v0 }
  0xc5   :  { %5200 = vst [vmem:[#allocation44_spill] sm:$0xff] %v3368_v26 }
  0xc9   :  { %v3370_v39 = vpop.f32.mrf.mxu2  ;;  %v3372_v52 = vpop.f32.mrf.mxu3 }
  0xca   :  { %5201 = vst [vmem:[#allocation45_spill] sm:$0xff] %v3370_v39  ;;  %v3374_v58 = vpop.f32.mrf.mxu0  ;;  %v3376_v55 = vpop.f32.mrf.mxu1 }
  0xcb   :  { %5202 = vst [vmem:[#allocation46_spill] sm:$0xff] %v3372_v52 }
  0xcc   :  { %5203 = vst [vmem:[#allocation47_spill] sm:$0xff] %v3374_v58 }
  0xcd   :  { %5204 = vst [vmem:[#allocation48_spill] sm:$0xff] %v3376_v55 }
  0xd1   :  { %v3378_v54 = vpop.f32.mrf.mxu2  ;;  %v3380_v56 = vpop.f32.mrf.mxu3 }
  0xd2   :  { %5205 = vst [vmem:[#allocation49_spill] sm:$0xff] %v3378_v54  ;;  %v3382_v61 = vpop.f32.mrf.mxu0  ;;  %v3384_v62 = vpop.f32.mrf.mxu1 }
  0xd3   :  { %5206 = vst [vmem:[#allocation50_spill] sm:$0xff] %v3380_v56 }
  0xd4   :  { %5207 = vst [vmem:[#allocation51_spill] sm:$0xff] %v3382_v61 }
  0xd5   :  { %5208 = vst [vmem:[#allocation52_spill] sm:$0xff] %v3384_v62 }
  0xd9   :  { %v3386_v63 = vpop.f32.mrf.mxu2  ;;  %v3388_v0 = vpop.f32.mrf.mxu3 }
  0xda   :  { %5209 = vst [vmem:[#allocation53_spill] sm:$0xff] %v3386_v63  ;;  %v3390_v26 = vpop.f32.mrf.mxu0  ;;  %v3392_v39 = vpop.f32.mrf.mxu1 }
  0xdb   :  { %5210 = vst [vmem:[#allocation54_spill] sm:$0xff] %v3388_v0  ;;  %v157_v0 = vld [vmem:[%s4962_s2] sm:$0xf] }
  0xdc   :  { %5211 = vst [vmem:[#allocation55_spill] sm:$0xff] %v3390_v26  ;;  %v3423_v50 = vperm.slane %v157_v0, 2 }
  0xdd   :  { %5212 = vst [vmem:[#allocation56_spill] sm:$0xff] %v3392_v39  ;;  %v3413_v39 = vperm.slane %v157_v0, 0 }
  0xde   :  { %5225 = vst [vmem:[#allocation69_spill] sm:$0xff] %v3423_v50  ;;  %v339_v48 = vadd.f32 %v338_v57, %v3423_v50 }
  0xdf   :  { %5221 = vst [vmem:[#allocation65_spill] sm:$0xff] %v3413_v39 }
  0xe1   :  { %v3394_v52 = vpop.f32.mrf.mxu2  ;;  %v3396_v58 = vpop.f32.mrf.mxu3 }
  0xe2   :  { %5213 = vst [vmem:[#allocation57_spill] sm:$0xff] %v3394_v52  ;;  %v3398_v55 = vpop.f32.mrf.mxu0  ;;  %v3400_v54 = vpop.f32.mrf.mxu1  ;;  %v3415_v52 = vperm.slane %v157_v0, 1 }
  0xe3   :  { %5214 = vst [vmem:[#allocation58_spill] sm:$0xff] %v3396_v58 }
  0xe4   :  { %5215 = vst [vmem:[#allocation59_spill] sm:$0xff] %v3398_v55  ;;  %v257_v55 = vadd.f32 %v256_v13, %v3413_v39 }
  0xe5   :  { %5216 = vst [vmem:[#allocation60_spill] sm:$0xff] %v3400_v54  ;;  %v298_v54 = vadd.f32 %v297_v59, %v3415_v52 }
  0xe6   :  { %5222 = vst [vmem:[#allocation66_spill] sm:$0xff] %v3415_v52 }
  0xe9   :  { %v3402_v56 = vpop.f32.mrf.mxu2  ;;  %v3404_v61 = vpop.f32.mrf.mxu3 }
  0xea   :  { %5217 = vst [vmem:[#allocation61_spill] sm:$0xff] %v3402_v56  ;;  %v3409_v63 = vpop.f32.mrf.mxu0  ;;  %v3411_v26 = vpop.f32.mrf.mxu1 }
  0xeb   :  { %5218 = vst [vmem:[#allocation62_spill] sm:$0xff] %v3404_v61 }
  0xec   :  { %5219 = vst [vmem:[#allocation63_spill] sm:$0xff] %v3409_v63  ;;  %v3425_v63 = vperm.slane %v157_v0, 3 }
  0xed   :  { %5220 = vst [vmem:[#allocation64_spill] sm:$0xff] %v3411_v26 }
  0xee   :  { %v380_v13 = vadd.f32 %v379_v60, %v3425_v63 }
  0xf1   :  { %v3419_v58 = vpop.f32.mrf.mxu2  ;;  %v3421_v56 = vpop.f32.mrf.mxu3 }
  0xf2   :  { %5223 = vst [vmem:[#allocation67_spill] sm:$0xff] %v3419_v58  ;;  %v459_v61 = vpop.f32.mrf.mxu0  ;;  %v479_v62 = vpop.f32.mrf.mxu1 }
  0xf3   :  { %5224 = vst [vmem:[#allocation68_spill] sm:$0xff] %v3421_v56  ;;  %v460_v53 = vadd.f32 %v459_v61, %v257_v55  ;;  %v480_v51 = vadd.f32 %v479_v62, %v298_v54 }
  0xf5   :  { %v522_v26 = vmul.f32 0.5, %v460_v53  ;;  %v526_v49 = vmul.f32 0.5, %v480_v51 }
  0xf7   :  { %2527 = vtanh.f32 %v522_v26 }
  0xf8   :  { %2529 = vtanh.f32 %v526_v49 }
  0xf9   :  { %v499_v59 = vpop.f32.mrf.mxu2  ;;  %v519_v58 = vpop.f32.mrf.mxu3 }
  0xfa   :  { %v500_v52 = vadd.f32 %v499_v59, %v339_v48  ;;  %v520_v56 = vadd.f32 %v519_v58, %v380_v13  ;;  %v5231_v13 = vld [vmem:[#allocation22_spill] sm:$0xff]  ;;  %v5232_v59 = vld [vmem:[#allocation23_spill] sm:$0xff] }
  0xfc   :  { %2531 = vtanh.f32 %v500_v52  ;;  %v531_v39 = vmul.f32 0.5, %v520_v56  ;;  %v5228_v56 = vld [vmem:[#allocation19_spill] sm:$0xff]  ;;  %v5230_v52 = vld [vmem:[#allocation21_spill] sm:$0xff] }
  0xfd   :  { %v2528_v55 = vpop.eup %2527 }
  0xfe   :  { %v2530_v54 = vpop.eup %2529  ;;  %v524_v61 = vmul.f32 0.5, %v2528_v55  ;;  %2533 = vtanh.f32 %v531_v39  ;;  %v5229_v39 = vld [vmem:[#allocation20_spill] sm:$0xff] }
  0xff   :  { %v528_v62 = vmul.f32 0.5, %v2530_v54  ;;  %v5233_v55 = vld [vmem:[#allocation24_spill] sm:$0xff]  ;;  %v5234_v54 = vld [vmem:[#allocation25_spill] sm:$0xff] }
 0x100   :  { %v525_v0 = vadd.f32 0.5, %v524_v61  ;;  %v5235_v61 = vld [vmem:[#allocation26_spill] sm:$0xff] }
 0x101   :  { %v529_v53 = vadd.f32 0.5, %v528_v62  ;;  %v5236_v62 = vld [vmem:[#allocation27_spill] sm:$0xff] }
 0x102   :  { %v2532_v51 = vpop.eup %2531 }
 0x103   :  { %v535_v26 = vmul.f32 0.0, %v529_v53  ;;  %v536_v47 = vmul.f32 %v2532_v51, %v525_v0  ;;  %v5237_v0 = vld [vmem:[#allocation28_spill] sm:$0xff]  ;;  %v5238_v53 = vld [vmem:[#allocation29_spill] sm:$0xff]  ;;  %v5239_v51 = vld [vmem:[#allocation30_spill] sm:$0xff] }
 0x104   :  { %v2534_v57 = vpop.eup %2533 }
 0x105   :  { %v3429_v50 = vadd.f32 %v536_v47, %v535_v26  ;;  %v533_v49 = vmul.f32 0.5, %v2534_v57  ;;  %v5227_v47 = vld [vmem:[#allocation18_spill] sm:$0xff]  ;;  %v5240_v26 = vld [vmem:[#allocation31_spill] sm:$0xff]  ;;  %v5241_v57 = vld [vmem:[#allocation32_spill] sm:$0xff] }
 0x107   :  { %2535 = vtanh.f32 %v3429_v50  ;;  %v534_v48 = vadd.f32 0.5, %v533_v49  ;;  %v5242_v49 = vld [vmem:[#allocation33_spill] sm:$0xff] }
 0x10d   :  { %v2536_v58 = vpop.eup %2535 }
 0x10e   :  { %v3432_v60 = vmul.f32 %v2536_v58, %v534_v48  ;;  %v5243_v48 = vld [vmem:[#allocation34_spill] sm:$0xff]  ;;  %v5244_v58 = vld [vmem:[#allocation35_spill] sm:$0xff] }
 0x110   :  { %5226 = vst [vmem:[#allocation70_spill] sm:$0xff] %v3432_v60  ;;  %564 = vmatmul.f32.vlgmr.msra.gmra.mxu0 %v3432_v60  ;;  %584 = vmatmul.f32.vlgmr.msra.gmra.mxu1 %v3432_v60 }
 0x111   :  { %604 = vmatmul.f32.vlgmr.msra.gmra.mxu2 %v3432_v60  ;;  %624 = vmatmul.f32.vlgmr.msra.gmra.mxu3 %v3432_v60  ;;  %v5245_v60 = vld [vmem:[#allocation36_spill] sm:$0xff] }
 0x112   :  { %762 = vmatpush.msra.mxu0 %v3013_v1  ;;  %782 = vmatpush.msra.mxu1 %v3015_v2 }
 0x113   :  { %802 = vmatpush.msra.mxu2 %v3017_v3  ;;  %822 = vmatpush.msra.mxu3 %v3019_v4 }
 0x114   :  { %763 = vmatpush.msra.mxu0 %v3021_v5  ;;  %783 = vmatpush.msra.mxu1 %v3023_v6 }
 0x115   :  { %803 = vmatpush.msra.mxu2 %v3027_v7  ;;  %823 = vmatpush.msra.mxu3 %v3029_v8 }
 0x116   :  { %764 = vmatpush.msra.mxu0 %v3033_v9  ;;  %784 = vmatpush.msra.mxu1 %v3035_v10 }
 0x117   :  { %804 = vmatpush.msra.mxu2 %v3039_v11  ;;  %824 = vmatpush.msra.mxu3 %v3041_v12 }
 0x118   :  { %765 = vmatpush.msra.mxu0 %v3051_v14  ;;  %785 = vmatpush.msra.mxu1 %v3053_v15 }
 0x119   :  { %805 = vmatpush.msra.mxu2 %v3056_v16  ;;  %825 = vmatpush.msra.mxu3 %v3058_v17 }
 0x11a   :  { %766 = vmatpush.msra.mxu0 %v3060_v18  ;;  %786 = vmatpush.msra.mxu1 %v3062_v19 }
 0x11b   :  { %806 = vmatpush.msra.mxu2 %v3066_v20  ;;  %826 = vmatpush.msra.mxu3 %v3068_v21 }
 0x11c   :  { %767 = vmatpush.msra.mxu0 %v3072_v22  ;;  %787 = vmatpush.msra.mxu1 %v3074_v23 }
 0x11d   :  { %807 = vmatpush.msra.mxu2 %v3078_v24  ;;  %827 = vmatpush.msra.mxu3 %v3080_v25 }
 0x11e   :  { %768 = vmatpush.msra.mxu0 %v3090_v27  ;;  %788 = vmatpush.msra.mxu1 %v3092_v28 }
 0x11f   :  { %808 = vmatpush.msra.mxu2 %v3095_v29  ;;  %828 = vmatpush.msra.mxu3 %v3097_v30 }
 0x120   :  { %769 = vmatpush.msra.mxu0 %v3099_v31  ;;  %789 = vmatpush.msra.mxu1 %v3101_v32 }
 0x121   :  { %809 = vmatpush.msra.mxu2 %v3105_v33  ;;  %829 = vmatpush.msra.mxu3 %v3107_v34 }
 0x122   :  { %770 = vmatpush.msra.mxu0 %v3111_v35  ;;  %790 = vmatpush.msra.mxu1 %v3113_v36 }
 0x123   :  { %810 = vmatpush.msra.mxu2 %v3117_v37  ;;  %830 = vmatpush.msra.mxu3 %v3119_v38 }
 0x124   :  { %771 = vmatpush.msra.mxu0 %v3129_v40  ;;  %791 = vmatpush.msra.mxu1 %v3131_v41 }
 0x125   :  { %811 = vmatpush.msra.mxu2 %v3134_v42  ;;  %831 = vmatpush.msra.mxu3 %v3136_v43 }
 0x126   :  { %772 = vmatpush.msra.mxu0 %v3138_v44  ;;  %792 = vmatpush.msra.mxu1 %v3140_v45 }
 0x127   :  { %812 = vmatpush.msra.mxu2 %v3144_v46  ;;  %832 = vmatpush.msra.mxu3 %v5227_v47 }
 0x128   :  { %773 = vmatpush.msra.mxu0 %v5228_v56  ;;  %793 = vmatpush.msra.mxu1 %v5229_v39  ;;  %v5253_v39 = vld [vmem:[#allocation41_spill] sm:$0xff] }
 0x129   :  { %813 = vmatpush.msra.mxu2 %v5230_v52  ;;  %833 = vmatpush.msra.mxu3 %v5231_v13 }
 0x12a   :  { %774 = vmatpush.msra.mxu0 %v5232_v59  ;;  %794 = vmatpush.msra.mxu1 %v5233_v55  ;;  %v5251_v55 = vld [vmem:[#allocation40_spill] sm:$0xff] }
 0x12b   :  { %814 = vmatpush.msra.mxu2 %v5234_v54  ;;  %834 = vmatpush.msra.mxu3 %v5235_v61  ;;  %v5246_v61 = vld [vmem:[#allocation37_spill] sm:$0xff] }
 0x12c   :  { %775 = vmatpush.msra.mxu0 %v5236_v62  ;;  %795 = vmatpush.msra.mxu1 %v5237_v0  ;;  %v5247_v62 = vld [vmem:[#allocation38_spill] sm:$0xff]  ;;  %v5248_v0 = vld [vmem:[#allocation65_spill] sm:$0xff] }
 0x12d   :  { %815 = vmatpush.msra.mxu2 %v5238_v53  ;;  %835 = vmatpush.msra.mxu3 %v5239_v51  ;;  %v5249_v53 = vld [vmem:[#allocation39_spill] sm:$0xff]  ;;  %v5250_v51 = vld [vmem:[#allocation66_spill] sm:$0xff] }
 0x12e   :  { %776 = vmatpush.msra.mxu0 %v5240_v26  ;;  %796 = vmatpush.msra.mxu1 %v5241_v57  ;;  %v260_v54 = vadd.f32 %v5249_v53, %v5248_v0  ;;  %v301_v26 = vadd.f32 %v5251_v55, %v5250_v51 }
 0x12f   :  { %816 = vmatpush.msra.mxu2 %v5242_v49  ;;  %836 = vmatpush.msra.mxu3 %v5243_v48 }
 0x130   :  { %777 = vmatpush.msra.mxu0 %v5244_v58  ;;  %797 = vmatpush.msra.mxu1 %v5245_v60  ;;  %v5252_v58 = vld [vmem:[#allocation69_spill] sm:$0xff] }
 0x131   :  { %817 = vmatpush.msra.mxu2 %v5246_v61  ;;  %837 = vmatpush.msra.mxu3 %v5247_v62  ;;  %v342_v60 = vadd.f32 %v5253_v39, %v5252_v58  ;;  %v5254_v61 = vld [vmem:[#allocation42_spill] sm:$0xff] }
 0x132   :  { %v383_v56 = vadd.f32 %v5254_v61, %v3425_v63 }
 0x18d   :  { %v565_v59 = vpop.f32.mrf.mxu0  ;;  %v585_v57 = vpop.f32.mrf.mxu1 }
 0x18e   :  { %v566_v13 = vadd.f32 %v565_v59, %v260_v54  ;;  %v586_v49 = vadd.f32 %v585_v57, %v301_v26 }
 0x190   :  { %v628_v52 = vmul.f32 0.5, %v566_v13  ;;  %v632_v48 = vmul.f32 0.5, %v586_v49 }
 0x192   :  { %2537 = vtanh.f32 %v628_v52 }
 0x193   :  { %2539 = vtanh.f32 %v632_v48 }
 0x194   :  { %v605_v62 = vpop.f32.mrf.mxu2  ;;  %v625_v47 = vpop.f32.mrf.mxu3 }
 0x195   :  { %v606_v53 = vadd.f32 %v605_v62, %v342_v60  ;;  %v626_v0 = vadd.f32 %v625_v47, %v383_v56 }
 0x197   :  { %2541 = vtanh.f32 %v606_v53  ;;  %v637_v55 = vmul.f32 0.5, %v626_v0 }
 0x198   :  { %v2538_v51 = vpop.eup %2537 }
 0x199   :  { %v2540_v46 = vpop.eup %2539  ;;  %v630_v59 = vmul.f32 0.5, %v2538_v51  ;;  %2543 = vtanh.f32 %v637_v55 }
 0x19a   :  { %v634_v54 = vmul.f32 0.5, %v2540_v46 }
 0x19b   :  { %v631_v13 = vadd.f32 0.5, %v630_v59 }
 0x19c   :  { %v635_v52 = vadd.f32 0.5, %v634_v54 }
 0x19d   :  { %v2542_v26 = vpop.eup %2541 }
 0x19e   :  { %v641_v39 = vmul.f32 %v635_v52, %v3429_v50  ;;  %v642_v57 = vmul.f32 %v2542_v26, %v631_v13 }
 0x19f   :  { %v2544_v49 = vpop.eup %2543 }
 0x1a0   :  { %v3511_v61 = vadd.f32 %v642_v57, %v641_v39  ;;  %v639_v60 = vmul.f32 0.5, %v2544_v49 }
 0x1a2   :  { %2545 = vtanh.f32 %v3511_v61  ;;  %v640_v47 = vadd.f32 0.5, %v639_v60 }
 0x1a8   :  { %v2546_v56 = vpop.eup %2545 }
 0x1a9   :  { %v3514_v62 = vmul.f32 %v2546_v56, %v640_v47  ;;  %v3605_v47 = vld [vmem:[#allocation9 + $0x1e8] sm:$0xff]  ;;  %v3608_v56 = vld [vmem:[#allocation9 + $0x1f0] sm:$0xff] }
 0x1ab   :  { %5255 = vst [vmem:[#allocation39_spill] sm:$0xff] %v3514_v62  ;;  %671 = vmatmul.f32.vlgmr.msrb.gmra.mxu0 %v3514_v62  ;;  %691 = vmatmul.f32.vlgmr.msrb.gmra.mxu1 %v3514_v62 }
 0x1ac   :  { %711 = vmatmul.f32.vlgmr.msrb.gmra.mxu2 %v3514_v62  ;;  %731 = vmatmul.f32.vlgmr.msrb.gmra.mxu3 %v3514_v62  ;;  %v3740_v62 = vld [vmem:[#allocation9 + $0x90] sm:$0xff] }
 0x1ad   :  { %869 = vmatpush.msrb.mxu0 %v3013_v1  ;;  %889 = vmatpush.msrb.mxu1 %v3015_v2  ;;  %v5256_v1 = vld [vmem:[#allocation17_spill] sm:$0xff]  ;;  %v5257_v2 = vld [vmem:[#allocation18_spill] sm:$0xff] }
 0x1ae   :  { %909 = vmatpush.msrb.mxu2 %v3017_v3  ;;  %929 = vmatpush.msrb.mxu3 %v3019_v4  ;;  %v5258_v3 = vld [vmem:[#allocation19_spill] sm:$0xff]  ;;  %v5259_v4 = vld [vmem:[#allocation20_spill] sm:$0xff] }
 0x1af   :  { %870 = vmatpush.msrb.mxu0 %v3021_v5  ;;  %890 = vmatpush.msrb.mxu1 %v3023_v6  ;;  %v5260_v5 = vld [vmem:[#allocation21_spill] sm:$0xff]  ;;  %v5261_v6 = vld [vmem:[#allocation22_spill] sm:$0xff]  ;;  %5290 = vst [vmem:[#allocation19_spill] sm:$0xff] %v3740_v62 }
 0x1b0   :  { %910 = vmatpush.msrb.mxu2 %v3027_v7  ;;  %930 = vmatpush.msrb.mxu3 %v3029_v8  ;;  %v5262_v7 = vld [vmem:[#allocation23_spill] sm:$0xff]  ;;  %v5263_v8 = vld [vmem:[#allocation24_spill] sm:$0xff] }
 0x1b1   :  { %871 = vmatpush.msrb.mxu0 %v3033_v9  ;;  %891 = vmatpush.msrb.mxu1 %v3035_v10  ;;  %v5264_v9 = vld [vmem:[#allocation25_spill] sm:$0xff]  ;;  %v5265_v10 = vld [vmem:[#allocation26_spill] sm:$0xff] }
 0x1b2   :  { %911 = vmatpush.msrb.mxu2 %v3039_v11  ;;  %931 = vmatpush.msrb.mxu3 %v3041_v12  ;;  %v5266_v11 = vld [vmem:[#allocation27_spill] sm:$0xff]  ;;  %v5267_v12 = vld [vmem:[#allocation28_spill] sm:$0xff] }
 0x1b3   :  { %872 = vmatpush.msrb.mxu0 %v3051_v14  ;;  %892 = vmatpush.msrb.mxu1 %v3053_v15  ;;  %v5268_v14 = vld [vmem:[#allocation29_spill] sm:$0xff]  ;;  %v5269_v15 = vld [vmem:[#allocation30_spill] sm:$0xff] }
 0x1b4   :  { %912 = vmatpush.msrb.mxu2 %v3056_v16  ;;  %932 = vmatpush.msrb.mxu3 %v3058_v17  ;;  %v5270_v16 = vld [vmem:[#allocation31_spill] sm:$0xff]  ;;  %v5271_v17 = vld [vmem:[#allocation32_spill] sm:$0xff] }
 0x1b5   :  { %873 = vmatpush.msrb.mxu0 %v3060_v18  ;;  %893 = vmatpush.msrb.mxu1 %v3062_v19  ;;  %v5272_v18 = vld [vmem:[#allocation33_spill] sm:$0xff]  ;;  %v5273_v19 = vld [vmem:[#allocation34_spill] sm:$0xff] }
 0x1b6   :  { %913 = vmatpush.msrb.mxu2 %v3066_v20  ;;  %933 = vmatpush.msrb.mxu3 %v3068_v21  ;;  %v5274_v20 = vld [vmem:[#allocation35_spill] sm:$0xff]  ;;  %v5275_v21 = vld [vmem:[#allocation36_spill] sm:$0xff] }
 0x1b7   :  { %874 = vmatpush.msrb.mxu0 %v3072_v22  ;;  %894 = vmatpush.msrb.mxu1 %v3074_v23  ;;  %v5276_v22 = vld [vmem:[#allocation37_spill] sm:$0xff]  ;;  %v5277_v23 = vld [vmem:[#allocation38_spill] sm:$0xff] }
 0x1b8   :  { %914 = vmatpush.msrb.mxu2 %v3078_v24  ;;  %934 = vmatpush.msrb.mxu3 %v3080_v25  ;;  %v5278_v24 = vld [vmem:[#allocation65_spill] sm:$0xff]  ;;  %v5279_v25 = vld [vmem:[#allocation43_spill] sm:$0xff] }
 0x1b9   :  { %875 = vmatpush.msrb.mxu0 %v3090_v27  ;;  %895 = vmatpush.msrb.mxu1 %v3092_v28  ;;  %v263_v27 = vadd.f32 %v5279_v25, %v5278_v24  ;;  %v5280_v28 = vld [vmem:[#allocation66_spill] sm:$0xff]  ;;  %v3641_v25 = vld [vmem:[#allocation9 + $0x188] sm:$0xff] }
 0x1ba   :  { %915 = vmatpush.msrb.mxu2 %v3095_v29  ;;  %935 = vmatpush.msrb.mxu3 %v3097_v30  ;;  %v5281_v29 = vld [vmem:[#allocation44_spill] sm:$0xff] }
 0x1bb   :  { %876 = vmatpush.msrb.mxu0 %v3099_v31  ;;  %896 = vmatpush.msrb.mxu1 %v3101_v32  ;;  %v304_v30 = vadd.f32 %v5281_v29, %v5280_v28  ;;  %v3647_v29 = vld [vmem:[#allocation9 + $0x198] sm:$0xff] }
 0x1bc   :  { %916 = vmatpush.msrb.mxu2 %v3105_v33  ;;  %936 = vmatpush.msrb.mxu3 %v3107_v34 }
 0x1bd   :  { %877 = vmatpush.msrb.mxu0 %v3111_v35  ;;  %897 = vmatpush.msrb.mxu1 %v3113_v36 }
 0x1be   :  { %917 = vmatpush.msrb.mxu2 %v3117_v37  ;;  %937 = vmatpush.msrb.mxu3 %v3119_v38  ;;  %v5282_v37 = vld [vmem:[#allocation45_spill] sm:$0xff] }
 0x1bf   :  { %878 = vmatpush.msrb.mxu0 %v3129_v40  ;;  %898 = vmatpush.msrb.mxu1 %v3131_v41  ;;  %v345_v38 = vadd.f32 %v5282_v37, %v5252_v58  ;;  %v5283_v40 = vld [vmem:[#allocation46_spill] sm:$0xff]  ;;  %v3671_v37 = vld [vmem:[#allocation9 + $0x158] sm:$0xff] }
 0x1c0   :  { %918 = vmatpush.msrb.mxu2 %v3134_v42  ;;  %938 = vmatpush.msrb.mxu3 %v3136_v43  ;;  %v386_v41 = vadd.f32 %v5283_v40, %v3425_v63  ;;  %v3677_v40 = vld [vmem:[#allocation9 + $0x128] sm:$0xff] }
 0x1c1   :  { %879 = vmatpush.msrb.mxu0 %v3138_v44  ;;  %899 = vmatpush.msrb.mxu1 %v3140_v45 }
 0x1c2   :  { %919 = vmatpush.msrb.mxu2 %v5256_v1  ;;  %939 = vmatpush.msrb.mxu3 %v5257_v2  ;;  %v3611_v1 = vld [vmem:[#allocation9 + $0x1f8] sm:$0xff]  ;;  %v3614_v2 = vld [vmem:[#allocation9 + $0x1c0] sm:$0xff] }
 0x1c3   :  { %880 = vmatpush.msrb.mxu0 %v5258_v3  ;;  %900 = vmatpush.msrb.mxu1 %v5259_v4  ;;  %v3617_v3 = vld [vmem:[#allocation9 + $0x1c8] sm:$0xff]  ;;  %v3620_v4 = vld [vmem:[#allocation9 + $0x1d0] sm:$0xff] }
 0x1c4   :  { %920 = vmatpush.msrb.mxu2 %v5260_v5  ;;  %940 = vmatpush.msrb.mxu3 %v5261_v6  ;;  %v3623_v5 = vld [vmem:[#allocation9 + $0x1d8] sm:$0xff]  ;;  %v3626_v6 = vld [vmem:[#allocation9 + $0x1a0] sm:$0xff] }
 0x1c5   :  { %881 = vmatpush.msrb.mxu0 %v5262_v7  ;;  %901 = vmatpush.msrb.mxu1 %v5263_v8  ;;  %v3629_v7 = vld [vmem:[#allocation9 + $0x1a8] sm:$0xff]  ;;  %v3632_v8 = vld [vmem:[#allocation9 + $0x1b0] sm:$0xff] }
 0x1c6   :  { %921 = vmatpush.msrb.mxu2 %v5264_v9  ;;  %941 = vmatpush.msrb.mxu3 %v5265_v10  ;;  %v3635_v9 = vld [vmem:[#allocation9 + $0x1b8] sm:$0xff]  ;;  %v3638_v10 = vld [vmem:[#allocation9 + $0x180] sm:$0xff] }
 0x1c7   :  { %882 = vmatpush.msrb.mxu0 %v5266_v11  ;;  %902 = vmatpush.msrb.mxu1 %v5267_v12 }
 0x1c8   :  { %922 = vmatpush.msrb.mxu2 %v5268_v14  ;;  %942 = vmatpush.msrb.mxu3 %v5269_v15 }
 0x1c9   :  { %883 = vmatpush.msrb.mxu0 %v5270_v16  ;;  %903 = vmatpush.msrb.mxu1 %v5271_v17 }
 0x1ca   :  { %923 = vmatpush.msrb.mxu2 %v5272_v18  ;;  %943 = vmatpush.msrb.mxu3 %v5273_v19 }
 0x1cb   :  { %884 = vmatpush.msrb.mxu0 %v5274_v20  ;;  %904 = vmatpush.msrb.mxu1 %v5275_v21 }
 0x1cc   :  { %924 = vmatpush.msrb.mxu2 %v5276_v22  ;;  %944 = vmatpush.msrb.mxu3 %v5277_v23 }
 0x228   :  { %v672_v31 = vpop.f32.mrf.mxu0  ;;  %v692_v32 = vpop.f32.mrf.mxu1 }
 0x229   :  { %v673_v33 = vadd.f32 %v672_v31, %v263_v27  ;;  %v693_v34 = vadd.f32 %v692_v32, %v304_v30  ;;  %v3644_v27 = vld [vmem:[#allocation9 + $0x190] sm:$0xff]  ;;  %v3650_v30 = vld [vmem:[#allocation9 + $0x160] sm:$0xff]  ;;  %v3653_v31 = vld [vmem:[#allocation9 + $0x168] sm:$0xff] }
 0x22a   :  { %v3656_v32 = vld [vmem:[#allocation9 + $0x170] sm:$0xff] }
 0x22b   :  { %v735_v35 = vmul.f32 0.5, %v673_v33  ;;  %v739_v36 = vmul.f32 0.5, %v693_v34  ;;  %v3659_v33 = vld [vmem:[#allocation9 + $0x178] sm:$0xff]  ;;  %v3662_v34 = vld [vmem:[#allocation9 + $0x140] sm:$0xff] }
 0x22d   :  { %2547 = vtanh.f32 %v735_v35  ;;  %v3665_v35 = vld [vmem:[#allocation9 + $0x148] sm:$0xff] }
 0x22e   :  { %2549 = vtanh.f32 %v739_v36  ;;  %v3668_v36 = vld [vmem:[#allocation9 + $0x150] sm:$0xff] }
 0x22f   :  { %v712_v42 = vpop.f32.mrf.mxu2  ;;  %v732_v43 = vpop.f32.mrf.mxu3 }
 0x230   :  { %v713_v44 = vadd.f32 %v712_v42, %v345_v38  ;;  %v733_v45 = vadd.f32 %v732_v43, %v386_v41  ;;  %v3674_v38 = vld [vmem:[#allocation9 + $0x120] sm:$0xff]  ;;  %v3680_v41 = vld [vmem:[#allocation9 + $0x130] sm:$0xff]  ;;  %v3683_v42 = vld [vmem:[#allocation9 + $0x138] sm:$0xff] }
 0x231   :  { %v3686_v43 = vld [vmem:[#allocation9 + $0x100] sm:$0xff] }
 0x232   :  { %2551 = vtanh.f32 %v713_v44  ;;  %v744_v46 = vmul.f32 0.5, %v733_v45  ;;  %v3689_v44 = vld [vmem:[#allocation9 + $0x108] sm:$0xff]  ;;  %v3692_v45 = vld [vmem:[#allocation9 + $0x110] sm:$0xff] }
 0x233   :  { %v2548_v50 = vpop.eup %2547 }
 0x234   :  { %v2550_v0 = vpop.eup %2549  ;;  %v737_v51 = vmul.f32 0.5, %v2548_v50  ;;  %2553 = vtanh.f32 %v744_v46  ;;  %v3695_v46 = vld [vmem:[#allocation9 + $0x118] sm:$0xff]  ;;  %v3698_v50 = vld [vmem:[#allocation9 + $0xe0] sm:$0xff] }
 0x235   :  { %v741_v48 = vmul.f32 0.5, %v2550_v0  ;;  %v3701_v0 = vld [vmem:[#allocation9 + $0xe8] sm:$0xff] }
 0x236   :  { %v738_v53 = vadd.f32 0.5, %v737_v51  ;;  %v3704_v51 = vld [vmem:[#allocation9 + $0xf0] sm:$0xff] }
 0x237   :  { %v742_v55 = vadd.f32 0.5, %v741_v48  ;;  %v3707_v48 = vld [vmem:[#allocation9 + $0xf8] sm:$0xff] }
 0x238   :  { %v2552_v59 = vpop.eup %2551 }
 0x239   :  { %v748_v54 = vmul.f32 %v742_v55, %v3511_v61  ;;  %v749_v13 = vmul.f32 %v2552_v59, %v738_v53  ;;  %v3602_v61 = vld [vmem:[#allocation9 + $0x1e0] sm:$0xff]  ;;  %v3713_v55 = vld [vmem:[#allocation9 + $0xc8] sm:$0xff]  ;;  %v3716_v59 = vld [vmem:[#allocation9 + $0xd0] sm:$0xff] }
 0x23a   :  { %v2554_v52 = vpop.eup %2553  ;;  %v3710_v53 = vld [vmem:[#allocation9 + $0xc0] sm:$0xff] }
 0x23b   :  { %v3593_v26 = vadd.f32 %v749_v13, %v748_v54  ;;  %v746_v39 = vmul.f32 0.5, %v2554_v52  ;;  %v3719_v54 = vld [vmem:[#allocation9 + $0xd8] sm:$0xff]  ;;  %v3722_v13 = vld [vmem:[#allocation9 + $0xa0] sm:$0xff]  ;;  %v3725_v52 = vld [vmem:[#allocation9 + $0xa8] sm:$0xff] }
 0x23c   :  { %5285 = vst [vmem:[#allocation69_spill] sm:$0xff] %v3725_v52 }
 0x23d   :  { %2555 = vtanh.f32 %v3593_v26  ;;  %v747_v57 = vadd.f32 0.5, %v746_v39  ;;  %v3728_v39 = vld [vmem:[#allocation9 + $0xb0] sm:$0xff] }
 0x23e   :  { %5286 = vst [vmem:[#allocation41_spill] sm:$0xff] %v3728_v39 }
 0x243   :  { %v2556_v49 = vpop.eup %2555 }
 0x244   :  { %v3596_v60 = vmul.f32 %v2556_v49, %v747_v57  ;;  %v3731_v57 = vld [vmem:[#allocation9 + $0xb8] sm:$0xff]  ;;  %v3734_v49 = vld [vmem:[#allocation9 + $0x80] sm:$0xff] }
 0x245   :  { %5287 = vst [vmem:[#allocation42_spill] sm:$0xff] %v3731_v57 }
 0x246   :  { %5284 = vst [vmem:[#allocation40_spill] sm:$0xff] %v3596_v60  ;;  %778 = vmatmul.f32.vlgmr.msra.gmra.mxu0 %v3596_v60  ;;  %798 = vmatmul.f32.vlgmr.msra.gmra.mxu1 %v3596_v60 }
 0x247   :  { %818 = vmatmul.f32.vlgmr.msra.gmra.mxu2 %v3596_v60  ;;  %838 = vmatmul.f32.vlgmr.msra.gmra.mxu3 %v3596_v60  ;;  %5288 = vst [vmem:[#allocation17_spill] sm:$0xff] %v3734_v49  ;;  %v3737_v60 = vld [vmem:[#allocation9 + $0x88] sm:$0xff] }
 0x248   :  { %976 = vmatpush.msra.mxu0 %v3602_v61  ;;  %996 = vmatpush.msra.mxu1 %v3605_v47  ;;  %5289 = vst [vmem:[#allocation18_spill] sm:$0xff] %v3737_v60 }
 0x249   :  { %1016 = vmatpush.msra.mxu2 %v3608_v56  ;;  %1036 = vmatpush.msra.mxu3 %v3611_v1 }
 0x24a   :  { %977 = vmatpush.msra.mxu0 %v3614_v2  ;;  %997 = vmatpush.msra.mxu1 %v3617_v3 }
 0x24b   :  { %1017 = vmatpush.msra.mxu2 %v3620_v4  ;;  %1037 = vmatpush.msra.mxu3 %v3623_v5 }
 0x24c   :  { %978 = vmatpush.msra.mxu0 %v3626_v6  ;;  %998 = vmatpush.msra.mxu1 %v3629_v7 }
 0x24d   :  { %1018 = vmatpush.msra.mxu2 %v3632_v8  ;;  %1038 = vmatpush.msra.mxu3 %v3635_v9 }
 0x24e   :  { %979 = vmatpush.msra.mxu0 %v3638_v10  ;;  %999 = vmatpush.msra.mxu1 %v3641_v25 }
 0x24f   :  { %1019 = vmatpush.msra.mxu2 %v3644_v27  ;;  %1039 = vmatpush.msra.mxu3 %v3647_v29 }
 0x250   :  { %980 = vmatpush.msra.mxu0 %v3650_v30  ;;  %1000 = vmatpush.msra.mxu1 %v3653_v31 }
 0x251   :  { %1020 = vmatpush.msra.mxu2 %v3656_v32  ;;  %1040 = vmatpush.msra.mxu3 %v3659_v33 }
 0x252   :  { %981 = vmatpush.msra.mxu0 %v3662_v34  ;;  %1001 = vmatpush.msra.mxu1 %v3665_v35 }
 0x253   :  { %1021 = vmatpush.msra.mxu2 %v3668_v36  ;;  %1041 = vmatpush.msra.mxu3 %v3671_v37 }
 0x254   :  { %982 = vmatpush.msra.mxu0 %v3674_v38  ;;  %1002 = vmatpush.msra.mxu1 %v3677_v40 }
 0x255   :  { %1022 = vmatpush.msra.mxu2 %v3680_v41  ;;  %1042 = vmatpush.msra.mxu3 %v3683_v42 }
 0x256   :  { %983 = vmatpush.msra.mxu0 %v3686_v43  ;;  %1003 = vmatpush.msra.mxu1 %v3689_v44 }
 0x257   :  { %1023 = vmatpush.msra.mxu2 %v3692_v45  ;;  %1043 = vmatpush.msra.mxu3 %v3695_v46 }
 0x258   :  { %984 = vmatpush.msra.mxu0 %v3698_v50  ;;  %1004 = vmatpush.msra.mxu1 %v3701_v0 }
 0x259   :  { %1024 = vmatpush.msra.mxu2 %v3704_v51  ;;  %1044 = vmatpush.msra.mxu3 %v3707_v48 }
 0x25a   :  { %985 = vmatpush.msra.mxu0 %v3710_v53  ;;  %1005 = vmatpush.msra.mxu1 %v3713_v55 }
 0x25b   :  { %1025 = vmatpush.msra.mxu2 %v3716_v59  ;;  %1045 = vmatpush.msra.mxu3 %v3719_v54 }
 0x25c   :  { %986 = vmatpush.msra.mxu0 %v3722_v13  ;;  %1006 = vmatpush.msra.mxu1 %v3725_v52  ;;  %v3743_v52 = vld [vmem:[#allocation9 + $0x98] sm:$0xff] }
 0x25d   :  { %1026 = vmatpush.msra.mxu2 %v3728_v39  ;;  %1046 = vmatpush.msra.mxu3 %v3731_v57  ;;  %5291 = vst [vmem:[#allocation20_spill] sm:$0xff] %v3743_v52  ;;  %v3746_v39 = vld [vmem:[#allocation9 + $0x60] sm:$0xff]  ;;  %v3749_v57 = vld [vmem:[#allocation9 + $0x68] sm:$0xff] }
 0x25e   :  { %987 = vmatpush.msra.mxu0 %v3734_v49  ;;  %1007 = vmatpush.msra.mxu1 %v3737_v60  ;;  %5292 = vst [vmem:[#allocation21_spill] sm:$0xff] %v3746_v39  ;;  %v3752_v49 = vld [vmem:[#allocation9 + $0x70] sm:$0xff]  ;;  %v3755_v60 = vld [vmem:[#allocation9 + $0x78] sm:$0xff] }
 0x25f   :  { %1027 = vmatpush.msra.mxu2 %v3740_v62  ;;  %1047 = vmatpush.msra.mxu3 %v3743_v52  ;;  %5293 = vst [vmem:[#allocation22_spill] sm:$0xff] %v3749_v57 }
 0x260   :  { %988 = vmatpush.msra.mxu0 %v3746_v39  ;;  %1008 = vmatpush.msra.mxu1 %v3749_v57  ;;  %5294 = vst [vmem:[#allocation23_spill] sm:$0xff] %v3752_v49 }
 0x261   :  { %1028 = vmatpush.msra.mxu2 %v3752_v49  ;;  %5295 = vst [vmem:[#allocation24_spill] sm:$0xff] %v3755_v60  ;;  %1048 = vmatpush.msra.mxu3 %v3755_v60 }
 0x262   :  { %989 = vmatpush.msra.mxu0 %v5266_v11  ;;  %1009 = vmatpush.msra.mxu1 %v5267_v12  ;;  %v5296_v11 = vld [vmem:[#allocation47_spill] sm:$0xff] }
 0x263   :  { %1029 = vmatpush.msra.mxu2 %v5268_v14  ;;  %1049 = vmatpush.msra.mxu3 %v5269_v15  ;;  %v266_v12 = vadd.f32 %v5296_v11, %v5278_v24  ;;  %v5297_v14 = vld [vmem:[#allocation48_spill] sm:$0xff] }
 0x264   :  { %990 = vmatpush.msra.mxu0 %v5270_v16  ;;  %1010 = vmatpush.msra.mxu1 %v5271_v17  ;;  %v307_v15 = vadd.f32 %v5297_v14, %v5280_v28 }
 0x265   :  { %1030 = vmatpush.msra.mxu2 %v5272_v18  ;;  %1050 = vmatpush.msra.mxu3 %v5273_v19 }
 0x266   :  { %991 = vmatpush.msra.mxu0 %v5274_v20  ;;  %1011 = vmatpush.msra.mxu1 %v5275_v21  ;;  %v5298_v20 = vld [vmem:[#allocation49_spill] sm:$0xff] }
 0x267   :  { %1031 = vmatpush.msra.mxu2 %v5276_v22  ;;  %1051 = vmatpush.msra.mxu3 %v5277_v23  ;;  %v348_v21 = vadd.f32 %v5298_v20, %v5252_v58  ;;  %v5299_v22 = vld [vmem:[#allocation50_spill] sm:$0xff] }
 0x268   :  { %v389_v57 = vadd.f32 %v5299_v22, %v3425_v63 }
 0x2c3   :  { %v779_v16 = vpop.f32.mrf.mxu0  ;;  %v799_v17 = vpop.f32.mrf.mxu1 }
 0x2c4   :  { %v780_v60 = vadd.f32 %v779_v16, %v266_v12  ;;  %v800_v18 = vadd.f32 %v799_v17, %v307_v15 }
 0x2c6   :  { %v842_v49 = vmul.f32 0.5, %v780_v60  ;;  %v846_v19 = vmul.f32 0.5, %v800_v18 }
 0x2c8   :  { %2557 = vtanh.f32 %v842_v49 }
 0x2c9   :  { %2559 = vtanh.f32 %v846_v19 }
 0x2ca   :  { %v819_v23 = vpop.f32.mrf.mxu2  ;;  %v839_v39 = vpop.f32.mrf.mxu3 }
 0x2cb   :  { %v820_v11 = vadd.f32 %v819_v23, %v348_v21  ;;  %v840_v24 = vadd.f32 %v839_v39, %v389_v57  ;;  %v5304_v21 = vld [vmem:[#allocation17_spill] sm:$0xff]  ;;  %v5305_v23 = vld [vmem:[#allocation18_spill] sm:$0xff] }
 0x2cd   :  { %2561 = vtanh.f32 %v820_v11  ;;  %v851_v14 = vmul.f32 0.5, %v840_v24  ;;  %v5306_v11 = vld [vmem:[#allocation20_spill] sm:$0xff] }
 0x2ce   :  { %v2558_v28 = vpop.eup %2557 }
 0x2cf   :  { %v2560_v52 = vpop.eup %2559  ;;  %v844_v12 = vmul.f32 0.5, %v2558_v28  ;;  %2563 = vtanh.f32 %v851_v14  ;;  %v5301_v28 = vld [vmem:[#allocation69_spill] sm:$0xff] }
 0x2d0   :  { %v848_v15 = vmul.f32 0.5, %v2560_v52  ;;  %v5303_v52 = vld [vmem:[#allocation42_spill] sm:$0xff]  ;;  %v5307_v14 = vld [vmem:[#allocation21_spill] sm:$0xff] }
 0x2d1   :  { %v845_v60 = vadd.f32 0.5, %v844_v12  ;;  %v5308_v12 = vld [vmem:[#allocation22_spill] sm:$0xff] }
 0x2d2   :  { %v849_v49 = vadd.f32 0.5, %v848_v15  ;;  %v5309_v15 = vld [vmem:[#allocation23_spill] sm:$0xff] }
 0x2d3   :  { %v2562_v16 = vpop.eup %2561 }
 0x2d4   :  { %v855_v17 = vmul.f32 %v849_v49, %v3593_v26  ;;  %v856_v18 = vmul.f32 %v2562_v16, %v845_v60  ;;  %v5302_v26 = vld [vmem:[#allocation41_spill] sm:$0xff]  ;;  %v5310_v60 = vld [vmem:[#allocation24_spill] sm:$0xff] }
 0x2d5   :  { %v2564_v20 = vpop.eup %2563  ;;  %v3840_v49 = vld [vmem:[#allocation9 + $0x40] sm:$0xff]  ;;  %v3843_v16 = vld [vmem:[#allocation9 + $0x48] sm:$0xff] }
 0x2d6   :  { %v3779_v22 = vadd.f32 %v856_v18, %v855_v17  ;;  %v853_v19 = vmul.f32 0.5, %v2564_v20  ;;  %5311 = vst [vmem:[#allocation26_spill] sm:$0xff] %v3840_v49  ;;  %v3846_v17 = vld [vmem:[#allocation9 + $0x50] sm:$0xff]  ;;  %v3849_v18 = vld [vmem:[#allocation9 + $0x58] sm:$0xff]  ;;  %v3852_v20 = vld [vmem:[#allocation9 + $0x20] sm:$0xff] }
 0x2d7   :  { %5312 = vst [vmem:[#allocation27_spill] sm:$0xff] %v3843_v16 }
 0x2d8   :  { %2565 = vtanh.f32 %v3779_v22  ;;  %v854_v39 = vadd.f32 0.5, %v853_v19  ;;  %5313 = vst [vmem:[#allocation28_spill] sm:$0xff] %v3846_v17  ;;  %v3855_v19 = vld [vmem:[#allocation9 + $0x28] sm:$0xff] }
 0x2d9   :  { %5314 = vst [vmem:[#allocation29_spill] sm:$0xff] %v3849_v18 }
 0x2da   :  { %5315 = vst [vmem:[#allocation30_spill] sm:$0xff] %v3852_v20 }
 0x2db   :  { %5316 = vst [vmem:[#allocation31_spill] sm:$0xff] %v3855_v19 }
 0x2de   :  { %v2566_v57 = vpop.eup %2565 }
 0x2df   :  { %v3782_v24 = vmul.f32 %v2566_v57, %v854_v39  ;;  %v3858_v39 = vld [vmem:[#allocation9 + $0x30] sm:$0xff]  ;;  %v3861_v57 = vld [vmem:[#allocation9 + $0x38] sm:$0xff] }
 0x2e0   :  { %5317 = vst [vmem:[#allocation32_spill] sm:$0xff] %v3858_v39 }
 0x2e1   :  { %5300 = vst [vmem:[#allocation25_spill] sm:$0xff] %v3782_v24  ;;  %885 = vmatmul.f32.vlgmr.msrb.gmra.mxu0 %v3782_v24  ;;  %905 = vmatmul.f32.vlgmr.msrb.gmra.mxu1 %v3782_v24 }
 0x2e2   :  { %925 = vmatmul.f32.vlgmr.msrb.gmra.mxu2 %v3782_v24  ;;  %945 = vmatmul.f32.vlgmr.msrb.gmra.mxu3 %v3782_v24  ;;  %5318 = vst [vmem:[#allocation33_spill] sm:$0xff] %v3861_v57  ;;  %v3864_v24 = vld [vmem:[#allocation9] sm:$0xff] }
 0x2e3   :  { %1083 = vmatpush.msrb.mxu0 %v3602_v61  ;;  %1103 = vmatpush.msrb.mxu1 %v3605_v47  ;;  %5319 = vst [vmem:[#allocation34_spill] sm:$0xff] %v3864_v24 }
 0x2e4   :  { %1123 = vmatpush.msrb.mxu2 %v3608_v56  ;;  %1143 = vmatpush.msrb.mxu3 %v3611_v1 }
 0x2e5   :  { %1084 = vmatpush.msrb.mxu0 %v3614_v2  ;;  %1104 = vmatpush.msrb.mxu1 %v3617_v3 }
 0x2e6   :  { %1124 = vmatpush.msrb.mxu2 %v3620_v4  ;;  %1144 = vmatpush.msrb.mxu3 %v3623_v5 }
 0x2e7   :  { %1085 = vmatpush.msrb.mxu0 %v3626_v6  ;;  %1105 = vmatpush.msrb.mxu1 %v3629_v7 }
 0x2e8   :  { %1125 = vmatpush.msrb.mxu2 %v3632_v8  ;;  %1145 = vmatpush.msrb.mxu3 %v3635_v9 }
 0x2e9   :  { %1086 = vmatpush.msrb.mxu0 %v3638_v10  ;;  %1106 = vmatpush.msrb.mxu1 %v3641_v25 }
 0x2ea   :  { %1126 = vmatpush.msrb.mxu2 %v3644_v27  ;;  %1146 = vmatpush.msrb.mxu3 %v3647_v29 }
 0x2eb   :  { %1087 = vmatpush.msrb.mxu0 %v3650_v30  ;;  %1107 = vmatpush.msrb.mxu1 %v3653_v31 }
 0x2ec   :  { %1127 = vmatpush.msrb.mxu2 %v3656_v32  ;;  %1147 = vmatpush.msrb.mxu3 %v3659_v33 }
 0x2ed   :  { %1088 = vmatpush.msrb.mxu0 %v3662_v34  ;;  %1108 = vmatpush.msrb.mxu1 %v3665_v35 }
 0x2ee   :  { %1128 = vmatpush.msrb.mxu2 %v3668_v36  ;;  %1148 = vmatpush.msrb.mxu3 %v3671_v37 }
 0x2ef   :  { %1089 = vmatpush.msrb.mxu0 %v3674_v38  ;;  %1109 = vmatpush.msrb.mxu1 %v3677_v40 }
 0x2f0   :  { %1129 = vmatpush.msrb.mxu2 %v3680_v41  ;;  %1149 = vmatpush.msrb.mxu3 %v3683_v42 }
 0x2f1   :  { %1090 = vmatpush.msrb.mxu0 %v3686_v43  ;;  %1110 = vmatpush.msrb.mxu1 %v3689_v44 }
 0x2f2   :  { %1130 = vmatpush.msrb.mxu2 %v3692_v45  ;;  %1150 = vmatpush.msrb.mxu3 %v3695_v46 }
 0x2f3   :  { %1091 = vmatpush.msrb.mxu0 %v3698_v50  ;;  %1111 = vmatpush.msrb.mxu1 %v3701_v0 }
 0x2f4   :  { %1131 = vmatpush.msrb.mxu2 %v3704_v51  ;;  %1151 = vmatpush.msrb.mxu3 %v3707_v48 }
 0x2f5   :  { %1092 = vmatpush.msrb.mxu0 %v3710_v53  ;;  %1112 = vmatpush.msrb.mxu1 %v3713_v55 }
 0x2f6   :  { %1132 = vmatpush.msrb.mxu2 %v3716_v59  ;;  %1152 = vmatpush.msrb.mxu3 %v3719_v54 }
 0x2f7   :  { %1093 = vmatpush.msrb.mxu0 %v3722_v13  ;;  %1113 = vmatpush.msrb.mxu1 %v5301_v28 }
 0x2f8   :  { %1133 = vmatpush.msrb.mxu2 %v5302_v26  ;;  %1153 = vmatpush.msrb.mxu3 %v5303_v52 }
 0x2f9   :  { %1094 = vmatpush.msrb.mxu0 %v5304_v21  ;;  %1114 = vmatpush.msrb.mxu1 %v5305_v23  ;;  %v5328_v23 = vld [vmem:[#allocation54_spill] sm:$0xff] }
 0x2fa   :  { %1134 = vmatpush.msrb.mxu2 %v3740_v62  ;;  %1154 = vmatpush.msrb.mxu3 %v5306_v11  ;;  %v5327_v62 = vld [vmem:[#allocation53_spill] sm:$0xff]  ;;  %v392_v21 = vadd.f32 %v5328_v23, %v3425_v63 }
 0x2fb   :  { %1095 = vmatpush.msrb.mxu0 %v5307_v14  ;;  %1115 = vmatpush.msrb.mxu1 %v5308_v12 }
 0x2fc   :  { %1135 = vmatpush.msrb.mxu2 %v5309_v15  ;;  %1155 = vmatpush.msrb.mxu3 %v5310_v60 }
 0x2fd   :  { %1096 = vmatpush.msrb.mxu0 %v3840_v49  ;;  %1116 = vmatpush.msrb.mxu1 %v3843_v16  ;;  %v5326_v49 = vld [vmem:[#allocation52_spill] sm:$0xff] }
 0x2fe   :  { %1136 = vmatpush.msrb.mxu2 %v3846_v17  ;;  %1156 = vmatpush.msrb.mxu3 %v3849_v18  ;;  %v3867_v18 = vld [vmem:[#allocation9 + $0x8] sm:$0xff]  ;;  %v5324_v17 = vld [vmem:[#allocation51_spill] sm:$0xff] }
 0x2ff   :  { %1097 = vmatpush.msrb.mxu0 %v3852_v20  ;;  %1117 = vmatpush.msrb.mxu1 %v3855_v19  ;;  %5320 = vst [vmem:[#allocation35_spill] sm:$0xff] %v3867_v18  ;;  %v3870_v20 = vld [vmem:[#allocation9 + $0x10] sm:$0xff]  ;;  %v3873_v19 = vld [vmem:[#allocation9 + $0x18] sm:$0xff] }
 0x300   :  { %1137 = vmatpush.msrb.mxu2 %v3858_v39  ;;  %1157 = vmatpush.msrb.mxu3 %v3861_v57  ;;  %5321 = vst [vmem:[#allocation36_spill] sm:$0xff] %v3870_v20  ;;  %v5323_v39 = vld [vmem:[#allocation65_spill] sm:$0xff]  ;;  %v5325_v57 = vld [vmem:[#allocation66_spill] sm:$0xff] }
 0x301   :  { %1098 = vmatpush.msrb.mxu0 %v3864_v24  ;;  %1118 = vmatpush.msrb.mxu1 %v3867_v18  ;;  %5322 = vst [vmem:[#allocation37_spill] sm:$0xff] %v3873_v19  ;;  %v269_v16 = vadd.f32 %v5324_v17, %v5323_v39  ;;  %v310_v60 = vadd.f32 %v5326_v49, %v5325_v57 }
 0x302   :  { %1138 = vmatpush.msrb.mxu2 %v3870_v20  ;;  %1158 = vmatpush.msrb.mxu3 %v3873_v19  ;;  %v351_v20 = vadd.f32 %v5327_v62, %v5252_v58 }
 0x35e   :  { %v886_v15 = vpop.f32.mrf.mxu0  ;;  %v906_v24 = vpop.f32.mrf.mxu1 }
 0x35f   :  { %v887_v12 = vadd.f32 %v886_v15, %v269_v16  ;;  %v907_v14 = vadd.f32 %v906_v24, %v310_v60 }
 0x361   :  { %v949_v11 = vmul.f32 0.5, %v887_v12  ;;  %v953_v18 = vmul.f32 0.5, %v907_v14 }
 0x363   :  { %2567 = vtanh.f32 %v949_v11 }
 0x364   :  { %2569 = vtanh.f32 %v953_v18 }
 0x365   :  { %v926_v19 = vpop.f32.mrf.mxu2  ;;  %v946_v52 = vpop.f32.mrf.mxu3 }
 0x366   :  { %v927_v17 = vadd.f32 %v926_v19, %v351_v20  ;;  %v947_v39 = vadd.f32 %v946_v52, %v392_v21 }
 0x368   :  { %2571 = vtanh.f32 %v927_v17  ;;  %v958_v49 = vmul.f32 0.5, %v947_v39 }
 0x369   :  { %v2568_v57 = vpop.eup %2567 }
 0x36a   :  { %v2570_v26 = vpop.eup %2569  ;;  %v951_v15 = vmul.f32 0.5, %v2568_v57  ;;  %2573 = vtanh.f32 %v958_v49 }
 0x36b   :  { %v955_v24 = vmul.f32 0.5, %v2570_v26 }
 0x36c   :  { %v952_v14 = vadd.f32 0.5, %v951_v15 }
 0x36d   :  { %v956_v11 = vadd.f32 0.5, %v955_v24 }
 0x36e   :  { %v2572_v12 = vpop.eup %2571 }
 0x36f   :  { %v962_v62 = vmul.f32 %v956_v11, %v3779_v22  ;;  %v963_v60 = vmul.f32 %v2572_v12, %v952_v14 }
 0x370   :  { %v2574_v16 = vpop.eup %2573 }
 0x371   :  { %v3885_v23 = vadd.f32 %v963_v60, %v962_v62  ;;  %v960_v18 = vmul.f32 0.5, %v2574_v16 }
 0x373   :  { %2575 = vtanh.f32 %v3885_v23  ;;  %v961_v52 = vadd.f32 0.5, %v960_v18 }
 0x379   :  { %v2576_v21 = vpop.eup %2575 }
 0x37a   :  { %v3888_v20 = vmul.f32 %v2576_v21, %v961_v52  ;;  %v1351_v52 = vld [vmem:[#allocation7 + $0x1e8] sm:$0xff]  ;;  %v1352_v21 = vld [vmem:[#allocation7 + $0x1f0] sm:$0xff] }
 0x37c   :  { %992 = vmatmul.f32.vlgmr.msra.gmra.mxu0 %v3888_v20  ;;  %1012 = vmatmul.f32.vlgmr.msra.gmra.mxu1 %v3888_v20 }
 0x37d   :  { %1032 = vmatmul.f32.vlgmr.msra.gmra.mxu2 %v3888_v20  ;;  %1052 = vmatmul.f32.vlgmr.msra.gmra.mxu3 %v3888_v20 }
 0x37e   :  { %1190 = vmatpush.msra.mxu0 %v3602_v61  ;;  %1210 = vmatpush.msra.mxu1 %v3605_v47  ;;  %v5329_v61 = vld [vmem:[#allocation41_spill] sm:$0xff]  ;;  %v5330_v47 = vld [vmem:[#allocation42_spill] sm:$0xff] }
 0x37f   :  { %1230 = vmatpush.msra.mxu2 %v3608_v56  ;;  %1250 = vmatpush.msra.mxu3 %v3611_v1  ;;  %v5331_v56 = vld [vmem:[#allocation17_spill] sm:$0xff]  ;;  %v5332_v1 = vld [vmem:[#allocation18_spill] sm:$0xff] }
 0x380   :  { %1191 = vmatpush.msra.mxu0 %v3614_v2  ;;  %1211 = vmatpush.msra.mxu1 %v3617_v3  ;;  %v5333_v2 = vld [vmem:[#allocation19_spill] sm:$0xff]  ;;  %v5334_v3 = vld [vmem:[#allocation20_spill] sm:$0xff] }
 0x381   :  { %1231 = vmatpush.msra.mxu2 %v3620_v4  ;;  %1251 = vmatpush.msra.mxu3 %v3623_v5  ;;  %v5335_v4 = vld [vmem:[#allocation21_spill] sm:$0xff]  ;;  %v5336_v5 = vld [vmem:[#allocation22_spill] sm:$0xff] }
 0x382   :  { %1192 = vmatpush.msra.mxu0 %v3626_v6  ;;  %1212 = vmatpush.msra.mxu1 %v3629_v7  ;;  %v5337_v6 = vld [vmem:[#allocation23_spill] sm:$0xff]  ;;  %v5338_v7 = vld [vmem:[#allocation24_spill] sm:$0xff] }
 0x383   :  { %1232 = vmatpush.msra.mxu2 %v3632_v8  ;;  %1252 = vmatpush.msra.mxu3 %v3635_v9  ;;  %v5339_v8 = vld [vmem:[#allocation26_spill] sm:$0xff]  ;;  %v5340_v9 = vld [vmem:[#allocation27_spill] sm:$0xff] }
 0x384   :  { %1193 = vmatpush.msra.mxu0 %v3638_v10  ;;  %1213 = vmatpush.msra.mxu1 %v3641_v25  ;;  %v5341_v10 = vld [vmem:[#allocation28_spill] sm:$0xff]  ;;  %v5342_v25 = vld [vmem:[#allocation29_spill] sm:$0xff] }
 0x385   :  { %1233 = vmatpush.msra.mxu2 %v3644_v27  ;;  %1253 = vmatpush.msra.mxu3 %v3647_v29  ;;  %v5343_v27 = vld [vmem:[#allocation30_spill] sm:$0xff]  ;;  %v5344_v29 = vld [vmem:[#allocation31_spill] sm:$0xff] }
 0x386   :  { %1194 = vmatpush.msra.mxu0 %v3650_v30  ;;  %1214 = vmatpush.msra.mxu1 %v3653_v31  ;;  %v5345_v30 = vld [vmem:[#allocation32_spill] sm:$0xff]  ;;  %v5346_v31 = vld [vmem:[#allocation33_spill] sm:$0xff] }
 0x387   :  { %1234 = vmatpush.msra.mxu2 %v3656_v32  ;;  %1254 = vmatpush.msra.mxu3 %v3659_v33  ;;  %v5347_v32 = vld [vmem:[#allocation34_spill] sm:$0xff]  ;;  %v5348_v33 = vld [vmem:[#allocation35_spill] sm:$0xff] }
 0x388   :  { %1195 = vmatpush.msra.mxu0 %v3662_v34  ;;  %1215 = vmatpush.msra.mxu1 %v3665_v35  ;;  %v5349_v34 = vld [vmem:[#allocation36_spill] sm:$0xff]  ;;  %v5350_v35 = vld [vmem:[#allocation37_spill] sm:$0xff] }
 0x389   :  { %1235 = vmatpush.msra.mxu2 %v3668_v36  ;;  %1255 = vmatpush.msra.mxu3 %v3671_v37  ;;  %v5351_v36 = vld [vmem:[#allocation65_spill] sm:$0xff]  ;;  %v5352_v37 = vld [vmem:[#allocation55_spill] sm:$0xff] }
 0x38a   :  { %1196 = vmatpush.msra.mxu0 %v3674_v38  ;;  %1216 = vmatpush.msra.mxu1 %v3677_v40  ;;  %v272_v38 = vadd.f32 %v5352_v37, %v5351_v36  ;;  %v5353_v40 = vld [vmem:[#allocation66_spill] sm:$0xff]  ;;  %v1327_v37 = vld [vmem:[#allocation7 + $0x128] sm:$0xff] }
 0x38b   :  { %1236 = vmatpush.msra.mxu2 %v3680_v41  ;;  %1256 = vmatpush.msra.mxu3 %v3683_v42  ;;  %v5354_v41 = vld [vmem:[#allocation56_spill] sm:$0xff] }
 0x38c   :  { %1197 = vmatpush.msra.mxu0 %v3686_v43  ;;  %1217 = vmatpush.msra.mxu1 %v3689_v44  ;;  %v313_v42 = vadd.f32 %v5354_v41, %v5353_v40  ;;  %v1329_v41 = vld [vmem:[#allocation7 + $0x138] sm:$0xff] }
 0x38d   :  { %1237 = vmatpush.msra.mxu2 %v3692_v45  ;;  %1257 = vmatpush.msra.mxu3 %v3695_v46 }
 0x38e   :  { %1198 = vmatpush.msra.mxu0 %v3698_v50  ;;  %1218 = vmatpush.msra.mxu1 %v3701_v0 }
 0x38f   :  { %1238 = vmatpush.msra.mxu2 %v3704_v51  ;;  %1258 = vmatpush.msra.mxu3 %v3707_v48  ;;  %v5355_v51 = vld [vmem:[#allocation57_spill] sm:$0xff] }
 0x390   :  { %1199 = vmatpush.msra.mxu0 %v3710_v53  ;;  %1219 = vmatpush.msra.mxu1 %v3713_v55  ;;  %v354_v48 = vadd.f32 %v5355_v51, %v5252_v58  ;;  %v5356_v53 = vld [vmem:[#allocation58_spill] sm:$0xff]  ;;  %v1321_v51 = vld [vmem:[#allocation7 + $0xf8] sm:$0xff] }
 0x391   :  { %1239 = vmatpush.msra.mxu2 %v3716_v59  ;;  %1259 = vmatpush.msra.mxu3 %v3719_v54  ;;  %v395_v55 = vadd.f32 %v5356_v53, %v3425_v63  ;;  %v1315_v53 = vld [vmem:[#allocation7 + $0xc8] sm:$0xff] }
 0x392   :  { %1200 = vmatpush.msra.mxu0 %v3722_v13  ;;  %1220 = vmatpush.msra.mxu1 %v5301_v28 }
 0x393   :  { %1240 = vmatpush.msra.mxu2 %v5329_v61  ;;  %1260 = vmatpush.msra.mxu3 %v5330_v47  ;;  %v1353_v61 = vld [vmem:[#allocation7 + $0x1f8] sm:$0xff]  ;;  %v1346_v47 = vld [vmem:[#allocation7 + $0x1c0] sm:$0xff] }
 0x394   :  { %1201 = vmatpush.msra.mxu0 %v5331_v56  ;;  %1221 = vmatpush.msra.mxu1 %v5332_v1  ;;  %v1347_v56 = vld [vmem:[#allocation7 + $0x1c8] sm:$0xff]  ;;  %v1348_v1 = vld [vmem:[#allocation7 + $0x1d0] sm:$0xff] }
 0x395   :  { %1241 = vmatpush.msra.mxu2 %v5333_v2  ;;  %1261 = vmatpush.msra.mxu3 %v5334_v3  ;;  %v1349_v2 = vld [vmem:[#allocation7 + $0x1d8] sm:$0xff]  ;;  %v1342_v3 = vld [vmem:[#allocation7 + $0x1a0] sm:$0xff] }
 0x396   :  { %1202 = vmatpush.msra.mxu0 %v5335_v4  ;;  %1222 = vmatpush.msra.mxu1 %v5336_v5  ;;  %v1343_v4 = vld [vmem:[#allocation7 + $0x1a8] sm:$0xff]  ;;  %v1344_v5 = vld [vmem:[#allocation7 + $0x1b0] sm:$0xff] }
 0x397   :  { %1242 = vmatpush.msra.mxu2 %v5337_v6  ;;  %1262 = vmatpush.msra.mxu3 %v5338_v7  ;;  %v1345_v6 = vld [vmem:[#allocation7 + $0x1b8] sm:$0xff]  ;;  %v1338_v7 = vld [vmem:[#allocation7 + $0x180] sm:$0xff] }
 0x398   :  { %1203 = vmatpush.msra.mxu0 %v5339_v8  ;;  %1223 = vmatpush.msra.mxu1 %v5340_v9  ;;  %v1339_v8 = vld [vmem:[#allocation7 + $0x188] sm:$0xff]  ;;  %v1340_v9 = vld [vmem:[#allocation7 + $0x190] sm:$0xff] }
 0x399   :  { %1243 = vmatpush.msra.mxu2 %v5341_v10  ;;  %1263 = vmatpush.msra.mxu3 %v5342_v25  ;;  %v1341_v10 = vld [vmem:[#allocation7 + $0x198] sm:$0xff]  ;;  %v1334_v25 = vld [vmem:[#allocation7 + $0x160] sm:$0xff] }
 0x39a   :  { %1204 = vmatpush.msra.mxu0 %v5343_v27  ;;  %1224 = vmatpush.msra.mxu1 %v5344_v29  ;;  %v1335_v27 = vld [vmem:[#allocation7 + $0x168] sm:$0xff]  ;;  %v1336_v29 = vld [vmem:[#allocation7 + $0x170] sm:$0xff] }
 0x39b   :  { %1244 = vmatpush.msra.mxu2 %v5345_v30  ;;  %1264 = vmatpush.msra.mxu3 %v5346_v31  ;;  %v1337_v30 = vld [vmem:[#allocation7 + $0x178] sm:$0xff]  ;;  %v1330_v31 = vld [vmem:[#allocation7 + $0x140] sm:$0xff] }
 0x39c   :  { %1205 = vmatpush.msra.mxu0 %v5347_v32  ;;  %1225 = vmatpush.msra.mxu1 %v5348_v33  ;;  %v1331_v32 = vld [vmem:[#allocation7 + $0x148] sm:$0xff]  ;;  %v1332_v33 = vld [vmem:[#allocation7 + $0x150] sm:$0xff] }
 0x39d   :  { %1245 = vmatpush.msra.mxu2 %v5349_v34  ;;  %1265 = vmatpush.msra.mxu3 %v5350_v35  ;;  %v1333_v34 = vld [vmem:[#allocation7 + $0x158] sm:$0xff]  ;;  %v1326_v35 = vld [vmem:[#allocation7 + $0x120] sm:$0xff] }
 0x3f9   :  { %v993_v43 = vpop.f32.mrf.mxu0  ;;  %v1013_v44 = vpop.f32.mrf.mxu1 }
 0x3fa   :  { %v994_v45 = vadd.f32 %v993_v43, %v272_v38  ;;  %v1014_v46 = vadd.f32 %v1013_v44, %v313_v42  ;;  %v1328_v38 = vld [vmem:[#allocation7 + $0x130] sm:$0xff]  ;;  %v1322_v42 = vld [vmem:[#allocation7 + $0x100] sm:$0xff]  ;;  %v1323_v43 = vld [vmem:[#allocation7 + $0x108] sm:$0xff] }
 0x3fb   :  { %v1324_v44 = vld [vmem:[#allocation7 + $0x110] sm:$0xff] }
 0x3fc   :  { %v1056_v50 = vmul.f32 0.5, %v994_v45  ;;  %v1060_v0 = vmul.f32 0.5, %v1014_v46  ;;  %v1325_v45 = vld [vmem:[#allocation7 + $0x118] sm:$0xff]  ;;  %v1318_v46 = vld [vmem:[#allocation7 + $0xe0] sm:$0xff] }
 0x3fe   :  { %2577 = vtanh.f32 %v1056_v50  ;;  %v1319_v50 = vld [vmem:[#allocation7 + $0xe8] sm:$0xff] }
 0x3ff   :  { %2579 = vtanh.f32 %v1060_v0  ;;  %v1320_v0 = vld [vmem:[#allocation7 + $0xf0] sm:$0xff] }
 0x400   :  { %v1033_v59 = vpop.f32.mrf.mxu2  ;;  %v1053_v54 = vpop.f32.mrf.mxu3 }
 0x401   :  { %v1034_v13 = vadd.f32 %v1033_v59, %v354_v48  ;;  %v1054_v22 = vadd.f32 %v1053_v54, %v395_v55  ;;  %v1314_v48 = vld [vmem:[#allocation7 + $0xc0] sm:$0xff]  ;;  %v1316_v55 = vld [vmem:[#allocation7 + $0xd0] sm:$0xff]  ;;  %v1317_v59 = vld [vmem:[#allocation7 + $0xd8] sm:$0xff] }
 0x402   :  { %v1310_v54 = vld [vmem:[#allocation7 + $0xa0] sm:$0xff] }
 0x403   :  { %2581 = vtanh.f32 %v1034_v13  ;;  %v1065_v28 = vmul.f32 0.5, %v1054_v22  ;;  %v1311_v13 = vld [vmem:[#allocation7 + $0xa8] sm:$0xff]  ;;  %v1312_v22 = vld [vmem:[#allocation7 + $0xb0] sm:$0xff] }
 0x404   :  { %v2578_v26 = vpop.eup %2577 }
 0x405   :  { %v2580_v19 = vpop.eup %2579  ;;  %v1058_v39 = vmul.f32 0.5, %v2578_v26  ;;  %2583 = vtanh.f32 %v1065_v28  ;;  %v1313_v28 = vld [vmem:[#allocation7 + $0xb8] sm:$0xff]  ;;  %v1306_v26 = vld [vmem:[#allocation7 + $0x80] sm:$0xff] }
 0x406   :  { %v1062_v57 = vmul.f32 0.5, %v2580_v19  ;;  %v1307_v19 = vld [vmem:[#allocation7 + $0x88] sm:$0xff] }
 0x407   :  { %v1059_v17 = vadd.f32 0.5, %v1058_v39  ;;  %v1308_v39 = vld [vmem:[#allocation7 + $0x90] sm:$0xff] }
 0x408   :  { %v1063_v49 = vadd.f32 0.5, %v1062_v57  ;;  %v1309_v57 = vld [vmem:[#allocation7 + $0x98] sm:$0xff] }
 0x409   :  { %v2582_v15 = vpop.eup %2581 }
 0x40a   :  { %v1069_v24 = vmul.f32 %v1063_v49, %v3885_v23  ;;  %v1070_v14 = vmul.f32 %v2582_v15, %v1059_v17  ;;  %v1350_v23 = vld [vmem:[#allocation7 + $0x1e0] sm:$0xff]  ;;  %v5357_v17 = vld [vmem:[#allocation59_spill] sm:$0xff] }
 0x40b   :  { %v2584_v11 = vpop.eup %2583  ;;  %v275_v49 = vadd.f32 %v5357_v17, %v5351_v36  ;;  %v5358_v15 = vld [vmem:[#allocation60_spill] sm:$0xff]  ;;  %v4018_v17 = vld [vmem:[#allocation9 + $0x3d0] sm:$0xff] }
 0x40c   :  { %v3967_v12 = vadd.f32 %v1070_v14, %v1069_v24  ;;  %v1067_v62 = vmul.f32 0.5, %v2584_v11  ;;  %v316_v24 = vadd.f32 %v5358_v15, %v5353_v40  ;;  %v1302_v14 = vld [vmem:[#allocation7 + $0x60] sm:$0xff]  ;;  %v1303_v11 = vld [vmem:[#allocation7 + $0x68] sm:$0xff] }
 0x40d   :  { %v4023_v15 = vld [vmem:[#allocation9 + $0x3a0] sm:$0xff] }
 0x40e   :  { %2585 = vtanh.f32 %v3967_v12  ;;  %v1068_v60 = vadd.f32 0.5, %v1067_v62  ;;  %v1304_v62 = vld [vmem:[#allocation7 + $0x70] sm:$0xff] }
 0x414   :  { %v2586_v16 = vpop.eup %2585 }
 0x415   :  { %v3970_v18 = vmul.f32 %v2586_v16, %v1068_v60 }
 0x417   :  { %1099 = vmatmul.f32.vlgmr.msrb.gmra.mxu0 %v3970_v18  ;;  %1119 = vmatmul.f32.vlgmr.msrb.gmra.mxu1 %v3970_v18 }
 0x418   :  { %1139 = vmatmul.f32.vlgmr.msrb.gmra.mxu2 %v3970_v18  ;;  %1159 = vmatmul.f32.vlgmr.msrb.gmra.mxu3 %v3970_v18 }
 0x419   :  { %1437 = vmatpush.msrb.mxu0 %v1350_v23  ;;  %1478 = vmatpush.msrb.mxu1 %v1351_v52  ;;  %v1305_v23 = vld [vmem:[#allocation7 + $0x78] sm:$0xff]  ;;  %v1298_v52 = vld [vmem:[#allocation7 + $0x40] sm:$0xff] }
 0x41a   :  { %1519 = vmatpush.msrb.mxu2 %v1352_v21  ;;  %1560 = vmatpush.msrb.mxu3 %v1353_v61  ;;  %v1299_v21 = vld [vmem:[#allocation7 + $0x48] sm:$0xff] }
 0x41b   :  { %1438 = vmatpush.msrb.mxu0 %v1346_v47  ;;  %1479 = vmatpush.msrb.mxu1 %v1347_v56  ;;  %v1300_v56 = vld [vmem:[#allocation7 + $0x50] sm:$0xff] }
 0x41c   :  { %1520 = vmatpush.msrb.mxu2 %v1348_v1  ;;  %1561 = vmatpush.msrb.mxu3 %v1349_v2  ;;  %v1301_v1 = vld [vmem:[#allocation7 + $0x58] sm:$0xff]  ;;  %v1294_v2 = vld [vmem:[#allocation7 + $0x20] sm:$0xff] }
 0x41d   :  { %1439 = vmatpush.msrb.mxu0 %v1342_v3  ;;  %1480 = vmatpush.msrb.mxu1 %v1343_v4  ;;  %v1295_v3 = vld [vmem:[#allocation7 + $0x28] sm:$0xff]  ;;  %v1296_v4 = vld [vmem:[#allocation7 + $0x30] sm:$0xff] }
 0x41e   :  { %1521 = vmatpush.msrb.mxu2 %v1344_v5  ;;  %1562 = vmatpush.msrb.mxu3 %v1345_v6  ;;  %v1297_v5 = vld [vmem:[#allocation7 + $0x38] sm:$0xff] }
 0x41f   :  { %1440 = vmatpush.msrb.mxu0 %v1338_v7  ;;  %1481 = vmatpush.msrb.mxu1 %v1339_v8  ;;  %v1290_v8 = vld [vmem:[#allocation7] sm:$0xff] }
 0x420   :  { %1522 = vmatpush.msrb.mxu2 %v1340_v9  ;;  %1563 = vmatpush.msrb.mxu3 %v1341_v10  ;;  %v1291_v9 = vld [vmem:[#allocation7 + $0x8] sm:$0xff]  ;;  %v1292_v10 = vld [vmem:[#allocation7 + $0x10] sm:$0xff] }
 0x421   :  { %1441 = vmatpush.msrb.mxu0 %v1334_v25  ;;  %1482 = vmatpush.msrb.mxu1 %v1335_v27  ;;  %v1293_v25 = vld [vmem:[#allocation7 + $0x18] sm:$0xff]  ;;  %v5359_v27 = vld [vmem:[#allocation61_spill] sm:$0xff] }
 0x422   :  { %1523 = vmatpush.msrb.mxu2 %v1336_v29  ;;  %1564 = vmatpush.msrb.mxu3 %v1337_v30  ;;  %v357_v29 = vadd.f32 %v5359_v27, %v5252_v58  ;;  %v5360_v30 = vld [vmem:[#allocation62_spill] sm:$0xff]  ;;  %v4115_v27 = vld [vmem:[#allocation9 + $0x2e8] sm:$0xff] }
 0x423   :  { %1442 = vmatpush.msrb.mxu0 %v1330_v31  ;;  %1483 = vmatpush.msrb.mxu1 %v1331_v32  ;;  %v398_v31 = vadd.f32 %v5360_v30, %v3425_v63  ;;  %v4123_v30 = vld [vmem:[#allocation9 + $0x318] sm:$0xff] }
 0x424   :  { %1524 = vmatpush.msrb.mxu2 %v1332_v33  ;;  %1565 = vmatpush.msrb.mxu3 %v1333_v34 }
 0x425   :  { %1443 = vmatpush.msrb.mxu0 %v1326_v35  ;;  %1484 = vmatpush.msrb.mxu1 %v1327_v37 }
 0x426   :  { %1525 = vmatpush.msrb.mxu2 %v1328_v38  ;;  %1566 = vmatpush.msrb.mxu3 %v1329_v41 }
 0x427   :  { %1444 = vmatpush.msrb.mxu0 %v1322_v42  ;;  %1485 = vmatpush.msrb.mxu1 %v1323_v43 }
 0x428   :  { %1526 = vmatpush.msrb.mxu2 %v1324_v44  ;;  %1567 = vmatpush.msrb.mxu3 %v1325_v45 }
 0x429   :  { %1445 = vmatpush.msrb.mxu0 %v1318_v46  ;;  %1486 = vmatpush.msrb.mxu1 %v1319_v50 }
 0x42a   :  { %1527 = vmatpush.msrb.mxu2 %v1320_v0  ;;  %1568 = vmatpush.msrb.mxu3 %v1321_v51 }
 0x42b   :  { %1446 = vmatpush.msrb.mxu0 %v1314_v48  ;;  %1487 = vmatpush.msrb.mxu1 %v1315_v53 }
 0x42c   :  { %1528 = vmatpush.msrb.mxu2 %v1316_v55  ;;  %1569 = vmatpush.msrb.mxu3 %v1317_v59 }
 0x42d   :  { %1447 = vmatpush.msrb.mxu0 %v1310_v54  ;;  %1488 = vmatpush.msrb.mxu1 %v1311_v13  ;;  %v5362_v13 = vld [vmem:[#allocation39_spill] sm:$0xff] }
 0x42e   :  { %1529 = vmatpush.msrb.mxu2 %v1312_v22  ;;  %1570 = vmatpush.msrb.mxu3 %v1313_v28  ;;  %v5363_v22 = vld [vmem:[#allocation40_spill] sm:$0xff] }
 0x42f   :  { %1448 = vmatpush.msrb.mxu0 %v1306_v26  ;;  %1489 = vmatpush.msrb.mxu1 %v1307_v19  ;;  %v4006_v28 = vld [vmem:[#allocation9 + $0x3e0] sm:$0xff]  ;;  %v4008_v26 = vld [vmem:[#allocation9 + $0x3e8] sm:$0xff]  ;;  %v4010_v19 = vld [vmem:[#allocation9 + $0x3f0] sm:$0xff] }
 0x430   :  { %1530 = vmatpush.msrb.mxu2 %v1308_v39  ;;  %1571 = vmatpush.msrb.mxu3 %v1309_v57  ;;  %v4014_v39 = vld [vmem:[#allocation9 + $0x3c0] sm:$0xff]  ;;  %v4016_v57 = vld [vmem:[#allocation9 + $0x3c8] sm:$0xff] }
 0x431   :  { %1449 = vmatpush.msrb.mxu0 %v1302_v14  ;;  %1490 = vmatpush.msrb.mxu1 %v1303_v11  ;;  %v4029_v14 = vld [vmem:[#allocation9 + $0x3b0] sm:$0xff]  ;;  %v4031_v11 = vld [vmem:[#allocation9 + $0x3d8] sm:$0xff] }
 0x432   :  { %1531 = vmatpush.msrb.mxu2 %v1304_v62  ;;  %1572 = vmatpush.msrb.mxu3 %v1305_v23  ;;  %v4039_v62 = vld [vmem:[#allocation9 + $0x380] sm:$0xff]  ;;  %v4045_v23 = vld [vmem:[#allocation9 + $0x390] sm:$0xff] }
 0x433   :  { %1450 = vmatpush.msrb.mxu0 %v1298_v52  ;;  %1491 = vmatpush.msrb.mxu1 %v1299_v21  ;;  %v4047_v52 = vld [vmem:[#allocation9 + $0x3b8] sm:$0xff]  ;;  %v4051_v21 = vld [vmem:[#allocation9 + $0x360] sm:$0xff] }
 0x434   :  { %1532 = vmatpush.msrb.mxu2 %v1300_v56  ;;  %1573 = vmatpush.msrb.mxu3 %v1301_v1  ;;  %v4059_v56 = vld [vmem:[#allocation9 + $0x398] sm:$0xff]  ;;  %v4063_v1 = vld [vmem:[#allocation9 + $0x340] sm:$0xff] }
 0x435   :  { %1451 = vmatpush.msrb.mxu0 %v1294_v2  ;;  %1492 = vmatpush.msrb.mxu1 %v1295_v3  ;;  %v4065_v2 = vld [vmem:[#allocation9 + $0x348] sm:$0xff]  ;;  %v4069_v3 = vld [vmem:[#allocation9 + $0x350] sm:$0xff] }
 0x436   :  { %1533 = vmatpush.msrb.mxu2 %v1296_v4  ;;  %1574 = vmatpush.msrb.mxu3 %v1297_v5  ;;  %v4071_v4 = vld [vmem:[#allocation9 + $0x378] sm:$0xff]  ;;  %v4079_v5 = vld [vmem:[#allocation9 + $0x320] sm:$0xff] }
 0x437   :  { %1452 = vmatpush.msrb.mxu0 %v1290_v8  ;;  %1493 = vmatpush.msrb.mxu1 %v1291_v9  ;;  %v4087_v8 = vld [vmem:[#allocation9 + $0x358] sm:$0xff]  ;;  %v4105_v9 = vld [vmem:[#allocation9 + $0x308] sm:$0xff] }
 0x438   :  { %1534 = vmatpush.msrb.mxu2 %v1292_v10  ;;  %1575 = vmatpush.msrb.mxu3 %v1293_v25  ;;  %v4107_v10 = vld [vmem:[#allocation9 + $0x310] sm:$0xff]  ;;  %v4111_v25 = vld [vmem:[#allocation9 + $0x338] sm:$0xff] }
 0x494   :  { %v1100_v60 = vpop.f32.mrf.mxu0  ;;  %v1120_v16 = vpop.f32.mrf.mxu1 }
 0x495   :  { %v1101_v61 = vadd.f32 %v1100_v60, %v275_v49  ;;  %v1121_v47 = vadd.f32 %v1120_v16, %v316_v24  ;;  %v4021_v49 = vld [vmem:[#allocation9 + $0x3f8] sm:$0xff]  ;;  %v4025_v24 = vld [vmem:[#allocation9 + $0x3a8] sm:$0xff] }
 0x496   :  { %v4041_v60 = vld [vmem:[#allocation9 + $0x388] sm:$0xff] }
 0x497   :  { %v1163_v6 = vmul.f32 0.5, %v1101_v61  ;;  %v1167_v7 = vmul.f32 0.5, %v1121_v47  ;;  %v5364_v16 = vld [vmem:[#allocation25_spill] sm:$0xff]  ;;  %v4057_v47 = vld [vmem:[#allocation9 + $0x370] sm:$0xff] }
 0x498   :  { %v4053_v61 = vld [vmem:[#allocation9 + $0x368] sm:$0xff] }
 0x499   :  { %2587 = vtanh.f32 %v1163_v6  ;;  %v4081_v6 = vld [vmem:[#allocation9 + $0x328] sm:$0xff] }
 0x49a   :  { %2589 = vtanh.f32 %v1167_v7  ;;  %v4085_v7 = vld [vmem:[#allocation9 + $0x330] sm:$0xff] }
 0x49b   :  { %v1140_v32 = vpop.f32.mrf.mxu2  ;;  %v1160_v33 = vpop.f32.mrf.mxu3 }
 0x49c   :  { %v1141_v34 = vadd.f32 %v1140_v32, %v357_v29  ;;  %v1161_v35 = vadd.f32 %v1160_v33, %v398_v31  ;;  %v4119_v29 = vld [vmem:[#allocation9 + $0x2f0] sm:$0xff]  ;;  %v4127_v31 = vld [vmem:[#allocation9 + $0x2f8] sm:$0xff]  ;;  %v4130_v32 = vld [vmem:[#allocation9 + $0x2c0] sm:$0xff] }
 0x49d   :  { %v4132_v33 = vld [vmem:[#allocation9 + $0x2c8] sm:$0xff] }
 0x49e   :  { %2591 = vtanh.f32 %v1141_v34  ;;  %v1172_v37 = vmul.f32 0.5, %v1161_v35  ;;  %v4134_v34 = vld [vmem:[#allocation9 + $0x2d0] sm:$0xff]  ;;  %v4138_v35 = vld [vmem:[#allocation9 + $0x2d8] sm:$0xff] }
 0x49f   :  { %v2588_v38 = vpop.eup %2587 }
 0x4a0   :  { %v2590_v41 = vpop.eup %2589  ;;  %v1165_v42 = vmul.f32 0.5, %v2588_v38  ;;  %2593 = vtanh.f32 %v1172_v37  ;;  %v4141_v37 = vld [vmem:[#allocation9 + $0x2a0] sm:$0xff]  ;;  %v4143_v38 = vld [vmem:[#allocation9 + $0x2a8] sm:$0xff] }
 0x4a1   :  { %v1169_v43 = vmul.f32 0.5, %v2590_v41  ;;  %v4145_v41 = vld [vmem:[#allocation9 + $0x2b0] sm:$0xff] }
 0x4a2   :  { %v1166_v44 = vadd.f32 0.5, %v1165_v42  ;;  %5365 = vst [vmem:[#allocation38_spill] sm:$0xff] %v4145_v41  ;;  %v4150_v42 = vld [vmem:[#allocation9 + $0x2b8] sm:$0xff] }
 0x4a3   :  { %v1170_v45 = vadd.f32 0.5, %v1169_v43  ;;  %5366 = vst [vmem:[#allocation43_spill] sm:$0xff] %v4150_v42  ;;  %v4153_v43 = vld [vmem:[#allocation9 + $0x280] sm:$0xff] }
 0x4a4   :  { %v2592_v46 = vpop.eup %2591  ;;  %5367 = vst [vmem:[#allocation44_spill] sm:$0xff] %v4153_v43 }
 0x4a5   :  { %v1176_v50 = vmul.f32 %v1170_v45, %v3967_v12  ;;  %v1177_v0 = vmul.f32 %v2592_v46, %v1166_v44  ;;  %v5361_v12 = vld [vmem:[#allocation70_spill] sm:$0xff]  ;;  %v4155_v44 = vld [vmem:[#allocation9 + $0x288] sm:$0xff]  ;;  %v4162_v46 = vld [vmem:[#allocation9 + $0x260] sm:$0xff] }
 0x4a6   :  { %v2594_v51 = vpop.eup %2593  ;;  %5368 = vst [vmem:[#allocation45_spill] sm:$0xff] %v4155_v44  ;;  %v4157_v45 = vld [vmem:[#allocation9 + $0x290] sm:$0xff] }
 0x4a7   :  { %v3985_v48 = vadd.f32 %v1177_v0, %v1176_v50  ;;  %v1174_v53 = vmul.f32 0.5, %v2594_v51  ;;  %5369 = vst [vmem:[#allocation46_spill] sm:$0xff] %v4157_v45  ;;  %v4164_v50 = vld [vmem:[#allocation9 + $0x268] sm:$0xff]  ;;  %v4166_v0 = vld [vmem:[#allocation9 + $0x270] sm:$0xff]  ;;  %v4169_v51 = vld [vmem:[#allocation9 + $0x298] sm:$0xff] }
 0x4a8   :  { %5370 = vst [vmem:[#allocation47_spill] sm:$0xff] %v4162_v46 }
 0x4a9   :  { %2595 = vtanh.f32 %v3985_v48  ;;  %v1175_v55 = vadd.f32 0.5, %v1174_v53  ;;  %5371 = vst [vmem:[#allocation48_spill] sm:$0xff] %v4164_v50  ;;  %v4171_v53 = vld [vmem:[#allocation9 + $0x240] sm:$0xff] }
 0x4aa   :  { %5372 = vst [vmem:[#allocation49_spill] sm:$0xff] %v4166_v0 }
 0x4ab   :  { %5373 = vst [vmem:[#allocation50_spill] sm:$0xff] %v4169_v51 }
 0x4ac   :  { %5374 = vst [vmem:[#allocation69_spill] sm:$0xff] %v4171_v53 }
 0x4af   :  { %v2596_v59 = vpop.eup %2595 }
 0x4b0   :  { %v3988_v54 = vmul.f32 %v2596_v59, %v1175_v55  ;;  %v4173_v55 = vld [vmem:[#allocation9 + $0x248] sm:$0xff]  ;;  %v5376_v59 = vld [vmem:[#allocation63_spill] sm:$0xff] }
 0x4b1   :  { %5375 = vst [vmem:[#allocation51_spill] sm:$0xff] %v4173_v55 }
 0x4b2   :  { %1206 = vmatmul.f32.vlgmr.msra.gmra.mxu0 %v3988_v54  ;;  %1226 = vmatmul.f32.vlgmr.msra.gmra.mxu1 %v3988_v54 }
 0x4b3   :  { %1246 = vmatmul.f32.vlgmr.msra.gmra.mxu2 %v3988_v54  ;;  %1266 = vmatmul.f32.vlgmr.msra.gmra.mxu3 %v3988_v54 }
 0x4b4   :  { %1637 = vmatpush.msra.mxu0 %v4006_v28  ;;  %1657 = vmatpush.msra.mxu1 %v4008_v26 }
 0x4b5   :  { %1677 = vmatpush.msra.mxu2 %v4010_v19  ;;  %1697 = vmatpush.msra.mxu3 %v4021_v49 }
 0x4b6   :  { %1638 = vmatpush.msra.mxu0 %v4014_v39  ;;  %1658 = vmatpush.msra.mxu1 %v4016_v57 }
 0x4b7   :  { %1678 = vmatpush.msra.mxu2 %v4018_v17  ;;  %1698 = vmatpush.msra.mxu3 %v4031_v11 }
 0x4b8   :  { %1639 = vmatpush.msra.mxu0 %v4023_v15  ;;  %1659 = vmatpush.msra.mxu1 %v4025_v24 }
 0x4b9   :  { %1679 = vmatpush.msra.mxu2 %v4029_v14  ;;  %1699 = vmatpush.msra.mxu3 %v4047_v52 }
 0x4ba   :  { %1453 = vmatmul.f32.vlgmr.msrb.gmra.mxu0 %v5361_v12  ;;  %1494 = vmatmul.f32.vlgmr.msrb.gmra.mxu1 %v5361_v12 }
 0x4bb   :  { %1535 = vmatmul.f32.vlgmr.msrb.gmra.mxu2 %v5361_v12  ;;  %1576 = vmatmul.f32.vlgmr.msrb.gmra.mxu3 %v5361_v12  ;;  %v5377_v12 = vld [vmem:[#allocation64_spill] sm:$0xff] }
 0x4bc   :  { %1640 = vmatpush.msra.mxu0 %v4039_v62  ;;  %1660 = vmatpush.msra.mxu1 %v4041_v60 }
 0x4bd   :  { %1680 = vmatpush.msra.mxu2 %v4045_v23  ;;  %1700 = vmatpush.msra.mxu3 %v4059_v56 }
 0x4be   :  { %1641 = vmatpush.msra.mxu0 %v4051_v21  ;;  %1661 = vmatpush.msra.mxu1 %v4053_v61 }
 0x4bf   :  { %1681 = vmatpush.msra.mxu2 %v4057_v47  ;;  %1701 = vmatpush.msra.mxu3 %v4071_v4 }
 0x4c0   :  { %1642 = vmatpush.msra.mxu0 %v4063_v1  ;;  %1662 = vmatpush.msra.mxu1 %v4065_v2 }
 0x4c1   :  { %1682 = vmatpush.msra.mxu2 %v4069_v3  ;;  %1702 = vmatpush.msra.mxu3 %v4087_v8 }
 0x4c2   :  { %1456 = vmatmul.f32.gmra.mxu0 %v5362_v13  ;;  %1497 = vmatmul.f32.gmra.mxu1 %v5362_v13 }
 0x4c3   :  { %1538 = vmatmul.f32.gmra.mxu2 %v5362_v13  ;;  %1579 = vmatmul.f32.gmra.mxu3 %v5362_v13  ;;  %v319_v13 = vadd.f32 %v5377_v12, %v5353_v40  ;;  %v4193_v12 = vld [vmem:[#allocation9 + $0x230] sm:$0xff] }
 0x4c4   :  { %1643 = vmatpush.msra.mxu0 %v4079_v5  ;;  %1663 = vmatpush.msra.mxu1 %v4081_v6  ;;  %5382 = vst [vmem:[#allocation42_spill] sm:$0xff] %v4193_v12 }
 0x4c5   :  { %1683 = vmatpush.msra.mxu2 %v4085_v7  ;;  %1703 = vmatpush.msra.mxu3 %v4111_v25 }
 0x4c6   :  { %1664 = vmatpush.msra.mxu1 %v4105_v9 }
 0x4c7   :  { %1684 = vmatpush.msra.mxu2 %v4107_v10  ;;  %1704 = vmatpush.msra.mxu3 %v4123_v30 }
 0x4c8   :  { %1665 = vmatpush.msra.mxu1 %v4115_v27 }
 0x4c9   :  { %1685 = vmatpush.msra.mxu2 %v4119_v29  ;;  %1705 = vmatpush.msra.mxu3 %v4127_v31 }
 0x4ca   :  { %1459 = vmatmul.f32.gmra.mxu0 %v5363_v22  ;;  %1500 = vmatmul.f32.gmra.mxu1 %v5363_v22 }
 0x4cb   :  { %1541 = vmatmul.f32.gmra.mxu2 %v5363_v22  ;;  %1582 = vmatmul.f32.gmra.mxu3 %v5363_v22  ;;  %v4181_v22 = vld [vmem:[#allocation9 + $0x250] sm:$0xff] }
 0x4cc   :  { %1666 = vmatpush.msra.mxu1 %v4132_v33  ;;  %1686 = vmatpush.msra.mxu2 %v4134_v34  ;;  %5378 = vst [vmem:[#allocation52_spill] sm:$0xff] %v4181_v22 }
 0x4cd   :  { %1706 = vmatpush.msra.mxu3 %v4138_v35 }
 0x4ce   :  { %1667 = vmatpush.msra.mxu1 %v4143_v38  ;;  %1687 = vmatpush.msra.mxu2 %v4145_v41 }
 0x4cf   :  { %1707 = vmatpush.msra.mxu3 %v4150_v42 }
 0x4d0   :  { %1668 = vmatpush.msra.mxu1 %v4155_v44  ;;  %1688 = vmatpush.msra.mxu2 %v4157_v45 }
 0x4d1   :  { %1708 = vmatpush.msra.mxu3 %v4169_v51 }
 0x4d2   :  { %1462 = vmatmul.f32.gmra.mxu0 %v5364_v16  ;;  %1503 = vmatmul.f32.gmra.mxu1 %v5364_v16 }
 0x4d3   :  { %1544 = vmatmul.f32.gmra.mxu2 %v5364_v16  ;;  %1585 = vmatmul.f32.gmra.mxu3 %v5364_v16  ;;  %v4183_v16 = vld [vmem:[#allocation9 + $0x278] sm:$0xff] }
 0x4d4   :  { %1669 = vmatpush.msra.mxu1 %v4164_v50  ;;  %5379 = vst [vmem:[#allocation53_spill] sm:$0xff] %v4183_v16  ;;  %1689 = vmatpush.msra.mxu2 %v4166_v0  ;;  %v4195_v50 = vld [vmem:[#allocation9 + $0x258] sm:$0xff]  ;;  %v4199_v0 = vld [vmem:[#allocation9 + $0x200] sm:$0xff] }
 0x4d5   :  { %5383 = vst [vmem:[#allocation17_spill] sm:$0xff] %v4195_v50  ;;  %1709 = vmatpush.msra.mxu3 %v4183_v16 }
 0x4d6   :  { %1670 = vmatpush.msra.mxu1 %v4173_v55  ;;  %1690 = vmatpush.msra.mxu2 %v4181_v22  ;;  %5384 = vst [vmem:[#allocation18_spill] sm:$0xff] %v4199_v0 }
 0x4d7   :  { %1710 = vmatpush.msra.mxu3 %v4195_v50 }
 0x4d8   :  { %1691 = vmatpush.msra.mxu2 %v4193_v12 }
 0x4da   :  { %1465 = vmatmul.f32.gmra.mxu0 %v3888_v20  ;;  %1506 = vmatmul.f32.gmra.mxu1 %v3888_v20 }
 0x4db   :  { %1547 = vmatmul.f32.gmra.mxu2 %v3888_v20  ;;  %1588 = vmatmul.f32.gmra.mxu3 %v3888_v20  ;;  %v4103_v20 = vld [vmem:[#allocation9 + $0x300] sm:$0xff] }
 0x4dc   :  { %1644 = vmatpush.msra.mxu0 %v4103_v20 }
 0x4e2   :  { %1468 = vmatmul.f32.gmra.mxu0 %v3970_v18  ;;  %1509 = vmatmul.f32.gmra.mxu1 %v3970_v18 }
 0x4e3   :  { %1550 = vmatmul.f32.gmra.mxu2 %v3970_v18  ;;  %1591 = vmatmul.f32.gmra.mxu3 %v3970_v18  ;;  %v4113_v18 = vld [vmem:[#allocation9 + $0x2e0] sm:$0xff] }
 0x4e4   :  { %1645 = vmatpush.msra.mxu0 %v4113_v18 }
 0x4e6   :  { %1646 = vmatpush.msra.mxu0 %v4130_v32 }
 0x4e8   :  { %1647 = vmatpush.msra.mxu0 %v4141_v37 }
 0x4ea   :  { %1471 = vmatmul.f32.gmra.mxu0 %v3988_v54  ;;  %1512 = vmatmul.f32.gmra.mxu1 %v3988_v54 }
 0x4eb   :  { %1553 = vmatmul.f32.gmra.mxu2 %v3988_v54  ;;  %1594 = vmatmul.f32.gmra.mxu3 %v3988_v54  ;;  %v278_v54 = vadd.f32 %v5376_v59, %v5351_v36  ;;  %v4189_v36 = vld [vmem:[#allocation9 + $0x228] sm:$0xff] }
 0x4ec   :  { %1648 = vmatpush.msra.mxu0 %v4153_v43  ;;  %v4187_v43 = vld [vmem:[#allocation9 + $0x220] sm:$0xff]  ;;  %5381 = vst [vmem:[#allocation41_spill] sm:$0xff] %v4189_v36  ;;  %1671 = vmatpush.msra.mxu1 %v4189_v36 }
 0x4ed   :  { %5380 = vst [vmem:[#allocation54_spill] sm:$0xff] %v4187_v43 }
 0x4ee   :  { %1649 = vmatpush.msra.mxu0 %v4162_v46  ;;  %v4201_v46 = vld [vmem:[#allocation9 + $0x208] sm:$0xff] }
 0x4ef   :  { %5385 = vst [vmem:[#allocation19_spill] sm:$0xff] %v4201_v46  ;;  %1672 = vmatpush.msra.mxu1 %v4201_v46 }
 0x4f0   :  { %1650 = vmatpush.msra.mxu0 %v4171_v53 }
 0x4f1   :  { %1759 = vmatpush.msrb.mxu1 %v4008_v26 }
 0x4f2   :  { %1651 = vmatpush.msra.mxu0 %v4187_v43 }
 0x4f3   :  { %1760 = vmatpush.msrb.mxu1 %v4016_v57 }
 0x4f4   :  { %1652 = vmatpush.msra.mxu0 %v4199_v0 }
 0x4f5   :  { %1761 = vmatpush.msrb.mxu1 %v4025_v24 }
 0x4f6   :  { %1739 = vmatpush.msrb.mxu0 %v4006_v28 }
 0x4f7   :  { %1762 = vmatpush.msrb.mxu1 %v4041_v60 }
 0x4f8   :  { %1740 = vmatpush.msrb.mxu0 %v4014_v39 }
 0x4f9   :  { %1763 = vmatpush.msrb.mxu1 %v4053_v61 }
 0x4fa   :  { %1741 = vmatpush.msrb.mxu0 %v4023_v15 }
 0x4fb   :  { %1764 = vmatpush.msrb.mxu1 %v4065_v2 }
 0x4fc   :  { %1742 = vmatpush.msrb.mxu0 %v4039_v62 }
 0x4fd   :  { %1765 = vmatpush.msrb.mxu1 %v4081_v6 }
 0x4fe   :  { %1743 = vmatpush.msrb.mxu0 %v4051_v21 }
 0x4ff   :  { %1766 = vmatpush.msrb.mxu1 %v4105_v9 }
 0x500   :  { %1744 = vmatpush.msrb.mxu0 %v4063_v1 }
 0x501   :  { %1767 = vmatpush.msrb.mxu1 %v4115_v27 }
 0x502   :  { %1745 = vmatpush.msrb.mxu0 %v4079_v5 }
 0x503   :  { %1768 = vmatpush.msrb.mxu1 %v4132_v33 }
 0x504   :  { %1746 = vmatpush.msrb.mxu0 %v4103_v20 }
 0x505   :  { %1769 = vmatpush.msrb.mxu1 %v4143_v38 }
 0x506   :  { %1747 = vmatpush.msrb.mxu0 %v4113_v18 }
 0x508   :  { %1748 = vmatpush.msrb.mxu0 %v4130_v32 }
 0x50a   :  { %1749 = vmatpush.msrb.mxu0 %v4141_v37 }
 0x52f   :  { %v1207_v45 = vpop.f32.mrf.mxu0  ;;  %v1227_v44 = vpop.f32.mrf.mxu1 }
 0x530   :  { %v1208_v59 = vadd.f32 %v1207_v45, %v278_v54  ;;  %v1228_v40 = vadd.f32 %v1227_v44, %v319_v13  ;;  %v4205_v44 = vld [vmem:[#allocation9 + $0x210] sm:$0xff]  ;;  %v4207_v45 = vld [vmem:[#allocation9 + $0x238] sm:$0xff] }
 0x531   :  { %5386 = vst [vmem:[#allocation20_spill] sm:$0xff] %v4205_v44  ;;  %v4213_v54 = vld [vmem:[#allocation9 + $0x218] sm:$0xff]  ;;  %1692 = vmatpush.msra.mxu2 %v4205_v44  ;;  %1711 = vmatpush.msra.mxu3 %v4207_v45 }
 0x532   :  { %v1270_v51 = vmul.f32 0.5, %v1208_v59  ;;  %v1274_v42 = vmul.f32 0.5, %v1228_v40  ;;  %5387 = vst [vmem:[#allocation21_spill] sm:$0xff] %v4207_v45  ;;  %v5389_v13 = vld [vmem:[#allocation67_spill] sm:$0xff]  ;;  %v5390_v40 = vld [vmem:[#allocation68_spill] sm:$0xff] }
 0x533   :  { %5388 = vst [vmem:[#allocation22_spill] sm:$0xff] %v4213_v54  ;;  %v360_v59 = vadd.f32 %v5389_v13, %v5252_v58  ;;  %v401_v36 = vadd.f32 %v5390_v40, %v3425_v63  ;;  %1712 = vmatpush.msra.mxu3 %v4213_v54  ;;  %1779 = vmatpush.msrb.mxu2 %v4010_v19 }
 0x534   :  { %2597 = vtanh.f32 %v1270_v51 }
 0x535   :  { %2599 = vtanh.f32 %v1274_v42  ;;  %1799 = vmatpush.msrb.mxu3 %v4021_v49  ;;  %1780 = vmatpush.msrb.mxu2 %v4018_v17 }
 0x536   :  { %v1247_v12 = vpop.f32.mrf.mxu2  ;;  %v1267_v43 = vpop.f32.mrf.mxu3 }
 0x537   :  { %v1248_v51 = vadd.f32 %v1247_v12, %v360_v59  ;;  %v1268_v46 = vadd.f32 %v1267_v43, %v401_v36  ;;  %1800 = vmatpush.msrb.mxu3 %v4031_v11  ;;  %1781 = vmatpush.msrb.mxu2 %v4029_v14 }
 0x539   :  { %2601 = vtanh.f32 %v1248_v51  ;;  %v1279_v63 = vmul.f32 0.5, %v1268_v46  ;;  %1801 = vmatpush.msrb.mxu3 %v4047_v52  ;;  %1782 = vmatpush.msrb.mxu2 %v4045_v23 }
 0x53a   :  { %v2598_v58 = vpop.eup %2597 }
 0x53b   :  { %v2600_v42 = vpop.eup %2599  ;;  %v1272_v43 = vmul.f32 0.5, %v2598_v58  ;;  %2603 = vtanh.f32 %v1279_v63  ;;  %1802 = vmatpush.msrb.mxu3 %v4059_v56  ;;  %1783 = vmatpush.msrb.mxu2 %v4057_v47 }
 0x53c   :  { %v1276_v36 = vmul.f32 0.5, %v2600_v42 }
 0x53d   :  { %v1273_v46 = vadd.f32 0.5, %v1272_v43  ;;  %1803 = vmatpush.msrb.mxu3 %v4071_v4  ;;  %1784 = vmatpush.msrb.mxu2 %v4069_v3 }
 0x53e   :  { %v1277_v12 = vadd.f32 0.5, %v1276_v36  ;;  %v5391_v36 = vld [vmem:[#allocation43_spill] sm:$0xff] }
 0x53f   :  { %v2602_v13 = vpop.eup %2601  ;;  %1804 = vmatpush.msrb.mxu3 %v4087_v8  ;;  %1785 = vmatpush.msrb.mxu2 %v4085_v7 }
 0x540   :  { %v1283_v59 = vmul.f32 %v1277_v12, %v3985_v48  ;;  %v1284_v40 = vmul.f32 %v2602_v13, %v1273_v46  ;;  %v5392_v46 = vld [vmem:[#allocation44_spill] sm:$0xff]  ;;  %v5393_v12 = vld [vmem:[#allocation45_spill] sm:$0xff]  ;;  %v5394_v13 = vld [vmem:[#allocation46_spill] sm:$0xff] }
 0x541   :  { %v2604_v51 = vpop.eup %2603  ;;  %1805 = vmatpush.msrb.mxu3 %v4111_v25  ;;  %1786 = vmatpush.msrb.mxu2 %v4107_v10 }
 0x542   :  { %v1285_v63 = vadd.f32 %v1284_v40, %v1283_v59  ;;  %v1281_v48 = vmul.f32 0.5, %v2604_v51  ;;  %1750 = vmatpush.msrb.mxu0 %v5392_v46  ;;  %1770 = vmatpush.msrb.mxu1 %v5393_v12  ;;  %v5395_v59 = vld [vmem:[#allocation50_spill] sm:$0xff]  ;;  %v5396_v40 = vld [vmem:[#allocation47_spill] sm:$0xff]  ;;  %v5397_v51 = vld [vmem:[#allocation48_spill] sm:$0xff] }
 0x543   :  { %1806 = vmatpush.msrb.mxu3 %v4123_v30  ;;  %1787 = vmatpush.msrb.mxu2 %v4119_v29 }
 0x544   :  { %2605 = vtanh.f32 %v1285_v63  ;;  %v1282_v58 = vadd.f32 0.5, %v1281_v48  ;;  %1751 = vmatpush.msrb.mxu0 %v5396_v40  ;;  %1771 = vmatpush.msrb.mxu1 %v5397_v51  ;;  %v5398_v63 = vld [vmem:[#allocation49_spill] sm:$0xff]  ;;  %v5399_v48 = vmov 0.0  }
 0x545   :  { %1807 = vmatpush.msrb.mxu3 %v4127_v31  ;;  %1788 = vmatpush.msrb.mxu2 %v4134_v34 }
 0x546   :  { %1752 = vmatpush.msrb.mxu0 %v4171_v53  ;;  %1772 = vmatpush.msrb.mxu1 %v4173_v55 }
 0x547   :  { %1808 = vmatpush.msrb.mxu3 %v4138_v35  ;;  %1789 = vmatpush.msrb.mxu2 %v4145_v41 }
 0x549   :  { %1809 = vmatpush.msrb.mxu3 %v5391_v36  ;;  %1790 = vmatpush.msrb.mxu2 %v5394_v13 }
 0x54a   :  { %v2606_v42 = vpop.eup %2605 }
 0x54b   :  { %v1287_v43 = vmul.f32 %v2606_v42, %v1282_v58  ;;  %1810 = vmatpush.msrb.mxu3 %v5395_v59  ;;  %1791 = vmatpush.msrb.mxu2 %v5398_v63  ;;  %v5400_v58 = vld [vmem:[#allocation54_spill] sm:$0xff]  ;;  %v5401_v42 = vld [vmem:[#allocation41_spill] sm:$0xff] }
 0x54c   :  { %1753 = vmatpush.msrb.mxu0 %v5400_v58  ;;  %1773 = vmatpush.msrb.mxu1 %v5401_v42 }
 0x54d   :  { %1474 = vmatmul.f32.gmra.mxu0 %v1287_v43  ;;  %1515 = vmatmul.f32.gmra.mxu1 %v1287_v43 }
 0x54e   :  { %1556 = vmatmul.f32.gmra.mxu2 %v1287_v43  ;;  %1597 = vmatmul.f32.gmra.mxu3 %v1287_v43  ;;  %v5402_v43 = vld [vmem:[#allocation42_spill] sm:$0xff] }
 0x54f   :  { %1811 = vmatpush.msrb.mxu3 %v4183_v16  ;;  %1792 = vmatpush.msrb.mxu2 %v4181_v22  ;;  %v5403_v22 = vld [vmem:[#allocation19_spill] sm:$0xff] }
 0x550   :  { %1754 = vmatpush.msrb.mxu0 %v4199_v0  ;;  %1774 = vmatpush.msrb.mxu1 %v5403_v22 }
 0x551   :  { %1812 = vmatpush.msrb.mxu3 %v4195_v50  ;;  %1793 = vmatpush.msrb.mxu2 %v5402_v43 }
 0x553   :  { %1813 = vmatpush.msrb.mxu3 %v4207_v45  ;;  %1794 = vmatpush.msrb.mxu2 %v4205_v44 }
 0x555   :  { %1653 = vmatmul.f32.vlgmr.msra.gmra.mxu0 %v5399_v48  ;;  %1673 = vmatmul.f32.vlgmr.msra.gmra.mxu1 %v5399_v48 }
 0x556   :  { %1693 = vmatmul.f32.vlgmr.msra.gmra.mxu2 %v5399_v48  ;;  %1713 = vmatmul.f32.vlgmr.msra.gmra.mxu3 %v5399_v48  ;;  %v5404_v48 = vld [vmem:[#allocation52_spill] sm:$0xff] }
 0x557   :  { %1814 = vmatpush.msrb.mxu3 %v4213_v54  ;;  %1841 = vmatpush.msra.mxu0 %v4006_v28 }
 0x558   :  { %1861 = vmatpush.msra.mxu1 %v4008_v26  ;;  %1881 = vmatpush.msra.mxu2 %v4010_v19 }
 0x559   :  { %1901 = vmatpush.msra.mxu3 %v4021_v49  ;;  %1842 = vmatpush.msra.mxu0 %v4014_v39 }
 0x55a   :  { %1862 = vmatpush.msra.mxu1 %v4016_v57  ;;  %1882 = vmatpush.msra.mxu2 %v4018_v17 }
 0x55b   :  { %1902 = vmatpush.msra.mxu3 %v4031_v11  ;;  %1843 = vmatpush.msra.mxu0 %v4023_v15 }
 0x55c   :  { %1863 = vmatpush.msra.mxu1 %v4025_v24  ;;  %1883 = vmatpush.msra.mxu2 %v4029_v14 }
 0x55d   :  { %1903 = vmatpush.msra.mxu3 %v4047_v52  ;;  %1844 = vmatpush.msra.mxu0 %v4039_v62 }
 0x55e   :  { %1864 = vmatpush.msra.mxu1 %v4041_v60  ;;  %1884 = vmatpush.msra.mxu2 %v4045_v23 }
 0x55f   :  { %1904 = vmatpush.msra.mxu3 %v4059_v56  ;;  %1845 = vmatpush.msra.mxu0 %v4051_v21 }
 0x560   :  { %1865 = vmatpush.msra.mxu1 %v4053_v61  ;;  %1885 = vmatpush.msra.mxu2 %v4057_v47 }
 0x561   :  { %1905 = vmatpush.msra.mxu3 %v4071_v4  ;;  %1846 = vmatpush.msra.mxu0 %v4063_v1 }
 0x562   :  { %1866 = vmatpush.msra.mxu1 %v4065_v2  ;;  %1886 = vmatpush.msra.mxu2 %v4069_v3 }
 0x563   :  { %1906 = vmatpush.msra.mxu3 %v4087_v8  ;;  %1847 = vmatpush.msra.mxu0 %v4079_v5 }
 0x564   :  { %1867 = vmatpush.msra.mxu1 %v4081_v6  ;;  %1887 = vmatpush.msra.mxu2 %v4085_v7 }
 0x565   :  { %1907 = vmatpush.msra.mxu3 %v4111_v25  ;;  %1848 = vmatpush.msra.mxu0 %v4103_v20 }
 0x566   :  { %1868 = vmatpush.msra.mxu1 %v4105_v9  ;;  %1888 = vmatpush.msra.mxu2 %v4107_v10 }
 0x567   :  { %1908 = vmatpush.msra.mxu3 %v4123_v30  ;;  %1849 = vmatpush.msra.mxu0 %v4113_v18 }
 0x568   :  { %1869 = vmatpush.msra.mxu1 %v4115_v27  ;;  %1889 = vmatpush.msra.mxu2 %v4119_v29 }
 0x569   :  { %1909 = vmatpush.msra.mxu3 %v4127_v31  ;;  %1850 = vmatpush.msra.mxu0 %v4130_v32 }
 0x56a   :  { %1870 = vmatpush.msra.mxu1 %v4132_v33  ;;  %1890 = vmatpush.msra.mxu2 %v4134_v34 }
 0x56b   :  { %1910 = vmatpush.msra.mxu3 %v4138_v35  ;;  %1851 = vmatpush.msra.mxu0 %v4141_v37 }
 0x56c   :  { %1871 = vmatpush.msra.mxu1 %v4143_v38  ;;  %1891 = vmatpush.msra.mxu2 %v4145_v41 }
 0x56d   :  { %1911 = vmatpush.msra.mxu3 %v5391_v36  ;;  %1852 = vmatpush.msra.mxu0 %v5392_v46 }
 0x56e   :  { %1872 = vmatpush.msra.mxu1 %v5393_v12  ;;  %1892 = vmatpush.msra.mxu2 %v5394_v13 }
 0x56f   :  { %1912 = vmatpush.msra.mxu3 %v5395_v59  ;;  %1853 = vmatpush.msra.mxu0 %v5396_v40 }
 0x570   :  { %1873 = vmatpush.msra.mxu1 %v5397_v51  ;;  %1893 = vmatpush.msra.mxu2 %v5398_v63 }
 0x571   :  { %1913 = vmatpush.msra.mxu3 %v4183_v16  ;;  %1854 = vmatpush.msra.mxu0 %v4171_v53  ;;  %v1536_v53 = vpop.f32.mrf.mxu2 }
 0x572   :  { %1874 = vmatpush.msra.mxu1 %v4173_v55  ;;  %1894 = vmatpush.msra.mxu2 %v5404_v48  ;;  %v1454_v55 = vpop.f32.mrf.mxu0  ;;  %v1495_v48 = vpop.f32.mrf.mxu1 }
 0x573   :  { %1914 = vmatpush.msra.mxu3 %v4195_v50  ;;  %1855 = vmatpush.msra.mxu0 %v5400_v58  ;;  %v1577_v50 = vpop.f32.mrf.mxu3 }
 0x574   :  { %1875 = vmatpush.msra.mxu1 %v5401_v42  ;;  %1895 = vmatpush.msra.mxu2 %v5402_v43 }
 0x575   :  { %1915 = vmatpush.msra.mxu3 %v4207_v45  ;;  %1856 = vmatpush.msra.mxu0 %v4199_v0 }
 0x576   :  { %1876 = vmatpush.msra.mxu1 %v5403_v22  ;;  %1896 = vmatpush.msra.mxu2 %v4205_v44 }
 0x577   :  { %1916 = vmatpush.msra.mxu3 %v4213_v54 }
 0x579   :  { %v4359_v42 = vpop.f32.mrf.mxu2 }
 0x57a   :  { %v4355_v16 = vpop.f32.mrf.mxu0  ;;  %v4357_v58 = vpop.f32.mrf.mxu1  ;;  %5407 = vst [vmem:[#allocation26_spill] sm:$0xff] %v4359_v42 }
 0x57b   :  { %5405 = vst [vmem:[#allocation23_spill] sm:$0xff] %v4355_v16  ;;  %v4361_v43 = vpop.f32.mrf.mxu3 }
 0x57c   :  { %5406 = vst [vmem:[#allocation24_spill] sm:$0xff] %v4357_v58 }
 0x57d   :  { %5408 = vst [vmem:[#allocation27_spill] sm:$0xff] %v4361_v43 }
 0x581   :  { %v4367_v22 = vpop.f32.mrf.mxu2 }
 0x582   :  { %v4363_v45 = vpop.f32.mrf.mxu0  ;;  %v4365_v0 = vpop.f32.mrf.mxu1  ;;  %5411 = vst [vmem:[#allocation30_spill] sm:$0xff] %v4367_v22 }
 0x583   :  { %5409 = vst [vmem:[#allocation28_spill] sm:$0xff] %v4363_v45  ;;  %v4369_v44 = vpop.f32.mrf.mxu3 }
 0x584   :  { %5410 = vst [vmem:[#allocation29_spill] sm:$0xff] %v4365_v0 }
 0x585   :  { %5412 = vst [vmem:[#allocation31_spill] sm:$0xff] %v4369_v44 }
 0x589   :  { %v4375_v51 = vpop.f32.mrf.mxu2 }
 0x58a   :  { %v4371_v54 = vpop.f32.mrf.mxu0  ;;  %v4373_v63 = vpop.f32.mrf.mxu1  ;;  %5415 = vst [vmem:[#allocation34_spill] sm:$0xff] %v4375_v51 }
 0x58b   :  { %5413 = vst [vmem:[#allocation32_spill] sm:$0xff] %v4371_v54  ;;  %v4377_v16 = vpop.f32.mrf.mxu3 }
 0x58c   :  { %5414 = vst [vmem:[#allocation33_spill] sm:$0xff] %v4373_v63 }
 0x58d   :  { %5416 = vst [vmem:[#allocation35_spill] sm:$0xff] %v4377_v16 }
 0x591   :  { %v4383_v43 = vpop.f32.mrf.mxu2 }
 0x592   :  { %v4379_v58 = vpop.f32.mrf.mxu0  ;;  %v4381_v42 = vpop.f32.mrf.mxu1  ;;  %5419 = vst [vmem:[#allocation65_spill] sm:$0xff] %v4383_v43 }
 0x593   :  { %5417 = vst [vmem:[#allocation36_spill] sm:$0xff] %v4379_v58  ;;  %v4385_v45 = vpop.f32.mrf.mxu3 }
 0x594   :  { %5418 = vst [vmem:[#allocation37_spill] sm:$0xff] %v4381_v42 }
 0x595   :  { %5420 = vst [vmem:[#allocation55_spill] sm:$0xff] %v4385_v45  ;;  %v1354_v45 = vld [vmem:[%s4964_s4] sm:$0xf] }
 0x596   :  { %v4420_v13 = vperm.slane %v1354_v45, 2 }
 0x598   :  { %5435 = vst [vmem:[#allocation67_spill] sm:$0xff] %v4420_v13  ;;  %v1537_v46 = vadd.f32 %v1536_v53, %v4420_v13 }
 0x599   :  { %v4391_v44 = vpop.f32.mrf.mxu2 }
 0x59a   :  { %v4387_v0 = vpop.f32.mrf.mxu0  ;;  %v4389_v22 = vpop.f32.mrf.mxu1  ;;  %5423 = vst [vmem:[#allocation57_spill] sm:$0xff] %v4391_v44  ;;  %v4412_v44 = vperm.slane %v1354_v45, 1 }
 0x59b   :  { %5421 = vst [vmem:[#allocation66_spill] sm:$0xff] %v4387_v0  ;;  %v4393_v54 = vpop.f32.mrf.mxu3 }
 0x59c   :  { %5422 = vst [vmem:[#allocation56_spill] sm:$0xff] %v4389_v22  ;;  %v4410_v22 = vperm.slane %v1354_v45, 0 }
 0x59d   :  { %5424 = vst [vmem:[#allocation58_spill] sm:$0xff] %v4393_v54 }
 0x59e   :  { %5431 = vst [vmem:[#allocation40_spill] sm:$0xff] %v4410_v22 }
 0x59f   :  { %5432 = vst [vmem:[#allocation25_spill] sm:$0xff] %v4412_v44 }
 0x5a1   :  { %v4399_v16 = vpop.f32.mrf.mxu2 }
 0x5a2   :  { %v4395_v63 = vpop.f32.mrf.mxu0  ;;  %v4397_v51 = vpop.f32.mrf.mxu1  ;;  %5427 = vst [vmem:[#allocation61_spill] sm:$0xff] %v4399_v16 }
 0x5a3   :  { %5425 = vst [vmem:[#allocation59_spill] sm:$0xff] %v4395_v63  ;;  %v4401_v58 = vpop.f32.mrf.mxu3  ;;  %v1455_v63 = vadd.f32 %v1454_v55, %v4410_v22 }
 0x5a4   :  { %5426 = vst [vmem:[#allocation60_spill] sm:$0xff] %v4397_v51  ;;  %v1496_v51 = vadd.f32 %v1495_v48, %v4412_v44 }
 0x5a5   :  { %5428 = vst [vmem:[#allocation62_spill] sm:$0xff] %v4401_v58 }
 0x5ca   :  { %v4406_v43 = vpop.f32.mrf.mxu0  ;;  %v4408_v0 = vpop.f32.mrf.mxu1 }
 0x5cb   :  { %5429 = vst [vmem:[#allocation70_spill] sm:$0xff] %v4406_v43  ;;  %v4422_v43 = vperm.slane %v1354_v45, 3 }
 0x5cc   :  { %5430 = vst [vmem:[#allocation39_spill] sm:$0xff] %v4408_v0 }
 0x5cd   :  { %v1578_v55 = vadd.f32 %v1577_v50, %v4422_v43 }
 0x5d1   :  { %v4416_v54 = vpop.f32.mrf.mxu2  ;;  %v4418_v16 = vpop.f32.mrf.mxu3 }
 0x5d2   :  { %5433 = vst [vmem:[#allocation63_spill] sm:$0xff] %v4416_v54  ;;  %v1654_v58 = vpop.f32.mrf.mxu0  ;;  %v1674_v42 = vpop.f32.mrf.mxu1 }
 0x5d3   :  { %5434 = vst [vmem:[#allocation64_spill] sm:$0xff] %v4418_v16  ;;  %v1655_v40 = vadd.f32 %v1654_v58, %v1455_v63  ;;  %v1675_v59 = vadd.f32 %v1674_v42, %v1496_v51 }
 0x5d5   :  { %v1717_v0 = vmul.f32 0.5, %v1655_v40  ;;  %v1721_v12 = vmul.f32 0.5, %v1675_v59 }
 0x5d7   :  { %2607 = vtanh.f32 %v1717_v0 }
 0x5d8   :  { %2609 = vtanh.f32 %v1721_v12  ;;  %v5439_v12 = vld [vmem:[#allocation46_spill] sm:$0xff] }
 0x5d9   :  { %v1694_v48 = vpop.f32.mrf.mxu2  ;;  %v1714_v54 = vpop.f32.mrf.mxu3 }
 0x5da   :  { %v1695_v44 = vadd.f32 %v1694_v48, %v1537_v46  ;;  %v1715_v16 = vadd.f32 %v1714_v54, %v1578_v55  ;;  %v5440_v55 = vld [vmem:[#allocation50_spill] sm:$0xff]  ;;  %v5441_v48 = vld [vmem:[#allocation47_spill] sm:$0xff] }
 0x5dc   :  { %2611 = vtanh.f32 %v1695_v44  ;;  %v1726_v22 = vmul.f32 0.5, %v1715_v16  ;;  %v5437_v16 = vld [vmem:[#allocation44_spill] sm:$0xff] }
 0x5dd   :  { %v2608_v63 = vpop.eup %2607 }
 0x5de   :  { %v2610_v51 = vpop.eup %2609  ;;  %v1719_v58 = vmul.f32 0.5, %v2608_v63  ;;  %2613 = vtanh.f32 %v1726_v22  ;;  %v5436_v22 = vld [vmem:[#allocation43_spill] sm:$0xff]  ;;  %v5442_v63 = vld [vmem:[#allocation48_spill] sm:$0xff] }
 0x5df   :  { %v1723_v42 = vmul.f32 0.5, %v2610_v51  ;;  %v5443_v51 = vld [vmem:[#allocation49_spill] sm:$0xff] }
 0x5e0   :  { %v1720_v45 = vadd.f32 0.5, %v1719_v58  ;;  %v5444_v58 = vld [vmem:[#allocation53_spill] sm:$0xff] }
 0x5e1   :  { %v1724_v40 = vadd.f32 0.5, %v1723_v42  ;;  %v5445_v42 = vld [vmem:[#allocation69_spill] sm:$0xff] }
 0x5e2   :  { %v2612_v59 = vpop.eup %2611 }
 0x5e3   :  { %v1730_v0 = vmul.f32 0.0, %v1724_v40  ;;  %v1731_v36 = vmul.f32 %v2612_v59, %v1720_v45  ;;  %v5446_v45 = vld [vmem:[#allocation51_spill] sm:$0xff]  ;;  %v5447_v40 = vld [vmem:[#allocation52_spill] sm:$0xff]  ;;  %v5448_v59 = vld [vmem:[#allocation17_spill] sm:$0xff] }
 0x5e4   :  { %v2614_v53 = vpop.eup %2613 }
 0x5e5   :  { %v4426_v13 = vadd.f32 %v1731_v36, %v1730_v0  ;;  %v1728_v50 = vmul.f32 0.5, %v2614_v53  ;;  %v5438_v36 = vld [vmem:[#allocation45_spill] sm:$0xff]  ;;  %v5449_v0 = vld [vmem:[#allocation54_spill] sm:$0xff] }
 0x5e6   :  { %v5450_v53 = vld [vmem:[#allocation41_spill] sm:$0xff] }
 0x5e7   :  { %2615 = vtanh.f32 %v4426_v13  ;;  %v1729_v46 = vadd.f32 0.5, %v1728_v50  ;;  %v5451_v50 = vld [vmem:[#allocation42_spill] sm:$0xff] }
 0x5ed   :  { %v2616_v54 = vpop.eup %2615 }
 0x5ee   :  { %v1734_v44 = vmul.f32 %v2616_v54, %v1729_v46  ;;  %v5452_v46 = vld [vmem:[#allocation21_spill] sm:$0xff]  ;;  %v5453_v54 = vld [vmem:[#allocation18_spill] sm:$0xff] }
 0x5f0   :  { %1755 = vmatmul.f32.vlgmr.msrb.gmra.mxu0 %v1734_v44  ;;  %1775 = vmatmul.f32.vlgmr.msrb.gmra.mxu1 %v1734_v44 }
 0x5f1   :  { %1795 = vmatmul.f32.vlgmr.msrb.gmra.mxu2 %v1734_v44  ;;  %1815 = vmatmul.f32.vlgmr.msrb.gmra.mxu3 %v1734_v44  ;;  %v5454_v44 = vld [vmem:[#allocation19_spill] sm:$0xff] }
 0x5f2   :  { %1943 = vmatpush.msrb.mxu0 %v4006_v28  ;;  %1963 = vmatpush.msrb.mxu1 %v4008_v26 }
 0x5f3   :  { %1983 = vmatpush.msrb.mxu2 %v4010_v19  ;;  %2003 = vmatpush.msrb.mxu3 %v4021_v49 }
 0x5f4   :  { %1944 = vmatpush.msrb.mxu0 %v4014_v39  ;;  %1964 = vmatpush.msrb.mxu1 %v4016_v57 }
 0x5f5   :  { %1984 = vmatpush.msrb.mxu2 %v4018_v17  ;;  %2004 = vmatpush.msrb.mxu3 %v4031_v11 }
 0x5f6   :  { %1945 = vmatpush.msrb.mxu0 %v4023_v15  ;;  %1965 = vmatpush.msrb.mxu1 %v4025_v24 }
 0x5f7   :  { %1985 = vmatpush.msrb.mxu2 %v4029_v14  ;;  %2005 = vmatpush.msrb.mxu3 %v4047_v52 }
 0x5f8   :  { %1946 = vmatpush.msrb.mxu0 %v4039_v62  ;;  %1966 = vmatpush.msrb.mxu1 %v4041_v60 }
 0x5f9   :  { %1986 = vmatpush.msrb.mxu2 %v4045_v23  ;;  %2006 = vmatpush.msrb.mxu3 %v4059_v56 }
 0x5fa   :  { %1947 = vmatpush.msrb.mxu0 %v4051_v21  ;;  %1967 = vmatpush.msrb.mxu1 %v4053_v61 }
 0x5fb   :  { %1987 = vmatpush.msrb.mxu2 %v4057_v47  ;;  %2007 = vmatpush.msrb.mxu3 %v4071_v4 }
 0x5fc   :  { %1948 = vmatpush.msrb.mxu0 %v4063_v1  ;;  %1968 = vmatpush.msrb.mxu1 %v4065_v2 }
 0x5fd   :  { %1988 = vmatpush.msrb.mxu2 %v4069_v3  ;;  %2008 = vmatpush.msrb.mxu3 %v4087_v8 }
 0x5fe   :  { %1949 = vmatpush.msrb.mxu0 %v4079_v5  ;;  %1969 = vmatpush.msrb.mxu1 %v4081_v6 }
 0x5ff   :  { %1989 = vmatpush.msrb.mxu2 %v4085_v7  ;;  %2009 = vmatpush.msrb.mxu3 %v4111_v25 }
 0x600   :  { %1950 = vmatpush.msrb.mxu0 %v4103_v20  ;;  %1970 = vmatpush.msrb.mxu1 %v4105_v9 }
 0x601   :  { %1990 = vmatpush.msrb.mxu2 %v4107_v10  ;;  %2010 = vmatpush.msrb.mxu3 %v4123_v30 }
 0x602   :  { %1951 = vmatpush.msrb.mxu0 %v4113_v18  ;;  %1971 = vmatpush.msrb.mxu1 %v4115_v27 }
 0x603   :  { %1991 = vmatpush.msrb.mxu2 %v4119_v29  ;;  %2011 = vmatpush.msrb.mxu3 %v4127_v31 }
 0x604   :  { %1952 = vmatpush.msrb.mxu0 %v4130_v32  ;;  %1972 = vmatpush.msrb.mxu1 %v4132_v33 }
 0x605   :  { %1992 = vmatpush.msrb.mxu2 %v4134_v34  ;;  %2012 = vmatpush.msrb.mxu3 %v4138_v35 }
 0x606   :  { %1953 = vmatpush.msrb.mxu0 %v4141_v37  ;;  %1973 = vmatpush.msrb.mxu1 %v4143_v38 }
 0x607   :  { %1993 = vmatpush.msrb.mxu2 %v4145_v41  ;;  %2013 = vmatpush.msrb.mxu3 %v5436_v22 }
 0x608   :  { %1954 = vmatpush.msrb.mxu0 %v5437_v16  ;;  %1974 = vmatpush.msrb.mxu1 %v5438_v36  ;;  %v5462_v36 = vld [vmem:[#allocation26_spill] sm:$0xff] }
 0x609   :  { %1994 = vmatpush.msrb.mxu2 %v5439_v12  ;;  %2014 = vmatpush.msrb.mxu3 %v5440_v55 }
 0x60a   :  { %1955 = vmatpush.msrb.mxu0 %v5441_v48  ;;  %1975 = vmatpush.msrb.mxu1 %v5442_v63  ;;  %v5460_v63 = vld [vmem:[#allocation24_spill] sm:$0xff] }
 0x60b   :  { %1995 = vmatpush.msrb.mxu2 %v5443_v51  ;;  %2015 = vmatpush.msrb.mxu3 %v5444_v58  ;;  %v5455_v58 = vld [vmem:[#allocation20_spill] sm:$0xff] }
 0x60c   :  { %1956 = vmatpush.msrb.mxu0 %v5445_v42  ;;  %1976 = vmatpush.msrb.mxu1 %v5446_v45  ;;  %v5456_v42 = vld [vmem:[#allocation22_spill] sm:$0xff]  ;;  %v5457_v45 = vld [vmem:[#allocation40_spill] sm:$0xff] }
 0x60d   :  { %1996 = vmatpush.msrb.mxu2 %v5447_v40  ;;  %2016 = vmatpush.msrb.mxu3 %v5448_v59  ;;  %v5458_v40 = vld [vmem:[#allocation23_spill] sm:$0xff]  ;;  %v5459_v59 = vld [vmem:[#allocation25_spill] sm:$0xff] }
 0x60e   :  { %1957 = vmatpush.msrb.mxu0 %v5449_v0  ;;  %1977 = vmatpush.msrb.mxu1 %v5450_v53  ;;  %v1458_v51 = vadd.f32 %v5458_v40, %v5457_v45  ;;  %v1499_v0 = vadd.f32 %v5460_v63, %v5459_v59 }
 0x60f   :  { %1997 = vmatpush.msrb.mxu2 %v5451_v50  ;;  %2017 = vmatpush.msrb.mxu3 %v5452_v46 }
 0x610   :  { %1958 = vmatpush.msrb.mxu0 %v5453_v54  ;;  %1978 = vmatpush.msrb.mxu1 %v5454_v44  ;;  %v5461_v54 = vld [vmem:[#allocation67_spill] sm:$0xff] }
 0x611   :  { %1998 = vmatpush.msrb.mxu2 %v5455_v58  ;;  %2018 = vmatpush.msrb.mxu3 %v5456_v42  ;;  %v1540_v44 = vadd.f32 %v5462_v36, %v5461_v54  ;;  %v5463_v58 = vld [vmem:[#allocation27_spill] sm:$0xff] }
 0x612   :  { %v1581_v16 = vadd.f32 %v5463_v58, %v4422_v43 }
 0x66d   :  { %v1756_v48 = vpop.f32.mrf.mxu0  ;;  %v1776_v53 = vpop.f32.mrf.mxu1 }
 0x66e   :  { %v1757_v55 = vadd.f32 %v1756_v48, %v1458_v51  ;;  %v1777_v50 = vadd.f32 %v1776_v53, %v1499_v0 }
 0x670   :  { %v1819_v12 = vmul.f32 0.5, %v1757_v55  ;;  %v1823_v46 = vmul.f32 0.5, %v1777_v50 }
 0x672   :  { %2617 = vtanh.f32 %v1819_v12 }
 0x673   :  { %2619 = vtanh.f32 %v1823_v46 }
 0x674   :  { %v1796_v42 = vpop.f32.mrf.mxu2  ;;  %v1816_v22 = vpop.f32.mrf.mxu3 }
 0x675   :  { %v1797_v40 = vadd.f32 %v1796_v42, %v1540_v44  ;;  %v1817_v45 = vadd.f32 %v1816_v22, %v1581_v16 }
 0x677   :  { %2621 = vtanh.f32 %v1797_v40  ;;  %v1828_v63 = vmul.f32 0.5, %v1817_v45 }
 0x678   :  { %v2618_v59 = vpop.eup %2617 }
 0x679   :  { %v2620_v41 = vpop.eup %2619  ;;  %v1821_v48 = vmul.f32 0.5, %v2618_v59  ;;  %2623 = vtanh.f32 %v1828_v63 }
 0x67a   :  { %v1825_v51 = vmul.f32 0.5, %v2620_v41 }
 0x67b   :  { %v1822_v55 = vadd.f32 0.5, %v1821_v48 }
 0x67c   :  { %v1826_v12 = vadd.f32 0.5, %v1825_v51 }
 0x67d   :  { %v2622_v0 = vpop.eup %2621 }
 0x67e   :  { %v1832_v36 = vmul.f32 %v1826_v12, %v4426_v13  ;;  %v1833_v53 = vmul.f32 %v2622_v0, %v1822_v55 }
 0x67f   :  { %v2624_v50 = vpop.eup %2623 }
 0x680   :  { %v4502_v58 = vadd.f32 %v1833_v53, %v1832_v36  ;;  %v1830_v42 = vmul.f32 0.5, %v2624_v50 }
 0x682   :  { %2625 = vtanh.f32 %v4502_v58  ;;  %v1831_v22 = vadd.f32 0.5, %v1830_v42 }
 0x688   :  { %v2626_v16 = vpop.eup %2625 }
 0x689   :  { %v1836_v45 = vmul.f32 %v2626_v16, %v1831_v22  ;;  %v4581_v22 = vld [vmem:[#allocation9 + $0x3e0] sm:$0xff]  ;;  %v4584_v16 = vld [vmem:[#allocation9 + $0x3e8] sm:$0xff] }
 0x68b   :  { %1857 = vmatmul.f32.vlgmr.msra.gmra.mxu0 %v1836_v45  ;;  %1877 = vmatmul.f32.vlgmr.msra.gmra.mxu1 %v1836_v45 }
 0x68c   :  { %1897 = vmatmul.f32.vlgmr.msra.gmra.mxu2 %v1836_v45  ;;  %1917 = vmatmul.f32.vlgmr.msra.gmra.mxu3 %v1836_v45  ;;  %v4590_v45 = vld [vmem:[#allocation9 + $0x3f8] sm:$0xff] }
 0x68d   :  { %2045 = vmatpush.msra.mxu0 %v4006_v28  ;;  %2065 = vmatpush.msra.mxu1 %v4008_v26  ;;  %v5464_v28 = vld [vmem:[#allocation38_spill] sm:$0xff]  ;;  %v5465_v26 = vld [vmem:[#allocation43_spill] sm:$0xff] }
 0x68e   :  { %2085 = vmatpush.msra.mxu2 %v4010_v19  ;;  %2105 = vmatpush.msra.mxu3 %v4021_v49  ;;  %v5466_v19 = vld [vmem:[#allocation44_spill] sm:$0xff]  ;;  %v5470_v49 = vld [vmem:[#allocation47_spill] sm:$0xff] }
 0x68f   :  { %2046 = vmatpush.msra.mxu0 %v4014_v39  ;;  %2066 = vmatpush.msra.mxu1 %v4016_v57  ;;  %v5467_v39 = vld [vmem:[#allocation45_spill] sm:$0xff]  ;;  %v5468_v57 = vld [vmem:[#allocation46_spill] sm:$0xff] }
 0x690   :  { %2086 = vmatpush.msra.mxu2 %v4018_v17  ;;  %2106 = vmatpush.msra.mxu3 %v4031_v11  ;;  %v5469_v17 = vld [vmem:[#allocation50_spill] sm:$0xff]  ;;  %v5474_v11 = vld [vmem:[#allocation69_spill] sm:$0xff] }
 0x691   :  { %2047 = vmatpush.msra.mxu0 %v4023_v15  ;;  %2067 = vmatpush.msra.mxu1 %v4025_v24  ;;  %v5471_v15 = vld [vmem:[#allocation48_spill] sm:$0xff]  ;;  %v5472_v24 = vld [vmem:[#allocation49_spill] sm:$0xff] }
 0x692   :  { %2087 = vmatpush.msra.mxu2 %v4029_v14  ;;  %2107 = vmatpush.msra.mxu3 %v4047_v52  ;;  %v5473_v14 = vld [vmem:[#allocation53_spill] sm:$0xff]  ;;  %v5478_v52 = vld [vmem:[#allocation54_spill] sm:$0xff] }
 0x693   :  { %2048 = vmatpush.msra.mxu0 %v4039_v62  ;;  %2068 = vmatpush.msra.mxu1 %v4041_v60  ;;  %v5475_v62 = vld [vmem:[#allocation51_spill] sm:$0xff]  ;;  %v5476_v60 = vld [vmem:[#allocation52_spill] sm:$0xff] }
 0x694   :  { %2088 = vmatpush.msra.mxu2 %v4045_v23  ;;  %2108 = vmatpush.msra.mxu3 %v4059_v56  ;;  %v5477_v23 = vld [vmem:[#allocation17_spill] sm:$0xff]  ;;  %v5482_v56 = vld [vmem:[#allocation18_spill] sm:$0xff] }
 0x695   :  { %2049 = vmatpush.msra.mxu0 %v4051_v21  ;;  %2069 = vmatpush.msra.mxu1 %v4053_v61  ;;  %v5479_v21 = vld [vmem:[#allocation41_spill] sm:$0xff]  ;;  %v5480_v61 = vld [vmem:[#allocation42_spill] sm:$0xff] }
 0x696   :  { %2089 = vmatpush.msra.mxu2 %v4057_v47  ;;  %2109 = vmatpush.msra.mxu3 %v4071_v4  ;;  %v5481_v47 = vld [vmem:[#allocation21_spill] sm:$0xff]  ;;  %v5486_v4 = vld [vmem:[#allocation40_spill] sm:$0xff] }
 0x697   :  { %2050 = vmatpush.msra.mxu0 %v4063_v1  ;;  %2070 = vmatpush.msra.mxu1 %v4065_v2  ;;  %v5483_v1 = vld [vmem:[#allocation19_spill] sm:$0xff]  ;;  %v5484_v2 = vld [vmem:[#allocation20_spill] sm:$0xff] }
 0x698   :  { %2090 = vmatpush.msra.mxu2 %v4069_v3  ;;  %2110 = vmatpush.msra.mxu3 %v4087_v8  ;;  %v5485_v3 = vld [vmem:[#allocation22_spill] sm:$0xff]  ;;  %v5489_v8 = vld [vmem:[#allocation29_spill] sm:$0xff] }
 0x699   :  { %2051 = vmatpush.msra.mxu0 %v4079_v5  ;;  %2071 = vmatpush.msra.mxu1 %v4081_v6  ;;  %v5487_v5 = vld [vmem:[#allocation28_spill] sm:$0xff] }
 0x69a   :  { %2091 = vmatpush.msra.mxu2 %v4085_v7  ;;  %2111 = vmatpush.msra.mxu3 %v4111_v25  ;;  %v1461_v6 = vadd.f32 %v5487_v5, %v5486_v4  ;;  %v5488_v7 = vld [vmem:[#allocation25_spill] sm:$0xff] }
 0x69b   :  { %2052 = vmatpush.msra.mxu0 %v4103_v20  ;;  %2072 = vmatpush.msra.mxu1 %v4105_v9  ;;  %v1502_v20 = vadd.f32 %v5489_v8, %v5488_v7  ;;  %v4656_v5 = vld [vmem:[#allocation9 + $0x328] sm:$0xff]  ;;  %v4662_v8 = vld [vmem:[#allocation9 + $0x338] sm:$0xff] }
 0x69c   :  { %2092 = vmatpush.msra.mxu2 %v4107_v10  ;;  %2112 = vmatpush.msra.mxu3 %v4123_v30  ;;  %v5490_v30 = vld [vmem:[#allocation30_spill] sm:$0xff] }
 0x69d   :  { %2053 = vmatpush.msra.mxu0 %v4113_v18  ;;  %2073 = vmatpush.msra.mxu1 %v4115_v27 }
 0x69e   :  { %2093 = vmatpush.msra.mxu2 %v4119_v29  ;;  %2113 = vmatpush.msra.mxu3 %v4127_v31  ;;  %v1543_v31 = vadd.f32 %v5490_v30, %v5461_v54  ;;  %v4686_v30 = vld [vmem:[#allocation9 + $0x2f8] sm:$0xff] }
 0x69f   :  { %2054 = vmatpush.msra.mxu0 %v4130_v32  ;;  %2074 = vmatpush.msra.mxu1 %v4132_v33  ;;  %v5491_v32 = vld [vmem:[#allocation31_spill] sm:$0xff] }
 0x6a0   :  { %2094 = vmatpush.msra.mxu2 %v4134_v34  ;;  %2114 = vmatpush.msra.mxu3 %v4138_v35  ;;  %v1584_v33 = vadd.f32 %v5491_v32, %v4422_v43  ;;  %v4692_v32 = vld [vmem:[#allocation9 + $0x2c8] sm:$0xff] }
 0x6a1   :  { %2055 = vmatpush.msra.mxu0 %v4141_v37  ;;  %2075 = vmatpush.msra.mxu1 %v4143_v38 }
 0x6a2   :  { %2095 = vmatpush.msra.mxu2 %v5464_v28  ;;  %2115 = vmatpush.msra.mxu3 %v5465_v26  ;;  %v4593_v28 = vld [vmem:[#allocation9 + $0x3c0] sm:$0xff]  ;;  %v4596_v26 = vld [vmem:[#allocation9 + $0x3c8] sm:$0xff] }
 0x6a3   :  { %2056 = vmatpush.msra.mxu0 %v5466_v19  ;;  %2076 = vmatpush.msra.mxu1 %v5467_v39  ;;  %v4599_v19 = vld [vmem:[#allocation9 + $0x3d0] sm:$0xff]  ;;  %v4602_v39 = vld [vmem:[#allocation9 + $0x3d8] sm:$0xff] }
 0x6a4   :  { %2096 = vmatpush.msra.mxu2 %v5468_v57  ;;  %2116 = vmatpush.msra.mxu3 %v5469_v17  ;;  %v4605_v57 = vld [vmem:[#allocation9 + $0x3a0] sm:$0xff]  ;;  %v4608_v17 = vld [vmem:[#allocation9 + $0x3a8] sm:$0xff] }
 0x6a5   :  { %2057 = vmatpush.msra.mxu0 %v5470_v49  ;;  %2077 = vmatpush.msra.mxu1 %v5471_v15  ;;  %v4611_v49 = vld [vmem:[#allocation9 + $0x3b0] sm:$0xff]  ;;  %v4614_v15 = vld [vmem:[#allocation9 + $0x3b8] sm:$0xff] }
 0x6a6   :  { %2097 = vmatpush.msra.mxu2 %v5472_v24  ;;  %2117 = vmatpush.msra.mxu3 %v5473_v14  ;;  %v4617_v24 = vld [vmem:[#allocation9 + $0x380] sm:$0xff]  ;;  %v4620_v14 = vld [vmem:[#allocation9 + $0x388] sm:$0xff] }
 0x6a7   :  { %2058 = vmatpush.msra.mxu0 %v5474_v11  ;;  %2078 = vmatpush.msra.mxu1 %v5475_v62  ;;  %v4623_v11 = vld [vmem:[#allocation9 + $0x390] sm:$0xff]  ;;  %v4626_v62 = vld [vmem:[#allocation9 + $0x398] sm:$0xff] }
 0x6a8   :  { %2098 = vmatpush.msra.mxu2 %v5476_v60  ;;  %2118 = vmatpush.msra.mxu3 %v5477_v23  ;;  %v4629_v60 = vld [vmem:[#allocation9 + $0x360] sm:$0xff]  ;;  %v4632_v23 = vld [vmem:[#allocation9 + $0x368] sm:$0xff] }
 0x6a9   :  { %2059 = vmatpush.msra.mxu0 %v5478_v52  ;;  %2079 = vmatpush.msra.mxu1 %v5479_v21  ;;  %v4635_v52 = vld [vmem:[#allocation9 + $0x370] sm:$0xff]  ;;  %v4638_v21 = vld [vmem:[#allocation9 + $0x378] sm:$0xff] }
 0x6aa   :  { %2099 = vmatpush.msra.mxu2 %v5480_v61  ;;  %2119 = vmatpush.msra.mxu3 %v5481_v47  ;;  %v4641_v61 = vld [vmem:[#allocation9 + $0x340] sm:$0xff]  ;;  %v4644_v47 = vld [vmem:[#allocation9 + $0x348] sm:$0xff] }
 0x6ab   :  { %2060 = vmatpush.msra.mxu0 %v5482_v56  ;;  %2080 = vmatpush.msra.mxu1 %v5483_v1  ;;  %v4647_v56 = vld [vmem:[#allocation9 + $0x350] sm:$0xff]  ;;  %v4650_v1 = vld [vmem:[#allocation9 + $0x358] sm:$0xff] }
 0x6ac   :  { %2100 = vmatpush.msra.mxu2 %v5484_v2  ;;  %2120 = vmatpush.msra.mxu3 %v5485_v3  ;;  %v4653_v2 = vld [vmem:[#allocation9 + $0x320] sm:$0xff] }
 0x708   :  { %v1858_v9 = vpop.f32.mrf.mxu0  ;;  %v1878_v10 = vpop.f32.mrf.mxu1 }
 0x709   :  { %v1859_v25 = vadd.f32 %v1858_v9, %v1461_v6  ;;  %v1879_v18 = vadd.f32 %v1878_v10, %v1502_v20  ;;  %v4659_v6 = vld [vmem:[#allocation9 + $0x330] sm:$0xff]  ;;  %v4665_v20 = vld [vmem:[#allocation9 + $0x300] sm:$0xff]  ;;  %v4668_v9 = vld [vmem:[#allocation9 + $0x308] sm:$0xff] }
 0x70a   :  { %v4671_v10 = vld [vmem:[#allocation9 + $0x310] sm:$0xff] }
 0x70b   :  { %v1921_v27 = vmul.f32 0.5, %v1859_v25  ;;  %v1925_v29 = vmul.f32 0.5, %v1879_v18  ;;  %v4674_v25 = vld [vmem:[#allocation9 + $0x318] sm:$0xff]  ;;  %v4677_v18 = vld [vmem:[#allocation9 + $0x2e0] sm:$0xff] }
 0x70d   :  { %2627 = vtanh.f32 %v1921_v27  ;;  %v4680_v27 = vld [vmem:[#allocation9 + $0x2e8] sm:$0xff] }
 0x70e   :  { %2629 = vtanh.f32 %v1925_v29  ;;  %v4683_v29 = vld [vmem:[#allocation9 + $0x2f0] sm:$0xff] }
 0x70f   :  { %v1898_v34 = vpop.f32.mrf.mxu2  ;;  %v1918_v35 = vpop.f32.mrf.mxu3 }
 0x710   :  { %v1899_v37 = vadd.f32 %v1898_v34, %v1543_v31  ;;  %v1919_v38 = vadd.f32 %v1918_v35, %v1584_v33  ;;  %v4689_v31 = vld [vmem:[#allocation9 + $0x2c0] sm:$0xff]  ;;  %v4695_v33 = vld [vmem:[#allocation9 + $0x2d0] sm:$0xff]  ;;  %v4698_v34 = vld [vmem:[#allocation9 + $0x2d8] sm:$0xff] }
 0x711   :  { %v4701_v35 = vld [vmem:[#allocation9 + $0x2a0] sm:$0xff] }
 0x712   :  { %2631 = vtanh.f32 %v1899_v37  ;;  %v1930_v41 = vmul.f32 0.5, %v1919_v38  ;;  %v4704_v37 = vld [vmem:[#allocation9 + $0x2a8] sm:$0xff]  ;;  %v4707_v38 = vld [vmem:[#allocation9 + $0x2b0] sm:$0xff] }
 0x713   :  { %v2628_v13 = vpop.eup %2627  ;;  %5492 = vst [vmem:[#allocation68_spill] sm:$0xff] %v4707_v38 }
 0x714   :  { %v2630_v59 = vpop.eup %2629  ;;  %v1923_v46 = vmul.f32 0.5, %v2628_v13  ;;  %2633 = vtanh.f32 %v1930_v41  ;;  %v4710_v41 = vld [vmem:[#allocation9 + $0x2b8] sm:$0xff]  ;;  %v4713_v13 = vld [vmem:[#allocation9 + $0x280] sm:$0xff] }
 0x715   :  { %v1927_v44 = vmul.f32 0.5, %v2630_v59  ;;  %5493 = vst [vmem:[#allocation23_spill] sm:$0xff] %v4710_v41  ;;  %v4716_v59 = vld [vmem:[#allocation9 + $0x288] sm:$0xff] }
 0x716   :  { %v1924_v40 = vadd.f32 0.5, %v1923_v46  ;;  %5494 = vst [vmem:[#allocation24_spill] sm:$0xff] %v4713_v13  ;;  %v4719_v46 = vld [vmem:[#allocation9 + $0x290] sm:$0xff] }
 0x717   :  { %v1928_v63 = vadd.f32 0.5, %v1927_v44  ;;  %5495 = vst [vmem:[#allocation67_spill] sm:$0xff] %v4716_v59  ;;  %v4722_v44 = vld [vmem:[#allocation9 + $0x298] sm:$0xff] }
 0x718   :  { %v2632_v48 = vpop.eup %2631  ;;  %5496 = vst [vmem:[#allocation26_spill] sm:$0xff] %v4719_v46 }
 0x719   :  { %v1934_v51 = vmul.f32 %v1928_v63, %v4502_v58  ;;  %v1935_v55 = vmul.f32 %v2632_v48, %v1924_v40  ;;  %v4587_v58 = vld [vmem:[#allocation9 + $0x3f0] sm:$0xff]  ;;  %5497 = vst [vmem:[#allocation27_spill] sm:$0xff] %v4722_v44  ;;  %v4725_v40 = vld [vmem:[#allocation9 + $0x260] sm:$0xff]  ;;  %v4728_v63 = vld [vmem:[#allocation9 + $0x268] sm:$0xff] }
 0x71a   :  { %v2634_v12 = vpop.eup %2633  ;;  %5498 = vst [vmem:[#allocation38_spill] sm:$0xff] %v4725_v40  ;;  %v4731_v48 = vld [vmem:[#allocation9 + $0x270] sm:$0xff] }
 0x71b   :  { %v4578_v0 = vadd.f32 %v1935_v55, %v1934_v51  ;;  %v1932_v36 = vmul.f32 0.5, %v2634_v12  ;;  %5499 = vst [vmem:[#allocation43_spill] sm:$0xff] %v4728_v63  ;;  %v4734_v51 = vld [vmem:[#allocation9 + $0x278] sm:$0xff]  ;;  %v4737_v55 = vld [vmem:[#allocation9 + $0x240] sm:$0xff]  ;;  %v4740_v12 = vld [vmem:[#allocation9 + $0x248] sm:$0xff] }
 0x71c   :  { %5500 = vst [vmem:[#allocation44_spill] sm:$0xff] %v4731_v48 }
 0x71d   :  { %2635 = vtanh.f32 %v4578_v0  ;;  %v1933_v53 = vadd.f32 0.5, %v1932_v36  ;;  %5501 = vst [vmem:[#allocation45_spill] sm:$0xff] %v4734_v51  ;;  %v4743_v36 = vld [vmem:[#allocation9 + $0x250] sm:$0xff] }
 0x71e   :  { %5502 = vst [vmem:[#allocation46_spill] sm:$0xff] %v4737_v55 }
 0x71f   :  { %5503 = vst [vmem:[#allocation50_spill] sm:$0xff] %v4740_v12 }
 0x720   :  { %5504 = vst [vmem:[#allocation47_spill] sm:$0xff] %v4743_v36 }
 0x723   :  { %v2636_v50 = vpop.eup %2635 }
 0x724   :  { %v1938_v42 = vmul.f32 %v2636_v50, %v1933_v53  ;;  %v4746_v53 = vld [vmem:[#allocation9 + $0x258] sm:$0xff]  ;;  %v4749_v50 = vld [vmem:[#allocation9 + $0x220] sm:$0xff] }
 0x725   :  { %5505 = vst [vmem:[#allocation48_spill] sm:$0xff] %v4746_v53 }
 0x726   :  { %1959 = vmatmul.f32.vlgmr.msrb.gmra.mxu0 %v1938_v42  ;;  %1979 = vmatmul.f32.vlgmr.msrb.gmra.mxu1 %v1938_v42  ;;  %5506 = vst [vmem:[#allocation49_spill] sm:$0xff] %v4749_v50 }
 0x727   :  { %1999 = vmatmul.f32.vlgmr.msrb.gmra.mxu2 %v1938_v42  ;;  %2019 = vmatmul.f32.vlgmr.msrb.gmra.mxu3 %v1938_v42  ;;  %v4752_v42 = vld [vmem:[#allocation9 + $0x228] sm:$0xff] }
 0x728   :  { %2147 = vmatpush.msrb.mxu0 %v4581_v22  ;;  %2167 = vmatpush.msrb.mxu1 %v4584_v16  ;;  %5507 = vst [vmem:[#allocation53_spill] sm:$0xff] %v4752_v42 }
 0x729   :  { %2187 = vmatpush.msrb.mxu2 %v4587_v58  ;;  %2207 = vmatpush.msrb.mxu3 %v4590_v45 }
 0x72a   :  { %2148 = vmatpush.msrb.mxu0 %v4593_v28  ;;  %2168 = vmatpush.msrb.mxu1 %v4596_v26 }
 0x72b   :  { %2188 = vmatpush.msrb.mxu2 %v4599_v19  ;;  %2208 = vmatpush.msrb.mxu3 %v4602_v39 }
 0x72c   :  { %2149 = vmatpush.msrb.mxu0 %v4605_v57  ;;  %2169 = vmatpush.msrb.mxu1 %v4608_v17 }
 0x72d   :  { %2189 = vmatpush.msrb.mxu2 %v4611_v49  ;;  %2209 = vmatpush.msrb.mxu3 %v4614_v15 }
 0x72e   :  { %2150 = vmatpush.msrb.mxu0 %v4617_v24  ;;  %2170 = vmatpush.msrb.mxu1 %v4620_v14 }
 0x72f   :  { %2190 = vmatpush.msrb.mxu2 %v4623_v11  ;;  %2210 = vmatpush.msrb.mxu3 %v4626_v62 }
 0x730   :  { %2151 = vmatpush.msrb.mxu0 %v4629_v60  ;;  %2171 = vmatpush.msrb.mxu1 %v4632_v23 }
 0x731   :  { %2191 = vmatpush.msrb.mxu2 %v4635_v52  ;;  %2211 = vmatpush.msrb.mxu3 %v4638_v21 }
 0x732   :  { %2152 = vmatpush.msrb.mxu0 %v4641_v61  ;;  %2172 = vmatpush.msrb.mxu1 %v4644_v47 }
 0x733   :  { %2192 = vmatpush.msrb.mxu2 %v4647_v56  ;;  %2212 = vmatpush.msrb.mxu3 %v4650_v1 }
 0x734   :  { %2153 = vmatpush.msrb.mxu0 %v4653_v2  ;;  %2173 = vmatpush.msrb.mxu1 %v4656_v5 }
 0x735   :  { %2193 = vmatpush.msrb.mxu2 %v4659_v6  ;;  %2213 = vmatpush.msrb.mxu3 %v4662_v8 }
 0x736   :  { %2154 = vmatpush.msrb.mxu0 %v4665_v20  ;;  %2174 = vmatpush.msrb.mxu1 %v4668_v9 }
 0x737   :  { %2194 = vmatpush.msrb.mxu2 %v4671_v10  ;;  %2214 = vmatpush.msrb.mxu3 %v4674_v25 }
 0x738   :  { %2155 = vmatpush.msrb.mxu0 %v4677_v18  ;;  %2175 = vmatpush.msrb.mxu1 %v4680_v27 }
 0x739   :  { %2195 = vmatpush.msrb.mxu2 %v4683_v29  ;;  %2215 = vmatpush.msrb.mxu3 %v4686_v30 }
 0x73a   :  { %2156 = vmatpush.msrb.mxu0 %v4689_v31  ;;  %2176 = vmatpush.msrb.mxu1 %v4692_v32 }
 0x73b   :  { %2196 = vmatpush.msrb.mxu2 %v4695_v33  ;;  %2216 = vmatpush.msrb.mxu3 %v4698_v34 }
 0x73c   :  { %2157 = vmatpush.msrb.mxu0 %v4701_v35  ;;  %2177 = vmatpush.msrb.mxu1 %v4704_v37 }
 0x73d   :  { %2197 = vmatpush.msrb.mxu2 %v4707_v38  ;;  %2217 = vmatpush.msrb.mxu3 %v4710_v41 }
 0x73e   :  { %2158 = vmatpush.msrb.mxu0 %v4713_v13  ;;  %2178 = vmatpush.msrb.mxu1 %v4716_v59 }
 0x73f   :  { %2198 = vmatpush.msrb.mxu2 %v4719_v46  ;;  %2218 = vmatpush.msrb.mxu3 %v4722_v44 }
 0x740   :  { %2159 = vmatpush.msrb.mxu0 %v4725_v40  ;;  %2179 = vmatpush.msrb.mxu1 %v4728_v63 }
 0x741   :  { %2199 = vmatpush.msrb.mxu2 %v4731_v48  ;;  %2219 = vmatpush.msrb.mxu3 %v4734_v51  ;;  %v5514_v51 = vld [vmem:[#allocation33_spill] sm:$0xff] }
 0x742   :  { %2160 = vmatpush.msrb.mxu0 %v4737_v55  ;;  %2180 = vmatpush.msrb.mxu1 %v4740_v12  ;;  %v4755_v55 = vld [vmem:[#allocation9 + $0x230] sm:$0xff]  ;;  %v4758_v12 = vld [vmem:[#allocation9 + $0x238] sm:$0xff] }
 0x743   :  { %2200 = vmatpush.msrb.mxu2 %v4743_v36  ;;  %2220 = vmatpush.msrb.mxu3 %v4746_v53  ;;  %5508 = vst [vmem:[#allocation69_spill] sm:$0xff] %v4755_v55  ;;  %v4761_v36 = vld [vmem:[#allocation9 + $0x200] sm:$0xff]  ;;  %v4764_v53 = vld [vmem:[#allocation9 + $0x208] sm:$0xff] }
 0x744   :  { %2161 = vmatpush.msrb.mxu0 %v4749_v50  ;;  %2181 = vmatpush.msrb.mxu1 %v4752_v42  ;;  %5509 = vst [vmem:[#allocation51_spill] sm:$0xff] %v4758_v12  ;;  %v4767_v50 = vld [vmem:[#allocation9 + $0x210] sm:$0xff] }
 0x745   :  { %2201 = vmatpush.msrb.mxu2 %v4755_v55  ;;  %2221 = vmatpush.msrb.mxu3 %v4758_v12  ;;  %5510 = vst [vmem:[#allocation52_spill] sm:$0xff] %v4761_v36  ;;  %v5513_v55 = vld [vmem:[#allocation32_spill] sm:$0xff]  ;;  %v1505_v12 = vadd.f32 %v5514_v51, %v5488_v7 }
 0x746   :  { %2162 = vmatpush.msrb.mxu0 %v4761_v36  ;;  %5511 = vst [vmem:[#allocation17_spill] sm:$0xff] %v4764_v53  ;;  %2182 = vmatpush.msrb.mxu1 %v4764_v53  ;;  %v1464_v42 = vadd.f32 %v5513_v55, %v5486_v4  ;;  %v5515_v53 = vld [vmem:[#allocation34_spill] sm:$0xff] }
 0x747   :  { %5512 = vst [vmem:[#allocation54_spill] sm:$0xff] %v4767_v50  ;;  %2202 = vmatpush.msrb.mxu2 %v4767_v50  ;;  %2222 = vmatpush.msrb.mxu3 %v5485_v3  ;;  %v1546_v59 = vadd.f32 %v5515_v53, %v5461_v54  ;;  %v5516_v50 = vld [vmem:[#allocation35_spill] sm:$0xff] }
 0x748   :  { %v1587_v13 = vadd.f32 %v5516_v50, %v4422_v43 }
 0x7a3   :  { %v1960_v48 = vpop.f32.mrf.mxu0  ;;  %v1980_v63 = vpop.f32.mrf.mxu1 }
 0x7a4   :  { %v1961_v40 = vadd.f32 %v1960_v48, %v1464_v42  ;;  %v1981_v36 = vadd.f32 %v1980_v63, %v1505_v12 }
 0x7a6   :  { %v2023_v44 = vmul.f32 0.5, %v1961_v40  ;;  %v2027_v46 = vmul.f32 0.5, %v1981_v36 }
 0x7a8   :  { %2637 = vtanh.f32 %v2023_v44 }
 0x7a9   :  { %2639 = vtanh.f32 %v2027_v46  ;;  %v5520_v46 = vld [vmem:[#allocation67_spill] sm:$0xff] }
 0x7aa   :  { %v2000_v3 = vpop.f32.mrf.mxu2  ;;  %v2020_v41 = vpop.f32.mrf.mxu3 }
 0x7ab   :  { %v2001_v55 = vadd.f32 %v2000_v3, %v1546_v59  ;;  %v2021_v4 = vadd.f32 %v2020_v41, %v1587_v13  ;;  %v5521_v3 = vld [vmem:[#allocation26_spill] sm:$0xff] }
 0x7ad   :  { %2641 = vtanh.f32 %v2001_v55  ;;  %v2032_v51 = vmul.f32 0.5, %v2021_v4  ;;  %v5522_v55 = vld [vmem:[#allocation27_spill] sm:$0xff] }
 0x7ae   :  { %v2638_v7 = vpop.eup %2637 }
 0x7af   :  { %v2640_v38 = vpop.eup %2639  ;;  %v2025_v48 = vmul.f32 0.5, %v2638_v7  ;;  %2643 = vtanh.f32 %v2032_v51  ;;  %v5517_v7 = vld [vmem:[#allocation68_spill] sm:$0xff]  ;;  %v5523_v51 = vld [vmem:[#allocation38_spill] sm:$0xff] }
 0x7b0   :  { %v2029_v63 = vmul.f32 0.5, %v2640_v38  ;;  %v5519_v38 = vld [vmem:[#allocation24_spill] sm:$0xff] }
 0x7b1   :  { %v2026_v40 = vadd.f32 0.5, %v2025_v48  ;;  %v5524_v48 = vld [vmem:[#allocation43_spill] sm:$0xff] }
 0x7b2   :  { %v2030_v44 = vadd.f32 0.5, %v2029_v63  ;;  %v5525_v63 = vld [vmem:[#allocation44_spill] sm:$0xff] }
 0x7b3   :  { %v2642_v12 = vpop.eup %2641 }
 0x7b4   :  { %v2036_v36 = vmul.f32 %v2030_v44, %v4578_v0  ;;  %v2037_v53 = vmul.f32 %v2642_v12, %v2026_v40  ;;  %v5518_v0 = vld [vmem:[#allocation23_spill] sm:$0xff]  ;;  %v5526_v40 = vld [vmem:[#allocation45_spill] sm:$0xff]  ;;  %v5527_v44 = vld [vmem:[#allocation46_spill] sm:$0xff] }
 0x7b5   :  { %v2644_v42 = vpop.eup %2643  ;;  %v5528_v12 = vld [vmem:[#allocation50_spill] sm:$0xff] }
 0x7b6   :  { %v4780_v50 = vadd.f32 %v2037_v53, %v2036_v36  ;;  %v2034_v59 = vmul.f32 0.5, %v2644_v42  ;;  %v5529_v36 = vld [vmem:[#allocation47_spill] sm:$0xff]  ;;  %v5530_v53 = vld [vmem:[#allocation48_spill] sm:$0xff]  ;;  %v5531_v42 = vld [vmem:[#allocation49_spill] sm:$0xff] }
 0x7b8   :  { %2645 = vtanh.f32 %v4780_v50  ;;  %v2035_v41 = vadd.f32 0.5, %v2034_v59  ;;  %v5532_v59 = vld [vmem:[#allocation53_spill] sm:$0xff] }
 0x7be   :  { %v2646_v13 = vpop.eup %2645 }
 0x7bf   :  { %v2040_v4 = vmul.f32 %v2646_v13, %v2035_v41  ;;  %v5533_v41 = vld [vmem:[#allocation69_spill] sm:$0xff]  ;;  %v5534_v13 = vld [vmem:[#allocation51_spill] sm:$0xff] }
 0x7c1   :  { %2061 = vmatmul.f32.vlgmr.msra.gmra.mxu0 %v2040_v4  ;;  %2081 = vmatmul.f32.vlgmr.msra.gmra.mxu1 %v2040_v4 }
 0x7c2   :  { %2101 = vmatmul.f32.vlgmr.msra.gmra.mxu2 %v2040_v4  ;;  %2121 = vmatmul.f32.vlgmr.msra.gmra.mxu3 %v2040_v4  ;;  %v5535_v4 = vld [vmem:[#allocation52_spill] sm:$0xff] }
 0x7c3   :  { %2249 = vmatpush.msra.mxu0 %v4581_v22  ;;  %2269 = vmatpush.msra.mxu1 %v4584_v16 }
 0x7c4   :  { %2289 = vmatpush.msra.mxu2 %v4587_v58  ;;  %2309 = vmatpush.msra.mxu3 %v4590_v45 }
 0x7c5   :  { %2250 = vmatpush.msra.mxu0 %v4593_v28  ;;  %2270 = vmatpush.msra.mxu1 %v4596_v26 }
 0x7c6   :  { %2290 = vmatpush.msra.mxu2 %v4599_v19  ;;  %2310 = vmatpush.msra.mxu3 %v4602_v39 }
 0x7c7   :  { %2251 = vmatpush.msra.mxu0 %v4605_v57  ;;  %2271 = vmatpush.msra.mxu1 %v4608_v17 }
 0x7c8   :  { %2291 = vmatpush.msra.mxu2 %v4611_v49  ;;  %2311 = vmatpush.msra.mxu3 %v4614_v15 }
 0x7c9   :  { %2252 = vmatpush.msra.mxu0 %v4617_v24  ;;  %2272 = vmatpush.msra.mxu1 %v4620_v14 }
 0x7ca   :  { %2292 = vmatpush.msra.mxu2 %v4623_v11  ;;  %2312 = vmatpush.msra.mxu3 %v4626_v62 }
 0x7cb   :  { %2253 = vmatpush.msra.mxu0 %v4629_v60  ;;  %2273 = vmatpush.msra.mxu1 %v4632_v23 }
 0x7cc   :  { %2293 = vmatpush.msra.mxu2 %v4635_v52  ;;  %2313 = vmatpush.msra.mxu3 %v4638_v21 }
 0x7cd   :  { %2254 = vmatpush.msra.mxu0 %v4641_v61  ;;  %2274 = vmatpush.msra.mxu1 %v4644_v47 }
 0x7ce   :  { %2294 = vmatpush.msra.mxu2 %v4647_v56  ;;  %2314 = vmatpush.msra.mxu3 %v4650_v1 }
 0x7cf   :  { %2255 = vmatpush.msra.mxu0 %v4653_v2  ;;  %2275 = vmatpush.msra.mxu1 %v4656_v5 }
 0x7d0   :  { %2295 = vmatpush.msra.mxu2 %v4659_v6  ;;  %2315 = vmatpush.msra.mxu3 %v4662_v8 }
 0x7d1   :  { %2256 = vmatpush.msra.mxu0 %v4665_v20  ;;  %2276 = vmatpush.msra.mxu1 %v4668_v9 }
 0x7d2   :  { %2296 = vmatpush.msra.mxu2 %v4671_v10  ;;  %2316 = vmatpush.msra.mxu3 %v4674_v25 }
 0x7d3   :  { %2257 = vmatpush.msra.mxu0 %v4677_v18  ;;  %2277 = vmatpush.msra.mxu1 %v4680_v27 }
 0x7d4   :  { %2297 = vmatpush.msra.mxu2 %v4683_v29  ;;  %2317 = vmatpush.msra.mxu3 %v4686_v30 }
 0x7d5   :  { %2258 = vmatpush.msra.mxu0 %v4689_v31  ;;  %2278 = vmatpush.msra.mxu1 %v4692_v32 }
 0x7d6   :  { %2298 = vmatpush.msra.mxu2 %v4695_v33  ;;  %2318 = vmatpush.msra.mxu3 %v4698_v34 }
 0x7d7   :  { %2259 = vmatpush.msra.mxu0 %v4701_v35  ;;  %2279 = vmatpush.msra.mxu1 %v4704_v37 }
 0x7d8   :  { %2299 = vmatpush.msra.mxu2 %v5517_v7  ;;  %2319 = vmatpush.msra.mxu3 %v5518_v0 }
 0x7d9   :  { %2260 = vmatpush.msra.mxu0 %v5519_v38  ;;  %2280 = vmatpush.msra.mxu1 %v5520_v46  ;;  %v5544_v46 = vld [vmem:[#allocation55_spill] sm:$0xff] }
 0x7da   :  { %2300 = vmatpush.msra.mxu2 %v5521_v3  ;;  %2320 = vmatpush.msra.mxu3 %v5522_v55  ;;  %v1590_v38 = vadd.f32 %v5544_v46, %v4422_v43 }
 0x7db   :  { %2261 = vmatpush.msra.mxu0 %v5523_v51  ;;  %2281 = vmatpush.msra.mxu1 %v5524_v48  ;;  %v5542_v48 = vld [vmem:[#allocation37_spill] sm:$0xff] }
 0x7dc   :  { %2301 = vmatpush.msra.mxu2 %v5525_v63  ;;  %2321 = vmatpush.msra.mxu3 %v5526_v40  ;;  %v5536_v63 = vld [vmem:[#allocation17_spill] sm:$0xff]  ;;  %v5537_v40 = vld [vmem:[#allocation54_spill] sm:$0xff] }
 0x7dd   :  { %2262 = vmatpush.msra.mxu0 %v5527_v44  ;;  %2282 = vmatpush.msra.mxu1 %v5528_v12  ;;  %v4846_v44 = vld [vmem:[#allocation9 + $0x218] sm:$0xff] }
 0x7de   :  { %2302 = vmatpush.msra.mxu2 %v5529_v36  ;;  %2322 = vmatpush.msra.mxu3 %v5530_v53  ;;  %5538 = vst [vmem:[#allocation41_spill] sm:$0xff] %v4846_v44  ;;  %v5539_v36 = vld [vmem:[#allocation40_spill] sm:$0xff] }
 0x7df   :  { %2263 = vmatpush.msra.mxu0 %v5531_v42  ;;  %2283 = vmatpush.msra.mxu1 %v5532_v59  ;;  %v5540_v53 = vld [vmem:[#allocation36_spill] sm:$0xff]  ;;  %v5541_v42 = vld [vmem:[#allocation25_spill] sm:$0xff] }
 0x7e0   :  { %2303 = vmatpush.msra.mxu2 %v5533_v41  ;;  %2323 = vmatpush.msra.mxu3 %v5534_v13  ;;  %v1467_v12 = vadd.f32 %v5540_v53, %v5539_v36  ;;  %v1508_v59 = vadd.f32 %v5542_v48, %v5541_v42 }
 0x7e1   :  { %2264 = vmatpush.msra.mxu0 %v5535_v4  ;;  %2284 = vmatpush.msra.mxu1 %v5536_v63  ;;  %v5543_v63 = vld [vmem:[#allocation65_spill] sm:$0xff] }
 0x7e2   :  { %2304 = vmatpush.msra.mxu2 %v5537_v40  ;;  %2324 = vmatpush.msra.mxu3 %v4846_v44  ;;  %v1549_v40 = vadd.f32 %v5543_v63, %v5461_v54 }
 0x83e   :  { %v2062_v51 = vpop.f32.mrf.mxu0  ;;  %v2082_v41 = vpop.f32.mrf.mxu1 }
 0x83f   :  { %v2063_v55 = vadd.f32 %v2062_v51, %v1467_v12  ;;  %v2083_v13 = vadd.f32 %v2082_v41, %v1508_v59 }
 0x841   :  { %v2125_v3 = vmul.f32 0.5, %v2063_v55  ;;  %v2129_v4 = vmul.f32 0.5, %v2083_v13 }
 0x843   :  { %2647 = vtanh.f32 %v2125_v3 }
 0x844   :  { %2649 = vtanh.f32 %v2129_v4 }
 0x845   :  { %v2102_v44 = vpop.f32.mrf.mxu2  ;;  %v2122_v0 = vpop.f32.mrf.mxu3 }
 0x846   :  { %v2103_v53 = vadd.f32 %v2102_v44, %v1549_v40  ;;  %v2123_v36 = vadd.f32 %v2122_v0, %v1590_v38 }
 0x848   :  { %2651 = vtanh.f32 %v2103_v53  ;;  %v2134_v48 = vmul.f32 0.5, %v2123_v36 }
 0x849   :  { %v2648_v42 = vpop.eup %2647 }
 0x84a   :  { %v2650_v7 = vpop.eup %2649  ;;  %v2127_v51 = vmul.f32 0.5, %v2648_v42  ;;  %2653 = vtanh.f32 %v2134_v48 }
 0x84b   :  { %v2131_v12 = vmul.f32 0.5, %v2650_v7 }
 0x84c   :  { %v2128_v55 = vadd.f32 0.5, %v2127_v51 }
 0x84d   :  { %v2132_v3 = vadd.f32 0.5, %v2131_v12 }
 0x84e   :  { %v2652_v59 = vpop.eup %2651 }
 0x84f   :  { %v2138_v63 = vmul.f32 %v2132_v3, %v4780_v50  ;;  %v2139_v41 = vmul.f32 %v2652_v59, %v2128_v55 }
 0x850   :  { %v2654_v13 = vpop.eup %2653 }
 0x851   :  { %v4858_v46 = vadd.f32 %v2139_v41, %v2138_v63  ;;  %v2136_v40 = vmul.f32 0.5, %v2654_v13 }
 0x853   :  { %2655 = vtanh.f32 %v4858_v46  ;;  %v2137_v0 = vadd.f32 0.5, %v2136_v40 }
 0x859   :  { %v2656_v38 = vpop.eup %2655 }
 0x85a   :  { %v2142_v44 = vmul.f32 %v2656_v38, %v2137_v0  ;;  %v5573_v0 = vld [vmem:[#allocation59_spill] sm:$0xff] }
 0x85c   :  { %2163 = vmatmul.f32.vlgmr.msrb.gmra.mxu0 %v2142_v44  ;;  %2183 = vmatmul.f32.vlgmr.msrb.gmra.mxu1 %v2142_v44 }
 0x85d   :  { %2203 = vmatmul.f32.vlgmr.msrb.gmra.mxu2 %v2142_v44  ;;  %2223 = vmatmul.f32.vlgmr.msrb.gmra.mxu3 %v2142_v44  ;;  %v5574_v44 = vld [vmem:[#allocation60_spill] sm:$0xff] }
 0x85e   :  { %2351 = vmatpush.msrb.mxu0 %v4581_v22  ;;  %2371 = vmatpush.msrb.mxu1 %v4584_v16  ;;  %v5545_v22 = vld [vmem:[#allocation68_spill] sm:$0xff]  ;;  %v5546_v16 = vld [vmem:[#allocation23_spill] sm:$0xff] }
 0x85f   :  { %2391 = vmatpush.msrb.mxu2 %v4587_v58  ;;  %2411 = vmatpush.msrb.mxu3 %v4590_v45  ;;  %v5547_v58 = vld [vmem:[#allocation24_spill] sm:$0xff]  ;;  %v5548_v45 = vld [vmem:[#allocation67_spill] sm:$0xff] }
 0x860   :  { %2352 = vmatpush.msrb.mxu0 %v4593_v28  ;;  %2372 = vmatpush.msrb.mxu1 %v4596_v26  ;;  %v5549_v28 = vld [vmem:[#allocation26_spill] sm:$0xff]  ;;  %v5550_v26 = vld [vmem:[#allocation27_spill] sm:$0xff] }
 0x861   :  { %2392 = vmatpush.msrb.mxu2 %v4599_v19  ;;  %2412 = vmatpush.msrb.mxu3 %v4602_v39  ;;  %v5551_v19 = vld [vmem:[#allocation38_spill] sm:$0xff]  ;;  %v5552_v39 = vld [vmem:[#allocation43_spill] sm:$0xff] }
 0x862   :  { %2353 = vmatpush.msrb.mxu0 %v4605_v57  ;;  %2373 = vmatpush.msrb.mxu1 %v4608_v17  ;;  %v5553_v57 = vld [vmem:[#allocation44_spill] sm:$0xff]  ;;  %v5554_v17 = vld [vmem:[#allocation45_spill] sm:$0xff] }
 0x863   :  { %2393 = vmatpush.msrb.mxu2 %v4611_v49  ;;  %2413 = vmatpush.msrb.mxu3 %v4614_v15  ;;  %v5555_v49 = vld [vmem:[#allocation46_spill] sm:$0xff] }
 0x864   :  { %2354 = vmatpush.msrb.mxu0 %v4617_v24  ;;  %2374 = vmatpush.msrb.mxu1 %v4620_v14  ;;  %v5556_v15 = vld [vmem:[#allocation50_spill] sm:$0xff]  ;;  %v5557_v24 = vld [vmem:[#allocation47_spill] sm:$0xff]  ;;  %v5558_v14 = vld [vmem:[#allocation48_spill] sm:$0xff] }
 0x865   :  { %2394 = vmatpush.msrb.mxu2 %v4623_v11  ;;  %2414 = vmatpush.msrb.mxu3 %v4626_v62  ;;  %v5559_v11 = vld [vmem:[#allocation49_spill] sm:$0xff] }
 0x866   :  { %2355 = vmatpush.msrb.mxu0 %v4629_v60  ;;  %2375 = vmatpush.msrb.mxu1 %v4632_v23  ;;  %v5560_v62 = vld [vmem:[#allocation53_spill] sm:$0xff]  ;;  %v5562_v23 = vld [vmem:[#allocation51_spill] sm:$0xff] }
 0x867   :  { %2395 = vmatpush.msrb.mxu2 %v4635_v52  ;;  %2415 = vmatpush.msrb.mxu3 %v4638_v21  ;;  %v5561_v60 = vld [vmem:[#allocation69_spill] sm:$0xff]  ;;  %v5563_v52 = vld [vmem:[#allocation52_spill] sm:$0xff] }
 0x868   :  { %2356 = vmatpush.msrb.mxu0 %v4641_v61  ;;  %2376 = vmatpush.msrb.mxu1 %v4644_v47  ;;  %v5564_v21 = vld [vmem:[#allocation17_spill] sm:$0xff]  ;;  %v5565_v61 = vld [vmem:[#allocation54_spill] sm:$0xff] }
 0x869   :  { %2396 = vmatpush.msrb.mxu2 %v4647_v56  ;;  %2416 = vmatpush.msrb.mxu3 %v4650_v1  ;;  %v5566_v47 = vld [vmem:[#allocation41_spill] sm:$0xff]  ;;  %v5567_v56 = vld [vmem:[#allocation40_spill] sm:$0xff]  ;;  %v5568_v1 = vld [vmem:[#allocation66_spill] sm:$0xff] }
 0x86a   :  { %2357 = vmatpush.msrb.mxu0 %v4653_v2  ;;  %2377 = vmatpush.msrb.mxu1 %v4656_v5  ;;  %v1470_v2 = vadd.f32 %v5568_v1, %v5567_v56  ;;  %v5569_v5 = vld [vmem:[#allocation25_spill] sm:$0xff]  ;;  %v1473_v38 = vadd.f32 %v5573_v0, %v5567_v56  ;;  %v5579_v0 = vld [vmem:[#allocation63_spill] sm:$0xff] }
 0x86b   :  { %2397 = vmatpush.msrb.mxu2 %v4659_v6  ;;  %2417 = vmatpush.msrb.mxu3 %v4662_v8  ;;  %v5570_v6 = vld [vmem:[#allocation56_spill] sm:$0xff] }
 0x86c   :  { %2358 = vmatpush.msrb.mxu0 %v4665_v20  ;;  %2378 = vmatpush.msrb.mxu1 %v4668_v9  ;;  %v1511_v8 = vadd.f32 %v5570_v6, %v5569_v5 }
 0x86d   :  { %2398 = vmatpush.msrb.mxu2 %v4671_v10  ;;  %2418 = vmatpush.msrb.mxu3 %v4674_v25 }
 0x86e   :  { %2359 = vmatpush.msrb.mxu0 %v4677_v18  ;;  %2379 = vmatpush.msrb.mxu1 %v4680_v27 }
 0x86f   :  { %2399 = vmatpush.msrb.mxu2 %v4683_v29  ;;  %2419 = vmatpush.msrb.mxu3 %v4686_v30  ;;  %v5571_v29 = vld [vmem:[#allocation57_spill] sm:$0xff] }
 0x870   :  { %2360 = vmatpush.msrb.mxu0 %v4689_v31  ;;  %2380 = vmatpush.msrb.mxu1 %v4692_v32  ;;  %v1552_v30 = vadd.f32 %v5571_v29, %v5461_v54  ;;  %v5572_v31 = vld [vmem:[#allocation58_spill] sm:$0xff]  ;;  %v2462_v29 = vld [vmem:[#allocation10 + $0x68] sm:$0xff] }
 0x871   :  { %2400 = vmatpush.msrb.mxu2 %v4695_v33  ;;  %2420 = vmatpush.msrb.mxu3 %v4698_v34  ;;  %v1593_v32 = vadd.f32 %v5572_v31, %v4422_v43  ;;  %v2460_v31 = vld [vmem:[#allocation10 + $0x58] sm:$0xff] }
 0x872   :  { %2361 = vmatpush.msrb.mxu0 %v4701_v35  ;;  %2381 = vmatpush.msrb.mxu1 %v4704_v37 }
 0x873   :  { %2401 = vmatpush.msrb.mxu2 %v5545_v22  ;;  %2421 = vmatpush.msrb.mxu3 %v5546_v16  ;;  %v1514_v22 = vadd.f32 %v5574_v44, %v5569_v5  ;;  %v2464_v16 = vld [vmem:[#allocation10 + $0x78] sm:$0xff]  ;;  %v5580_v44 = vld [vmem:[#allocation64_spill] sm:$0xff] }
 0x874   :  { %2362 = vmatpush.msrb.mxu0 %v5547_v58  ;;  %2382 = vmatpush.msrb.mxu1 %v5548_v45 }
 0x875   :  { %2402 = vmatpush.msrb.mxu2 %v5549_v28  ;;  %2422 = vmatpush.msrb.mxu3 %v5550_v26 }
 0x876   :  { %2363 = vmatpush.msrb.mxu0 %v5551_v19  ;;  %2383 = vmatpush.msrb.mxu1 %v5552_v39  ;;  %v5575_v39 = vld [vmem:[#allocation61_spill] sm:$0xff] }
 0x877   :  { %2403 = vmatpush.msrb.mxu2 %v5553_v57  ;;  %2423 = vmatpush.msrb.mxu3 %v5554_v17  ;;  %v1555_v57 = vadd.f32 %v5575_v39, %v5461_v54  ;;  %v5576_v17 = vld [vmem:[#allocation62_spill] sm:$0xff] }
 0x878   :  { %2364 = vmatpush.msrb.mxu0 %v5555_v49  ;;  %2384 = vmatpush.msrb.mxu1 %v5556_v15  ;;  %v1596_v49 = vadd.f32 %v5576_v17, %v4422_v43 }
 0x879   :  { %2404 = vmatpush.msrb.mxu2 %v5557_v24  ;;  %2424 = vmatpush.msrb.mxu3 %v5558_v14 }
 0x87a   :  { %2365 = vmatpush.msrb.mxu0 %v5559_v11  ;;  %2385 = vmatpush.msrb.mxu1 %v5560_v62 }
 0x87b   :  { %2405 = vmatpush.msrb.mxu2 %v5561_v60  ;;  %2425 = vmatpush.msrb.mxu3 %v5562_v23 }
 0x87c   :  { %2366 = vmatpush.msrb.mxu0 %v5563_v52  ;;  %2386 = vmatpush.msrb.mxu1 %v5564_v21 }
 0x87d   :  { %2406 = vmatpush.msrb.mxu2 %v5565_v61  ;;  %2426 = vmatpush.msrb.mxu3 %v5566_v47 }
 0x8d9   :  { %v2164_v20 = vpop.f32.mrf.mxu0  ;;  %v2184_v9 = vpop.f32.mrf.mxu1 }
 0x8da   :  { %v2165_v10 = vadd.f32 %v2164_v20, %v1470_v2  ;;  %v2185_v25 = vadd.f32 %v2184_v9, %v1511_v8 }
 0x8dc   :  { %v2227_v18 = vmul.f32 0.5, %v2165_v10  ;;  %v2231_v27 = vmul.f32 0.5, %v2185_v25 }
 0x8de   :  { %2657 = vtanh.f32 %v2227_v18 }
 0x8df   :  { %2659 = vtanh.f32 %v2231_v27  ;;  %v2463_v27 = vld [vmem:[#allocation10 + $0x70] sm:$0xff] }
 0x8e0   :  { %v2204_v33 = vpop.f32.mrf.mxu2  ;;  %v2224_v34 = vpop.f32.mrf.mxu3 }
 0x8e1   :  { %v2205_v35 = vadd.f32 %v2204_v33, %v1552_v30  ;;  %v2225_v37 = vadd.f32 %v2224_v34, %v1593_v32  ;;  %v2461_v30 = vld [vmem:[#allocation10 + $0x60] sm:$0xff]  ;;  %v2459_v32 = vld [vmem:[#allocation10 + $0x50] sm:$0xff]  ;;  %v2458_v33 = vld [vmem:[#allocation10 + $0x48] sm:$0xff] }
 0x8e2   :  { %v2457_v34 = vld [vmem:[#allocation10 + $0x40] sm:$0xff] }
 0x8e3   :  { %2661 = vtanh.f32 %v2205_v35  ;;  %v2236_v50 = vmul.f32 0.5, %v2225_v37  ;;  %v2456_v35 = vld [vmem:[#allocation10 + $0x38] sm:$0xff]  ;;  %v2455_v37 = vld [vmem:[#allocation10 + $0x30] sm:$0xff] }
 0x8e4   :  { %v2658_v7 = vpop.eup %2657 }
 0x8e5   :  { %v2660_v36 = vpop.eup %2659  ;;  %v2229_v42 = vmul.f32 0.5, %v2658_v7  ;;  %2663 = vtanh.f32 %v2236_v50  ;;  %v2454_v50 = vld [vmem:[#allocation10 + $0x28] sm:$0xff]  ;;  %v2453_v7 = vld [vmem:[#allocation10 + $0x20] sm:$0xff] }
 0x8e6   :  { %v2233_v4 = vmul.f32 0.5, %v2660_v36  ;;  %v2452_v36 = vld [vmem:[#allocation10 + $0x18] sm:$0xff] }
 0x8e7   :  { %v2230_v53 = vadd.f32 0.5, %v2229_v42  ;;  %v2451_v42 = vld [vmem:[#allocation10 + $0x10] sm:$0xff] }
 0x8e8   :  { %v2234_v48 = vadd.f32 0.5, %v2233_v4  ;;  %v2450_v4 = vld [vmem:[#allocation10 + $0x8] sm:$0xff] }
 0x8e9   :  { %v2662_v51 = vpop.eup %2661 }
 0x8ea   :  { %v2240_v12 = vmul.f32 %v2234_v48, %v4858_v46  ;;  %v2241_v55 = vmul.f32 %v2662_v51, %v2230_v53  ;;  %v2449_v53 = vld [vmem:[#allocation10] sm:$0xff]  ;;  %v5577_v48 = vld [vmem:[#allocation70_spill] sm:$0xff] }
 0x8eb   :  { %v2664_v3 = vpop.eup %2663  ;;  %v1476_v51 = vadd.f32 %v5577_v48, %v5567_v56 }
 0x8ec   :  { %v2242_v59 = vadd.f32 %v2241_v55, %v2240_v12  ;;  %v2238_v63 = vmul.f32 0.5, %v2664_v3  ;;  %v5578_v12 = vld [vmem:[#allocation39_spill] sm:$0xff] }
 0x8ed   :  { %v1517_v55 = vadd.f32 %v5578_v12, %v5569_v5 }
 0x8ee   :  { %2665 = vtanh.f32 %v2242_v59  ;;  %v2239_v41 = vadd.f32 0.5, %v2238_v63 }
 0x8f4   :  { %v2666_v13 = vpop.eup %2665 }
 0x8f5   :  { %v2244_v40 = vmul.f32 %v2666_v13, %v2239_v41 }
 0x8f7   :  { %2265 = vmatmul.f32.vlgmr.msra.gmra.mxu0 %v2244_v40  ;;  %2285 = vmatmul.f32.vlgmr.msra.gmra.mxu1 %v2244_v40 }
 0x8f8   :  { %2305 = vmatmul.f32.vlgmr.msra.gmra.mxu2 %v2244_v40  ;;  %2325 = vmatmul.f32.vlgmr.msra.gmra.mxu3 %v2244_v40 }
 0x8f9   :  { %2469 = vmatpush.msra.mxu0 %v2464_v16 }
 0x8fb   :  { %2470 = vmatpush.msra.mxu0 %v2463_v27 }
 0x8fd   :  { %2471 = vmatpush.msra.mxu0 %v2462_v29 }
 0x8ff   :  { %2472 = vmatpush.msra.mxu0 %v2461_v30 }
 0x901   :  { %2473 = vmatpush.msra.mxu0 %v2460_v31 }
 0x903   :  { %2474 = vmatpush.msra.mxu0 %v2459_v32 }
 0x905   :  { %2475 = vmatpush.msra.mxu0 %v2458_v33 }
 0x907   :  { %2476 = vmatpush.msra.mxu0 %v2457_v34 }
 0x909   :  { %2477 = vmatpush.msra.mxu0 %v2456_v35 }
 0x90b   :  { %2478 = vmatpush.msra.mxu0 %v2455_v37 }
 0x90d   :  { %2479 = vmatpush.msra.mxu0 %v2454_v50 }
 0x90f   :  { %2480 = vmatpush.msra.mxu0 %v2453_v7 }
 0x911   :  { %2481 = vmatpush.msra.mxu0 %v2452_v36 }
 0x913   :  { %2482 = vmatpush.msra.mxu0 %v2451_v42 }
 0x915   :  { %2483 = vmatpush.msra.mxu0 %v2450_v4 }
 0x917   :  { %2484 = vmatpush.msra.mxu0 %v2449_v53 }
 0x974   :  { %v2266_v46 = vpop.f32.mrf.mxu0  ;;  %v2286_v58 = vpop.f32.mrf.mxu1 }
 0x975   :  { %v2267_v45 = vadd.f32 %v2266_v46, %v1473_v38  ;;  %v2287_v28 = vadd.f32 %v2286_v58, %v1514_v22  ;;  %v1558_v38 = vadd.f32 %v5579_v0, %v5461_v54  ;;  %v1599_v22 = vadd.f32 %v5580_v44, %v4422_v43 }
 0x977   :  { %v2329_v26 = vmul.f32 0.5, %v2267_v45  ;;  %v2333_v19 = vmul.f32 0.5, %v2287_v28 }
 0x979   :  { %2667 = vtanh.f32 %v2329_v26 }
 0x97a   :  { %2669 = vtanh.f32 %v2333_v19 }
 0x97b   :  { %v2306_v15 = vpop.f32.mrf.mxu2  ;;  %v2326_v24 = vpop.f32.mrf.mxu3 }
 0x97c   :  { %v2307_v14 = vadd.f32 %v2306_v15, %v1555_v57  ;;  %v2327_v11 = vadd.f32 %v2326_v24, %v1596_v49 }
 0x97e   :  { %2671 = vtanh.f32 %v2307_v14  ;;  %v2338_v62 = vmul.f32 0.5, %v2327_v11 }
 0x97f   :  { %v2668_v60 = vpop.eup %2667 }
 0x980   :  { %v2670_v23 = vpop.eup %2669  ;;  %v2331_v52 = vmul.f32 0.5, %v2668_v60  ;;  %2673 = vtanh.f32 %v2338_v62  ;;  %v2526_v60 = vld [vmem:[%s4967_s7] ss:$0 sm:$0xff] }
 0x981   :  { %v2335_v21 = vmul.f32 0.5, %v2670_v23 }
 0x982   :  { %v2332_v61 = vadd.f32 0.5, %v2331_v52 }
 0x983   :  { %v2336_v47 = vadd.f32 0.5, %v2335_v21 }
 0x984   :  { %v2672_v1 = vpop.eup %2671 }
 0x985   :  { %v2342_v2 = vmul.f32 %v2336_v47, %v2242_v59  ;;  %v2343_v6 = vmul.f32 %v2672_v1, %v2332_v61 }
 0x986   :  { %v2674_v8 = vpop.eup %2673 }
 0x987   :  { %v4942_v20 = vadd.f32 %v2343_v6, %v2342_v2  ;;  %v2340_v9 = vmul.f32 0.5, %v2674_v8 }
 0x989   :  { %2675 = vtanh.f32 %v4942_v20  ;;  %v2341_v10 = vadd.f32 0.5, %v2340_v9 }
 0x98f   :  { %v2676_v25 = vpop.eup %2675 }
 0x990   :  { %v2346_v18 = vmul.f32 %v2676_v25, %v2341_v10 }
 0x992   :  { %2367 = vmatmul.f32.vlgmr.msrb.gmra.mxu0 %v2346_v18  ;;  %2387 = vmatmul.f32.vlgmr.msrb.gmra.mxu1 %v2346_v18 }
 0x993   :  { %2407 = vmatmul.f32.vlgmr.msrb.gmra.mxu2 %v2346_v18  ;;  %2427 = vmatmul.f32.vlgmr.msrb.gmra.mxu3 %v2346_v18 }
 0xa0f   :  { %v2368_v3 = vpop.f32.mrf.mxu0  ;;  %v2388_v59 = vpop.f32.mrf.mxu1 }
 0xa10   :  { %v2369_v63 = vadd.f32 %v2368_v3, %v1476_v51  ;;  %v2389_v41 = vadd.f32 %v2388_v59, %v1517_v55 }
 0xa12   :  { %v2431_v13 = vmul.f32 0.5, %v2369_v63  ;;  %v2435_v40 = vmul.f32 0.5, %v2389_v41 }
 0xa14   :  { %2677 = vtanh.f32 %v2431_v13 }
 0xa15   :  { %2679 = vtanh.f32 %v2435_v40 }
 0xa16   :  { %v2408_v16 = vpop.f32.mrf.mxu2  ;;  %v2428_v46 = vpop.f32.mrf.mxu3 }
 0xa17   :  { %v2409_v56 = vadd.f32 %v2408_v16, %v1558_v38  ;;  %v2429_v58 = vadd.f32 %v2428_v46, %v1599_v22 }
 0xa19   :  { %2681 = vtanh.f32 %v2409_v56  ;;  %v2440_v5 = vmul.f32 0.5, %v2429_v58 }
 0xa1a   :  { %v2678_v45 = vpop.eup %2677 }
 0xa1b   :  { %v2680_v28 = vpop.eup %2679  ;;  %v2433_v26 = vmul.f32 0.5, %v2678_v45  ;;  %2683 = vtanh.f32 %v2440_v5 }
 0xa1c   :  { %v2437_v19 = vmul.f32 0.5, %v2680_v28 }
 0xa1d   :  { %v2434_v39 = vadd.f32 0.5, %v2433_v26 }
 0xa1e   :  { %v2438_v57 = vadd.f32 0.5, %v2437_v19 }
 0xa1f   :  { %v2682_v17 = vpop.eup %2681 }
 0xa20   :  { %v2444_v54 = vmul.f32 %v2438_v57, %v4942_v20  ;;  %v2445_v49 = vmul.f32 %v2682_v17, %v2434_v39 }
 0xa21   :  { %v2684_v15 = vpop.eup %2683 }
 0xa22   :  { %v2446_v43 = vadd.f32 %v2445_v49, %v2444_v54  ;;  %v2442_v24 = vmul.f32 0.5, %v2684_v15 }
 0xa24   :  { %2685 = vtanh.f32 %v2446_v43  ;;  %v2443_v14 = vadd.f32 0.5, %v2442_v24 }
 0xa2a   :  { %v2686_v11 = vpop.eup %2685 }
 0xa2b   :  { %v2448_v62 = vmul.f32 %v2686_v11, %v2443_v14 }
 0xa2d   :  { %2485 = vmatmul.f32.vlgmr.msra.gmra.mxu0 %v2448_v62 }
 0xaaa   :  { %v2486_v23 = vpop.f32.mrf.mxu0 }
 0xaab   :  { %v2487_v52 = vadd.f32 %v2526_v60, %v2486_v23 }
 0xaad   :  { %2489 = vst [vmem:[#allocation12] sm:$0xff] %v2487_v52 }
 0xaae   :  { %2500 = dma.vmem_to_hbm [thread:$0]  %s2496_s22, 128, %s2498_s24, [#allocation6]  }
 0xaaf   :  { %2941 = dma.done.wait [#allocation6], 128  }
 0xab0   :  { %2942 = vsyncadd [#allocation6], 4294967168 }
 0xab1   :  { %2505 = vsyncpa [#allocation5], 1 }
 0xab2   :  { %2506 = vsyncpa [#allocation8], 1 }
 0xab3   :  { %2507 = vsyncpa [#allocation11], 1 }
 0xab4   :  { %2508 = vsyncpa [#allocation6], 1 }

// kernel: _rnn_forward_impl.1
= control target key start
LH: loop header
LB: loop body
LE: loop exit
PB: predicated region body
PF: predicated region fallthrough
CT: control target
= control target key end

     0   :  { %13 = vsyncpa [#allocation5], 0  ;;  %s4960_s0 = inlined_call_operand.vmem [shape: f32[8,8,128], index: 0, kind: input, shape index: {}]   ;;  %s4961_s1 = inlined_call_operand.hbm [shape: f32[128,512], index: 1, kind: input, shape index: {}]   ;;  %s4962_s2 = inlined_call_operand.vmem [shape: f32[1,512], index: 2, kind: input, shape index: {}]   ;;  %s4963_s3 = inlined_call_operand.hbm [shape: f32[1,128,512], index: 3, kind: input, shape index: {}]   ;;  %s4964_s4 = inlined_call_operand.vmem [shape: f32[1,1,512], index: 4, kind: input, shape index: {}]   ;;  %s4965_s5 = inlined_call_operand.hbm [shape: f32[2,128,512], index: 5, kind: input, shape index: {}]   ;;  %s4966_s6 = inlined_call_operand.hbm [shape: f32[128,128], index: 6, kind: input, shape index: {}]   ;;  %s4967_s7 = inlined_call_operand.vmem [shape: f32[1,128], index: 7, kind: input, shape index: {}]   ;;  %s4968_s8 = inlined_call_operand.hbm [shape: f32[8,128], index: 8, kind: output, shape index: {}]  }
   0x1   :  { %14 = vsyncpa [#allocation8], 0 }
   0x2   :  { %15 = vsyncpa [#allocation11], 0 }
   0x3   :  { %16 = vsyncpa [#allocation6], 0  ;;  %s38_s29 = sshll.u32 %s4963_s3, 4  ;;  %s2943_s30 = smov [#allocation7]   ;;  %s39_s29 = int_to_ptr.hbm [resolvable:$true] %s38_s29 }
   0x4   :  { %s40_s9 = sshll.u32 %s2943_s30, 4  ;;  %s23_s12 = sshll.u32 %s4961_s1, 4  ;;  %s41_s9 = int_to_ptr.vmem [resolvable:$true] %s40_s9  ;;  %s24_s12 = int_to_ptr.hbm [resolvable:$true] %s23_s12 }
   0x5   :  { %s2944_s13 = smov 512   ;;  %s2945_s14 = smov 32  }
   0x6   :  { %46 = dma.hbm_to_vmem [thread:$0]  %s39_s29, 8192, %s41_s9, [#allocation8], %s2944_s13, %s2944_s13, %s2945_s14  }
   0x7   :  { %s2946_s15 = smov [#allocation4]   ;;  %s53_s19 = sshll.u32 %s4965_s5, 4  ;;  %s54_s19 = int_to_ptr.hbm [resolvable:$true] %s53_s19 }
   0x8   :  { %s25_s16 = sshll.u32 %s2946_s15, 4  ;;  %s66_s21 = sshll.u32 %s4966_s6, 4  ;;  %s26_s16 = int_to_ptr.vmem [resolvable:$true] %s25_s16  ;;  %s67_s21 = int_to_ptr.hbm [resolvable:$true] %s66_s21 }
   0x9   :  { %31 = dma.hbm_to_vmem [thread:$0]  %s24_s12, 8192, %s26_s16, [#allocation5], %s2944_s13, %s2944_s13, %s2945_s14  }
   0xa   :  { %s2947_s22 = smov [#allocation9]   ;;  %s2948_s1 = smov [#allocation10]  }
   0xb   :  { %s55_s23 = sshll.u32 %s2947_s22, 4  ;;  %s68_s24 = sshll.u32 %s2948_s1, 4  ;;  %s56_s23 = int_to_ptr.vmem [resolvable:$true] %s55_s23  ;;  %s69_s24 = int_to_ptr.vmem [resolvable:$true] %s68_s24 }
   0xc   :  { %61 = dma.hbm_to_vmem [thread:$0]  %s54_s19, 16384, %s56_s23, [#allocation8], %s2944_s13, %s2944_s13, %s2945_s14  }
   0xd   :  { %s2949_s25 = smov 128   ;;  %s2950_s26 = smov 8  }
   0xe   :  { %74 = dma.hbm_to_vmem [thread:$0]  %s67_s21, 2048, %s69_s24, [#allocation11], %s2949_s25, %s2949_s25, %s2950_s26  }
   0xf   :  { %2935 = dma.done.wait [#allocation5], 8192  }
  0x10   :  { %2936 = vsyncadd [#allocation5], 4294959104 }
  0x11   :  { %2937 = dma.done.wait [#allocation8], 24576  }
  0x12   :  { %2938 = vsyncadd [#allocation8], 4294942720 }
  0x13   :  { %2939 = dma.done.wait [#allocation11], 2048  }
  0x14   :  { %2940 = vsyncadd [#allocation11], 4294965248  ;;  %v153_v0 = vld [vmem:[#allocation4 + $0x1e0] sm:$0xff]  ;;  %v154_v1 = vld [vmem:[#allocation4 + $0x1e8] sm:$0xff]  ;;  %s2952_s21 = smov [#allocation12]   ;;  %s2497_s24 = sshll.u32 %s4968_s8, 4  ;;  %s2498_s24 = int_to_ptr.hbm [resolvable:$true] %s2497_s24 }
  0x15   :  { %v155_v2 = vld [vmem:[#allocation4 + $0x1f0] sm:$0xff]  ;;  %239 = vmatpush.msra.mxu0 %v153_v0  ;;  %280 = vmatpush.msra.mxu1 %v154_v1  ;;  %v156_v3 = vld [vmem:[#allocation4 + $0x1f8] sm:$0xff]  ;;  %v149_v4 = vld [vmem:[#allocation4 + $0x1c0] sm:$0xff]  ;;  %s2495_s22 = sshll.u32 %s2952_s21, 4  ;;  %s2496_s22 = int_to_ptr.vmem [resolvable:$true] %s2495_s22 }
  0x16   :  { %v150_v5 = vld [vmem:[#allocation4 + $0x1c8] sm:$0xff]  ;;  %321 = vmatpush.msra.mxu2 %v155_v2  ;;  %362 = vmatpush.msra.mxu3 %v156_v3  ;;  %v151_v6 = vld [vmem:[#allocation4 + $0x1d0] sm:$0xff]  ;;  %v152_v7 = vld [vmem:[#allocation4 + $0x1d8] sm:$0xff] }
  0x17   :  { %v145_v8 = vld [vmem:[#allocation4 + $0x1a0] sm:$0xff]  ;;  %240 = vmatpush.msra.mxu0 %v149_v4  ;;  %281 = vmatpush.msra.mxu1 %v150_v5  ;;  %v146_v9 = vld [vmem:[#allocation4 + $0x1a8] sm:$0xff]  ;;  %v147_v10 = vld [vmem:[#allocation4 + $0x1b0] sm:$0xff] }
  0x18   :  { %v148_v11 = vld [vmem:[#allocation4 + $0x1b8] sm:$0xff]  ;;  %322 = vmatpush.msra.mxu2 %v151_v6  ;;  %363 = vmatpush.msra.mxu3 %v152_v7  ;;  %v141_v12 = vld [vmem:[#allocation4 + $0x180] sm:$0xff]  ;;  %v142_v13 = vld [vmem:[#allocation4 + $0x188] sm:$0xff] }
  0x19   :  { %241 = vmatpush.msra.mxu0 %v145_v8  ;;  %282 = vmatpush.msra.mxu1 %v146_v9  ;;  %v143_v14 = vld [vmem:[#allocation4 + $0x190] sm:$0xff]  ;;  %v144_v15 = vld [vmem:[#allocation4 + $0x198] sm:$0xff]  ;;  %v137_v16 = vld [vmem:[#allocation4 + $0x160] sm:$0xff] }
  0x1a   :  { %323 = vmatpush.msra.mxu2 %v147_v10  ;;  %364 = vmatpush.msra.mxu3 %v148_v11  ;;  %v138_v17 = vld [vmem:[#allocation4 + $0x168] sm:$0xff]  ;;  %v139_v18 = vld [vmem:[#allocation4 + $0x170] sm:$0xff]  ;;  %v140_v19 = vld [vmem:[#allocation4 + $0x178] sm:$0xff] }
  0x1b   :  { %242 = vmatpush.msra.mxu0 %v141_v12  ;;  %283 = vmatpush.msra.mxu1 %v142_v13  ;;  %v133_v20 = vld [vmem:[#allocation4 + $0x140] sm:$0xff]  ;;  %v134_v21 = vld [vmem:[#allocation4 + $0x148] sm:$0xff]  ;;  %v135_v22 = vld [vmem:[#allocation4 + $0x150] sm:$0xff] }
  0x1c   :  { %324 = vmatpush.msra.mxu2 %v143_v14  ;;  %365 = vmatpush.msra.mxu3 %v144_v15  ;;  %v136_v23 = vld [vmem:[#allocation4 + $0x158] sm:$0xff]  ;;  %v129_v24 = vld [vmem:[#allocation4 + $0x120] sm:$0xff]  ;;  %v130_v25 = vld [vmem:[#allocation4 + $0x128] sm:$0xff] }
  0x1d   :  { %243 = vmatpush.msra.mxu0 %v137_v16  ;;  %284 = vmatpush.msra.mxu1 %v138_v17  ;;  %v131_v26 = vld [vmem:[#allocation4 + $0x130] sm:$0xff]  ;;  %v132_v27 = vld [vmem:[#allocation4 + $0x138] sm:$0xff]  ;;  %v125_v28 = vld [vmem:[#allocation4 + $0x100] sm:$0xff] }
  0x1e   :  { %325 = vmatpush.msra.mxu2 %v139_v18  ;;  %366 = vmatpush.msra.mxu3 %v140_v19  ;;  %v126_v29 = vld [vmem:[#allocation4 + $0x108] sm:$0xff]  ;;  %v127_v30 = vld [vmem:[#allocation4 + $0x110] sm:$0xff]  ;;  %v128_v31 = vld [vmem:[#allocation4 + $0x118] sm:$0xff] }
  0x1f   :  { %244 = vmatpush.msra.mxu0 %v133_v20  ;;  %285 = vmatpush.msra.mxu1 %v134_v21  ;;  %v121_v32 = vld [vmem:[#allocation4 + $0xe0] sm:$0xff]  ;;  %v122_v33 = vld [vmem:[#allocation4 + $0xe8] sm:$0xff]  ;;  %v123_v34 = vld [vmem:[#allocation4 + $0xf0] sm:$0xff] }
  0x20   :  { %326 = vmatpush.msra.mxu2 %v135_v22  ;;  %367 = vmatpush.msra.mxu3 %v136_v23  ;;  %v124_v35 = vld [vmem:[#allocation4 + $0xf8] sm:$0xff]  ;;  %v117_v36 = vld [vmem:[#allocation4 + $0xc0] sm:$0xff]  ;;  %v118_v37 = vld [vmem:[#allocation4 + $0xc8] sm:$0xff] }
  0x21   :  { %245 = vmatpush.msra.mxu0 %v129_v24  ;;  %286 = vmatpush.msra.mxu1 %v130_v25  ;;  %v119_v38 = vld [vmem:[#allocation4 + $0xd0] sm:$0xff]  ;;  %v120_v39 = vld [vmem:[#allocation4 + $0xd8] sm:$0xff]  ;;  %v113_v40 = vld [vmem:[#allocation4 + $0xa0] sm:$0xff] }
  0x22   :  { %327 = vmatpush.msra.mxu2 %v131_v26  ;;  %368 = vmatpush.msra.mxu3 %v132_v27  ;;  %v114_v41 = vld [vmem:[#allocation4 + $0xa8] sm:$0xff]  ;;  %v115_v42 = vld [vmem:[#allocation4 + $0xb0] sm:$0xff]  ;;  %v116_v43 = vld [vmem:[#allocation4 + $0xb8] sm:$0xff] }
  0x23   :  { %246 = vmatpush.msra.mxu0 %v125_v28  ;;  %287 = vmatpush.msra.mxu1 %v126_v29  ;;  %v109_v44 = vld [vmem:[#allocation4 + $0x80] sm:$0xff]  ;;  %v110_v45 = vld [vmem:[#allocation4 + $0x88] sm:$0xff]  ;;  %v111_v46 = vld [vmem:[#allocation4 + $0x90] sm:$0xff] }
  0x24   :  { %328 = vmatpush.msra.mxu2 %v127_v30  ;;  %369 = vmatpush.msra.mxu3 %v128_v31  ;;  %v112_v47 = vld [vmem:[#allocation4 + $0x98] sm:$0xff]  ;;  %v105_v48 = vld [vmem:[#allocation4 + $0x60] sm:$0xff]  ;;  %v106_v49 = vld [vmem:[#allocation4 + $0x68] sm:$0xff] }
  0x25   :  { %247 = vmatpush.msra.mxu0 %v121_v32  ;;  %288 = vmatpush.msra.mxu1 %v122_v33  ;;  %v107_v50 = vld [vmem:[#allocation4 + $0x70] sm:$0xff]  ;;  %v108_v51 = vld [vmem:[#allocation4 + $0x78] sm:$0xff]  ;;  %v101_v52 = vld [vmem:[#allocation4 + $0x40] sm:$0xff] }
  0x26   :  { %329 = vmatpush.msra.mxu2 %v123_v34  ;;  %370 = vmatpush.msra.mxu3 %v124_v35  ;;  %v102_v53 = vld [vmem:[#allocation4 + $0x48] sm:$0xff]  ;;  %v103_v54 = vld [vmem:[#allocation4 + $0x50] sm:$0xff]  ;;  %v104_v55 = vld [vmem:[#allocation4 + $0x58] sm:$0xff] }
  0x27   :  { %248 = vmatpush.msra.mxu0 %v117_v36  ;;  %289 = vmatpush.msra.mxu1 %v118_v37  ;;  %v97_v56 = vld [vmem:[#allocation4 + $0x20] sm:$0xff]  ;;  %v98_v57 = vld [vmem:[#allocation4 + $0x28] sm:$0xff]  ;;  %v99_v58 = vld [vmem:[#allocation4 + $0x30] sm:$0xff] }
  0x28   :  { %330 = vmatpush.msra.mxu2 %v119_v38  ;;  %371 = vmatpush.msra.mxu3 %v120_v39  ;;  %v100_v59 = vld [vmem:[#allocation4 + $0x38] sm:$0xff]  ;;  %v93_v60 = vld [vmem:[#allocation4] sm:$0xff]  ;;  %v94_v61 = vld [vmem:[#allocation4 + $0x8] sm:$0xff] }
  0x29   :  { %249 = vmatpush.msra.mxu0 %v113_v40  ;;  %290 = vmatpush.msra.mxu1 %v114_v41  ;;  %v95_v62 = vld [vmem:[#allocation4 + $0x10] sm:$0xff]  ;;  %v96_v63 = vld [vmem:[#allocation4 + $0x18] sm:$0xff]  ;;  %v222_v0 = vld [vmem:[%s4960_s0] sm:$0xff] }
  0x2a   :  { %331 = vmatpush.msra.mxu2 %v115_v42  ;;  %372 = vmatpush.msra.mxu3 %v116_v43  ;;  %v3013_v1 = vld [vmem:[#allocation9 + $0x1e0] sm:$0xff]  ;;  %v3015_v2 = vld [vmem:[#allocation9 + $0x1e8] sm:$0xff]  ;;  %v3017_v3 = vld [vmem:[#allocation9 + $0x1f0] sm:$0xff] }
  0x2b   :  { %250 = vmatpush.msra.mxu0 %v109_v44  ;;  %291 = vmatpush.msra.mxu1 %v110_v45  ;;  %v3019_v4 = vld [vmem:[#allocation9 + $0x1f8] sm:$0xff]  ;;  %v3021_v5 = vld [vmem:[#allocation9 + $0x1c0] sm:$0xff]  ;;  %v3023_v6 = vld [vmem:[#allocation9 + $0x1c8] sm:$0xff] }
  0x2c   :  { %332 = vmatpush.msra.mxu2 %v111_v46  ;;  %373 = vmatpush.msra.mxu3 %v112_v47  ;;  %v3027_v7 = vld [vmem:[#allocation9 + $0x1d0] sm:$0xff]  ;;  %v3029_v8 = vld [vmem:[#allocation9 + $0x1d8] sm:$0xff]  ;;  %v3033_v9 = vld [vmem:[#allocation9 + $0x1a0] sm:$0xff] }
  0x2d   :  { %251 = vmatpush.msra.mxu0 %v105_v48  ;;  %292 = vmatpush.msra.mxu1 %v106_v49  ;;  %v3035_v10 = vld [vmem:[#allocation9 + $0x1a8] sm:$0xff]  ;;  %v3039_v11 = vld [vmem:[#allocation9 + $0x1b0] sm:$0xff]  ;;  %v3041_v12 = vld [vmem:[#allocation9 + $0x1b8] sm:$0xff] }
  0x2e   :  { %333 = vmatpush.msra.mxu2 %v107_v50  ;;  %374 = vmatpush.msra.mxu3 %v108_v51  ;;  %v223_v13 = vld [vmem:[%s4960_s0 + $0x8] sm:$0xff]  ;;  %v3051_v14 = vld [vmem:[#allocation9 + $0x180] sm:$0xff]  ;;  %v3056_v16 = vld [vmem:[#allocation9 + $0x190] sm:$0xff] }
  0x2f   :  { %252 = vmatpush.msra.mxu0 %v101_v52  ;;  %293 = vmatpush.msra.mxu1 %v102_v53  ;;  %v3053_v15 = vld [vmem:[#allocation9 + $0x188] sm:$0xff]  ;;  %v3058_v17 = vld [vmem:[#allocation9 + $0x198] sm:$0xff]  ;;  %v3060_v18 = vld [vmem:[#allocation9 + $0x160] sm:$0xff] }
  0x30   :  { %334 = vmatpush.msra.mxu2 %v103_v54  ;;  %375 = vmatpush.msra.mxu3 %v104_v55  ;;  %v3062_v19 = vld [vmem:[#allocation9 + $0x168] sm:$0xff]  ;;  %v3066_v20 = vld [vmem:[#allocation9 + $0x170] sm:$0xff]  ;;  %v3068_v21 = vld [vmem:[#allocation9 + $0x178] sm:$0xff] }
  0x31   :  { %253 = vmatpush.msra.mxu0 %v97_v56  ;;  %294 = vmatpush.msra.mxu1 %v98_v57  ;;  %v3072_v22 = vld [vmem:[#allocation9 + $0x140] sm:$0xff]  ;;  %v3074_v23 = vld [vmem:[#allocation9 + $0x148] sm:$0xff]  ;;  %v3078_v24 = vld [vmem:[#allocation9 + $0x150] sm:$0xff] }
  0x32   :  { %335 = vmatpush.msra.mxu2 %v99_v58  ;;  %376 = vmatpush.msra.mxu3 %v100_v59  ;;  %v3080_v25 = vld [vmem:[#allocation9 + $0x158] sm:$0xff]  ;;  %v224_v26 = vld [vmem:[%s4960_s0 + $0x10] sm:$0xff]  ;;  %v3090_v27 = vld [vmem:[#allocation9 + $0x120] sm:$0xff] }
  0x33   :  { %254 = vmatpush.msra.mxu0 %v93_v60  ;;  %295 = vmatpush.msra.mxu1 %v94_v61  ;;  %v3092_v28 = vld [vmem:[#allocation9 + $0x128] sm:$0xff]  ;;  %v3095_v29 = vld [vmem:[#allocation9 + $0x130] sm:$0xff]  ;;  %v3097_v30 = vld [vmem:[#allocation9 + $0x138] sm:$0xff] }
  0x34   :  { %336 = vmatpush.msra.mxu2 %v95_v62  ;;  %377 = vmatpush.msra.mxu3 %v96_v63  ;;  %v3099_v31 = vld [vmem:[#allocation9 + $0x100] sm:$0xff]  ;;  %v3101_v32 = vld [vmem:[#allocation9 + $0x108] sm:$0xff]  ;;  %v3105_v33 = vld [vmem:[#allocation9 + $0x110] sm:$0xff] }
  0x35   :  { %255 = vmatmul.f32.vlgmr.msra.gmra.mxu0 %v222_v0  ;;  %296 = vmatmul.f32.vlgmr.msra.gmra.mxu1 %v222_v0  ;;  %v3107_v34 = vld [vmem:[#allocation9 + $0x118] sm:$0xff]  ;;  %v3111_v35 = vld [vmem:[#allocation9 + $0xe0] sm:$0xff]  ;;  %v3113_v36 = vld [vmem:[#allocation9 + $0xe8] sm:$0xff] }
  0x36   :  { %337 = vmatmul.f32.vlgmr.msra.gmra.mxu2 %v222_v0  ;;  %378 = vmatmul.f32.vlgmr.msra.gmra.mxu3 %v222_v0  ;;  %v3117_v37 = vld [vmem:[#allocation9 + $0xf0] sm:$0xff]  ;;  %v3119_v38 = vld [vmem:[#allocation9 + $0xf8] sm:$0xff]  ;;  %v3129_v40 = vld [vmem:[#allocation9 + $0xc0] sm:$0xff] }
  0x37   :  { %442 = vmatpush.msrb.mxu0 %v3013_v1  ;;  %462 = vmatpush.msrb.mxu1 %v3015_v2  ;;  %v225_v39 = vld [vmem:[%s4960_s0 + $0x18] sm:$0xff]  ;;  %v3131_v41 = vld [vmem:[#allocation9 + $0xc8] sm:$0xff]  ;;  %v3134_v42 = vld [vmem:[#allocation9 + $0xd0] sm:$0xff] }
  0x38   :  { %482 = vmatpush.msrb.mxu2 %v3017_v3  ;;  %502 = vmatpush.msrb.mxu3 %v3019_v4  ;;  %v3136_v43 = vld [vmem:[#allocation9 + $0xd8] sm:$0xff]  ;;  %v3138_v44 = vld [vmem:[#allocation9 + $0xa0] sm:$0xff]  ;;  %v3140_v45 = vld [vmem:[#allocation9 + $0xa8] sm:$0xff] }
  0x39   :  { %443 = vmatpush.msrb.mxu0 %v3021_v5  ;;  %463 = vmatpush.msrb.mxu1 %v3023_v6  ;;  %v3144_v46 = vld [vmem:[#allocation9 + $0xb0] sm:$0xff]  ;;  %v3146_v47 = vld [vmem:[#allocation9 + $0xb8] sm:$0xff]  ;;  %v3150_v48 = vld [vmem:[#allocation9 + $0x80] sm:$0xff] }
  0x3a   :  { %483 = vmatpush.msrb.mxu2 %v3027_v7  ;;  %503 = vmatpush.msrb.mxu3 %v3029_v8  ;;  %5171 = vst [vmem:[#allocation17_spill] sm:$0xff] %v3144_v46  ;;  %v3152_v49 = vld [vmem:[#allocation9 + $0x88] sm:$0xff]  ;;  %v3156_v50 = vld [vmem:[#allocation9 + $0x90] sm:$0xff]  ;;  %v3158_v51 = vld [vmem:[#allocation9 + $0x98] sm:$0xff] }
  0x3b   :  { %444 = vmatpush.msrb.mxu0 %v3033_v9  ;;  %464 = vmatpush.msrb.mxu1 %v3035_v10  ;;  %5172 = vst [vmem:[#allocation18_spill] sm:$0xff] %v3146_v47  ;;  %v226_v52 = vld [vmem:[%s4960_s0 + $0x20] sm:$0xff]  ;;  %v3170_v54 = vld [vmem:[#allocation9 + $0x68] sm:$0xff]  ;;  %v3173_v55 = vld [vmem:[#allocation9 + $0x70] sm:$0xff] }
  0x3c   :  { %484 = vmatpush.msrb.mxu2 %v3039_v11  ;;  %504 = vmatpush.msrb.mxu3 %v3041_v12  ;;  %5173 = vst [vmem:[#allocation19_spill] sm:$0xff] %v3150_v48  ;;  %v3168_v53 = vld [vmem:[#allocation9 + $0x60] sm:$0xff]  ;;  %v3175_v56 = vld [vmem:[#allocation9 + $0x78] sm:$0xff]  ;;  %v3179_v58 = vld [vmem:[#allocation9 + $0x48] sm:$0xff] }
  0x3d   :  { %258 = vmatmul.f32.gmra.mxu0 %v223_v13  ;;  %299 = vmatmul.f32.gmra.mxu1 %v223_v13  ;;  %5174 = vst [vmem:[#allocation20_spill] sm:$0xff] %v3152_v49  ;;  %v3177_v57 = vld [vmem:[#allocation9 + $0x40] sm:$0xff]  ;;  %v3183_v59 = vld [vmem:[#allocation9 + $0x50] sm:$0xff]  ;;  %v3185_v60 = vld [vmem:[#allocation9 + $0x58] sm:$0xff] }
  0x3e   :  { %340 = vmatmul.f32.gmra.mxu2 %v223_v13  ;;  %381 = vmatmul.f32.gmra.mxu3 %v223_v13  ;;  %5175 = vst [vmem:[#allocation21_spill] sm:$0xff] %v3156_v50  ;;  %v3189_v61 = vld [vmem:[#allocation9 + $0x20] sm:$0xff]  ;;  %v3191_v62 = vld [vmem:[#allocation9 + $0x28] sm:$0xff]  ;;  %v3195_v63 = vld [vmem:[#allocation9 + $0x30] sm:$0xff] }
  0x3f   :  { %445 = vmatpush.msrb.mxu0 %v3051_v14  ;;  %465 = vmatpush.msrb.mxu1 %v3053_v15  ;;  %5176 = vst [vmem:[#allocation22_spill] sm:$0xff] %v3158_v51  ;;  %v3197_v0 = vld [vmem:[#allocation9 + $0x38] sm:$0xff]  ;;  %v227_v13 = vld [vmem:[%s4960_s0 + $0x28] sm:$0xff] }
  0x40   :  { %485 = vmatpush.msrb.mxu2 %v3056_v16  ;;  %505 = vmatpush.msrb.mxu3 %v3058_v17  ;;  %5177 = vst [vmem:[#allocation23_spill] sm:$0xff] %v3168_v53 }
  0x41   :  { %446 = vmatpush.msrb.mxu0 %v3060_v18  ;;  %466 = vmatpush.msrb.mxu1 %v3062_v19  ;;  %5178 = vst [vmem:[#allocation24_spill] sm:$0xff] %v3170_v54 }
  0x42   :  { %486 = vmatpush.msrb.mxu2 %v3066_v20  ;;  %506 = vmatpush.msrb.mxu3 %v3068_v21  ;;  %5179 = vst [vmem:[#allocation25_spill] sm:$0xff] %v3173_v55 }
  0x43   :  { %447 = vmatpush.msrb.mxu0 %v3072_v22  ;;  %467 = vmatpush.msrb.mxu1 %v3074_v23  ;;  %5180 = vst [vmem:[#allocation26_spill] sm:$0xff] %v3175_v56 }
  0x44   :  { %487 = vmatpush.msrb.mxu2 %v3078_v24  ;;  %507 = vmatpush.msrb.mxu3 %v3080_v25  ;;  %5181 = vst [vmem:[#allocation27_spill] sm:$0xff] %v3177_v57 }
  0x45   :  { %261 = vmatmul.f32.gmra.mxu0 %v224_v26  ;;  %302 = vmatmul.f32.gmra.mxu1 %v224_v26  ;;  %5182 = vst [vmem:[#allocation28_spill] sm:$0xff] %v3179_v58 }
  0x46   :  { %343 = vmatmul.f32.gmra.mxu2 %v224_v26  ;;  %384 = vmatmul.f32.gmra.mxu3 %v224_v26  ;;  %5183 = vst [vmem:[#allocation29_spill] sm:$0xff] %v3183_v59  ;;  %v3207_v26 = vld [vmem:[#allocation9] sm:$0xff] }
  0x47   :  { %448 = vmatpush.msrb.mxu0 %v3090_v27  ;;  %468 = vmatpush.msrb.mxu1 %v3092_v28  ;;  %5184 = vst [vmem:[#allocation30_spill] sm:$0xff] %v3185_v60 }
  0x48   :  { %488 = vmatpush.msrb.mxu2 %v3095_v29  ;;  %508 = vmatpush.msrb.mxu3 %v3097_v30  ;;  %5185 = vst [vmem:[#allocation31_spill] sm:$0xff] %v3189_v61 }
  0x49   :  { %449 = vmatpush.msrb.mxu0 %v3099_v31  ;;  %469 = vmatpush.msrb.mxu1 %v3101_v32  ;;  %5186 = vst [vmem:[#allocation32_spill] sm:$0xff] %v3191_v62 }
  0x4a   :  { %489 = vmatpush.msrb.mxu2 %v3105_v33  ;;  %509 = vmatpush.msrb.mxu3 %v3107_v34  ;;  %5187 = vst [vmem:[#allocation33_spill] sm:$0xff] %v3195_v63 }
  0x4b   :  { %450 = vmatpush.msrb.mxu0 %v3111_v35  ;;  %470 = vmatpush.msrb.mxu1 %v3113_v36  ;;  %5188 = vst [vmem:[#allocation34_spill] sm:$0xff] %v3197_v0 }
  0x4c   :  { %490 = vmatpush.msrb.mxu2 %v3117_v37  ;;  %510 = vmatpush.msrb.mxu3 %v3119_v38  ;;  %5189 = vst [vmem:[#allocation35_spill] sm:$0xff] %v3207_v26 }
  0x4d   :  { %264 = vmatmul.f32.gmra.mxu0 %v225_v39  ;;  %305 = vmatmul.f32.gmra.mxu1 %v225_v39 }
  0x4e   :  { %346 = vmatmul.f32.gmra.mxu2 %v225_v39  ;;  %387 = vmatmul.f32.gmra.mxu3 %v225_v39  ;;  %v3209_v39 = vld [vmem:[#allocation9 + $0x8] sm:$0xff] }
  0x4f   :  { %451 = vmatpush.msrb.mxu0 %v3129_v40  ;;  %471 = vmatpush.msrb.mxu1 %v3131_v41  ;;  %5190 = vst [vmem:[#allocation36_spill] sm:$0xff] %v3209_v39 }
  0x50   :  { %491 = vmatpush.msrb.mxu2 %v3134_v42  ;;  %511 = vmatpush.msrb.mxu3 %v3136_v43 }
  0x51   :  { %452 = vmatpush.msrb.mxu0 %v3138_v44  ;;  %472 = vmatpush.msrb.mxu1 %v3140_v45 }
  0x52   :  { %492 = vmatpush.msrb.mxu2 %v3144_v46  ;;  %512 = vmatpush.msrb.mxu3 %v3146_v47 }
  0x53   :  { %453 = vmatpush.msrb.mxu0 %v3150_v48  ;;  %473 = vmatpush.msrb.mxu1 %v3152_v49 }
  0x54   :  { %493 = vmatpush.msrb.mxu2 %v3156_v50  ;;  %513 = vmatpush.msrb.mxu3 %v3158_v51 }
  0x55   :  { %267 = vmatmul.f32.gmra.mxu0 %v226_v52  ;;  %308 = vmatmul.f32.gmra.mxu1 %v226_v52 }
  0x56   :  { %349 = vmatmul.f32.gmra.mxu2 %v226_v52  ;;  %390 = vmatmul.f32.gmra.mxu3 %v226_v52  ;;  %v3212_v52 = vld [vmem:[#allocation9 + $0x10] sm:$0xff] }
  0x57   :  { %454 = vmatpush.msrb.mxu0 %v3168_v53  ;;  %474 = vmatpush.msrb.mxu1 %v3170_v54  ;;  %5191 = vst [vmem:[#allocation37_spill] sm:$0xff] %v3212_v52 }
  0x58   :  { %494 = vmatpush.msrb.mxu2 %v3173_v55  ;;  %514 = vmatpush.msrb.mxu3 %v3175_v56 }
  0x59   :  { %455 = vmatpush.msrb.mxu0 %v3177_v57  ;;  %475 = vmatpush.msrb.mxu1 %v3179_v58  ;;  %v3214_v58 = vld [vmem:[#allocation9 + $0x18] sm:$0xff] }
  0x5a   :  { %495 = vmatpush.msrb.mxu2 %v3183_v59  ;;  %515 = vmatpush.msrb.mxu3 %v3185_v60  ;;  %5192 = vst [vmem:[#allocation38_spill] sm:$0xff] %v3214_v58 }
  0x5b   :  { %456 = vmatpush.msrb.mxu0 %v3189_v61  ;;  %476 = vmatpush.msrb.mxu1 %v3191_v62 }
  0x5c   :  { %496 = vmatpush.msrb.mxu2 %v3195_v63  ;;  %516 = vmatpush.msrb.mxu3 %v3197_v0  ;;  %v228_v0 = vld [vmem:[%s4960_s0 + $0x30] sm:$0xff] }
  0x5d   :  { %270 = vmatmul.f32.gmra.mxu0 %v227_v13  ;;  %311 = vmatmul.f32.gmra.mxu1 %v227_v13 }
  0x5e   :  { %352 = vmatmul.f32.gmra.mxu2 %v227_v13  ;;  %393 = vmatmul.f32.gmra.mxu3 %v227_v13  ;;  %v229_v13 = vld [vmem:[%s4960_s0 + $0x38] sm:$0xff] }
  0x5f   :  { %457 = vmatpush.msrb.mxu0 %v3207_v26  ;;  %477 = vmatpush.msrb.mxu1 %v3209_v39 }
  0x60   :  { %497 = vmatpush.msrb.mxu2 %v3212_v52  ;;  %517 = vmatpush.msrb.mxu3 %v3214_v58 }
  0x61   :  { %548 = vmatpush.msra.mxu0 %v3013_v1  ;;  %568 = vmatpush.msra.mxu1 %v3015_v2 }
  0x62   :  { %588 = vmatpush.msra.mxu2 %v3017_v3  ;;  %608 = vmatpush.msra.mxu3 %v3019_v4 }
  0x63   :  { %549 = vmatpush.msra.mxu0 %v3021_v5  ;;  %569 = vmatpush.msra.mxu1 %v3023_v6 }
  0x64   :  { %589 = vmatpush.msra.mxu2 %v3027_v7  ;;  %609 = vmatpush.msra.mxu3 %v3029_v8 }
  0x65   :  { %273 = vmatmul.f32.gmra.mxu0 %v228_v0  ;;  %314 = vmatmul.f32.gmra.mxu1 %v228_v0 }
  0x66   :  { %355 = vmatmul.f32.gmra.mxu2 %v228_v0  ;;  %396 = vmatmul.f32.gmra.mxu3 %v228_v0  ;;  %v4973_v0 = vmov 0.0  }
  0x67   :  { %550 = vmatpush.msra.mxu0 %v3033_v9  ;;  %570 = vmatpush.msra.mxu1 %v3035_v10 }
  0x68   :  { %590 = vmatpush.msra.mxu2 %v3039_v11  ;;  %610 = vmatpush.msra.mxu3 %v3041_v12 }
  0x69   :  { %551 = vmatpush.msra.mxu0 %v3051_v14  ;;  %571 = vmatpush.msra.mxu1 %v3053_v15 }
  0x6a   :  { %591 = vmatpush.msra.mxu2 %v3056_v16  ;;  %611 = vmatpush.msra.mxu3 %v3058_v17 }
  0x6b   :  { %552 = vmatpush.msra.mxu0 %v3060_v18  ;;  %572 = vmatpush.msra.mxu1 %v3062_v19 }
  0x6c   :  { %592 = vmatpush.msra.mxu2 %v3066_v20  ;;  %612 = vmatpush.msra.mxu3 %v3068_v21 }
  0x6d   :  { %276 = vmatmul.f32.gmra.mxu0 %v229_v13  ;;  %317 = vmatmul.f32.gmra.mxu1 %v229_v13 }
  0x6e   :  { %358 = vmatmul.f32.gmra.mxu2 %v229_v13  ;;  %399 = vmatmul.f32.gmra.mxu3 %v229_v13  ;;  %v5193_v13 = vld [vmem:[#allocation28_spill] sm:$0xff] }
  0x6f   :  { %553 = vmatpush.msra.mxu0 %v3072_v22  ;;  %573 = vmatpush.msra.mxu1 %v3074_v23 }
  0x70   :  { %593 = vmatpush.msra.mxu2 %v3078_v24  ;;  %613 = vmatpush.msra.mxu3 %v3080_v25 }
  0x71   :  { %554 = vmatpush.msra.mxu0 %v3090_v27  ;;  %574 = vmatpush.msra.mxu1 %v3092_v28 }
  0x72   :  { %594 = vmatpush.msra.mxu2 %v3095_v29  ;;  %614 = vmatpush.msra.mxu3 %v3097_v30 }
  0x73   :  { %555 = vmatpush.msra.mxu0 %v3099_v31  ;;  %575 = vmatpush.msra.mxu1 %v3101_v32 }
  0x74   :  { %595 = vmatpush.msra.mxu2 %v3105_v33  ;;  %615 = vmatpush.msra.mxu3 %v3107_v34 }
  0x75   :  { %458 = vmatmul.f32.vlgmr.msrb.gmra.mxu0 %v4973_v0  ;;  %478 = vmatmul.f32.vlgmr.msrb.gmra.mxu1 %v4973_v0 }
  0x76   :  { %498 = vmatmul.f32.vlgmr.msrb.gmra.mxu2 %v4973_v0  ;;  %518 = vmatmul.f32.vlgmr.msrb.gmra.mxu3 %v4973_v0  ;;  %v5194_v0 = vld [vmem:[#allocation34_spill] sm:$0xff] }
  0x77   :  { %556 = vmatpush.msra.mxu0 %v3111_v35  ;;  %576 = vmatpush.msra.mxu1 %v3113_v36 }
  0x78   :  { %596 = vmatpush.msra.mxu2 %v3117_v37  ;;  %616 = vmatpush.msra.mxu3 %v3119_v38 }
  0x79   :  { %557 = vmatpush.msra.mxu0 %v3129_v40  ;;  %577 = vmatpush.msra.mxu1 %v3131_v41 }
  0x7a   :  { %597 = vmatpush.msra.mxu2 %v3134_v42  ;;  %617 = vmatpush.msra.mxu3 %v3136_v43 }
  0x7b   :  { %558 = vmatpush.msra.mxu0 %v3138_v44  ;;  %578 = vmatpush.msra.mxu1 %v3140_v45 }
  0x7c   :  { %598 = vmatpush.msra.mxu2 %v3144_v46  ;;  %618 = vmatpush.msra.mxu3 %v3146_v47 }
  0x7d   :  { %559 = vmatpush.msra.mxu0 %v3150_v48  ;;  %579 = vmatpush.msra.mxu1 %v3152_v49 }
  0x7e   :  { %599 = vmatpush.msra.mxu2 %v3156_v50  ;;  %619 = vmatpush.msra.mxu3 %v3158_v51 }
  0x7f   :  { %560 = vmatpush.msra.mxu0 %v3168_v53  ;;  %580 = vmatpush.msra.mxu1 %v3170_v54 }
  0x80   :  { %600 = vmatpush.msra.mxu2 %v3173_v55  ;;  %620 = vmatpush.msra.mxu3 %v3175_v56 }
  0x81   :  { %561 = vmatpush.msra.mxu0 %v3177_v57  ;;  %581 = vmatpush.msra.mxu1 %v5193_v13 }
  0x82   :  { %601 = vmatpush.msra.mxu2 %v3183_v59  ;;  %621 = vmatpush.msra.mxu3 %v3185_v60 }
  0x83   :  { %562 = vmatpush.msra.mxu0 %v3189_v61  ;;  %582 = vmatpush.msra.mxu1 %v3191_v62 }
  0x84   :  { %602 = vmatpush.msra.mxu2 %v3195_v63  ;;  %622 = vmatpush.msra.mxu3 %v5194_v0 }
  0x85   :  { %563 = vmatpush.msra.mxu0 %v3207_v26  ;;  %583 = vmatpush.msra.mxu1 %v3209_v39 }
  0x86   :  { %603 = vmatpush.msra.mxu2 %v3212_v52  ;;  %623 = vmatpush.msra.mxu3 %v3214_v58 }
  0x87   :  { %655 = vmatpush.msrb.mxu0 %v3013_v1  ;;  %675 = vmatpush.msrb.mxu1 %v3015_v2 }
  0x88   :  { %695 = vmatpush.msrb.mxu2 %v3017_v3  ;;  %715 = vmatpush.msrb.mxu3 %v3019_v4 }
  0x89   :  { %656 = vmatpush.msrb.mxu0 %v3021_v5  ;;  %676 = vmatpush.msrb.mxu1 %v3023_v6 }
  0x8a   :  { %696 = vmatpush.msrb.mxu2 %v3027_v7  ;;  %716 = vmatpush.msrb.mxu3 %v3029_v8 }
  0x8b   :  { %657 = vmatpush.msrb.mxu0 %v3033_v9  ;;  %677 = vmatpush.msrb.mxu1 %v3035_v10 }
  0x8c   :  { %697 = vmatpush.msrb.mxu2 %v3039_v11  ;;  %717 = vmatpush.msrb.mxu3 %v3041_v12 }
  0x8d   :  { %658 = vmatpush.msrb.mxu0 %v3051_v14  ;;  %678 = vmatpush.msrb.mxu1 %v3053_v15 }
  0x8e   :  { %698 = vmatpush.msrb.mxu2 %v3056_v16  ;;  %718 = vmatpush.msrb.mxu3 %v3058_v17 }
  0x8f   :  { %659 = vmatpush.msrb.mxu0 %v3060_v18  ;;  %679 = vmatpush.msrb.mxu1 %v3062_v19 }
  0x90   :  { %699 = vmatpush.msrb.mxu2 %v3066_v20  ;;  %719 = vmatpush.msrb.mxu3 %v3068_v21 }
  0x91   :  { %660 = vmatpush.msrb.mxu0 %v3072_v22  ;;  %680 = vmatpush.msrb.mxu1 %v3074_v23 }
  0x92   :  { %700 = vmatpush.msrb.mxu2 %v3078_v24  ;;  %720 = vmatpush.msrb.mxu3 %v3080_v25 }
  0x93   :  { %661 = vmatpush.msrb.mxu0 %v3090_v27  ;;  %681 = vmatpush.msrb.mxu1 %v3092_v28 }
  0x94   :  { %701 = vmatpush.msrb.mxu2 %v3095_v29  ;;  %721 = vmatpush.msrb.mxu3 %v3097_v30 }
  0x95   :  { %662 = vmatpush.msrb.mxu0 %v3099_v31  ;;  %682 = vmatpush.msrb.mxu1 %v3101_v32 }
  0x96   :  { %702 = vmatpush.msrb.mxu2 %v3105_v33  ;;  %722 = vmatpush.msrb.mxu3 %v3107_v34 }
  0x97   :  { %663 = vmatpush.msrb.mxu0 %v3111_v35  ;;  %683 = vmatpush.msrb.mxu1 %v3113_v36 }
  0x98   :  { %703 = vmatpush.msrb.mxu2 %v3117_v37  ;;  %723 = vmatpush.msrb.mxu3 %v3119_v38 }
  0x99   :  { %664 = vmatpush.msrb.mxu0 %v3129_v40  ;;  %684 = vmatpush.msrb.mxu1 %v3131_v41 }
  0x9a   :  { %704 = vmatpush.msrb.mxu2 %v3134_v42  ;;  %724 = vmatpush.msrb.mxu3 %v3136_v43 }
  0x9b   :  { %665 = vmatpush.msrb.mxu0 %v3138_v44  ;;  %685 = vmatpush.msrb.mxu1 %v3140_v45 }
  0x9c   :  { %705 = vmatpush.msrb.mxu2 %v3144_v46  ;;  %725 = vmatpush.msrb.mxu3 %v3146_v47 }
  0x9d   :  { %666 = vmatpush.msrb.mxu0 %v3150_v48  ;;  %686 = vmatpush.msrb.mxu1 %v3152_v49 }
  0x9e   :  { %706 = vmatpush.msrb.mxu2 %v3156_v50  ;;  %726 = vmatpush.msrb.mxu3 %v3158_v51 }
  0x9f   :  { %667 = vmatpush.msrb.mxu0 %v3168_v53  ;;  %687 = vmatpush.msrb.mxu1 %v3170_v54 }
  0xa0   :  { %707 = vmatpush.msrb.mxu2 %v3173_v55  ;;  %727 = vmatpush.msrb.mxu3 %v3175_v56 }
  0xa1   :  { %668 = vmatpush.msrb.mxu0 %v3177_v57  ;;  %688 = vmatpush.msrb.mxu1 %v5193_v13 }
  0xa2   :  { %708 = vmatpush.msrb.mxu2 %v3183_v59  ;;  %728 = vmatpush.msrb.mxu3 %v3185_v60 }
  0xa3   :  { %669 = vmatpush.msrb.mxu0 %v3189_v61  ;;  %689 = vmatpush.msrb.mxu1 %v3191_v62 }
  0xa4   :  { %709 = vmatpush.msrb.mxu2 %v3195_v63  ;;  %729 = vmatpush.msrb.mxu3 %v5194_v0 }
  0xa5   :  { %670 = vmatpush.msrb.mxu0 %v3207_v26  ;;  %690 = vmatpush.msrb.mxu1 %v3209_v39 }
  0xa6   :  { %710 = vmatpush.msrb.mxu2 %v3212_v52  ;;  %730 = vmatpush.msrb.mxu3 %v3214_v58 }
  0xb2   :  { %v256_v13 = vpop.f32.mrf.mxu0  ;;  %v297_v59 = vpop.f32.mrf.mxu1 }
  0xb9   :  { %v338_v57 = vpop.f32.mrf.mxu2  ;;  %v379_v60 = vpop.f32.mrf.mxu3 }
  0xba   :  { %v3358_v56 = vpop.f32.mrf.mxu0  ;;  %v3360_v61 = vpop.f32.mrf.mxu1 }
  0xbb   :  { %5195 = vst [vmem:[#allocation39_spill] sm:$0xff] %v3358_v56 }
  0xbc   :  { %5196 = vst [vmem:[#allocation40_spill] sm:$0xff] %v3360_v61 }
  0xc1   :  { %v3362_v62 = vpop.f32.mrf.mxu2  ;;  %v3364_v63 = vpop.f32.mrf.mxu3 }
  0xc2   :  { %5197 = vst [vmem:[#allocation41_spill] sm:$0xff] %v3362_v62  ;;  %v3366_v0 = vpop.f32.mrf.mxu0  ;;  %v3368_v26 = vpop.f32.mrf.mxu1 }
  0xc3   :  { %5198 = vst [vmem:[#allocation42_spill] sm:$0xff] %v3364_v63 }
  0xc4   :  { %5199 = vst [vmem:[#allocation43_spill] sm:$0xff] %v3366_v0 }
  0xc5   :  { %5200 = vst [vmem:[#allocation44_spill] sm:$0xff] %v3368_v26 }
  0xc9   :  { %v3370_v39 = vpop.f32.mrf.mxu2  ;;  %v3372_v52 = vpop.f32.mrf.mxu3 }
  0xca   :  { %5201 = vst [vmem:[#allocation45_spill] sm:$0xff] %v3370_v39  ;;  %v3374_v58 = vpop.f32.mrf.mxu0  ;;  %v3376_v55 = vpop.f32.mrf.mxu1 }
  0xcb   :  { %5202 = vst [vmem:[#allocation46_spill] sm:$0xff] %v3372_v52 }
  0xcc   :  { %5203 = vst [vmem:[#allocation47_spill] sm:$0xff] %v3374_v58 }
  0xcd   :  { %5204 = vst [vmem:[#allocation48_spill] sm:$0xff] %v3376_v55 }
  0xd1   :  { %v3378_v54 = vpop.f32.mrf.mxu2  ;;  %v3380_v56 = vpop.f32.mrf.mxu3 }
  0xd2   :  { %5205 = vst [vmem:[#allocation49_spill] sm:$0xff] %v3378_v54  ;;  %v3382_v61 = vpop.f32.mrf.mxu0  ;;  %v3384_v62 = vpop.f32.mrf.mxu1 }
  0xd3   :  { %5206 = vst [vmem:[#allocation50_spill] sm:$0xff] %v3380_v56 }
  0xd4   :  { %5207 = vst [vmem:[#allocation51_spill] sm:$0xff] %v3382_v61 }
  0xd5   :  { %5208 = vst [vmem:[#allocation52_spill] sm:$0xff] %v3384_v62 }
  0xd9   :  { %v3386_v63 = vpop.f32.mrf.mxu2  ;;  %v3388_v0 = vpop.f32.mrf.mxu3 }
  0xda   :  { %5209 = vst [vmem:[#allocation53_spill] sm:$0xff] %v3386_v63  ;;  %v3390_v26 = vpop.f32.mrf.mxu0  ;;  %v3392_v39 = vpop.f32.mrf.mxu1 }
  0xdb   :  { %5210 = vst [vmem:[#allocation54_spill] sm:$0xff] %v3388_v0  ;;  %v157_v0 = vld [vmem:[%s4962_s2] sm:$0xf] }
  0xdc   :  { %5211 = vst [vmem:[#allocation55_spill] sm:$0xff] %v3390_v26  ;;  %v3423_v50 = vperm.slane %v157_v0, 2 }
  0xdd   :  { %5212 = vst [vmem:[#allocation56_spill] sm:$0xff] %v3392_v39  ;;  %v3413_v39 = vperm.slane %v157_v0, 0 }
  0xde   :  { %5225 = vst [vmem:[#allocation69_spill] sm:$0xff] %v3423_v50  ;;  %v339_v48 = vadd.f32 %v338_v57, %v3423_v50 }
  0xdf   :  { %5221 = vst [vmem:[#allocation65_spill] sm:$0xff] %v3413_v39 }
  0xe1   :  { %v3394_v52 = vpop.f32.mrf.mxu2  ;;  %v3396_v58 = vpop.f32.mrf.mxu3 }
  0xe2   :  { %5213 = vst [vmem:[#allocation57_spill] sm:$0xff] %v3394_v52  ;;  %v3398_v55 = vpop.f32.mrf.mxu0  ;;  %v3400_v54 = vpop.f32.mrf.mxu1  ;;  %v3415_v52 = vperm.slane %v157_v0, 1 }
  0xe3   :  { %5214 = vst [vmem:[#allocation58_spill] sm:$0xff] %v3396_v58 }
  0xe4   :  { %5215 = vst [vmem:[#allocation59_spill] sm:$0xff] %v3398_v55  ;;  %v257_v55 = vadd.f32 %v256_v13, %v3413_v39 }
  0xe5   :  { %5216 = vst [vmem:[#allocation60_spill] sm:$0xff] %v3400_v54  ;;  %v298_v54 = vadd.f32 %v297_v59, %v3415_v52 }
  0xe6   :  { %5222 = vst [vmem:[#allocation66_spill] sm:$0xff] %v3415_v52 }
  0xe9   :  { %v3402_v56 = vpop.f32.mrf.mxu2  ;;  %v3404_v61 = vpop.f32.mrf.mxu3 }
  0xea   :  { %5217 = vst [vmem:[#allocation61_spill] sm:$0xff] %v3402_v56  ;;  %v3409_v63 = vpop.f32.mrf.mxu0  ;;  %v3411_v26 = vpop.f32.mrf.mxu1 }
  0xeb   :  { %5218 = vst [vmem:[#allocation62_spill] sm:$0xff] %v3404_v61 }
  0xec   :  { %5219 = vst [vmem:[#allocation63_spill] sm:$0xff] %v3409_v63  ;;  %v3425_v63 = vperm.slane %v157_v0, 3 }
  0xed   :  { %5220 = vst [vmem:[#allocation64_spill] sm:$0xff] %v3411_v26 }
  0xee   :  { %v380_v13 = vadd.f32 %v379_v60, %v3425_v63 }
  0xf1   :  { %v3419_v58 = vpop.f32.mrf.mxu2  ;;  %v3421_v56 = vpop.f32.mrf.mxu3 }
  0xf2   :  { %5223 = vst [vmem:[#allocation67_spill] sm:$0xff] %v3419_v58  ;;  %v459_v61 = vpop.f32.mrf.mxu0  ;;  %v479_v62 = vpop.f32.mrf.mxu1 }
  0xf3   :  { %5224 = vst [vmem:[#allocation68_spill] sm:$0xff] %v3421_v56  ;;  %v460_v53 = vadd.f32 %v459_v61, %v257_v55  ;;  %v480_v51 = vadd.f32 %v479_v62, %v298_v54 }
  0xf5   :  { %v522_v26 = vmul.f32 0.5, %v460_v53  ;;  %v526_v49 = vmul.f32 0.5, %v480_v51 }
  0xf7   :  { %2527 = vtanh.f32 %v522_v26 }
  0xf8   :  { %2529 = vtanh.f32 %v526_v49 }
  0xf9   :  { %v499_v59 = vpop.f32.mrf.mxu2  ;;  %v519_v58 = vpop.f32.mrf.mxu3 }
  0xfa   :  { %v500_v52 = vadd.f32 %v499_v59, %v339_v48  ;;  %v520_v56 = vadd.f32 %v519_v58, %v380_v13  ;;  %v5231_v13 = vld [vmem:[#allocation22_spill] sm:$0xff]  ;;  %v5232_v59 = vld [vmem:[#allocation23_spill] sm:$0xff] }
  0xfc   :  { %2531 = vtanh.f32 %v500_v52  ;;  %v531_v39 = vmul.f32 0.5, %v520_v56  ;;  %v5228_v56 = vld [vmem:[#allocation19_spill] sm:$0xff]  ;;  %v5230_v52 = vld [vmem:[#allocation21_spill] sm:$0xff] }
  0xfd   :  { %v2528_v55 = vpop.eup %2527 }
  0xfe   :  { %v2530_v54 = vpop.eup %2529  ;;  %v524_v61 = vmul.f32 0.5, %v2528_v55  ;;  %2533 = vtanh.f32 %v531_v39  ;;  %v5229_v39 = vld [vmem:[#allocation20_spill] sm:$0xff] }
  0xff   :  { %v528_v62 = vmul.f32 0.5, %v2530_v54  ;;  %v5233_v55 = vld [vmem:[#allocation24_spill] sm:$0xff]  ;;  %v5234_v54 = vld [vmem:[#allocation25_spill] sm:$0xff] }
 0x100   :  { %v525_v0 = vadd.f32 0.5, %v524_v61  ;;  %v5235_v61 = vld [vmem:[#allocation26_spill] sm:$0xff] }
 0x101   :  { %v529_v53 = vadd.f32 0.5, %v528_v62  ;;  %v5236_v62 = vld [vmem:[#allocation27_spill] sm:$0xff] }
 0x102   :  { %v2532_v51 = vpop.eup %2531 }
 0x103   :  { %v535_v26 = vmul.f32 0.0, %v529_v53  ;;  %v536_v47 = vmul.f32 %v2532_v51, %v525_v0  ;;  %v5237_v0 = vld [vmem:[#allocation28_spill] sm:$0xff]  ;;  %v5238_v53 = vld [vmem:[#allocation29_spill] sm:$0xff]  ;;  %v5239_v51 = vld [vmem:[#allocation30_spill] sm:$0xff] }
 0x104   :  { %v2534_v57 = vpop.eup %2533 }
 0x105   :  { %v3429_v50 = vadd.f32 %v536_v47, %v535_v26  ;;  %v533_v49 = vmul.f32 0.5, %v2534_v57  ;;  %v5227_v47 = vld [vmem:[#allocation18_spill] sm:$0xff]  ;;  %v5240_v26 = vld [vmem:[#allocation31_spill] sm:$0xff]  ;;  %v5241_v57 = vld [vmem:[#allocation32_spill] sm:$0xff] }
 0x107   :  { %2535 = vtanh.f32 %v3429_v50  ;;  %v534_v48 = vadd.f32 0.5, %v533_v49  ;;  %v5242_v49 = vld [vmem:[#allocation33_spill] sm:$0xff] }
 0x10d   :  { %v2536_v58 = vpop.eup %2535 }
 0x10e   :  { %v3432_v60 = vmul.f32 %v2536_v58, %v534_v48  ;;  %v5243_v48 = vld [vmem:[#allocation34_spill] sm:$0xff]  ;;  %v5244_v58 = vld [vmem:[#allocation35_spill] sm:$0xff] }
 0x110   :  { %5226 = vst [vmem:[#allocation70_spill] sm:$0xff] %v3432_v60  ;;  %564 = vmatmul.f32.vlgmr.msra.gmra.mxu0 %v3432_v60  ;;  %584 = vmatmul.f32.vlgmr.msra.gmra.mxu1 %v3432_v60 }
 0x111   :  { %604 = vmatmul.f32.vlgmr.msra.gmra.mxu2 %v3432_v60  ;;  %624 = vmatmul.f32.vlgmr.msra.gmra.mxu3 %v3432_v60  ;;  %v5245_v60 = vld [vmem:[#allocation36_spill] sm:$0xff] }
 0x112   :  { %762 = vmatpush.msra.mxu0 %v3013_v1  ;;  %782 = vmatpush.msra.mxu1 %v3015_v2 }
 0x113   :  { %802 = vmatpush.msra.mxu2 %v3017_v3  ;;  %822 = vmatpush.msra.mxu3 %v3019_v4 }
 0x114   :  { %763 = vmatpush.msra.mxu0 %v3021_v5  ;;  %783 = vmatpush.msra.mxu1 %v3023_v6 }
 0x115   :  { %803 = vmatpush.msra.mxu2 %v3027_v7  ;;  %823 = vmatpush.msra.mxu3 %v3029_v8 }
 0x116   :  { %764 = vmatpush.msra.mxu0 %v3033_v9  ;;  %784 = vmatpush.msra.mxu1 %v3035_v10 }
 0x117   :  { %804 = vmatpush.msra.mxu2 %v3039_v11  ;;  %824 = vmatpush.msra.mxu3 %v3041_v12 }
 0x118   :  { %765 = vmatpush.msra.mxu0 %v3051_v14  ;;  %785 = vmatpush.msra.mxu1 %v3053_v15 }
 0x119   :  { %805 = vmatpush.msra.mxu2 %v3056_v16  ;;  %825 = vmatpush.msra.mxu3 %v3058_v17 }
 0x11a   :  { %766 = vmatpush.msra.mxu0 %v3060_v18  ;;  %786 = vmatpush.msra.mxu1 %v3062_v19 }
 0x11b   :  { %806 = vmatpush.msra.mxu2 %v3066_v20  ;;  %826 = vmatpush.msra.mxu3 %v3068_v21 }
 0x11c   :  { %767 = vmatpush.msra.mxu0 %v3072_v22  ;;  %787 = vmatpush.msra.mxu1 %v3074_v23 }
 0x11d   :  { %807 = vmatpush.msra.mxu2 %v3078_v24  ;;  %827 = vmatpush.msra.mxu3 %v3080_v25 }
 0x11e   :  { %768 = vmatpush.msra.mxu0 %v3090_v27  ;;  %788 = vmatpush.msra.mxu1 %v3092_v28 }
 0x11f   :  { %808 = vmatpush.msra.mxu2 %v3095_v29  ;;  %828 = vmatpush.msra.mxu3 %v3097_v30 }
 0x120   :  { %769 = vmatpush.msra.mxu0 %v3099_v31  ;;  %789 = vmatpush.msra.mxu1 %v3101_v32 }
 0x121   :  { %809 = vmatpush.msra.mxu2 %v3105_v33  ;;  %829 = vmatpush.msra.mxu3 %v3107_v34 }
 0x122   :  { %770 = vmatpush.msra.mxu0 %v3111_v35  ;;  %790 = vmatpush.msra.mxu1 %v3113_v36 }
 0x123   :  { %810 = vmatpush.msra.mxu2 %v3117_v37  ;;  %830 = vmatpush.msra.mxu3 %v3119_v38 }
 0x124   :  { %771 = vmatpush.msra.mxu0 %v3129_v40  ;;  %791 = vmatpush.msra.mxu1 %v3131_v41 }
 0x125   :  { %811 = vmatpush.msra.mxu2 %v3134_v42  ;;  %831 = vmatpush.msra.mxu3 %v3136_v43 }
 0x126   :  { %772 = vmatpush.msra.mxu0 %v3138_v44  ;;  %792 = vmatpush.msra.mxu1 %v3140_v45 }
 0x127   :  { %812 = vmatpush.msra.mxu2 %v3144_v46  ;;  %832 = vmatpush.msra.mxu3 %v5227_v47 }
 0x128   :  { %773 = vmatpush.msra.mxu0 %v5228_v56  ;;  %793 = vmatpush.msra.mxu1 %v5229_v39  ;;  %v5253_v39 = vld [vmem:[#allocation41_spill] sm:$0xff] }
 0x129   :  { %813 = vmatpush.msra.mxu2 %v5230_v52  ;;  %833 = vmatpush.msra.mxu3 %v5231_v13 }
 0x12a   :  { %774 = vmatpush.msra.mxu0 %v5232_v59  ;;  %794 = vmatpush.msra.mxu1 %v5233_v55  ;;  %v5251_v55 = vld [vmem:[#allocation40_spill] sm:$0xff] }
 0x12b   :  { %814 = vmatpush.msra.mxu2 %v5234_v54  ;;  %834 = vmatpush.msra.mxu3 %v5235_v61  ;;  %v5246_v61 = vld [vmem:[#allocation37_spill] sm:$0xff] }
 0x12c   :  { %775 = vmatpush.msra.mxu0 %v5236_v62  ;;  %795 = vmatpush.msra.mxu1 %v5237_v0  ;;  %v5247_v62 = vld [vmem:[#allocation38_spill] sm:$0xff]  ;;  %v5248_v0 = vld [vmem:[#allocation65_spill] sm:$0xff] }
 0x12d   :  { %815 = vmatpush.msra.mxu2 %v5238_v53  ;;  %835 = vmatpush.msra.mxu3 %v5239_v51  ;;  %v5249_v53 = vld [vmem:[#allocation39_spill] sm:$0xff]  ;;  %v5250_v51 = vld [vmem:[#allocation66_spill] sm:$0xff] }
 0x12e   :  { %776 = vmatpush.msra.mxu0 %v5240_v26  ;;  %796 = vmatpush.msra.mxu1 %v5241_v57  ;;  %v260_v54 = vadd.f32 %v5249_v53, %v5248_v0  ;;  %v301_v26 = vadd.f32 %v5251_v55, %v5250_v51 }
 0x12f   :  { %816 = vmatpush.msra.mxu2 %v5242_v49  ;;  %836 = vmatpush.msra.mxu3 %v5243_v48 }
 0x130   :  { %777 = vmatpush.msra.mxu0 %v5244_v58  ;;  %797 = vmatpush.msra.mxu1 %v5245_v60  ;;  %v5252_v58 = vld [vmem:[#allocation69_spill] sm:$0xff] }
 0x131   :  { %817 = vmatpush.msra.mxu2 %v5246_v61  ;;  %837 = vmatpush.msra.mxu3 %v5247_v62  ;;  %v342_v60 = vadd.f32 %v5253_v39, %v5252_v58  ;;  %v5254_v61 = vld [vmem:[#allocation42_spill] sm:$0xff] }
 0x132   :  { %v383_v56 = vadd.f32 %v5254_v61, %v3425_v63 }
 0x18d   :  { %v565_v59 = vpop.f32.mrf.mxu0  ;;  %v585_v57 = vpop.f32.mrf.mxu1 }
 0x18e   :  { %v566_v13 = vadd.f32 %v565_v59, %v260_v54  ;;  %v586_v49 = vadd.f32 %v585_v57, %v301_v26 }
 0x190   :  { %v628_v52 = vmul.f32 0.5, %v566_v13  ;;  %v632_v48 = vmul.f32 0.5, %v586_v49 }
 0x192   :  { %2537 = vtanh.f32 %v628_v52 }
 0x193   :  { %2539 = vtanh.f32 %v632_v48 }
 0x194   :  { %v605_v62 = vpop.f32.mrf.mxu2  ;;  %v625_v47 = vpop.f32.mrf.mxu3 }
 0x195   :  { %v606_v53 = vadd.f32 %v605_v62, %v342_v60  ;;  %v626_v0 = vadd.f32 %v625_v47, %v383_v56 }
 0x197   :  { %2541 = vtanh.f32 %v606_v53  ;;  %v637_v55 = vmul.f32 0.5, %v626_v0 }
 0x198   :  { %v2538_v51 = vpop.eup %2537 }
 0x199   :  { %v2540_v46 = vpop.eup %2539  ;;  %v630_v59 = vmul.f32 0.5, %v2538_v51  ;;  %2543 = vtanh.f32 %v637_v55 }
 0x19a   :  { %v634_v54 = vmul.f32 0.5, %v2540_v46 }
 0x19b   :  { %v631_v13 = vadd.f32 0.5, %v630_v59 }
 0x19c   :  { %v635_v52 = vadd.f32 0.5, %v634_v54 }
 0x19d   :  { %v2542_v26 = vpop.eup %2541 }
 0x19e   :  { %v641_v39 = vmul.f32 %v635_v52, %v3429_v50  ;;  %v642_v57 = vmul.f32 %v2542_v26, %v631_v13 }
 0x19f   :  { %v2544_v49 = vpop.eup %2543 }
 0x1a0   :  { %v3511_v61 = vadd.f32 %v642_v57, %v641_v39  ;;  %v639_v60 = vmul.f32 0.5, %v2544_v49 }
 0x1a2   :  { %2545 = vtanh.f32 %v3511_v61  ;;  %v640_v47 = vadd.f32 0.5, %v639_v60 }
 0x1a8   :  { %v2546_v56 = vpop.eup %2545 }
 0x1a9   :  { %v3514_v62 = vmul.f32 %v2546_v56, %v640_v47  ;;  %v3605_v47 = vld [vmem:[#allocation9 + $0x1e8] sm:$0xff]  ;;  %v3608_v56 = vld [vmem:[#allocation9 + $0x1f0] sm:$0xff] }
 0x1ab   :  { %5255 = vst [vmem:[#allocation39_spill] sm:$0xff] %v3514_v62  ;;  %671 = vmatmul.f32.vlgmr.msrb.gmra.mxu0 %v3514_v62  ;;  %691 = vmatmul.f32.vlgmr.msrb.gmra.mxu1 %v3514_v62 }
 0x1ac   :  { %711 = vmatmul.f32.vlgmr.msrb.gmra.mxu2 %v3514_v62  ;;  %731 = vmatmul.f32.vlgmr.msrb.gmra.mxu3 %v3514_v62  ;;  %v3740_v62 = vld [vmem:[#allocation9 + $0x90] sm:$0xff] }
 0x1ad   :  { %869 = vmatpush.msrb.mxu0 %v3013_v1  ;;  %889 = vmatpush.msrb.mxu1 %v3015_v2  ;;  %v5256_v1 = vld [vmem:[#allocation17_spill] sm:$0xff]  ;;  %v5257_v2 = vld [vmem:[#allocation18_spill] sm:$0xff] }
 0x1ae   :  { %909 = vmatpush.msrb.mxu2 %v3017_v3  ;;  %929 = vmatpush.msrb.mxu3 %v3019_v4  ;;  %v5258_v3 = vld [vmem:[#allocation19_spill] sm:$0xff]  ;;  %v5259_v4 = vld [vmem:[#allocation20_spill] sm:$0xff] }
 0x1af   :  { %870 = vmatpush.msrb.mxu0 %v3021_v5  ;;  %890 = vmatpush.msrb.mxu1 %v3023_v6  ;;  %v5260_v5 = vld [vmem:[#allocation21_spill] sm:$0xff]  ;;  %v5261_v6 = vld [vmem:[#allocation22_spill] sm:$0xff]  ;;  %5290 = vst [vmem:[#allocation19_spill] sm:$0xff] %v3740_v62 }
 0x1b0   :  { %910 = vmatpush.msrb.mxu2 %v3027_v7  ;;  %930 = vmatpush.msrb.mxu3 %v3029_v8  ;;  %v5262_v7 = vld [vmem:[#allocation23_spill] sm:$0xff]  ;;  %v5263_v8 = vld [vmem:[#allocation24_spill] sm:$0xff] }
 0x1b1   :  { %871 = vmatpush.msrb.mxu0 %v3033_v9  ;;  %891 = vmatpush.msrb.mxu1 %v3035_v10  ;;  %v5264_v9 = vld [vmem:[#allocation25_spill] sm:$0xff]  ;;  %v5265_v10 = vld [vmem:[#allocation26_spill] sm:$0xff] }
 0x1b2   :  { %911 = vmatpush.msrb.mxu2 %v3039_v11  ;;  %931 = vmatpush.msrb.mxu3 %v3041_v12  ;;  %v5266_v11 = vld [vmem:[#allocation27_spill] sm:$0xff]  ;;  %v5267_v12 = vld [vmem:[#allocation28_spill] sm:$0xff] }
 0x1b3   :  { %872 = vmatpush.msrb.mxu0 %v3051_v14  ;;  %892 = vmatpush.msrb.mxu1 %v3053_v15  ;;  %v5268_v14 = vld [vmem:[#allocation29_spill] sm:$0xff]  ;;  %v5269_v15 = vld [vmem:[#allocation30_spill] sm:$0xff] }
 0x1b4   :  { %912 = vmatpush.msrb.mxu2 %v3056_v16  ;;  %932 = vmatpush.msrb.mxu3 %v3058_v17  ;;  %v5270_v16 = vld [vmem:[#allocation31_spill] sm:$0xff]  ;;  %v5271_v17 = vld [vmem:[#allocation32_spill] sm:$0xff] }
 0x1b5   :  { %873 = vmatpush.msrb.mxu0 %v3060_v18  ;;  %893 = vmatpush.msrb.mxu1 %v3062_v19  ;;  %v5272_v18 = vld [vmem:[#allocation33_spill] sm:$0xff]  ;;  %v5273_v19 = vld [vmem:[#allocation34_spill] sm:$0xff] }
 0x1b6   :  { %913 = vmatpush.msrb.mxu2 %v3066_v20  ;;  %933 = vmatpush.msrb.mxu3 %v3068_v21  ;;  %v5274_v20 = vld [vmem:[#allocation35_spill] sm:$0xff]  ;;  %v5275_v21 = vld [vmem:[#allocation36_spill] sm:$0xff] }
 0x1b7   :  { %874 = vmatpush.msrb.mxu0 %v3072_v22  ;;  %894 = vmatpush.msrb.mxu1 %v3074_v23  ;;  %v5276_v22 = vld [vmem:[#allocation37_spill] sm:$0xff]  ;;  %v5277_v23 = vld [vmem:[#allocation38_spill] sm:$0xff] }
 0x1b8   :  { %914 = vmatpush.msrb.mxu2 %v3078_v24  ;;  %934 = vmatpush.msrb.mxu3 %v3080_v25  ;;  %v5278_v24 = vld [vmem:[#allocation65_spill] sm:$0xff]  ;;  %v5279_v25 = vld [vmem:[#allocation43_spill] sm:$0xff] }
 0x1b9   :  { %875 = vmatpush.msrb.mxu0 %v3090_v27  ;;  %895 = vmatpush.msrb.mxu1 %v3092_v28  ;;  %v263_v27 = vadd.f32 %v5279_v25, %v5278_v24  ;;  %v5280_v28 = vld [vmem:[#allocation66_spill] sm:$0xff]  ;;  %v3641_v25 = vld [vmem:[#allocation9 + $0x188] sm:$0xff] }
 0x1ba   :  { %915 = vmatpush.msrb.mxu2 %v3095_v29  ;;  %935 = vmatpush.msrb.mxu3 %v3097_v30  ;;  %v5281_v29 = vld [vmem:[#allocation44_spill] sm:$0xff] }
 0x1bb   :  { %876 = vmatpush.msrb.mxu0 %v3099_v31  ;;  %896 = vmatpush.msrb.mxu1 %v3101_v32  ;;  %v304_v30 = vadd.f32 %v5281_v29, %v5280_v28  ;;  %v3647_v29 = vld [vmem:[#allocation9 + $0x198] sm:$0xff] }
 0x1bc   :  { %916 = vmatpush.msrb.mxu2 %v3105_v33  ;;  %936 = vmatpush.msrb.mxu3 %v3107_v34 }
 0x1bd   :  { %877 = vmatpush.msrb.mxu0 %v3111_v35  ;;  %897 = vmatpush.msrb.mxu1 %v3113_v36 }
 0x1be   :  { %917 = vmatpush.msrb.mxu2 %v3117_v37  ;;  %937 = vmatpush.msrb.mxu3 %v3119_v38  ;;  %v5282_v37 = vld [vmem:[#allocation45_spill] sm:$0xff] }
 0x1bf   :  { %878 = vmatpush.msrb.mxu0 %v3129_v40  ;;  %898 = vmatpush.msrb.mxu1 %v3131_v41  ;;  %v345_v38 = vadd.f32 %v5282_v37, %v5252_v58  ;;  %v5283_v40 = vld [vmem:[#allocation46_spill] sm:$0xff]  ;;  %v3671_v37 = vld [vmem:[#allocation9 + $0x158] sm:$0xff] }
 0x1c0   :  { %918 = vmatpush.msrb.mxu2 %v3134_v42  ;;  %938 = vmatpush.msrb.mxu3 %v3136_v43  ;;  %v386_v41 = vadd.f32 %v5283_v40, %v3425_v63  ;;  %v3677_v40 = vld [vmem:[#allocation9 + $0x128] sm:$0xff] }
 0x1c1   :  { %879 = vmatpush.msrb.mxu0 %v3138_v44  ;;  %899 = vmatpush.msrb.mxu1 %v3140_v45 }
 0x1c2   :  { %919 = vmatpush.msrb.mxu2 %v5256_v1  ;;  %939 = vmatpush.msrb.mxu3 %v5257_v2  ;;  %v3611_v1 = vld [vmem:[#allocation9 + $0x1f8] sm:$0xff]  ;;  %v3614_v2 = vld [vmem:[#allocation9 + $0x1c0] sm:$0xff] }
 0x1c3   :  { %880 = vmatpush.msrb.mxu0 %v5258_v3  ;;  %900 = vmatpush.msrb.mxu1 %v5259_v4  ;;  %v3617_v3 = vld [vmem:[#allocation9 + $0x1c8] sm:$0xff]  ;;  %v3620_v4 = vld [vmem:[#allocation9 + $0x1d0] sm:$0xff] }
 0x1c4   :  { %920 = vmatpush.msrb.mxu2 %v5260_v5  ;;  %940 = vmatpush.msrb.mxu3 %v5261_v6  ;;  %v3623_v5 = vld [vmem:[#allocation9 + $0x1d8] sm:$0xff]  ;;  %v3626_v6 = vld [vmem:[#allocation9 + $0x1a0] sm:$0xff] }
 0x1c5   :  { %881 = vmatpush.msrb.mxu0 %v5262_v7  ;;  %901 = vmatpush.msrb.mxu1 %v5263_v8  ;;  %v3629_v7 = vld [vmem:[#allocation9 + $0x1a8] sm:$0xff]  ;;  %v3632_v8 = vld [vmem:[#allocation9 + $0x1b0] sm:$0xff] }
 0x1c6   :  { %921 = vmatpush.msrb.mxu2 %v5264_v9  ;;  %941 = vmatpush.msrb.mxu3 %v5265_v10  ;;  %v3635_v9 = vld [vmem:[#allocation9 + $0x1b8] sm:$0xff]  ;;  %v3638_v10 = vld [vmem:[#allocation9 + $0x180] sm:$0xff] }
 0x1c7   :  { %882 = vmatpush.msrb.mxu0 %v5266_v11  ;;  %902 = vmatpush.msrb.mxu1 %v5267_v12 }
 0x1c8   :  { %922 = vmatpush.msrb.mxu2 %v5268_v14  ;;  %942 = vmatpush.msrb.mxu3 %v5269_v15 }
 0x1c9   :  { %883 = vmatpush.msrb.mxu0 %v5270_v16  ;;  %903 = vmatpush.msrb.mxu1 %v5271_v17 }
 0x1ca   :  { %923 = vmatpush.msrb.mxu2 %v5272_v18  ;;  %943 = vmatpush.msrb.mxu3 %v5273_v19 }
 0x1cb   :  { %884 = vmatpush.msrb.mxu0 %v5274_v20  ;;  %904 = vmatpush.msrb.mxu1 %v5275_v21 }
 0x1cc   :  { %924 = vmatpush.msrb.mxu2 %v5276_v22  ;;  %944 = vmatpush.msrb.mxu3 %v5277_v23 }
 0x228   :  { %v672_v31 = vpop.f32.mrf.mxu0  ;;  %v692_v32 = vpop.f32.mrf.mxu1 }
 0x229   :  { %v673_v33 = vadd.f32 %v672_v31, %v263_v27  ;;  %v693_v34 = vadd.f32 %v692_v32, %v304_v30  ;;  %v3644_v27 = vld [vmem:[#allocation9 + $0x190] sm:$0xff]  ;;  %v3650_v30 = vld [vmem:[#allocation9 + $0x160] sm:$0xff]  ;;  %v3653_v31 = vld [vmem:[#allocation9 + $0x168] sm:$0xff] }
 0x22a   :  { %v3656_v32 = vld [vmem:[#allocation9 + $0x170] sm:$0xff] }
 0x22b   :  { %v735_v35 = vmul.f32 0.5, %v673_v33  ;;  %v739_v36 = vmul.f32 0.5, %v693_v34  ;;  %v3659_v33 = vld [vmem:[#allocation9 + $0x178] sm:$0xff]  ;;  %v3662_v34 = vld [vmem:[#allocation9 + $0x140] sm:$0xff] }
 0x22d   :  { %2547 = vtanh.f32 %v735_v35  ;;  %v3665_v35 = vld [vmem:[#allocation9 + $0x148] sm:$0xff] }
 0x22e   :  { %2549 = vtanh.f32 %v739_v36  ;;  %v3668_v36 = vld [vmem:[#allocation9 + $0x150] sm:$0xff] }
 0x22f   :  { %v712_v42 = vpop.f32.mrf.mxu2  ;;  %v732_v43 = vpop.f32.mrf.mxu3 }
 0x230   :  { %v713_v44 = vadd.f32 %v712_v42, %v345_v38  ;;  %v733_v45 = vadd.f32 %v732_v43, %v386_v41  ;;  %v3674_v38 = vld [vmem:[#allocation9 + $0x120] sm:$0xff]  ;;  %v3680_v41 = vld [vmem:[#allocation9 + $0x130] sm:$0xff]  ;;  %v3683_v42 = vld [vmem:[#allocation9 + $0x138] sm:$0xff] }
 0x231   :  { %v3686_v43 = vld [vmem:[#allocation9 + $0x100] sm:$0xff] }
 0x232   :  { %2551 = vtanh.f32 %v713_v44  ;;  %v744_v46 = vmul.f32 0.5, %v733_v45  ;;  %v3689_v44 = vld [vmem:[#allocation9 + $0x108] sm:$0xff]  ;;  %v3692_v45 = vld [vmem:[#allocation9 + $0x110] sm:$0xff] }
 0x233   :  { %v2548_v50 = vpop.eup %2547 }
 0x234   :  { %v2550_v0 = vpop.eup %2549  ;;  %v737_v51 = vmul.f32 0.5, %v2548_v50  ;;  %2553 = vtanh.f32 %v744_v46  ;;  %v3695_v46 = vld [vmem:[#allocation9 + $0x118] sm:$0xff]  ;;  %v3698_v50 = vld [vmem:[#allocation9 + $0xe0] sm:$0xff] }
 0x235   :  { %v741_v48 = vmul.f32 0.5, %v2550_v0  ;;  %v3701_v0 = vld [vmem:[#allocation9 + $0xe8] sm:$0xff] }
 0x236   :  { %v738_v53 = vadd.f32 0.5, %v737_v51  ;;  %v3704_v51 = vld [vmem:[#allocation9 + $0xf0] sm:$0xff] }
 0x237   :  { %v742_v55 = vadd.f32 0.5, %v741_v48  ;;  %v3707_v48 = vld [vmem:[#allocation9 + $0xf8] sm:$0xff] }
 0x238   :  { %v2552_v59 = vpop.eup %2551 }
 0x239   :  { %v748_v54 = vmul.f32 %v742_v55, %v3511_v61  ;;  %v749_v13 = vmul.f32 %v2552_v59, %v738_v53  ;;  %v3602_v61 = vld [vmem:[#allocation9 + $0x1e0] sm:$0xff]  ;;  %v3713_v55 = vld [vmem:[#allocation9 + $0xc8] sm:$0xff]  ;;  %v3716_v59 = vld [vmem:[#allocation9 + $0xd0] sm:$0xff] }
 0x23a   :  { %v2554_v52 = vpop.eup %2553  ;;  %v3710_v53 = vld [vmem:[#allocation9 + $0xc0] sm:$0xff] }
 0x23b   :  { %v3593_v26 = vadd.f32 %v749_v13, %v748_v54  ;;  %v746_v39 = vmul.f32 0.5, %v2554_v52  ;;  %v3719_v54 = vld [vmem:[#allocation9 + $0xd8] sm:$0xff]  ;;  %v3722_v13 = vld [vmem:[#allocation9 + $0xa0] sm:$0xff]  ;;  %v3725_v52 = vld [vmem:[#allocation9 + $0xa8] sm:$0xff] }
 0x23c   :  { %5285 = vst [vmem:[#allocation69_spill] sm:$0xff] %v3725_v52 }
 0x23d   :  { %2555 = vtanh.f32 %v3593_v26  ;;  %v747_v57 = vadd.f32 0.5, %v746_v39  ;;  %v3728_v39 = vld [vmem:[#allocation9 + $0xb0] sm:$0xff] }
 0x23e   :  { %5286 = vst [vmem:[#allocation41_spill] sm:$0xff] %v3728_v39 }
 0x243   :  { %v2556_v49 = vpop.eup %2555 }
 0x244   :  { %v3596_v60 = vmul.f32 %v2556_v49, %v747_v57  ;;  %v3731_v57 = vld [vmem:[#allocation9 + $0xb8] sm:$0xff]  ;;  %v3734_v49 = vld [vmem:[#allocation9 + $0x80] sm:$0xff] }
 0x245   :  { %5287 = vst [vmem:[#allocation42_spill] sm:$0xff] %v3731_v57 }
 0x246   :  { %5284 = vst [vmem:[#allocation40_spill] sm:$0xff] %v3596_v60  ;;  %778 = vmatmul.f32.vlgmr.msra.gmra.mxu0 %v3596_v60  ;;  %798 = vmatmul.f32.vlgmr.msra.gmra.mxu1 %v3596_v60 }
 0x247   :  { %818 = vmatmul.f32.vlgmr.msra.gmra.mxu2 %v3596_v60  ;;  %838 = vmatmul.f32.vlgmr.msra.gmra.mxu3 %v3596_v60  ;;  %5288 = vst [vmem:[#allocation17_spill] sm:$0xff] %v3734_v49  ;;  %v3737_v60 = vld [vmem:[#allocation9 + $0x88] sm:$0xff] }
 0x248   :  { %976 = vmatpush.msra.mxu0 %v3602_v61  ;;  %996 = vmatpush.msra.mxu1 %v3605_v47  ;;  %5289 = vst [vmem:[#allocation18_spill] sm:$0xff] %v3737_v60 }
 0x249   :  { %1016 = vmatpush.msra.mxu2 %v3608_v56  ;;  %1036 = vmatpush.msra.mxu3 %v3611_v1 }
 0x24a   :  { %977 = vmatpush.msra.mxu0 %v3614_v2  ;;  %997 = vmatpush.msra.mxu1 %v3617_v3 }
 0x24b   :  { %1017 = vmatpush.msra.mxu2 %v3620_v4  ;;  %1037 = vmatpush.msra.mxu3 %v3623_v5 }
 0x24c   :  { %978 = vmatpush.msra.mxu0 %v3626_v6  ;;  %998 = vmatpush.msra.mxu1 %v3629_v7 }
 0x24d   :  { %1018 = vmatpush.msra.mxu2 %v3632_v8  ;;  %1038 = vmatpush.msra.mxu3 %v3635_v9 }
 0x24e   :  { %979 = vmatpush.msra.mxu0 %v3638_v10  ;;  %999 = vmatpush.msra.mxu1 %v3641_v25 }
 0x24f   :  { %1019 = vmatpush.msra.mxu2 %v3644_v27  ;;  %1039 = vmatpush.msra.mxu3 %v3647_v29 }
 0x250   :  { %980 = vmatpush.msra.mxu0 %v3650_v30  ;;  %1000 = vmatpush.msra.mxu1 %v3653_v31 }
 0x251   :  { %1020 = vmatpush.msra.mxu2 %v3656_v32  ;;  %1040 = vmatpush.msra.mxu3 %v3659_v33 }
 0x252   :  { %981 = vmatpush.msra.mxu0 %v3662_v34  ;;  %1001 = vmatpush.msra.mxu1 %v3665_v35 }
 0x253   :  { %1021 = vmatpush.msra.mxu2 %v3668_v36  ;;  %1041 = vmatpush.msra.mxu3 %v3671_v37 }
 0x254   :  { %982 = vmatpush.msra.mxu0 %v3674_v38  ;;  %1002 = vmatpush.msra.mxu1 %v3677_v40 }
 0x255   :  { %1022 = vmatpush.msra.mxu2 %v3680_v41  ;;  %1042 = vmatpush.msra.mxu3 %v3683_v42 }
 0x256   :  { %983 = vmatpush.msra.mxu0 %v3686_v43  ;;  %1003 = vmatpush.msra.mxu1 %v3689_v44 }
 0x257   :  { %1023 = vmatpush.msra.mxu2 %v3692_v45  ;;  %1043 = vmatpush.msra.mxu3 %v3695_v46 }
 0x258   :  { %984 = vmatpush.msra.mxu0 %v3698_v50  ;;  %1004 = vmatpush.msra.mxu1 %v3701_v0 }
 0x259   :  { %1024 = vmatpush.msra.mxu2 %v3704_v51  ;;  %1044 = vmatpush.msra.mxu3 %v3707_v48 }
 0x25a   :  { %985 = vmatpush.msra.mxu0 %v3710_v53  ;;  %1005 = vmatpush.msra.mxu1 %v3713_v55 }
 0x25b   :  { %1025 = vmatpush.msra.mxu2 %v3716_v59  ;;  %1045 = vmatpush.msra.mxu3 %v3719_v54 }
 0x25c   :  { %986 = vmatpush.msra.mxu0 %v3722_v13  ;;  %1006 = vmatpush.msra.mxu1 %v3725_v52  ;;  %v3743_v52 = vld [vmem:[#allocation9 + $0x98] sm:$0xff] }
 0x25d   :  { %1026 = vmatpush.msra.mxu2 %v3728_v39  ;;  %1046 = vmatpush.msra.mxu3 %v3731_v57  ;;  %5291 = vst [vmem:[#allocation20_spill] sm:$0xff] %v3743_v52  ;;  %v3746_v39 = vld [vmem:[#allocation9 + $0x60] sm:$0xff]  ;;  %v3749_v57 = vld [vmem:[#allocation9 + $0x68] sm:$0xff] }
 0x25e   :  { %987 = vmatpush.msra.mxu0 %v3734_v49  ;;  %1007 = vmatpush.msra.mxu1 %v3737_v60  ;;  %5292 = vst [vmem:[#allocation21_spill] sm:$0xff] %v3746_v39  ;;  %v3752_v49 = vld [vmem:[#allocation9 + $0x70] sm:$0xff]  ;;  %v3755_v60 = vld [vmem:[#allocation9 + $0x78] sm:$0xff] }
 0x25f   :  { %1027 = vmatpush.msra.mxu2 %v3740_v62  ;;  %1047 = vmatpush.msra.mxu3 %v3743_v52  ;;  %5293 = vst [vmem:[#allocation22_spill] sm:$0xff] %v3749_v57 }
 0x260   :  { %988 = vmatpush.msra.mxu0 %v3746_v39  ;;  %1008 = vmatpush.msra.mxu1 %v3749_v57  ;;  %5294 = vst [vmem:[#allocation23_spill] sm:$0xff] %v3752_v49 }
 0x261   :  { %1028 = vmatpush.msra.mxu2 %v3752_v49  ;;  %5295 = vst [vmem:[#allocation24_spill] sm:$0xff] %v3755_v60  ;;  %1048 = vmatpush.msra.mxu3 %v3755_v60 }
 0x262   :  { %989 = vmatpush.msra.mxu0 %v5266_v11  ;;  %1009 = vmatpush.msra.mxu1 %v5267_v12  ;;  %v5296_v11 = vld [vmem:[#allocation47_spill] sm:$0xff] }
 0x263   :  { %1029 = vmatpush.msra.mxu2 %v5268_v14  ;;  %1049 = vmatpush.msra.mxu3 %v5269_v15  ;;  %v266_v12 = vadd.f32 %v5296_v11, %v5278_v24  ;;  %v5297_v14 = vld [vmem:[#allocation48_spill] sm:$0xff] }
 0x264   :  { %990 = vmatpush.msra.mxu0 %v5270_v16  ;;  %1010 = vmatpush.msra.mxu1 %v5271_v17  ;;  %v307_v15 = vadd.f32 %v5297_v14, %v5280_v28 }
 0x265   :  { %1030 = vmatpush.msra.mxu2 %v5272_v18  ;;  %1050 = vmatpush.msra.mxu3 %v5273_v19 }
 0x266   :  { %991 = vmatpush.msra.mxu0 %v5274_v20  ;;  %1011 = vmatpush.msra.mxu1 %v5275_v21  ;;  %v5298_v20 = vld [vmem:[#allocation49_spill] sm:$0xff] }
 0x267   :  { %1031 = vmatpush.msra.mxu2 %v5276_v22  ;;  %1051 = vmatpush.msra.mxu3 %v5277_v23  ;;  %v348_v21 = vadd.f32 %v5298_v20, %v5252_v58  ;;  %v5299_v22 = vld [vmem:[#allocation50_spill] sm:$0xff] }
 0x268   :  { %v389_v57 = vadd.f32 %v5299_v22, %v3425_v63 }
 0x2c3   :  { %v779_v16 = vpop.f32.mrf.mxu0  ;;  %v799_v17 = vpop.f32.mrf.mxu1 }
 0x2c4   :  { %v780_v60 = vadd.f32 %v779_v16, %v266_v12  ;;  %v800_v18 = vadd.f32 %v799_v17, %v307_v15 }
 0x2c6   :  { %v842_v49 = vmul.f32 0.5, %v780_v60  ;;  %v846_v19 = vmul.f32 0.5, %v800_v18 }
 0x2c8   :  { %2557 = vtanh.f32 %v842_v49 }
 0x2c9   :  { %2559 = vtanh.f32 %v846_v19 }
 0x2ca   :  { %v819_v23 = vpop.f32.mrf.mxu2  ;;  %v839_v39 = vpop.f32.mrf.mxu3 }
 0x2cb   :  { %v820_v11 = vadd.f32 %v819_v23, %v348_v21  ;;  %v840_v24 = vadd.f32 %v839_v39, %v389_v57  ;;  %v5304_v21 = vld [vmem:[#allocation17_spill] sm:$0xff]  ;;  %v5305_v23 = vld [vmem:[#allocation18_spill] sm:$0xff] }
 0x2cd   :  { %2561 = vtanh.f32 %v820_v11  ;;  %v851_v14 = vmul.f32 0.5, %v840_v24  ;;  %v5306_v11 = vld [vmem:[#allocation20_spill] sm:$0xff] }
 0x2ce   :  { %v2558_v28 = vpop.eup %2557 }
 0x2cf   :  { %v2560_v52 = vpop.eup %2559  ;;  %v844_v12 = vmul.f32 0.5, %v2558_v28  ;;  %2563 = vtanh.f32 %v851_v14  ;;  %v5301_v28 = vld [vmem:[#allocation69_spill] sm:$0xff] }
 0x2d0   :  { %v848_v15 = vmul.f32 0.5, %v2560_v52  ;;  %v5303_v52 = vld [vmem:[#allocation42_spill] sm:$0xff]  ;;  %v5307_v14 = vld [vmem:[#allocation21_spill] sm:$0xff] }
 0x2d1   :  { %v845_v60 = vadd.f32 0.5, %v844_v12  ;;  %v5308_v12 = vld [vmem:[#allocation22_spill] sm:$0xff] }
 0x2d2   :  { %v849_v49 = vadd.f32 0.5, %v848_v15  ;;  %v5309_v15 = vld [vmem:[#allocation23_spill] sm:$0xff] }
 0x2d3   :  { %v2562_v16 = vpop.eup %2561 }
 0x2d4   :  { %v855_v17 = vmul.f32 %v849_v49, %v3593_v26  ;;  %v856_v18 = vmul.f32 %v2562_v16, %v845_v60  ;;  %v5302_v26 = vld [vmem:[#allocation41_spill] sm:$0xff]  ;;  %v5310_v60 = vld [vmem:[#allocation24_spill] sm:$0xff] }
 0x2d5   :  { %v2564_v20 = vpop.eup %2563  ;;  %v3840_v49 = vld [vmem:[#allocation9 + $0x40] sm:$0xff]  ;;  %v3843_v16 = vld [vmem:[#allocation9 + $0x48] sm:$0xff] }
 0x2d6   :  { %v3779_v22 = vadd.f32 %v856_v18, %v855_v17  ;;  %v853_v19 = vmul.f32 0.5, %v2564_v20  ;;  %5311 = vst [vmem:[#allocation26_spill] sm:$0xff] %v3840_v49  ;;  %v3846_v17 = vld [vmem:[#allocation9 + $0x50] sm:$0xff]  ;;  %v3849_v18 = vld [vmem:[#allocation9 + $0x58] sm:$0xff]  ;;  %v3852_v20 = vld [vmem:[#allocation9 + $0x20] sm:$0xff] }
 0x2d7   :  { %5312 = vst [vmem:[#allocation27_spill] sm:$0xff] %v3843_v16 }
 0x2d8   :  { %2565 = vtanh.f32 %v3779_v22  ;;  %v854_v39 = vadd.f32 0.5, %v853_v19  ;;  %5313 = vst [vmem:[#allocation28_spill] sm:$0xff] %v3846_v17  ;;  %v3855_v19 = vld [vmem:[#allocation9 + $0x28] sm:$0xff] }
 0x2d9   :  { %5314 = vst [vmem:[#allocation29_spill] sm:$0xff] %v3849_v18 }
 0x2da   :  { %5315 = vst [vmem:[#allocation30_spill] sm:$0xff] %v3852_v20 }
 0x2db   :  { %5316 = vst [vmem:[#allocation31_spill] sm:$0xff] %v3855_v19 }
 0x2de   :  { %v2566_v57 = vpop.eup %2565 }
 0x2df   :  { %v3782_v24 = vmul.f32 %v2566_v57, %v854_v39  ;;  %v3858_v39 = vld [vmem:[#allocation9 + $0x30] sm:$0xff]  ;;  %v3861_v57 = vld [vmem:[#allocation9 + $0x38] sm:$0xff] }
 0x2e0   :  { %5317 = vst [vmem:[#allocation32_spill] sm:$0xff] %v3858_v39 }
 0x2e1   :  { %5300 = vst [vmem:[#allocation25_spill] sm:$0xff] %v3782_v24  ;;  %885 = vmatmul.f32.vlgmr.msrb.gmra.mxu0 %v3782_v24  ;;  %905 = vmatmul.f32.vlgmr.msrb.gmra.mxu1 %v3782_v24 }
 0x2e2   :  { %925 = vmatmul.f32.vlgmr.msrb.gmra.mxu2 %v3782_v24  ;;  %945 = vmatmul.f32.vlgmr.msrb.gmra.mxu3 %v3782_v24  ;;  %5318 = vst [vmem:[#allocation33_spill] sm:$0xff] %v3861_v57  ;;  %v3864_v24 = vld [vmem:[#allocation9] sm:$0xff] }
 0x2e3   :  { %1083 = vmatpush.msrb.mxu0 %v3602_v61  ;;  %1103 = vmatpush.msrb.mxu1 %v3605_v47  ;;  %5319 = vst [vmem:[#allocation34_spill] sm:$0xff] %v3864_v24 }
 0x2e4   :  { %1123 = vmatpush.msrb.mxu2 %v3608_v56  ;;  %1143 = vmatpush.msrb.mxu3 %v3611_v1 }
 0x2e5   :  { %1084 = vmatpush.msrb.mxu0 %v3614_v2  ;;  %1104 = vmatpush.msrb.mxu1 %v3617_v3 }
 0x2e6   :  { %1124 = vmatpush.msrb.mxu2 %v3620_v4  ;;  %1144 = vmatpush.msrb.mxu3 %v3623_v5 }
 0x2e7   :  { %1085 = vmatpush.msrb.mxu0 %v3626_v6  ;;  %1105 = vmatpush.msrb.mxu1 %v3629_v7 }
 0x2e8   :  { %1125 = vmatpush.msrb.mxu2 %v3632_v8  ;;  %1145 = vmatpush.msrb.mxu3 %v3635_v9 }
 0x2e9   :  { %1086 = vmatpush.msrb.mxu0 %v3638_v10  ;;  %1106 = vmatpush.msrb.mxu1 %v3641_v25 }
 0x2ea   :  { %1126 = vmatpush.msrb.mxu2 %v3644_v27  ;;  %1146 = vmatpush.msrb.mxu3 %v3647_v29 }
 0x2eb   :  { %1087 = vmatpush.msrb.mxu0 %v3650_v30  ;;  %1107 = vmatpush.msrb.mxu1 %v3653_v31 }
 0x2ec   :  { %1127 = vmatpush.msrb.mxu2 %v3656_v32  ;;  %1147 = vmatpush.msrb.mxu3 %v3659_v33 }
 0x2ed   :  { %1088 = vmatpush.msrb.mxu0 %v3662_v34  ;;  %1108 = vmatpush.msrb.mxu1 %v3665_v35 }
 0x2ee   :  { %1128 = vmatpush.msrb.mxu2 %v3668_v36  ;;  %1148 = vmatpush.msrb.mxu3 %v3671_v37 }
 0x2ef   :  { %1089 = vmatpush.msrb.mxu0 %v3674_v38  ;;  %1109 = vmatpush.msrb.mxu1 %v3677_v40 }
 0x2f0   :  { %1129 = vmatpush.msrb.mxu2 %v3680_v41  ;;  %1149 = vmatpush.msrb.mxu3 %v3683_v42 }
 0x2f1   :  { %1090 = vmatpush.msrb.mxu0 %v3686_v43  ;;  %1110 = vmatpush.msrb.mxu1 %v3689_v44 }
 0x2f2   :  { %1130 = vmatpush.msrb.mxu2 %v3692_v45  ;;  %1150 = vmatpush.msrb.mxu3 %v3695_v46 }
 0x2f3   :  { %1091 = vmatpush.msrb.mxu0 %v3698_v50  ;;  %1111 = vmatpush.msrb.mxu1 %v3701_v0 }
 0x2f4   :  { %1131 = vmatpush.msrb.mxu2 %v3704_v51  ;;  %1151 = vmatpush.msrb.mxu3 %v3707_v48 }
 0x2f5   :  { %1092 = vmatpush.msrb.mxu0 %v3710_v53  ;;  %1112 = vmatpush.msrb.mxu1 %v3713_v55 }
 0x2f6   :  { %1132 = vmatpush.msrb.mxu2 %v3716_v59  ;;  %1152 = vmatpush.msrb.mxu3 %v3719_v54 }
 0x2f7   :  { %1093 = vmatpush.msrb.mxu0 %v3722_v13  ;;  %1113 = vmatpush.msrb.mxu1 %v5301_v28 }
 0x2f8   :  { %1133 = vmatpush.msrb.mxu2 %v5302_v26  ;;  %1153 = vmatpush.msrb.mxu3 %v5303_v52 }
 0x2f9   :  { %1094 = vmatpush.msrb.mxu0 %v5304_v21  ;;  %1114 = vmatpush.msrb.mxu1 %v5305_v23  ;;  %v5328_v23 = vld [vmem:[#allocation54_spill] sm:$0xff] }
 0x2fa   :  { %1134 = vmatpush.msrb.mxu2 %v3740_v62  ;;  %1154 = vmatpush.msrb.mxu3 %v5306_v11  ;;  %v5327_v62 = vld [vmem:[#allocation53_spill] sm:$0xff]  ;;  %v392_v21 = vadd.f32 %v5328_v23, %v3425_v63 }
 0x2fb   :  { %1095 = vmatpush.msrb.mxu0 %v5307_v14  ;;  %1115 = vmatpush.msrb.mxu1 %v5308_v12 }
 0x2fc   :  { %1135 = vmatpush.msrb.mxu2 %v5309_v15  ;;  %1155 = vmatpush.msrb.mxu3 %v5310_v60 }
 0x2fd   :  { %1096 = vmatpush.msrb.mxu0 %v3840_v49  ;;  %1116 = vmatpush.msrb.mxu1 %v3843_v16  ;;  %v5326_v49 = vld [vmem:[#allocation52_spill] sm:$0xff] }
 0x2fe   :  { %1136 = vmatpush.msrb.mxu2 %v3846_v17  ;;  %1156 = vmatpush.msrb.mxu3 %v3849_v18  ;;  %v3867_v18 = vld [vmem:[#allocation9 + $0x8] sm:$0xff]  ;;  %v5324_v17 = vld [vmem:[#allocation51_spill] sm:$0xff] }
 0x2ff   :  { %1097 = vmatpush.msrb.mxu0 %v3852_v20  ;;  %1117 = vmatpush.msrb.mxu1 %v3855_v19  ;;  %5320 = vst [vmem:[#allocation35_spill] sm:$0xff] %v3867_v18  ;;  %v3870_v20 = vld [vmem:[#allocation9 + $0x10] sm:$0xff]  ;;  %v3873_v19 = vld [vmem:[#allocation9 + $0x18] sm:$0xff] }
 0x300   :  { %1137 = vmatpush.msrb.mxu2 %v3858_v39  ;;  %1157 = vmatpush.msrb.mxu3 %v3861_v57  ;;  %5321 = vst [vmem:[#allocation36_spill] sm:$0xff] %v3870_v20  ;;  %v5323_v39 = vld [vmem:[#allocation65_spill] sm:$0xff]  ;;  %v5325_v57 = vld [vmem:[#allocation66_spill] sm:$0xff] }
 0x301   :  { %1098 = vmatpush.msrb.mxu0 %v3864_v24  ;;  %1118 = vmatpush.msrb.mxu1 %v3867_v18  ;;  %5322 = vst [vmem:[#allocation37_spill] sm:$0xff] %v3873_v19  ;;  %v269_v16 = vadd.f32 %v5324_v17, %v5323_v39  ;;  %v310_v60 = vadd.f32 %v5326_v49, %v5325_v57 }
 0x302   :  { %1138 = vmatpush.msrb.mxu2 %v3870_v20  ;;  %1158 = vmatpush.msrb.mxu3 %v3873_v19  ;;  %v351_v20 = vadd.f32 %v5327_v62, %v5252_v58 }
 0x35e   :  { %v886_v15 = vpop.f32.mrf.mxu0  ;;  %v906_v24 = vpop.f32.mrf.mxu1 }
 0x35f   :  { %v887_v12 = vadd.f32 %v886_v15, %v269_v16  ;;  %v907_v14 = vadd.f32 %v906_v24, %v310_v60 }
 0x361   :  { %v949_v11 = vmul.f32 0.5, %v887_v12  ;;  %v953_v18 = vmul.f32 0.5, %v907_v14 }
 0x363   :  { %2567 = vtanh.f32 %v949_v11 }
 0x364   :  { %2569 = vtanh.f32 %v953_v18 }
 0x365   :  { %v926_v19 = vpop.f32.mrf.mxu2  ;;  %v946_v52 = vpop.f32.mrf.mxu3 }
 0x366   :  { %v927_v17 = vadd.f32 %v926_v19, %v351_v20  ;;  %v947_v39 = vadd.f32 %v946_v52, %v392_v21 }
 0x368   :  { %2571 = vtanh.f32 %v927_v17  ;;  %v958_v49 = vmul.f32 0.5, %v947_v39 }
 0x369   :  { %v2568_v57 = vpop.eup %2567 }
 0x36a   :  { %v2570_v26 = vpop.eup %2569  ;;  %v951_v15 = vmul.f32 0.5, %v2568_v57  ;;  %2573 = vtanh.f32 %v958_v49 }
 0x36b   :  { %v955_v24 = vmul.f32 0.5, %v2570_v26 }
 0x36c   :  { %v952_v14 = vadd.f32 0.5, %v951_v15 }
 0x36d   :  { %v956_v11 = vadd.f32 0.5, %v955_v24 }
 0x36e   :  { %v2572_v12 = vpop.eup %2571 }
 0x36f   :  { %v962_v62 = vmul.f32 %v956_v11, %v3779_v22  ;;  %v963_v60 = vmul.f32 %v2572_v12, %v952_v14 }
 0x370   :  { %v2574_v16 = vpop.eup %2573 }
 0x371   :  { %v3885_v23 = vadd.f32 %v963_v60, %v962_v62  ;;  %v960_v18 = vmul.f32 0.5, %v2574_v16 }
 0x373   :  { %2575 = vtanh.f32 %v3885_v23  ;;  %v961_v52 = vadd.f32 0.5, %v960_v18 }
 0x379   :  { %v2576_v21 = vpop.eup %2575 }
 0x37a   :  { %v3888_v20 = vmul.f32 %v2576_v21, %v961_v52  ;;  %v1351_v52 = vld [vmem:[#allocation7 + $0x1e8] sm:$0xff]  ;;  %v1352_v21 = vld [vmem:[#allocation7 + $0x1f0] sm:$0xff] }
 0x37c   :  { %992 = vmatmul.f32.vlgmr.msra.gmra.mxu0 %v3888_v20  ;;  %1012 = vmatmul.f32.vlgmr.msra.gmra.mxu1 %v3888_v20 }
 0x37d   :  { %1032 = vmatmul.f32.vlgmr.msra.gmra.mxu2 %v3888_v20  ;;  %1052 = vmatmul.f32.vlgmr.msra.gmra.mxu3 %v3888_v20 }
 0x37e   :  { %1190 = vmatpush.msra.mxu0 %v3602_v61  ;;  %1210 = vmatpush.msra.mxu1 %v3605_v47  ;;  %v5329_v61 = vld [vmem:[#allocation41_spill] sm:$0xff]  ;;  %v5330_v47 = vld [vmem:[#allocation42_spill] sm:$0xff] }
 0x37f   :  { %1230 = vmatpush.msra.mxu2 %v3608_v56  ;;  %1250 = vmatpush.msra.mxu3 %v3611_v1  ;;  %v5331_v56 = vld [vmem:[#allocation17_spill] sm:$0xff]  ;;  %v5332_v1 = vld [vmem:[#allocation18_spill] sm:$0xff] }
 0x380   :  { %1191 = vmatpush.msra.mxu0 %v3614_v2  ;;  %1211 = vmatpush.msra.mxu1 %v3617_v3  ;;  %v5333_v2 = vld [vmem:[#allocation19_spill] sm:$0xff]  ;;  %v5334_v3 = vld [vmem:[#allocation20_spill] sm:$0xff] }
 0x381   :  { %1231 = vmatpush.msra.mxu2 %v3620_v4  ;;  %1251 = vmatpush.msra.mxu3 %v3623_v5  ;;  %v5335_v4 = vld [vmem:[#allocation21_spill] sm:$0xff]  ;;  %v5336_v5 = vld [vmem:[#allocation22_spill] sm:$0xff] }
 0x382   :  { %1192 = vmatpush.msra.mxu0 %v3626_v6  ;;  %1212 = vmatpush.msra.mxu1 %v3629_v7  ;;  %v5337_v6 = vld [vmem:[#allocation23_spill] sm:$0xff]  ;;  %v5338_v7 = vld [vmem:[#allocation24_spill] sm:$0xff] }
 0x383   :  { %1232 = vmatpush.msra.mxu2 %v3632_v8  ;;  %1252 = vmatpush.msra.mxu3 %v3635_v9  ;;  %v5339_v8 = vld [vmem:[#allocation26_spill] sm:$0xff]  ;;  %v5340_v9 = vld [vmem:[#allocation27_spill] sm:$0xff] }
 0x384   :  { %1193 = vmatpush.msra.mxu0 %v3638_v10  ;;  %1213 = vmatpush.msra.mxu1 %v3641_v25  ;;  %v5341_v10 = vld [vmem:[#allocation28_spill] sm:$0xff]  ;;  %v5342_v25 = vld [vmem:[#allocation29_spill] sm:$0xff] }
 0x385   :  { %1233 = vmatpush.msra.mxu2 %v3644_v27  ;;  %1253 = vmatpush.msra.mxu3 %v3647_v29  ;;  %v5343_v27 = vld [vmem:[#allocation30_spill] sm:$0xff]  ;;  %v5344_v29 = vld [vmem:[#allocation31_spill] sm:$0xff] }
 0x386   :  { %1194 = vmatpush.msra.mxu0 %v3650_v30  ;;  %1214 = vmatpush.msra.mxu1 %v3653_v31  ;;  %v5345_v30 = vld [vmem:[#allocation32_spill] sm:$0xff]  ;;  %v5346_v31 = vld [vmem:[#allocation33_spill] sm:$0xff] }
 0x387   :  { %1234 = vmatpush.msra.mxu2 %v3656_v32  ;;  %1254 = vmatpush.msra.mxu3 %v3659_v33  ;;  %v5347_v32 = vld [vmem:[#allocation34_spill] sm:$0xff]  ;;  %v5348_v33 = vld [vmem:[#allocation35_spill] sm:$0xff] }
 0x388   :  { %1195 = vmatpush.msra.mxu0 %v3662_v34  ;;  %1215 = vmatpush.msra.mxu1 %v3665_v35  ;;  %v5349_v34 = vld [vmem:[#allocation36_spill] sm:$0xff]  ;;  %v5350_v35 = vld [vmem:[#allocation37_spill] sm:$0xff] }
 0x389   :  { %1235 = vmatpush.msra.mxu2 %v3668_v36  ;;  %1255 = vmatpush.msra.mxu3 %v3671_v37  ;;  %v5351_v36 = vld [vmem:[#allocation65_spill] sm:$0xff]  ;;  %v5352_v37 = vld [vmem:[#allocation55_spill] sm:$0xff] }
 0x38a   :  { %1196 = vmatpush.msra.mxu0 %v3674_v38  ;;  %1216 = vmatpush.msra.mxu1 %v3677_v40  ;;  %v272_v38 = vadd.f32 %v5352_v37, %v5351_v36  ;;  %v5353_v40 = vld [vmem:[#allocation66_spill] sm:$0xff]  ;;  %v1327_v37 = vld [vmem:[#allocation7 + $0x128] sm:$0xff] }
 0x38b   :  { %1236 = vmatpush.msra.mxu2 %v3680_v41  ;;  %1256 = vmatpush.msra.mxu3 %v3683_v42  ;;  %v5354_v41 = vld [vmem:[#allocation56_spill] sm:$0xff] }
 0x38c   :  { %1197 = vmatpush.msra.mxu0 %v3686_v43  ;;  %1217 = vmatpush.msra.mxu1 %v3689_v44  ;;  %v313_v42 = vadd.f32 %v5354_v41, %v5353_v40  ;;  %v1329_v41 = vld [vmem:[#allocation7 + $0x138] sm:$0xff] }
 0x38d   :  { %1237 = vmatpush.msra.mxu2 %v3692_v45  ;;  %1257 = vmatpush.msra.mxu3 %v3695_v46 }
 0x38e   :  { %1198 = vmatpush.msra.mxu0 %v3698_v50  ;;  %1218 = vmatpush.msra.mxu1 %v3701_v0 }
 0x38f   :  { %1238 = vmatpush.msra.mxu2 %v3704_v51  ;;  %1258 = vmatpush.msra.mxu3 %v3707_v48  ;;  %v5355_v51 = vld [vmem:[#allocation57_spill] sm:$0xff] }
 0x390   :  { %1199 = vmatpush.msra.mxu0 %v3710_v53  ;;  %1219 = vmatpush.msra.mxu1 %v3713_v55  ;;  %v354_v48 = vadd.f32 %v5355_v51, %v5252_v58  ;;  %v5356_v53 = vld [vmem:[#allocation58_spill] sm:$0xff]  ;;  %v1321_v51 = vld [vmem:[#allocation7 + $0xf8] sm:$0xff] }
 0x391   :  { %1239 = vmatpush.msra.mxu2 %v3716_v59  ;;  %1259 = vmatpush.msra.mxu3 %v3719_v54  ;;  %v395_v55 = vadd.f32 %v5356_v53, %v3425_v63  ;;  %v1315_v53 = vld [vmem:[#allocation7 + $0xc8] sm:$0xff] }
 0x392   :  { %1200 = vmatpush.msra.mxu0 %v3722_v13  ;;  %1220 = vmatpush.msra.mxu1 %v5301_v28 }
 0x393   :  { %1240 = vmatpush.msra.mxu2 %v5329_v61  ;;  %1260 = vmatpush.msra.mxu3 %v5330_v47  ;;  %v1353_v61 = vld [vmem:[#allocation7 + $0x1f8] sm:$0xff]  ;;  %v1346_v47 = vld [vmem:[#allocation7 + $0x1c0] sm:$0xff] }
 0x394   :  { %1201 = vmatpush.msra.mxu0 %v5331_v56  ;;  %1221 = vmatpush.msra.mxu1 %v5332_v1  ;;  %v1347_v56 = vld [vmem:[#allocation7 + $0x1c8] sm:$0xff]  ;;  %v1348_v1 = vld [vmem:[#allocation7 + $0x1d0] sm:$0xff] }
 0x395   :  { %1241 = vmatpush.msra.mxu2 %v5333_v2  ;;  %1261 = vmatpush.msra.mxu3 %v5334_v3  ;;  %v1349_v2 = vld [vmem:[#allocation7 + $0x1d8] sm:$0xff]  ;;  %v1342_v3 = vld [vmem:[#allocation7 + $0x1a0] sm:$0xff] }
 0x396   :  { %1202 = vmatpush.msra.mxu0 %v5335_v4  ;;  %1222 = vmatpush.msra.mxu1 %v5336_v5  ;;  %v1343_v4 = vld [vmem:[#allocation7 + $0x1a8] sm:$0xff]  ;;  %v1344_v5 = vld [vmem:[#allocation7 + $0x1b0] sm:$0xff] }
 0x397   :  { %1242 = vmatpush.msra.mxu2 %v5337_v6  ;;  %1262 = vmatpush.msra.mxu3 %v5338_v7  ;;  %v1345_v6 = vld [vmem:[#allocation7 + $0x1b8] sm:$0xff]  ;;  %v1338_v7 = vld [vmem:[#allocation7 + $0x180] sm:$0xff] }
 0x398   :  { %1203 = vmatpush.msra.mxu0 %v5339_v8  ;;  %1223 = vmatpush.msra.mxu1 %v5340_v9  ;;  %v1339_v8 = vld [vmem:[#allocation7 + $0x188] sm:$0xff]  ;;  %v1340_v9 = vld [vmem:[#allocation7 + $0x190] sm:$0xff] }
 0x399   :  { %1243 = vmatpush.msra.mxu2 %v5341_v10  ;;  %1263 = vmatpush.msra.mxu3 %v5342_v25  ;;  %v1341_v10 = vld [vmem:[#allocation7 + $0x198] sm:$0xff]  ;;  %v1334_v25 = vld [vmem:[#allocation7 + $0x160] sm:$0xff] }
 0x39a   :  { %1204 = vmatpush.msra.mxu0 %v5343_v27  ;;  %1224 = vmatpush.msra.mxu1 %v5344_v29  ;;  %v1335_v27 = vld [vmem:[#allocation7 + $0x168] sm:$0xff]  ;;  %v1336_v29 = vld [vmem:[#allocation7 + $0x170] sm:$0xff] }
 0x39b   :  { %1244 = vmatpush.msra.mxu2 %v5345_v30  ;;  %1264 = vmatpush.msra.mxu3 %v5346_v31  ;;  %v1337_v30 = vld [vmem:[#allocation7 + $0x178] sm:$0xff]  ;;  %v1330_v31 = vld [vmem:[#allocation7 + $0x140] sm:$0xff] }
 0x39c   :  { %1205 = vmatpush.msra.mxu0 %v5347_v32  ;;  %1225 = vmatpush.msra.mxu1 %v5348_v33  ;;  %v1331_v32 = vld [vmem:[#allocation7 + $0x148] sm:$0xff]  ;;  %v1332_v33 = vld [vmem:[#allocation7 + $0x150] sm:$0xff] }
 0x39d   :  { %1245 = vmatpush.msra.mxu2 %v5349_v34  ;;  %1265 = vmatpush.msra.mxu3 %v5350_v35  ;;  %v1333_v34 = vld [vmem:[#allocation7 + $0x158] sm:$0xff]  ;;  %v1326_v35 = vld [vmem:[#allocation7 + $0x120] sm:$0xff] }
 0x3f9   :  { %v993_v43 = vpop.f32.mrf.mxu0  ;;  %v1013_v44 = vpop.f32.mrf.mxu1 }
 0x3fa   :  { %v994_v45 = vadd.f32 %v993_v43, %v272_v38  ;;  %v1014_v46 = vadd.f32 %v1013_v44, %v313_v42  ;;  %v1328_v38 = vld [vmem:[#allocation7 + $0x130] sm:$0xff]  ;;  %v1322_v42 = vld [vmem:[#allocation7 + $0x100] sm:$0xff]  ;;  %v1323_v43 = vld [vmem:[#allocation7 + $0x108] sm:$0xff] }
 0x3fb   :  { %v1324_v44 = vld [vmem:[#allocation7 + $0x110] sm:$0xff] }
 0x3fc   :  { %v1056_v50 = vmul.f32 0.5, %v994_v45  ;;  %v1060_v0 = vmul.f32 0.5, %v1014_v46  ;;  %v1325_v45 = vld [vmem:[#allocation7 + $0x118] sm:$0xff]  ;;  %v1318_v46 = vld [vmem:[#allocation7 + $0xe0] sm:$0xff] }
 0x3fe   :  { %2577 = vtanh.f32 %v1056_v50  ;;  %v1319_v50 = vld [vmem:[#allocation7 + $0xe8] sm:$0xff] }
 0x3ff   :  { %2579 = vtanh.f32 %v1060_v0  ;;  %v1320_v0 = vld [vmem:[#allocation7 + $0xf0] sm:$0xff] }
 0x400   :  { %v1033_v59 = vpop.f32.mrf.mxu2  ;;  %v1053_v54 = vpop.f32.mrf.mxu3 }
 0x401   :  { %v1034_v13 = vadd.f32 %v1033_v59, %v354_v48  ;;  %v1054_v22 = vadd.f32 %v1053_v54, %v395_v55  ;;  %v1314_v48 = vld [vmem:[#allocation7 + $0xc0] sm:$0xff]  ;;  %v1316_v55 = vld [vmem:[#allocation7 + $0xd0] sm:$0xff]  ;;  %v1317_v59 = vld [vmem:[#allocation7 + $0xd8] sm:$0xff] }
 0x402   :  { %v1310_v54 = vld [vmem:[#allocation7 + $0xa0] sm:$0xff] }
 0x403   :  { %2581 = vtanh.f32 %v1034_v13  ;;  %v1065_v28 = vmul.f32 0.5, %v1054_v22  ;;  %v1311_v13 = vld [vmem:[#allocation7 + $0xa8] sm:$0xff]  ;;  %v1312_v22 = vld [vmem:[#allocation7 + $0xb0] sm:$0xff] }
 0x404   :  { %v2578_v26 = vpop.eup %2577 }
 0x405   :  { %v2580_v19 = vpop.eup %2579  ;;  %v1058_v39 = vmul.f32 0.5, %v2578_v26  ;;  %2583 = vtanh.f32 %v1065_v28  ;;  %v1313_v28 = vld [vmem:[#allocation7 + $0xb8] sm:$0xff]  ;;  %v1306_v26 = vld [vmem:[#allocation7 + $0x80] sm:$0xff] }
 0x406   :  { %v1062_v57 = vmul.f32 0.5, %v2580_v19  ;;  %v1307_v19 = vld [vmem:[#allocation7 + $0x88] sm:$0xff] }
 0x407   :  { %v1059_v17 = vadd.f32 0.5, %v1058_v39  ;;  %v1308_v39 = vld [vmem:[#allocation7 + $0x90] sm:$0xff] }
 0x408   :  { %v1063_v49 = vadd.f32 0.5, %v1062_v57  ;;  %v1309_v57 = vld [vmem:[#allocation7 + $0x98] sm:$0xff] }
 0x409   :  { %v2582_v15 = vpop.eup %2581 }
 0x40a   :  { %v1069_v24 = vmul.f32 %v1063_v49, %v3885_v23  ;;  %v1070_v14 = vmul.f32 %v2582_v15, %v1059_v17  ;;  %v1350_v23 = vld [vmem:[#allocation7 + $0x1e0] sm:$0xff]  ;;  %v5357_v17 = vld [vmem:[#allocation59_spill] sm:$0xff] }
 0x40b   :  { %v2584_v11 = vpop.eup %2583  ;;  %v275_v49 = vadd.f32 %v5357_v17, %v5351_v36  ;;  %v5358_v15 = vld [vmem:[#allocation60_spill] sm:$0xff]  ;;  %v4018_v17 = vld [vmem:[#allocation9 + $0x3d0] sm:$0xff] }
 0x40c   :  { %v3967_v12 = vadd.f32 %v1070_v14, %v1069_v24  ;;  %v1067_v62 = vmul.f32 0.5, %v2584_v11  ;;  %v316_v24 = vadd.f32 %v5358_v15, %v5353_v40  ;;  %v1302_v14 = vld [vmem:[#allocation7 + $0x60] sm:$0xff]  ;;  %v1303_v11 = vld [vmem:[#allocation7 + $0x68] sm:$0xff] }
 0x40d   :  { %v4023_v15 = vld [vmem:[#allocation9 + $0x3a0] sm:$0xff] }
 0x40e   :  { %2585 = vtanh.f32 %v3967_v12  ;;  %v1068_v60 = vadd.f32 0.5, %v1067_v62  ;;  %v1304_v62 = vld [vmem:[#allocation7 + $0x70] sm:$0xff] }
 0x414   :  { %v2586_v16 = vpop.eup %2585 }
 0x415   :  { %v3970_v18 = vmul.f32 %v2586_v16, %v1068_v60 }
 0x417   :  { %1099 = vmatmul.f32.vlgmr.msrb.gmra.mxu0 %v3970_v18  ;;  %1119 = vmatmul.f32.vlgmr.msrb.gmra.mxu1 %v3970_v18 }
 0x418   :  { %1139 = vmatmul.f32.vlgmr.msrb.gmra.mxu2 %v3970_v18  ;;  %1159 = vmatmul.f32.vlgmr.msrb.gmra.mxu3 %v3970_v18 }
 0x419   :  { %1437 = vmatpush.msrb.mxu0 %v1350_v23  ;;  %1478 = vmatpush.msrb.mxu1 %v1351_v52  ;;  %v1305_v23 = vld [vmem:[#allocation7 + $0x78] sm:$0xff]  ;;  %v1298_v52 = vld [vmem:[#allocation7 + $0x40] sm:$0xff] }
 0x41a   :  { %1519 = vmatpush.msrb.mxu2 %v1352_v21  ;;  %1560 = vmatpush.msrb.mxu3 %v1353_v61  ;;  %v1299_v21 = vld [vmem:[#allocation7 + $0x48] sm:$0xff] }
 0x41b   :  { %1438 = vmatpush.msrb.mxu0 %v1346_v47  ;;  %1479 = vmatpush.msrb.mxu1 %v1347_v56  ;;  %v1300_v56 = vld [vmem:[#allocation7 + $0x50] sm:$0xff] }
 0x41c   :  { %1520 = vmatpush.msrb.mxu2 %v1348_v1  ;;  %1561 = vmatpush.msrb.mxu3 %v1349_v2  ;;  %v1301_v1 = vld [vmem:[#allocation7 + $0x58] sm:$0xff]  ;;  %v1294_v2 = vld [vmem:[#allocation7 + $0x20] sm:$0xff] }
 0x41d   :  { %1439 = vmatpush.msrb.mxu0 %v1342_v3  ;;  %1480 = vmatpush.msrb.mxu1 %v1343_v4  ;;  %v1295_v3 = vld [vmem:[#allocation7 + $0x28] sm:$0xff]  ;;  %v1296_v4 = vld [vmem:[#allocation7 + $0x30] sm:$0xff] }
 0x41e   :  { %1521 = vmatpush.msrb.mxu2 %v1344_v5  ;;  %1562 = vmatpush.msrb.mxu3 %v1345_v6  ;;  %v1297_v5 = vld [vmem:[#allocation7 + $0x38] sm:$0xff] }
 0x41f   :  { %1440 = vmatpush.msrb.mxu0 %v1338_v7  ;;  %1481 = vmatpush.msrb.mxu1 %v1339_v8  ;;  %v1290_v8 = vld [vmem:[#allocation7] sm:$0xff] }
 0x420   :  { %1522 = vmatpush.msrb.mxu2 %v1340_v9  ;;  %1563 = vmatpush.msrb.mxu3 %v1341_v10  ;;  %v1291_v9 = vld [vmem:[#allocation7 + $0x8] sm:$0xff]  ;;  %v1292_v10 = vld [vmem:[#allocation7 + $0x10] sm:$0xff] }
 0x421   :  { %1441 = vmatpush.msrb.mxu0 %v1334_v25  ;;  %1482 = vmatpush.msrb.mxu1 %v1335_v27  ;;  %v1293_v25 = vld [vmem:[#allocation7 + $0x18] sm:$0xff]  ;;  %v5359_v27 = vld [vmem:[#allocation61_spill] sm:$0xff] }
 0x422   :  { %1523 = vmatpush.msrb.mxu2 %v1336_v29  ;;  %1564 = vmatpush.msrb.mxu3 %v1337_v30  ;;  %v357_v29 = vadd.f32 %v5359_v27, %v5252_v58  ;;  %v5360_v30 = vld [vmem:[#allocation62_spill] sm:$0xff]  ;;  %v4115_v27 = vld [vmem:[#allocation9 + $0x2e8] sm:$0xff] }
 0x423   :  { %1442 = vmatpush.msrb.mxu0 %v1330_v31  ;;  %1483 = vmatpush.msrb.mxu1 %v1331_v32  ;;  %v398_v31 = vadd.f32 %v5360_v30, %v3425_v63  ;;  %v4123_v30 = vld [vmem:[#allocation9 + $0x318] sm:$0xff] }
 0x424   :  { %1524 = vmatpush.msrb.mxu2 %v1332_v33  ;;  %1565 = vmatpush.msrb.mxu3 %v1333_v34 }
 0x425   :  { %1443 = vmatpush.msrb.mxu0 %v1326_v35  ;;  %1484 = vmatpush.msrb.mxu1 %v1327_v37 }
 0x426   :  { %1525 = vmatpush.msrb.mxu2 %v1328_v38  ;;  %1566 = vmatpush.msrb.mxu3 %v1329_v41 }
 0x427   :  { %1444 = vmatpush.msrb.mxu0 %v1322_v42  ;;  %1485 = vmatpush.msrb.mxu1 %v1323_v43 }
 0x428   :  { %1526 = vmatpush.msrb.mxu2 %v1324_v44  ;;  %1567 = vmatpush.msrb.mxu3 %v1325_v45 }
 0x429   :  { %1445 = vmatpush.msrb.mxu0 %v1318_v46  ;;  %1486 = vmatpush.msrb.mxu1 %v1319_v50 }
 0x42a   :  { %1527 = vmatpush.msrb.mxu2 %v1320_v0  ;;  %1568 = vmatpush.msrb.mxu3 %v1321_v51 }
 0x42b   :  { %1446 = vmatpush.msrb.mxu0 %v1314_v48  ;;  %1487 = vmatpush.msrb.mxu1 %v1315_v53 }
 0x42c   :  { %1528 = vmatpush.msrb.mxu2 %v1316_v55  ;;  %1569 = vmatpush.msrb.mxu3 %v1317_v59 }
 0x42d   :  { %1447 = vmatpush.msrb.mxu0 %v1310_v54  ;;  %1488 = vmatpush.msrb.mxu1 %v1311_v13  ;;  %v5362_v13 = vld [vmem:[#allocation39_spill] sm:$0xff] }
 0x42e   :  { %1529 = vmatpush.msrb.mxu2 %v1312_v22  ;;  %1570 = vmatpush.msrb.mxu3 %v1313_v28  ;;  %v5363_v22 = vld [vmem:[#allocation40_spill] sm:$0xff] }
 0x42f   :  { %1448 = vmatpush.msrb.mxu0 %v1306_v26  ;;  %1489 = vmatpush.msrb.mxu1 %v1307_v19  ;;  %v4006_v28 = vld [vmem:[#allocation9 + $0x3e0] sm:$0xff]  ;;  %v4008_v26 = vld [vmem:[#allocation9 + $0x3e8] sm:$0xff]  ;;  %v4010_v19 = vld [vmem:[#allocation9 + $0x3f0] sm:$0xff] }
 0x430   :  { %1530 = vmatpush.msrb.mxu2 %v1308_v39  ;;  %1571 = vmatpush.msrb.mxu3 %v1309_v57  ;;  %v4014_v39 = vld [vmem:[#allocation9 + $0x3c0] sm:$0xff]  ;;  %v4016_v57 = vld [vmem:[#allocation9 + $0x3c8] sm:$0xff] }
 0x431   :  { %1449 = vmatpush.msrb.mxu0 %v1302_v14  ;;  %1490 = vmatpush.msrb.mxu1 %v1303_v11  ;;  %v4029_v14 = vld [vmem:[#allocation9 + $0x3b0] sm:$0xff]  ;;  %v4031_v11 = vld [vmem:[#allocation9 + $0x3d8] sm:$0xff] }
 0x432   :  { %1531 = vmatpush.msrb.mxu2 %v1304_v62  ;;  %1572 = vmatpush.msrb.mxu3 %v1305_v23  ;;  %v4039_v62 = vld [vmem:[#allocation9 + $0x380] sm:$0xff]  ;;  %v4045_v23 = vld [vmem:[#allocation9 + $0x390] sm:$0xff] }
 0x433   :  { %1450 = vmatpush.msrb.mxu0 %v1298_v52  ;;  %1491 = vmatpush.msrb.mxu1 %v1299_v21  ;;  %v4047_v52 = vld [vmem:[#allocation9 + $0x3b8] sm:$0xff]  ;;  %v4051_v21 = vld [vmem:[#allocation9 + $0x360] sm:$0xff] }
 0x434   :  { %1532 = vmatpush.msrb.mxu2 %v1300_v56  ;;  %1573 = vmatpush.msrb.mxu3 %v1301_v1  ;;  %v4059_v56 = vld [vmem:[#allocation9 + $0x398] sm:$0xff]  ;;  %v4063_v1 = vld [vmem:[#allocation9 + $0x340] sm:$0xff] }
 0x435   :  { %1451 = vmatpush.msrb.mxu0 %v1294_v2  ;;  %1492 = vmatpush.msrb.mxu1 %v1295_v3  ;;  %v4065_v2 = vld [vmem:[#allocation9 + $0x348] sm:$0xff]  ;;  %v4069_v3 = vld [vmem:[#allocation9 + $0x350] sm:$0xff] }
 0x436   :  { %1533 = vmatpush.msrb.mxu2 %v1296_v4  ;;  %1574 = vmatpush.msrb.mxu3 %v1297_v5  ;;  %v4071_v4 = vld [vmem:[#allocation9 + $0x378] sm:$0xff]  ;;  %v4079_v5 = vld [vmem:[#allocation9 + $0x320] sm:$0xff] }
 0x437   :  { %1452 = vmatpush.msrb.mxu0 %v1290_v8  ;;  %1493 = vmatpush.msrb.mxu1 %v1291_v9  ;;  %v4087_v8 = vld [vmem:[#allocation9 + $0x358] sm:$0xff]  ;;  %v4105_v9 = vld [vmem:[#allocation9 + $0x308] sm:$0xff] }
 0x438   :  { %1534 = vmatpush.msrb.mxu2 %v1292_v10  ;;  %1575 = vmatpush.msrb.mxu3 %v1293_v25  ;;  %v4107_v10 = vld [vmem:[#allocation9 + $0x310] sm:$0xff]  ;;  %v4111_v25 = vld [vmem:[#allocation9 + $0x338] sm:$0xff] }
 0x494   :  { %v1100_v60 = vpop.f32.mrf.mxu0  ;;  %v1120_v16 = vpop.f32.mrf.mxu1 }
 0x495   :  { %v1101_v61 = vadd.f32 %v1100_v60, %v275_v49  ;;  %v1121_v47 = vadd.f32 %v1120_v16, %v316_v24  ;;  %v4021_v49 = vld [vmem:[#allocation9 + $0x3f8] sm:$0xff]  ;;  %v4025_v24 = vld [vmem:[#allocation9 + $0x3a8] sm:$0xff] }
 0x496   :  { %v4041_v60 = vld [vmem:[#allocation9 + $0x388] sm:$0xff] }
 0x497   :  { %v1163_v6 = vmul.f32 0.5, %v1101_v61  ;;  %v1167_v7 = vmul.f32 0.5, %v1121_v47  ;;  %v5364_v16 = vld [vmem:[#allocation25_spill] sm:$0xff]  ;;  %v4057_v47 = vld [vmem:[#allocation9 + $0x370] sm:$0xff] }
 0x498   :  { %v4053_v61 = vld [vmem:[#allocation9 + $0x368] sm:$0xff] }
 0x499   :  { %2587 = vtanh.f32 %v1163_v6  ;;  %v4081_v6 = vld [vmem:[#allocation9 + $0x328] sm:$0xff] }
 0x49a   :  { %2589 = vtanh.f32 %v1167_v7  ;;  %v4085_v7 = vld [vmem:[#allocation9 + $0x330] sm:$0xff] }
 0x49b   :  { %v1140_v32 = vpop.f32.mrf.mxu2  ;;  %v1160_v33 = vpop.f32.mrf.mxu3 }
 0x49c   :  { %v1141_v34 = vadd.f32 %v1140_v32, %v357_v29  ;;  %v1161_v35 = vadd.f32 %v1160_v33, %v398_v31  ;;  %v4119_v29 = vld [vmem:[#allocation9 + $0x2f0] sm:$0xff]  ;;  %v4127_v31 = vld [vmem:[#allocation9 + $0x2f8] sm:$0xff]  ;;  %v4130_v32 = vld [vmem:[#allocation9 + $0x2c0] sm:$0xff] }
 0x49d   :  { %v4132_v33 = vld [vmem:[#allocation9 + $0x2c8] sm:$0xff] }
 0x49e   :  { %2591 = vtanh.f32 %v1141_v34  ;;  %v1172_v37 = vmul.f32 0.5, %v1161_v35  ;;  %v4134_v34 = vld [vmem:[#allocation9 + $0x2d0] sm:$0xff]  ;;  %v4138_v35 = vld [vmem:[#allocation9 + $0x2d8] sm:$0xff] }
 0x49f   :  { %v2588_v38 = vpop.eup %2587 }
 0x4a0   :  { %v2590_v41 = vpop.eup %2589  ;;  %v1165_v42 = vmul.f32 0.5, %v2588_v38  ;;  %2593 = vtanh.f32 %v1172_v37  ;;  %v4141_v37 = vld [vmem:[#allocation9 + $0x2a0] sm:$0xff]  ;;  %v4143_v38 = vld [vmem:[#allocation9 + $0x2a8] sm:$0xff] }
 0x4a1   :  { %v1169_v43 = vmul.f32 0.5, %v2590_v41  ;;  %v4145_v41 = vld [vmem:[#allocation9 + $0x2b0] sm:$0xff] }
 0x4a2   :  { %v1166_v44 = vadd.f32 0.5, %v1165_v42  ;;  %5365 = vst [vmem:[#allocation38_spill] sm:$0xff] %v4145_v41  ;;  %v4150_v42 = vld [vmem:[#allocation9 + $0x2b8] sm:$0xff] }
 0x4a3   :  { %v1170_v45 = vadd.f32 0.5, %v1169_v43  ;;  %5366 = vst [vmem:[#allocation43_spill] sm:$0xff] %v4150_v42  ;;  %v4153_v43 = vld [vmem:[#allocation9 + $0x280] sm:$0xff] }
 0x4a4   :  { %v2592_v46 = vpop.eup %2591  ;;  %5367 = vst [vmem:[#allocation44_spill] sm:$0xff] %v4153_v43 }
 0x4a5   :  { %v1176_v50 = vmul.f32 %v1170_v45, %v3967_v12  ;;  %v1177_v0 = vmul.f32 %v2592_v46, %v1166_v44  ;;  %v5361_v12 = vld [vmem:[#allocation70_spill] sm:$0xff]  ;;  %v4155_v44 = vld [vmem:[#allocation9 + $0x288] sm:$0xff]  ;;  %v4162_v46 = vld [vmem:[#allocation9 + $0x260] sm:$0xff] }
 0x4a6   :  { %v2594_v51 = vpop.eup %2593  ;;  %5368 = vst [vmem:[#allocation45_spill] sm:$0xff] %v4155_v44  ;;  %v4157_v45 = vld [vmem:[#allocation9 + $0x290] sm:$0xff] }
 0x4a7   :  { %v3985_v48 = vadd.f32 %v1177_v0, %v1176_v50  ;;  %v1174_v53 = vmul.f32 0.5, %v2594_v51  ;;  %5369 = vst [vmem:[#allocation46_spill] sm:$0xff] %v4157_v45  ;;  %v4164_v50 = vld [vmem:[#allocation9 + $0x268] sm:$0xff]  ;;  %v4166_v0 = vld [vmem:[#allocation9 + $0x270] sm:$0xff]  ;;  %v4169_v51 = vld [vmem:[#allocation9 + $0x298] sm:$0xff] }
 0x4a8   :  { %5370 = vst [vmem:[#allocation47_spill] sm:$0xff] %v4162_v46 }
 0x4a9   :  { %2595 = vtanh.f32 %v3985_v48  ;;  %v1175_v55 = vadd.f32 0.5, %v1174_v53  ;;  %5371 = vst [vmem:[#allocation48_spill] sm:$0xff] %v4164_v50  ;;  %v4171_v53 = vld [vmem:[#allocation9 + $0x240] sm:$0xff] }
 0x4aa   :  { %5372 = vst [vmem:[#allocation49_spill] sm:$0xff] %v4166_v0 }
 0x4ab   :  { %5373 = vst [vmem:[#allocation50_spill] sm:$0xff] %v4169_v51 }
 0x4ac   :  { %5374 = vst [vmem:[#allocation69_spill] sm:$0xff] %v4171_v53 }
 0x4af   :  { %v2596_v59 = vpop.eup %2595 }
 0x4b0   :  { %v3988_v54 = vmul.f32 %v2596_v59, %v1175_v55  ;;  %v4173_v55 = vld [vmem:[#allocation9 + $0x248] sm:$0xff]  ;;  %v5376_v59 = vld [vmem:[#allocation63_spill] sm:$0xff] }
 0x4b1   :  { %5375 = vst [vmem:[#allocation51_spill] sm:$0xff] %v4173_v55 }
 0x4b2   :  { %1206 = vmatmul.f32.vlgmr.msra.gmra.mxu0 %v3988_v54  ;;  %1226 = vmatmul.f32.vlgmr.msra.gmra.mxu1 %v3988_v54 }
 0x4b3   :  { %1246 = vmatmul.f32.vlgmr.msra.gmra.mxu2 %v3988_v54  ;;  %1266 = vmatmul.f32.vlgmr.msra.gmra.mxu3 %v3988_v54 }
 0x4b4   :  { %1637 = vmatpush.msra.mxu0 %v4006_v28  ;;  %1657 = vmatpush.msra.mxu1 %v4008_v26 }
 0x4b5   :  { %1677 = vmatpush.msra.mxu2 %v4010_v19  ;;  %1697 = vmatpush.msra.mxu3 %v4021_v49 }
 0x4b6   :  { %1638 = vmatpush.msra.mxu0 %v4014_v39  ;;  %1658 = vmatpush.msra.mxu1 %v4016_v57 }
 0x4b7   :  { %1678 = vmatpush.msra.mxu2 %v4018_v17  ;;  %1698 = vmatpush.msra.mxu3 %v4031_v11 }
 0x4b8   :  { %1639 = vmatpush.msra.mxu0 %v4023_v15  ;;  %1659 = vmatpush.msra.mxu1 %v4025_v24 }
 0x4b9   :  { %1679 = vmatpush.msra.mxu2 %v4029_v14  ;;  %1699 = vmatpush.msra.mxu3 %v4047_v52 }
 0x4ba   :  { %1453 = vmatmul.f32.vlgmr.msrb.gmra.mxu0 %v5361_v12  ;;  %1494 = vmatmul.f32.vlgmr.msrb.gmra.mxu1 %v5361_v12 }
 0x4bb   :  { %1535 = vmatmul.f32.vlgmr.msrb.gmra.mxu2 %v5361_v12  ;;  %1576 = vmatmul.f32.vlgmr.msrb.gmra.mxu3 %v5361_v12  ;;  %v5377_v12 = vld [vmem:[#allocation64_spill] sm:$0xff] }
 0x4bc   :  { %1640 = vmatpush.msra.mxu0 %v4039_v62  ;;  %1660 = vmatpush.msra.mxu1 %v4041_v60 }
 0x4bd   :  { %1680 = vmatpush.msra.mxu2 %v4045_v23  ;;  %1700 = vmatpush.msra.mxu3 %v4059_v56 }
 0x4be   :  { %1641 = vmatpush.msra.mxu0 %v4051_v21  ;;  %1661 = vmatpush.msra.mxu1 %v4053_v61 }
 0x4bf   :  { %1681 = vmatpush.msra.mxu2 %v4057_v47  ;;  %1701 = vmatpush.msra.mxu3 %v4071_v4 }
 0x4c0   :  { %1642 = vmatpush.msra.mxu0 %v4063_v1  ;;  %1662 = vmatpush.msra.mxu1 %v4065_v2 }
 0x4c1   :  { %1682 = vmatpush.msra.mxu2 %v4069_v3  ;;  %1702 = vmatpush.msra.mxu3 %v4087_v8 }
 0x4c2   :  { %1456 = vmatmul.f32.gmra.mxu0 %v5362_v13  ;;  %1497 = vmatmul.f32.gmra.mxu1 %v5362_v13 }
 0x4c3   :  { %1538 = vmatmul.f32.gmra.mxu2 %v5362_v13  ;;  %1579 = vmatmul.f32.gmra.mxu3 %v5362_v13  ;;  %v319_v13 = vadd.f32 %v5377_v12, %v5353_v40  ;;  %v4193_v12 = vld [vmem:[#allocation9 + $0x230] sm:$0xff] }
 0x4c4   :  { %1643 = vmatpush.msra.mxu0 %v4079_v5  ;;  %1663 = vmatpush.msra.mxu1 %v4081_v6  ;;  %5382 = vst [vmem:[#allocation42_spill] sm:$0xff] %v4193_v12 }
 0x4c5   :  { %1683 = vmatpush.msra.mxu2 %v4085_v7  ;;  %1703 = vmatpush.msra.mxu3 %v4111_v25 }
 0x4c6   :  { %1664 = vmatpush.msra.mxu1 %v4105_v9 }
 0x4c7   :  { %1684 = vmatpush.msra.mxu2 %v4107_v10  ;;  %1704 = vmatpush.msra.mxu3 %v4123_v30 }
 0x4c8   :  { %1665 = vmatpush.msra.mxu1 %v4115_v27 }
 0x4c9   :  { %1685 = vmatpush.msra.mxu2 %v4119_v29  ;;  %1705 = vmatpush.msra.mxu3 %v4127_v31 }
 0x4ca   :  { %1459 = vmatmul.f32.gmra.mxu0 %v5363_v22  ;;  %1500 = vmatmul.f32.gmra.mxu1 %v5363_v22 }
 0x4cb   :  { %1541 = vmatmul.f32.gmra.mxu2 %v5363_v22  ;;  %1582 = vmatmul.f32.gmra.mxu3 %v5363_v22  ;;  %v4181_v22 = vld [vmem:[#allocation9 + $0x250] sm:$0xff] }
 0x4cc   :  { %1666 = vmatpush.msra.mxu1 %v4132_v33  ;;  %1686 = vmatpush.msra.mxu2 %v4134_v34  ;;  %5378 = vst [vmem:[#allocation52_spill] sm:$0xff] %v4181_v22 }
 0x4cd   :  { %1706 = vmatpush.msra.mxu3 %v4138_v35 }
 0x4ce   :  { %1667 = vmatpush.msra.mxu1 %v4143_v38  ;;  %1687 = vmatpush.msra.mxu2 %v4145_v41 }
 0x4cf   :  { %1707 = vmatpush.msra.mxu3 %v4150_v42 }
 0x4d0   :  { %1668 = vmatpush.msra.mxu1 %v4155_v44  ;;  %1688 = vmatpush.msra.mxu2 %v4157_v45 }
 0x4d1   :  { %1708 = vmatpush.msra.mxu3 %v4169_v51 }
 0x4d2   :  { %1462 = vmatmul.f32.gmra.mxu0 %v5364_v16  ;;  %1503 = vmatmul.f32.gmra.mxu1 %v5364_v16 }
 0x4d3   :  { %1544 = vmatmul.f32.gmra.mxu2 %v5364_v16  ;;  %1585 = vmatmul.f32.gmra.mxu3 %v5364_v16  ;;  %v4183_v16 = vld [vmem:[#allocation9 + $0x278] sm:$0xff] }
 0x4d4   :  { %1669 = vmatpush.msra.mxu1 %v4164_v50  ;;  %5379 = vst [vmem:[#allocation53_spill] sm:$0xff] %v4183_v16  ;;  %1689 = vmatpush.msra.mxu2 %v4166_v0  ;;  %v4195_v50 = vld [vmem:[#allocation9 + $0x258] sm:$0xff]  ;;  %v4199_v0 = vld [vmem:[#allocation9 + $0x200] sm:$0xff] }
 0x4d5   :  { %5383 = vst [vmem:[#allocation17_spill] sm:$0xff] %v4195_v50  ;;  %1709 = vmatpush.msra.mxu3 %v4183_v16 }
 0x4d6   :  { %1670 = vmatpush.msra.mxu1 %v4173_v55  ;;  %1690 = vmatpush.msra.mxu2 %v4181_v22  ;;  %5384 = vst [vmem:[#allocation18_spill] sm:$0xff] %v4199_v0 }
 0x4d7   :  { %1710 = vmatpush.msra.mxu3 %v4195_v50 }
 0x4d8   :  { %1691 = vmatpush.msra.mxu2 %v4193_v12 }
 0x4da   :  { %1465 = vmatmul.f32.gmra.mxu0 %v3888_v20  ;;  %1506 = vmatmul.f32.gmra.mxu1 %v3888_v20 }
 0x4db   :  { %1547 = vmatmul.f32.gmra.mxu2 %v3888_v20  ;;  %1588 = vmatmul.f32.gmra.mxu3 %v3888_v20  ;;  %v4103_v20 = vld [vmem:[#allocation9 + $0x300] sm:$0xff] }
 0x4dc   :  { %1644 = vmatpush.msra.mxu0 %v4103_v20 }
 0x4e2   :  { %1468 = vmatmul.f32.gmra.mxu0 %v3970_v18  ;;  %1509 = vmatmul.f32.gmra.mxu1 %v3970_v18 }
 0x4e3   :  { %1550 = vmatmul.f32.gmra.mxu2 %v3970_v18  ;;  %1591 = vmatmul.f32.gmra.mxu3 %v3970_v18  ;;  %v4113_v18 = vld [vmem:[#allocation9 + $0x2e0] sm:$0xff] }
 0x4e4   :  { %1645 = vmatpush.msra.mxu0 %v4113_v18 }
 0x4e6   :  { %1646 = vmatpush.msra.mxu0 %v4130_v32 }
 0x4e8   :  { %1647 = vmatpush.msra.mxu0 %v4141_v37 }
 0x4ea   :  { %1471 = vmatmul.f32.gmra.mxu0 %v3988_v54  ;;  %1512 = vmatmul.f32.gmra.mxu1 %v3988_v54 }
 0x4eb   :  { %1553 = vmatmul.f32.gmra.mxu2 %v3988_v54  ;;  %1594 = vmatmul.f32.gmra.mxu3 %v3988_v54  ;;  %v278_v54 = vadd.f32 %v5376_v59, %v5351_v36  ;;  %v4189_v36 = vld [vmem:[#allocation9 + $0x228] sm:$0xff] }
 0x4ec   :  { %1648 = vmatpush.msra.mxu0 %v4153_v43  ;;  %v4187_v43 = vld [vmem:[#allocation9 + $0x220] sm:$0xff]  ;;  %5381 = vst [vmem:[#allocation41_spill] sm:$0xff] %v4189_v36  ;;  %1671 = vmatpush.msra.mxu1 %v4189_v36 }
 0x4ed   :  { %5380 = vst [vmem:[#allocation54_spill] sm:$0xff] %v4187_v43 }
 0x4ee   :  { %1649 = vmatpush.msra.mxu0 %v4162_v46  ;;  %v4201_v46 = vld [vmem:[#allocation9 + $0x208] sm:$0xff] }
 0x4ef   :  { %5385 = vst [vmem:[#allocation19_spill] sm:$0xff] %v4201_v46  ;;  %1672 = vmatpush.msra.mxu1 %v4201_v46 }
 0x4f0   :  { %1650 = vmatpush.msra.mxu0 %v4171_v53 }
 0x4f1   :  { %1759 = vmatpush.msrb.mxu1 %v4008_v26 }
 0x4f2   :  { %1651 = vmatpush.msra.mxu0 %v4187_v43 }
 0x4f3   :  { %1760 = vmatpush.msrb.mxu1 %v4016_v57 }
 0x4f4   :  { %1652 = vmatpush.msra.mxu0 %v4199_v0 }
 0x4f5   :  { %1761 = vmatpush.msrb.mxu1 %v4025_v24 }
 0x4f6   :  { %1739 = vmatpush.msrb.mxu0 %v4006_v28 }
 0x4f7   :  { %1762 = vmatpush.msrb.mxu1 %v4041_v60 }
 0x4f8   :  { %1740 = vmatpush.msrb.mxu0 %v4014_v39 }
 0x4f9   :  { %1763 = vmatpush.msrb.mxu1 %v4053_v61 }
 0x4fa   :  { %1741 = vmatpush.msrb.mxu0 %v4023_v15 }
 0x4fb   :  { %1764 = vmatpush.msrb.mxu1 %v4065_v2 }
 0x4fc   :  { %1742 = vmatpush.msrb.mxu0 %v4039_v62 }
 0x4fd   :  { %1765 = vmatpush.msrb.mxu1 %v4081_v6 }
 0x4fe   :  { %1743 = vmatpush.msrb.mxu0 %v4051_v21 }
 0x4ff   :  { %1766 = vmatpush.msrb.mxu1 %v4105_v9 }
 0x500   :  { %1744 = vmatpush.msrb.mxu0 %v4063_v1 }
 0x501   :  { %1767 = vmatpush.msrb.mxu1 %v4115_v27 }
 0x502   :  { %1745 = vmatpush.msrb.mxu0 %v4079_v5 }
 0x503   :  { %1768 = vmatpush.msrb.mxu1 %v4132_v33 }
 0x504   :  { %1746 = vmatpush.msrb.mxu0 %v4103_v20 }
 0x505   :  { %1769 = vmatpush.msrb.mxu1 %v4143_v38 }
 0x506   :  { %1747 = vmatpush.msrb.mxu0 %v4113_v18 }
 0x508   :  { %1748 = vmatpush.msrb.mxu0 %v4130_v32 }
 0x50a   :  { %1749 = vmatpush.msrb.mxu0 %v4141_v37 }
 0x52f   :  { %v1207_v45 = vpop.f32.mrf.mxu0  ;;  %v1227_v44 = vpop.f32.mrf.mxu1 }
 0x530   :  { %v1208_v59 = vadd.f32 %v1207_v45, %v278_v54  ;;  %v1228_v40 = vadd.f32 %v1227_v44, %v319_v13  ;;  %v4205_v44 = vld [vmem:[#allocation9 + $0x210] sm:$0xff]  ;;  %v4207_v45 = vld [vmem:[#allocation9 + $0x238] sm:$0xff] }
 0x531   :  { %5386 = vst [vmem:[#allocation20_spill] sm:$0xff] %v4205_v44  ;;  %v4213_v54 = vld [vmem:[#allocation9 + $0x218] sm:$0xff]  ;;  %1692 = vmatpush.msra.mxu2 %v4205_v44  ;;  %1711 = vmatpush.msra.mxu3 %v4207_v45 }
 0x532   :  { %v1270_v51 = vmul.f32 0.5, %v1208_v59  ;;  %v1274_v42 = vmul.f32 0.5, %v1228_v40  ;;  %5387 = vst [vmem:[#allocation21_spill] sm:$0xff] %v4207_v45  ;;  %v5389_v13 = vld [vmem:[#allocation67_spill] sm:$0xff]  ;;  %v5390_v40 = vld [vmem:[#allocation68_spill] sm:$0xff] }
 0x533   :  { %5388 = vst [vmem:[#allocation22_spill] sm:$0xff] %v4213_v54  ;;  %v360_v59 = vadd.f32 %v5389_v13, %v5252_v58  ;;  %v401_v36 = vadd.f32 %v5390_v40, %v3425_v63  ;;  %1712 = vmatpush.msra.mxu3 %v4213_v54  ;;  %1779 = vmatpush.msrb.mxu2 %v4010_v19 }
 0x534   :  { %2597 = vtanh.f32 %v1270_v51 }
 0x535   :  { %2599 = vtanh.f32 %v1274_v42  ;;  %1799 = vmatpush.msrb.mxu3 %v4021_v49  ;;  %1780 = vmatpush.msrb.mxu2 %v4018_v17 }
 0x536   :  { %v1247_v12 = vpop.f32.mrf.mxu2  ;;  %v1267_v43 = vpop.f32.mrf.mxu3 }
 0x537   :  { %v1248_v51 = vadd.f32 %v1247_v12, %v360_v59  ;;  %v1268_v46 = vadd.f32 %v1267_v43, %v401_v36  ;;  %1800 = vmatpush.msrb.mxu3 %v4031_v11  ;;  %1781 = vmatpush.msrb.mxu2 %v4029_v14 }
 0x539   :  { %2601 = vtanh.f32 %v1248_v51  ;;  %v1279_v63 = vmul.f32 0.5, %v1268_v46  ;;  %1801 = vmatpush.msrb.mxu3 %v4047_v52  ;;  %1782 = vmatpush.msrb.mxu2 %v4045_v23 }
 0x53a   :  { %v2598_v58 = vpop.eup %2597 }
 0x53b   :  { %v2600_v42 = vpop.eup %2599  ;;  %v1272_v43 = vmul.f32 0.5, %v2598_v58  ;;  %2603 = vtanh.f32 %v1279_v63  ;;  %1802 = vmatpush.msrb.mxu3 %v4059_v56  ;;  %1783 = vmatpush.msrb.mxu2 %v4057_v47 }
 0x53c   :  { %v1276_v36 = vmul.f32 0.5, %v2600_v42 }
 0x53d   :  { %v1273_v46 = vadd.f32 0.5, %v1272_v43  ;;  %1803 = vmatpush.msrb.mxu3 %v4071_v4  ;;  %1784 = vmatpush.msrb.mxu2 %v4069_v3 }
 0x53e   :  { %v1277_v12 = vadd.f32 0.5, %v1276_v36  ;;  %v5391_v36 = vld [vmem:[#allocation43_spill] sm:$0xff] }
 0x53f   :  { %v2602_v13 = vpop.eup %2601  ;;  %1804 = vmatpush.msrb.mxu3 %v4087_v8  ;;  %1785 = vmatpush.msrb.mxu2 %v4085_v7 }
 0x540   :  { %v1283_v59 = vmul.f32 %v1277_v12, %v3985_v48  ;;  %v1284_v40 = vmul.f32 %v2602_v13, %v1273_v46  ;;  %v5392_v46 = vld [vmem:[#allocation44_spill] sm:$0xff]  ;;  %v5393_v12 = vld [vmem:[#allocation45_spill] sm:$0xff]  ;;  %v5394_v13 = vld [vmem:[#allocation46_spill] sm:$0xff] }
 0x541   :  { %v2604_v51 = vpop.eup %2603  ;;  %1805 = vmatpush.msrb.mxu3 %v4111_v25  ;;  %1786 = vmatpush.msrb.mxu2 %v4107_v10 }
 0x542   :  { %v1285_v63 = vadd.f32 %v1284_v40, %v1283_v59  ;;  %v1281_v48 = vmul.f32 0.5, %v2604_v51  ;;  %1750 = vmatpush.msrb.mxu0 %v5392_v46  ;;  %1770 = vmatpush.msrb.mxu1 %v5393_v12  ;;  %v5395_v59 = vld [vmem:[#allocation50_spill] sm:$0xff]  ;;  %v5396_v40 = vld [vmem:[#allocation47_spill] sm:$0xff]  ;;  %v5397_v51 = vld [vmem:[#allocation48_spill] sm:$0xff] }
 0x543   :  { %1806 = vmatpush.msrb.mxu3 %v4123_v30  ;;  %1787 = vmatpush.msrb.mxu2 %v4119_v29 }
 0x544   :  { %2605 = vtanh.f32 %v1285_v63  ;;  %v1282_v58 = vadd.f32 0.5, %v1281_v48  ;;  %1751 = vmatpush.msrb.mxu0 %v5396_v40  ;;  %1771 = vmatpush.msrb.mxu1 %v5397_v51  ;;  %v5398_v63 = vld [vmem:[#allocation49_spill] sm:$0xff]  ;;  %v5399_v48 = vmov 0.0  }
 0x545   :  { %1807 = vmatpush.msrb.mxu3 %v4127_v31  ;;  %1788 = vmatpush.msrb.mxu2 %v4134_v34 }
 0x546   :  { %1752 = vmatpush.msrb.mxu0 %v4171_v53  ;;  %1772 = vmatpush.msrb.mxu1 %v4173_v55 }
 0x547   :  { %1808 = vmatpush.msrb.mxu3 %v4138_v35  ;;  %1789 = vmatpush.msrb.mxu2 %v4145_v41 }
 0x549   :  { %1809 = vmatpush.msrb.mxu3 %v5391_v36  ;;  %1790 = vmatpush.msrb.mxu2 %v5394_v13 }
 0x54a   :  { %v2606_v42 = vpop.eup %2605 }
 0x54b   :  { %v1287_v43 = vmul.f32 %v2606_v42, %v1282_v58  ;;  %1810 = vmatpush.msrb.mxu3 %v5395_v59  ;;  %1791 = vmatpush.msrb.mxu2 %v5398_v63  ;;  %v5400_v58 = vld [vmem:[#allocation54_spill] sm:$0xff]  ;;  %v5401_v42 = vld [vmem:[#allocation41_spill] sm:$0xff] }
 0x54c   :  { %1753 = vmatpush.msrb.mxu0 %v5400_v58  ;;  %1773 = vmatpush.msrb.mxu1 %v5401_v42 }
 0x54d   :  { %1474 = vmatmul.f32.gmra.mxu0 %v1287_v43  ;;  %1515 = vmatmul.f32.gmra.mxu1 %v1287_v43 }
 0x54e   :  { %1556 = vmatmul.f32.gmra.mxu2 %v1287_v43  ;;  %1597 = vmatmul.f32.gmra.mxu3 %v1287_v43  ;;  %v5402_v43 = vld [vmem:[#allocation42_spill] sm:$0xff] }
 0x54f   :  { %1811 = vmatpush.msrb.mxu3 %v4183_v16  ;;  %1792 = vmatpush.msrb.mxu2 %v4181_v22  ;;  %v5403_v22 = vld [vmem:[#allocation19_spill] sm:$0xff] }
 0x550   :  { %1754 = vmatpush.msrb.mxu0 %v4199_v0  ;;  %1774 = vmatpush.msrb.mxu1 %v5403_v22 }
 0x551   :  { %1812 = vmatpush.msrb.mxu3 %v4195_v50  ;;  %1793 = vmatpush.msrb.mxu2 %v5402_v43 }
 0x553   :  { %1813 = vmatpush.msrb.mxu3 %v4207_v45  ;;  %1794 = vmatpush.msrb.mxu2 %v4205_v44 }
 0x555   :  { %1653 = vmatmul.f32.vlgmr.msra.gmra.mxu0 %v5399_v48  ;;  %1673 = vmatmul.f32.vlgmr.msra.gmra.mxu1 %v5399_v48 }
 0x556   :  { %1693 = vmatmul.f32.vlgmr.msra.gmra.mxu2 %v5399_v48  ;;  %1713 = vmatmul.f32.vlgmr.msra.gmra.mxu3 %v5399_v48  ;;  %v5404_v48 = vld [vmem:[#allocation52_spill] sm:$0xff] }
 0x557   :  { %1814 = vmatpush.msrb.mxu3 %v4213_v54  ;;  %1841 = vmatpush.msra.mxu0 %v4006_v28 }
 0x558   :  { %1861 = vmatpush.msra.mxu1 %v4008_v26  ;;  %1881 = vmatpush.msra.mxu2 %v4010_v19 }
 0x559   :  { %1901 = vmatpush.msra.mxu3 %v4021_v49  ;;  %1842 = vmatpush.msra.mxu0 %v4014_v39 }
 0x55a   :  { %1862 = vmatpush.msra.mxu1 %v4016_v57  ;;  %1882 = vmatpush.msra.mxu2 %v4018_v17 }
 0x55b   :  { %1902 = vmatpush.msra.mxu3 %v4031_v11  ;;  %1843 = vmatpush.msra.mxu0 %v4023_v15 }
 0x55c   :  { %1863 = vmatpush.msra.mxu1 %v4025_v24  ;;  %1883 = vmatpush.msra.mxu2 %v4029_v14 }
 0x55d   :  { %1903 = vmatpush.msra.mxu3 %v4047_v52  ;;  %1844 = vmatpush.msra.mxu0 %v4039_v62 }
 0x55e   :  { %1864 = vmatpush.msra.mxu1 %v4041_v60  ;;  %1884 = vmatpush.msra.mxu2 %v4045_v23 }
 0x55f   :  { %1904 = vmatpush.msra.mxu3 %v4059_v56  ;;  %1845 = vmatpush.msra.mxu0 %v4051_v21 }
 0x560   :  { %1865 = vmatpush.msra.mxu1 %v4053_v61  ;;  %1885 = vmatpush.msra.mxu2 %v4057_v47 }
 0x561   :  { %1905 = vmatpush.msra.mxu3 %v4071_v4  ;;  %1846 = vmatpush.msra.mxu0 %v4063_v1 }
 0x562   :  { %1866 = vmatpush.msra.mxu1 %v4065_v2  ;;  %1886 = vmatpush.msra.mxu2 %v4069_v3 }
 0x563   :  { %1906 = vmatpush.msra.mxu3 %v4087_v8  ;;  %1847 = vmatpush.msra.mxu0 %v4079_v5 }
 0x564   :  { %1867 = vmatpush.msra.mxu1 %v4081_v6  ;;  %1887 = vmatpush.msra.mxu2 %v4085_v7 }
 0x565   :  { %1907 = vmatpush.msra.mxu3 %v4111_v25  ;;  %1848 = vmatpush.msra.mxu0 %v4103_v20 }
 0x566   :  { %1868 = vmatpush.msra.mxu1 %v4105_v9  ;;  %1888 = vmatpush.msra.mxu2 %v4107_v10 }
 0x567   :  { %1908 = vmatpush.msra.mxu3 %v4123_v30  ;;  %1849 = vmatpush.msra.mxu0 %v4113_v18 }
 0x568   :  { %1869 = vmatpush.msra.mxu1 %v4115_v27  ;;  %1889 = vmatpush.msra.mxu2 %v4119_v29 }
 0x569   :  { %1909 = vmatpush.msra.mxu3 %v4127_v31  ;;  %1850 = vmatpush.msra.mxu0 %v4130_v32 }
 0x56a   :  { %1870 = vmatpush.msra.mxu1 %v4132_v33  ;;  %1890 = vmatpush.msra.mxu2 %v4134_v34 }
 0x56b   :  { %1910 = vmatpush.msra.mxu3 %v4138_v35  ;;  %1851 = vmatpush.msra.mxu0 %v4141_v37 }
 0x56c   :  { %1871 = vmatpush.msra.mxu1 %v4143_v38  ;;  %1891 = vmatpush.msra.mxu2 %v4145_v41 }
 0x56d   :  { %1911 = vmatpush.msra.mxu3 %v5391_v36  ;;  %1852 = vmatpush.msra.mxu0 %v5392_v46 }
 0x56e   :  { %1872 = vmatpush.msra.mxu1 %v5393_v12  ;;  %1892 = vmatpush.msra.mxu2 %v5394_v13 }
 0x56f   :  { %1912 = vmatpush.msra.mxu3 %v5395_v59  ;;  %1853 = vmatpush.msra.mxu0 %v5396_v40 }
 0x570   :  { %1873 = vmatpush.msra.mxu1 %v5397_v51  ;;  %1893 = vmatpush.msra.mxu2 %v5398_v63 }
 0x571   :  { %1913 = vmatpush.msra.mxu3 %v4183_v16  ;;  %1854 = vmatpush.msra.mxu0 %v4171_v53  ;;  %v1536_v53 = vpop.f32.mrf.mxu2 }
 0x572   :  { %1874 = vmatpush.msra.mxu1 %v4173_v55  ;;  %1894 = vmatpush.msra.mxu2 %v5404_v48  ;;  %v1454_v55 = vpop.f32.mrf.mxu0  ;;  %v1495_v48 = vpop.f32.mrf.mxu1 }
 0x573   :  { %1914 = vmatpush.msra.mxu3 %v4195_v50  ;;  %1855 = vmatpush.msra.mxu0 %v5400_v58  ;;  %v1577_v50 = vpop.f32.mrf.mxu3 }
 0x574   :  { %1875 = vmatpush.msra.mxu1 %v5401_v42  ;;  %1895 = vmatpush.msra.mxu2 %v5402_v43 }
 0x575   :  { %1915 = vmatpush.msra.mxu3 %v4207_v45  ;;  %1856 = vmatpush.msra.mxu0 %v4199_v0 }
 0x576   :  { %1876 = vmatpush.msra.mxu1 %v5403_v22  ;;  %1896 = vmatpush.msra.mxu2 %v4205_v44 }
 0x577   :  { %1916 = vmatpush.msra.mxu3 %v4213_v54 }
 0x579   :  { %v4359_v42 = vpop.f32.mrf.mxu2 }
 0x57a   :  { %v4355_v16 = vpop.f32.mrf.mxu0  ;;  %v4357_v58 = vpop.f32.mrf.mxu1  ;;  %5407 = vst [vmem:[#allocation26_spill] sm:$0xff] %v4359_v42 }
 0x57b   :  { %5405 = vst [vmem:[#allocation23_spill] sm:$0xff] %v4355_v16  ;;  %v4361_v43 = vpop.f32.mrf.mxu3 }
 0x57c   :  { %5406 = vst [vmem:[#allocation24_spill] sm:$0xff] %v4357_v58 }
 0x57d   :  { %5408 = vst [vmem:[#allocation27_spill] sm:$0xff] %v4361_v43 }
 0x581   :  { %v4367_v22 = vpop.f32.mrf.mxu2 }
 0x582   :  { %v4363_v45 = vpop.f32.mrf.mxu0  ;;  %v4365_v0 = vpop.f32.mrf.mxu1  ;;  %5411 = vst [vmem:[#allocation30_spill] sm:$0xff] %v4367_v22 }
 0x583   :  { %5409 = vst [vmem:[#allocation28_spill] sm:$0xff] %v4363_v45  ;;  %v4369_v44 = vpop.f32.mrf.mxu3 }
 0x584   :  { %5410 = vst [vmem:[#allocation29_spill] sm:$0xff] %v4365_v0 }
 0x585   :  { %5412 = vst [vmem:[#allocation31_spill] sm:$0xff] %v4369_v44 }
 0x589   :  { %v4375_v51 = vpop.f32.mrf.mxu2 }
 0x58a   :  { %v4371_v54 = vpop.f32.mrf.mxu0  ;;  %v4373_v63 = vpop.f32.mrf.mxu1  ;;  %5415 = vst [vmem:[#allocation34_spill] sm:$0xff] %v4375_v51 }
 0x58b   :  { %5413 = vst [vmem:[#allocation32_spill] sm:$0xff] %v4371_v54  ;;  %v4377_v16 = vpop.f32.mrf.mxu3 }
 0x58c   :  { %5414 = vst [vmem:[#allocation33_spill] sm:$0xff] %v4373_v63 }
 0x58d   :  { %5416 = vst [vmem:[#allocation35_spill] sm:$0xff] %v4377_v16 }
 0x591   :  { %v4383_v43 = vpop.f32.mrf.mxu2 }
 0x592   :  { %v4379_v58 = vpop.f32.mrf.mxu0  ;;  %v4381_v42 = vpop.f32.mrf.mxu1  ;;  %5419 = vst [vmem:[#allocation65_spill] sm:$0xff] %v4383_v43 }
 0x593   :  { %5417 = vst [vmem:[#allocation36_spill] sm:$0xff] %v4379_v58  ;;  %v4385_v45 = vpop.f32.mrf.mxu3 }
 0x594   :  { %5418 = vst [vmem:[#allocation37_spill] sm:$0xff] %v4381_v42 }
 0x595   :  { %5420 = vst [vmem:[#allocation55_spill] sm:$0xff] %v4385_v45  ;;  %v1354_v45 = vld [vmem:[%s4964_s4] sm:$0xf] }
 0x596   :  { %v4420_v13 = vperm.slane %v1354_v45, 2 }
 0x598   :  { %5435 = vst [vmem:[#allocation67_spill] sm:$0xff] %v4420_v13  ;;  %v1537_v46 = vadd.f32 %v1536_v53, %v4420_v13 }
 0x599   :  { %v4391_v44 = vpop.f32.mrf.mxu2 }
 0x59a   :  { %v4387_v0 = vpop.f32.mrf.mxu0  ;;  %v4389_v22 = vpop.f32.mrf.mxu1  ;;  %5423 = vst [vmem:[#allocation57_spill] sm:$0xff] %v4391_v44  ;;  %v4412_v44 = vperm.slane %v1354_v45, 1 }
 0x59b   :  { %5421 = vst [vmem:[#allocation66_spill] sm:$0xff] %v4387_v0  ;;  %v4393_v54 = vpop.f32.mrf.mxu3 }
 0x59c   :  { %5422 = vst [vmem:[#allocation56_spill] sm:$0xff] %v4389_v22  ;;  %v4410_v22 = vperm.slane %v1354_v45, 0 }
 0x59d   :  { %5424 = vst [vmem:[#allocation58_spill] sm:$0xff] %v4393_v54 }
 0x59e   :  { %5431 = vst [vmem:[#allocation40_spill] sm:$0xff] %v4410_v22 }
 0x59f   :  { %5432 = vst [vmem:[#allocation25_spill] sm:$0xff] %v4412_v44 }
 0x5a1   :  { %v4399_v16 = vpop.f32.mrf.mxu2 }
 0x5a2   :  { %v4395_v63 = vpop.f32.mrf.mxu0  ;;  %v4397_v51 = vpop.f32.mrf.mxu1  ;;  %5427 = vst [vmem:[#allocation61_spill] sm:$0xff] %v4399_v16 }
 0x5a3   :  { %5425 = vst [vmem:[#allocation59_spill] sm:$0xff] %v4395_v63  ;;  %v4401_v58 = vpop.f32.mrf.mxu3  ;;  %v1455_v63 = vadd.f32 %v1454_v55, %v4410_v22 }
 0x5a4   :  { %5426 = vst [vmem:[#allocation60_spill] sm:$0xff] %v4397_v51  ;;  %v1496_v51 = vadd.f32 %v1495_v48, %v4412_v44 }
 0x5a5   :  { %5428 = vst [vmem:[#allocation62_spill] sm:$0xff] %v4401_v58 }
 0x5ca   :  { %v4406_v43 = vpop.f32.mrf.mxu0  ;;  %v4408_v0 = vpop.f32.mrf.mxu1 }
 0x5cb   :  { %5429 = vst [vmem:[#allocation70_spill] sm:$0xff] %v4406_v43  ;;  %v4422_v43 = vperm.slane %v1354_v45, 3 }
 0x5cc   :  { %5430 = vst [vmem:[#allocation39_spill] sm:$0xff] %v4408_v0 }
 0x5cd   :  { %v1578_v55 = vadd.f32 %v1577_v50, %v4422_v43 }
 0x5d1   :  { %v4416_v54 = vpop.f32.mrf.mxu2  ;;  %v4418_v16 = vpop.f32.mrf.mxu3 }
 0x5d2   :  { %5433 = vst [vmem:[#allocation63_spill] sm:$0xff] %v4416_v54  ;;  %v1654_v58 = vpop.f32.mrf.mxu0  ;;  %v1674_v42 = vpop.f32.mrf.mxu1 }
 0x5d3   :  { %5434 = vst [vmem:[#allocation64_spill] sm:$0xff] %v4418_v16  ;;  %v1655_v40 = vadd.f32 %v1654_v58, %v1455_v63  ;;  %v1675_v59 = vadd.f32 %v1674_v42, %v1496_v51 }
 0x5d5   :  { %v1717_v0 = vmul.f32 0.5, %v1655_v40  ;;  %v1721_v12 = vmul.f32 0.5, %v1675_v59 }
 0x5d7   :  { %2607 = vtanh.f32 %v1717_v0 }
 0x5d8   :  { %2609 = vtanh.f32 %v1721_v12  ;;  %v5439_v12 = vld [vmem:[#allocation46_spill] sm:$0xff] }
 0x5d9   :  { %v1694_v48 = vpop.f32.mrf.mxu2  ;;  %v1714_v54 = vpop.f32.mrf.mxu3 }
 0x5da   :  { %v1695_v44 = vadd.f32 %v1694_v48, %v1537_v46  ;;  %v1715_v16 = vadd.f32 %v1714_v54, %v1578_v55  ;;  %v5440_v55 = vld [vmem:[#allocation50_spill] sm:$0xff]  ;;  %v5441_v48 = vld [vmem:[#allocation47_spill] sm:$0xff] }
 0x5dc   :  { %2611 = vtanh.f32 %v1695_v44  ;;  %v1726_v22 = vmul.f32 0.5, %v1715_v16  ;;  %v5437_v16 = vld [vmem:[#allocation44_spill] sm:$0xff] }
 0x5dd   :  { %v2608_v63 = vpop.eup %2607 }
 0x5de   :  { %v2610_v51 = vpop.eup %2609  ;;  %v1719_v58 = vmul.f32 0.5, %v2608_v63  ;;  %2613 = vtanh.f32 %v1726_v22  ;;  %v5436_v22 = vld [vmem:[#allocation43_spill] sm:$0xff]  ;;  %v5442_v63 = vld [vmem:[#allocation48_spill] sm:$0xff] }
 0x5df   :  { %v1723_v42 = vmul.f32 0.5, %v2610_v51  ;;  %v5443_v51 = vld [vmem:[#allocation49_spill] sm:$0xff] }
 0x5e0   :  { %v1720_v45 = vadd.f32 0.5, %v1719_v58  ;;  %v5444_v58 = vld [vmem:[#allocation53_spill] sm:$0xff] }
 0x5e1   :  { %v1724_v40 = vadd.f32 0.5, %v1723_v42  ;;  %v5445_v42 = vld [vmem:[#allocation69_spill] sm:$0xff] }
 0x5e2   :  { %v2612_v59 = vpop.eup %2611 }
 0x5e3   :  { %v1730_v0 = vmul.f32 0.0, %v1724_v40  ;;  %v1731_v36 = vmul.f32 %v2612_v59, %v1720_v45  ;;  %v5446_v45 = vld [vmem:[#allocation51_spill] sm:$0xff]  ;;  %v5447_v40 = vld [vmem:[#allocation52_spill] sm:$0xff]  ;;  %v5448_v59 = vld [vmem:[#allocation17_spill] sm:$0xff] }
 0x5e4   :  { %v2614_v53 = vpop.eup %2613 }
 0x5e5   :  { %v4426_v13 = vadd.f32 %v1731_v36, %v1730_v0  ;;  %v1728_v50 = vmul.f32 0.5, %v2614_v53  ;;  %v5438_v36 = vld [vmem:[#allocation45_spill] sm:$0xff]  ;;  %v5449_v0 = vld [vmem:[#allocation54_spill] sm:$0xff] }
 0x5e6   :  { %v5450_v53 = vld [vmem:[#allocation41_spill] sm:$0xff] }
 0x5e7   :  { %2615 = vtanh.f32 %v4426_v13  ;;  %v1729_v46 = vadd.f32 0.5, %v1728_v50  ;;  %v5451_v50 = vld [vmem:[#allocation42_spill] sm:$0xff] }
 0x5ed   :  { %v2616_v54 = vpop.eup %2615 }
 0x5ee   :  { %v1734_v44 = vmul.f32 %v2616_v54, %v1729_v46  ;;  %v5452_v46 = vld [vmem:[#allocation21_spill] sm:$0xff]  ;;  %v5453_v54 = vld [vmem:[#allocation18_spill] sm:$0xff] }
 0x5f0   :  { %1755 = vmatmul.f32.vlgmr.msrb.gmra.mxu0 %v1734_v44  ;;  %1775 = vmatmul.f32.vlgmr.msrb.gmra.mxu1 %v1734_v44 }
 0x5f1   :  { %1795 = vmatmul.f32.vlgmr.msrb.gmra.mxu2 %v1734_v44  ;;  %1815 = vmatmul.f32.vlgmr.msrb.gmra.mxu3 %v1734_v44  ;;  %v5454_v44 = vld [vmem:[#allocation19_spill] sm:$0xff] }
 0x5f2   :  { %1943 = vmatpush.msrb.mxu0 %v4006_v28  ;;  %1963 = vmatpush.msrb.mxu1 %v4008_v26 }
 0x5f3   :  { %1983 = vmatpush.msrb.mxu2 %v4010_v19  ;;  %2003 = vmatpush.msrb.mxu3 %v4021_v49 }
 0x5f4   :  { %1944 = vmatpush.msrb.mxu0 %v4014_v39  ;;  %1964 = vmatpush.msrb.mxu1 %v4016_v57 }
 0x5f5   :  { %1984 = vmatpush.msrb.mxu2 %v4018_v17  ;;  %2004 = vmatpush.msrb.mxu3 %v4031_v11 }
 0x5f6   :  { %1945 = vmatpush.msrb.mxu0 %v4023_v15  ;;  %1965 = vmatpush.msrb.mxu1 %v4025_v24 }
 0x5f7   :  { %1985 = vmatpush.msrb.mxu2 %v4029_v14  ;;  %2005 = vmatpush.msrb.mxu3 %v4047_v52 }
 0x5f8   :  { %1946 = vmatpush.msrb.mxu0 %v4039_v62  ;;  %1966 = vmatpush.msrb.mxu1 %v4041_v60 }
 0x5f9   :  { %1986 = vmatpush.msrb.mxu2 %v4045_v23  ;;  %2006 = vmatpush.msrb.mxu3 %v4059_v56 }
 0x5fa   :  { %1947 = vmatpush.msrb.mxu0 %v4051_v21  ;;  %1967 = vmatpush.msrb.mxu1 %v4053_v61 }
 0x5fb   :  { %1987 = vmatpush.msrb.mxu2 %v4057_v47  ;;  %2007 = vmatpush.msrb.mxu3 %v4071_v4 }
 0x5fc   :  { %1948 = vmatpush.msrb.mxu0 %v4063_v1  ;;  %1968 = vmatpush.msrb.mxu1 %v4065_v2 }
 0x5fd   :  { %1988 = vmatpush.msrb.mxu2 %v4069_v3  ;;  %2008 = vmatpush.msrb.mxu3 %v4087_v8 }
 0x5fe   :  { %1949 = vmatpush.msrb.mxu0 %v4079_v5  ;;  %1969 = vmatpush.msrb.mxu1 %v4081_v6 }
 0x5ff   :  { %1989 = vmatpush.msrb.mxu2 %v4085_v7  ;;  %2009 = vmatpush.msrb.mxu3 %v4111_v25 }
 0x600   :  { %1950 = vmatpush.msrb.mxu0 %v4103_v20  ;;  %1970 = vmatpush.msrb.mxu1 %v4105_v9 }
 0x601   :  { %1990 = vmatpush.msrb.mxu2 %v4107_v10  ;;  %2010 = vmatpush.msrb.mxu3 %v4123_v30 }
 0x602   :  { %1951 = vmatpush.msrb.mxu0 %v4113_v18  ;;  %1971 = vmatpush.msrb.mxu1 %v4115_v27 }
 0x603   :  { %1991 = vmatpush.msrb.mxu2 %v4119_v29  ;;  %2011 = vmatpush.msrb.mxu3 %v4127_v31 }
 0x604   :  { %1952 = vmatpush.msrb.mxu0 %v4130_v32  ;;  %1972 = vmatpush.msrb.mxu1 %v4132_v33 }
 0x605   :  { %1992 = vmatpush.msrb.mxu2 %v4134_v34  ;;  %2012 = vmatpush.msrb.mxu3 %v4138_v35 }
 0x606   :  { %1953 = vmatpush.msrb.mxu0 %v4141_v37  ;;  %1973 = vmatpush.msrb.mxu1 %v4143_v38 }
 0x607   :  { %1993 = vmatpush.msrb.mxu2 %v4145_v41  ;;  %2013 = vmatpush.msrb.mxu3 %v5436_v22 }
 0x608   :  { %1954 = vmatpush.msrb.mxu0 %v5437_v16  ;;  %1974 = vmatpush.msrb.mxu1 %v5438_v36  ;;  %v5462_v36 = vld [vmem:[#allocation26_spill] sm:$0xff] }
 0x609   :  { %1994 = vmatpush.msrb.mxu2 %v5439_v12  ;;  %2014 = vmatpush.msrb.mxu3 %v5440_v55 }
 0x60a   :  { %1955 = vmatpush.msrb.mxu0 %v5441_v48  ;;  %1975 = vmatpush.msrb.mxu1 %v5442_v63  ;;  %v5460_v63 = vld [vmem:[#allocation24_spill] sm:$0xff] }
 0x60b   :  { %1995 = vmatpush.msrb.mxu2 %v5443_v51  ;;  %2015 = vmatpush.msrb.mxu3 %v5444_v58  ;;  %v5455_v58 = vld [vmem:[#allocation20_spill] sm:$0xff] }
 0x60c   :  { %1956 = vmatpush.msrb.mxu0 %v5445_v42  ;;  %1976 = vmatpush.msrb.mxu1 %v5446_v45  ;;  %v5456_v42 = vld [vmem:[#allocation22_spill] sm:$0xff]  ;;  %v5457_v45 = vld [vmem:[#allocation40_spill] sm:$0xff] }
 0x60d   :  { %1996 = vmatpush.msrb.mxu2 %v5447_v40  ;;  %2016 = vmatpush.msrb.mxu3 %v5448_v59  ;;  %v5458_v40 = vld [vmem:[#allocation23_spill] sm:$0xff]  ;;  %v5459_v59 = vld [vmem:[#allocation25_spill] sm:$0xff] }
 0x60e   :  { %1957 = vmatpush.msrb.mxu0 %v5449_v0  ;;  %1977 = vmatpush.msrb.mxu1 %v5450_v53  ;;  %v1458_v51 = vadd.f32 %v5458_v40, %v5457_v45  ;;  %v1499_v0 = vadd.f32 %v5460_v63, %v5459_v59 }
 0x60f   :  { %1997 = vmatpush.msrb.mxu2 %v5451_v50  ;;  %2017 = vmatpush.msrb.mxu3 %v5452_v46 }
 0x610   :  { %1958 = vmatpush.msrb.mxu0 %v5453_v54  ;;  %1978 = vmatpush.msrb.mxu1 %v5454_v44  ;;  %v5461_v54 = vld [vmem:[#allocation67_spill] sm:$0xff] }
 0x611   :  { %1998 = vmatpush.msrb.mxu2 %v5455_v58  ;;  %2018 = vmatpush.msrb.mxu3 %v5456_v42  ;;  %v1540_v44 = vadd.f32 %v5462_v36, %v5461_v54  ;;  %v5463_v58 = vld [vmem:[#allocation27_spill] sm:$0xff] }
 0x612   :  { %v1581_v16 = vadd.f32 %v5463_v58, %v4422_v43 }
 0x66d   :  { %v1756_v48 = vpop.f32.mrf.mxu0  ;;  %v1776_v53 = vpop.f32.mrf.mxu1 }
 0x66e   :  { %v1757_v55 = vadd.f32 %v1756_v48, %v1458_v51  ;;  %v1777_v50 = vadd.f32 %v1776_v53, %v1499_v0 }
 0x670   :  { %v1819_v12 = vmul.f32 0.5, %v1757_v55  ;;  %v1823_v46 = vmul.f32 0.5, %v1777_v50 }
 0x672   :  { %2617 = vtanh.f32 %v1819_v12 }
 0x673   :  { %2619 = vtanh.f32 %v1823_v46 }
 0x674   :  { %v1796_v42 = vpop.f32.mrf.mxu2  ;;  %v1816_v22 = vpop.f32.mrf.mxu3 }
 0x675   :  { %v1797_v40 = vadd.f32 %v1796_v42, %v1540_v44  ;;  %v1817_v45 = vadd.f32 %v1816_v22, %v1581_v16 }
 0x677   :  { %2621 = vtanh.f32 %v1797_v40  ;;  %v1828_v63 = vmul.f32 0.5, %v1817_v45 }
 0x678   :  { %v2618_v59 = vpop.eup %2617 }
 0x679   :  { %v2620_v41 = vpop.eup %2619  ;;  %v1821_v48 = vmul.f32 0.5, %v2618_v59  ;;  %2623 = vtanh.f32 %v1828_v63 }
 0x67a   :  { %v1825_v51 = vmul.f32 0.5, %v2620_v41 }
 0x67b   :  { %v1822_v55 = vadd.f32 0.5, %v1821_v48 }
 0x67c   :  { %v1826_v12 = vadd.f32 0.5, %v1825_v51 }
 0x67d   :  { %v2622_v0 = vpop.eup %2621 }
 0x67e   :  { %v1832_v36 = vmul.f32 %v1826_v12, %v4426_v13  ;;  %v1833_v53 = vmul.f32 %v2622_v0, %v1822_v55 }
 0x67f   :  { %v2624_v50 = vpop.eup %2623 }
 0x680   :  { %v4502_v58 = vadd.f32 %v1833_v53, %v1832_v36  ;;  %v1830_v42 = vmul.f32 0.5, %v2624_v50 }
 0x682   :  { %2625 = vtanh.f32 %v4502_v58  ;;  %v1831_v22 = vadd.f32 0.5, %v1830_v42 }
 0x688   :  { %v2626_v16 = vpop.eup %2625 }
 0x689   :  { %v1836_v45 = vmul.f32 %v2626_v16, %v1831_v22  ;;  %v4581_v22 = vld [vmem:[#allocation9 + $0x3e0] sm:$0xff]  ;;  %v4584_v16 = vld [vmem:[#allocation9 + $0x3e8] sm:$0xff] }
 0x68b   :  { %1857 = vmatmul.f32.vlgmr.msra.gmra.mxu0 %v1836_v45  ;;  %1877 = vmatmul.f32.vlgmr.msra.gmra.mxu1 %v1836_v45 }
 0x68c   :  { %1897 = vmatmul.f32.vlgmr.msra.gmra.mxu2 %v1836_v45  ;;  %1917 = vmatmul.f32.vlgmr.msra.gmra.mxu3 %v1836_v45  ;;  %v4590_v45 = vld [vmem:[#allocation9 + $0x3f8] sm:$0xff] }
 0x68d   :  { %2045 = vmatpush.msra.mxu0 %v4006_v28  ;;  %2065 = vmatpush.msra.mxu1 %v4008_v26  ;;  %v5464_v28 = vld [vmem:[#allocation38_spill] sm:$0xff]  ;;  %v5465_v26 = vld [vmem:[#allocation43_spill] sm:$0xff] }
 0x68e   :  { %2085 = vmatpush.msra.mxu2 %v4010_v19  ;;  %2105 = vmatpush.msra.mxu3 %v4021_v49  ;;  %v5466_v19 = vld [vmem:[#allocation44_spill] sm:$0xff]  ;;  %v5470_v49 = vld [vmem:[#allocation47_spill] sm:$0xff] }
 0x68f   :  { %2046 = vmatpush.msra.mxu0 %v4014_v39  ;;  %2066 = vmatpush.msra.mxu1 %v4016_v57  ;;  %v5467_v39 = vld [vmem:[#allocation45_spill] sm:$0xff]  ;;  %v5468_v57 = vld [vmem:[#allocation46_spill] sm:$0xff] }
 0x690   :  { %2086 = vmatpush.msra.mxu2 %v4018_v17  ;;  %2106 = vmatpush.msra.mxu3 %v4031_v11  ;;  %v5469_v17 = vld [vmem:[#allocation50_spill] sm:$0xff]  ;;  %v5474_v11 = vld [vmem:[#allocation69_spill] sm:$0xff] }
 0x691   :  { %2047 = vmatpush.msra.mxu0 %v4023_v15  ;;  %2067 = vmatpush.msra.mxu1 %v4025_v24  ;;  %v5471_v15 = vld [vmem:[#allocation48_spill] sm:$0xff]  ;;  %v5472_v24 = vld [vmem:[#allocation49_spill] sm:$0xff] }
 0x692   :  { %2087 = vmatpush.msra.mxu2 %v4029_v14  ;;  %2107 = vmatpush.msra.mxu3 %v4047_v52  ;;  %v5473_v14 = vld [vmem:[#allocation53_spill] sm:$0xff]  ;;  %v5478_v52 = vld [vmem:[#allocation54_spill] sm:$0xff] }
 0x693   :  { %2048 = vmatpush.msra.mxu0 %v4039_v62  ;;  %2068 = vmatpush.msra.mxu1 %v4041_v60  ;;  %v5475_v62 = vld [vmem:[#allocation51_spill] sm:$0xff]  ;;  %v5476_v60 = vld [vmem:[#allocation52_spill] sm:$0xff] }
 0x694   :  { %2088 = vmatpush.msra.mxu2 %v4045_v23  ;;  %2108 = vmatpush.msra.mxu3 %v4059_v56  ;;  %v5477_v23 = vld [vmem:[#allocation17_spill] sm:$0xff]  ;;  %v5482_v56 = vld [vmem:[#allocation18_spill] sm:$0xff] }
 0x695   :  { %2049 = vmatpush.msra.mxu0 %v4051_v21  ;;  %2069 = vmatpush.msra.mxu1 %v4053_v61  ;;  %v5479_v21 = vld [vmem:[#allocation41_spill] sm:$0xff]  ;;  %v5480_v61 = vld [vmem:[#allocation42_spill] sm:$0xff] }
 0x696   :  { %2089 = vmatpush.msra.mxu2 %v4057_v47  ;;  %2109 = vmatpush.msra.mxu3 %v4071_v4  ;;  %v5481_v47 = vld [vmem:[#allocation21_spill] sm:$0xff]  ;;  %v5486_v4 = vld [vmem:[#allocation40_spill] sm:$0xff] }
 0x697   :  { %2050 = vmatpush.msra.mxu0 %v4063_v1  ;;  %2070 = vmatpush.msra.mxu1 %v4065_v2  ;;  %v5483_v1 = vld [vmem:[#allocation19_spill] sm:$0xff]  ;;  %v5484_v2 = vld [vmem:[#allocation20_spill] sm:$0xff] }
 0x698   :  { %2090 = vmatpush.msra.mxu2 %v4069_v3  ;;  %2110 = vmatpush.msra.mxu3 %v4087_v8  ;;  %v5485_v3 = vld [vmem:[#allocation22_spill] sm:$0xff]  ;;  %v5489_v8 = vld [vmem:[#allocation29_spill] sm:$0xff] }
 0x699   :  { %2051 = vmatpush.msra.mxu0 %v4079_v5  ;;  %2071 = vmatpush.msra.mxu1 %v4081_v6  ;;  %v5487_v5 = vld [vmem:[#allocation28_spill] sm:$0xff] }
 0x69a   :  { %2091 = vmatpush.msra.mxu2 %v4085_v7  ;;  %2111 = vmatpush.msra.mxu3 %v4111_v25  ;;  %v1461_v6 = vadd.f32 %v5487_v5, %v5486_v4  ;;  %v5488_v7 = vld [vmem:[#allocation25_spill] sm:$0xff] }
 0x69b   :  { %2052 = vmatpush.msra.mxu0 %v4103_v20  ;;  %2072 = vmatpush.msra.mxu1 %v4105_v9  ;;  %v1502_v20 = vadd.f32 %v5489_v8, %v5488_v7  ;;  %v4656_v5 = vld [vmem:[#allocation9 + $0x328] sm:$0xff]  ;;  %v4662_v8 = vld [vmem:[#allocation9 + $0x338] sm:$0xff] }
 0x69c   :  { %2092 = vmatpush.msra.mxu2 %v4107_v10  ;;  %2112 = vmatpush.msra.mxu3 %v4123_v30  ;;  %v5490_v30 = vld [vmem:[#allocation30_spill] sm:$0xff] }
 0x69d   :  { %2053 = vmatpush.msra.mxu0 %v4113_v18  ;;  %2073 = vmatpush.msra.mxu1 %v4115_v27 }
 0x69e   :  { %2093 = vmatpush.msra.mxu2 %v4119_v29  ;;  %2113 = vmatpush.msra.mxu3 %v4127_v31  ;;  %v1543_v31 = vadd.f32 %v5490_v30, %v5461_v54  ;;  %v4686_v30 = vld [vmem:[#allocation9 + $0x2f8] sm:$0xff] }
 0x69f   :  { %2054 = vmatpush.msra.mxu0 %v4130_v32  ;;  %2074 = vmatpush.msra.mxu1 %v4132_v33  ;;  %v5491_v32 = vld [vmem:[#allocation31_spill] sm:$0xff] }
 0x6a0   :  { %2094 = vmatpush.msra.mxu2 %v4134_v34  ;;  %2114 = vmatpush.msra.mxu3 %v4138_v35  ;;  %v1584_v33 = vadd.f32 %v5491_v32, %v4422_v43  ;;  %v4692_v32 = vld [vmem:[#allocation9 + $0x2c8] sm:$0xff] }
 0x6a1   :  { %2055 = vmatpush.msra.mxu0 %v4141_v37  ;;  %2075 = vmatpush.msra.mxu1 %v4143_v38 }
 0x6a2   :  { %2095 = vmatpush.msra.mxu2 %v5464_v28  ;;  %2115 = vmatpush.msra.mxu3 %v5465_v26  ;;  %v4593_v28 = vld [vmem:[#allocation9 + $0x3c0] sm:$0xff]  ;;  %v4596_v26 = vld [vmem:[#allocation9 + $0x3c8] sm:$0xff] }
 0x6a3   :  { %2056 = vmatpush.msra.mxu0 %v5466_v19  ;;  %2076 = vmatpush.msra.mxu1 %v5467_v39  ;;  %v4599_v19 = vld [vmem:[#allocation9 + $0x3d0] sm:$0xff]  ;;  %v4602_v39 = vld [vmem:[#allocation9 + $0x3d8] sm:$0xff] }
 0x6a4   :  { %2096 = vmatpush.msra.mxu2 %v5468_v57  ;;  %2116 = vmatpush.msra.mxu3 %v5469_v17  ;;  %v4605_v57 = vld [vmem:[#allocation9 + $0x3a0] sm:$0xff]  ;;  %v4608_v17 = vld [vmem:[#allocation9 + $0x3a8] sm:$0xff] }
 0x6a5   :  { %2057 = vmatpush.msra.mxu0 %v5470_v49  ;;  %2077 = vmatpush.msra.mxu1 %v5471_v15  ;;  %v4611_v49 = vld [vmem:[#allocation9 + $0x3b0] sm:$0xff]  ;;  %v4614_v15 = vld [vmem:[#allocation9 + $0x3b8] sm:$0xff] }
 0x6a6   :  { %2097 = vmatpush.msra.mxu2 %v5472_v24  ;;  %2117 = vmatpush.msra.mxu3 %v5473_v14  ;;  %v4617_v24 = vld [vmem:[#allocation9 + $0x380] sm:$0xff]  ;;  %v4620_v14 = vld [vmem:[#allocation9 + $0x388] sm:$0xff] }
 0x6a7   :  { %2058 = vmatpush.msra.mxu0 %v5474_v11  ;;  %2078 = vmatpush.msra.mxu1 %v5475_v62  ;;  %v4623_v11 = vld [vmem:[#allocation9 + $0x390] sm:$0xff]  ;;  %v4626_v62 = vld [vmem:[#allocation9 + $0x398] sm:$0xff] }
 0x6a8   :  { %2098 = vmatpush.msra.mxu2 %v5476_v60  ;;  %2118 = vmatpush.msra.mxu3 %v5477_v23  ;;  %v4629_v60 = vld [vmem:[#allocation9 + $0x360] sm:$0xff]  ;;  %v4632_v23 = vld [vmem:[#allocation9 + $0x368] sm:$0xff] }
 0x6a9   :  { %2059 = vmatpush.msra.mxu0 %v5478_v52  ;;  %2079 = vmatpush.msra.mxu1 %v5479_v21  ;;  %v4635_v52 = vld [vmem:[#allocation9 + $0x370] sm:$0xff]  ;;  %v4638_v21 = vld [vmem:[#allocation9 + $0x378] sm:$0xff] }
 0x6aa   :  { %2099 = vmatpush.msra.mxu2 %v5480_v61  ;;  %2119 = vmatpush.msra.mxu3 %v5481_v47  ;;  %v4641_v61 = vld [vmem:[#allocation9 + $0x340] sm:$0xff]  ;;  %v4644_v47 = vld [vmem:[#allocation9 + $0x348] sm:$0xff] }
 0x6ab   :  { %2060 = vmatpush.msra.mxu0 %v5482_v56  ;;  %2080 = vmatpush.msra.mxu1 %v5483_v1  ;;  %v4647_v56 = vld [vmem:[#allocation9 + $0x350] sm:$0xff]  ;;  %v4650_v1 = vld [vmem:[#allocation9 + $0x358] sm:$0xff] }
 0x6ac   :  { %2100 = vmatpush.msra.mxu2 %v5484_v2  ;;  %2120 = vmatpush.msra.mxu3 %v5485_v3  ;;  %v4653_v2 = vld [vmem:[#allocation9 + $0x320] sm:$0xff] }
 0x708   :  { %v1858_v9 = vpop.f32.mrf.mxu0  ;;  %v1878_v10 = vpop.f32.mrf.mxu1 }
 0x709   :  { %v1859_v25 = vadd.f32 %v1858_v9, %v1461_v6  ;;  %v1879_v18 = vadd.f32 %v1878_v10, %v1502_v20  ;;  %v4659_v6 = vld [vmem:[#allocation9 + $0x330] sm:$0xff]  ;;  %v4665_v20 = vld [vmem:[#allocation9 + $0x300] sm:$0xff]  ;;  %v4668_v9 = vld [vmem:[#allocation9 + $0x308] sm:$0xff] }
 0x70a   :  { %v4671_v10 = vld [vmem:[#allocation9 + $0x310] sm:$0xff] }
 0x70b   :  { %v1921_v27 = vmul.f32 0.5, %v1859_v25  ;;  %v1925_v29 = vmul.f32 0.5, %v1879_v18  ;;  %v4674_v25 = vld [vmem:[#allocation9 + $0x318] sm:$0xff]  ;;  %v4677_v18 = vld [vmem:[#allocation9 + $0x2e0] sm:$0xff] }
 0x70d   :  { %2627 = vtanh.f32 %v1921_v27  ;;  %v4680_v27 = vld [vmem:[#allocation9 + $0x2e8] sm:$0xff] }
 0x70e   :  { %2629 = vtanh.f32 %v1925_v29  ;;  %v4683_v29 = vld [vmem:[#allocation9 + $0x2f0] sm:$0xff] }
 0x70f   :  { %v1898_v34 = vpop.f32.mrf.mxu2  ;;  %v1918_v35 = vpop.f32.mrf.mxu3 }
 0x710   :  { %v1899_v37 = vadd.f32 %v1898_v34, %v1543_v31  ;;  %v1919_v38 = vadd.f32 %v1918_v35, %v1584_v33  ;;  %v4689_v31 = vld [vmem:[#allocation9 + $0x2c0] sm:$0xff]  ;;  %v4695_v33 = vld [vmem:[#allocation9 + $0x2d0] sm:$0xff]  ;;  %v4698_v34 = vld [vmem:[#allocation9 + $0x2d8] sm:$0xff] }
 0x711   :  { %v4701_v35 = vld [vmem:[#allocation9 + $0x2a0] sm:$0xff] }
 0x712   :  { %2631 = vtanh.f32 %v1899_v37  ;;  %v1930_v41 = vmul.f32 0.5, %v1919_v38  ;;  %v4704_v37 = vld [vmem:[#allocation9 + $0x2a8] sm:$0xff]  ;;  %v4707_v38 = vld [vmem:[#allocation9 + $0x2b0] sm:$0xff] }
 0x713   :  { %v2628_v13 = vpop.eup %2627  ;;  %5492 = vst [vmem:[#allocation68_spill] sm:$0xff] %v4707_v38 }
 0x714   :  { %v2630_v59 = vpop.eup %2629  ;;  %v1923_v46 = vmul.f32 0.5, %v2628_v13  ;;  %2633 = vtanh.f32 %v1930_v41  ;;  %v4710_v41 = vld [vmem:[#allocation9 + $0x2b8] sm:$0xff]  ;;  %v4713_v13 = vld [vmem:[#allocation9 + $0x280] sm:$0xff] }
 0x715   :  { %v1927_v44 = vmul.f32 0.5, %v2630_v59  ;;  %5493 = vst [vmem:[#allocation23_spill] sm:$0xff] %v4710_v41  ;;  %v4716_v59 = vld [vmem:[#allocation9 + $0x288] sm:$0xff] }
 0x716   :  { %v1924_v40 = vadd.f32 0.5, %v1923_v46  ;;  %5494 = vst [vmem:[#allocation24_spill] sm:$0xff] %v4713_v13  ;;  %v4719_v46 = vld [vmem:[#allocation9 + $0x290] sm:$0xff] }
 0x717   :  { %v1928_v63 = vadd.f32 0.5, %v1927_v44  ;;  %5495 = vst [vmem:[#allocation67_spill] sm:$0xff] %v4716_v59  ;;  %v4722_v44 = vld [vmem:[#allocation9 + $0x298] sm:$0xff] }
 0x718   :  { %v2632_v48 = vpop.eup %2631  ;;  %5496 = vst [vmem:[#allocation26_spill] sm:$0xff] %v4719_v46 }
 0x719   :  { %v1934_v51 = vmul.f32 %v1928_v63, %v4502_v58  ;;  %v1935_v55 = vmul.f32 %v2632_v48, %v1924_v40  ;;  %v4587_v58 = vld [vmem:[#allocation9 + $0x3f0] sm:$0xff]  ;;  %5497 = vst [vmem:[#allocation27_spill] sm:$0xff] %v4722_v44  ;;  %v4725_v40 = vld [vmem:[#allocation9 + $0x260] sm:$0xff]  ;;  %v4728_v63 = vld [vmem:[#allocation9 + $0x268] sm:$0xff] }
 0x71a   :  { %v2634_v12 = vpop.eup %2633  ;;  %5498 = vst [vmem:[#allocation38_spill] sm:$0xff] %v4725_v40  ;;  %v4731_v48 = vld [vmem:[#allocation9 + $0x270] sm:$0xff] }
 0x71b   :  { %v4578_v0 = vadd.f32 %v1935_v55, %v1934_v51  ;;  %v1932_v36 = vmul.f32 0.5, %v2634_v12  ;;  %5499 = vst [vmem:[#allocation43_spill] sm:$0xff] %v4728_v63  ;;  %v4734_v51 = vld [vmem:[#allocation9 + $0x278] sm:$0xff]  ;;  %v4737_v55 = vld [vmem:[#allocation9 + $0x240] sm:$0xff]  ;;  %v4740_v12 = vld [vmem:[#allocation9 + $0x248] sm:$0xff] }
 0x71c   :  { %5500 = vst [vmem:[#allocation44_spill] sm:$0xff] %v4731_v48 }
 0x71d   :  { %2635 = vtanh.f32 %v4578_v0  ;;  %v1933_v53 = vadd.f32 0.5, %v1932_v36  ;;  %5501 = vst [vmem:[#allocation45_spill] sm:$0xff] %v4734_v51  ;;  %v4743_v36 = vld [vmem:[#allocation9 + $0x250] sm:$0xff] }
 0x71e   :  { %5502 = vst [vmem:[#allocation46_spill] sm:$0xff] %v4737_v55 }
 0x71f   :  { %5503 = vst [vmem:[#allocation50_spill] sm:$0xff] %v4740_v12 }
 0x720   :  { %5504 = vst [vmem:[#allocation47_spill] sm:$0xff] %v4743_v36 }
 0x723   :  { %v2636_v50 = vpop.eup %2635 }
 0x724   :  { %v1938_v42 = vmul.f32 %v2636_v50, %v1933_v53  ;;  %v4746_v53 = vld [vmem:[#allocation9 + $0x258] sm:$0xff]  ;;  %v4749_v50 = vld [vmem:[#allocation9 + $0x220] sm:$0xff] }
 0x725   :  { %5505 = vst [vmem:[#allocation48_spill] sm:$0xff] %v4746_v53 }
 0x726   :  { %1959 = vmatmul.f32.vlgmr.msrb.gmra.mxu0 %v1938_v42  ;;  %1979 = vmatmul.f32.vlgmr.msrb.gmra.mxu1 %v1938_v42  ;;  %5506 = vst [vmem:[#allocation49_spill] sm:$0xff] %v4749_v50 }
 0x727   :  { %1999 = vmatmul.f32.vlgmr.msrb.gmra.mxu2 %v1938_v42  ;;  %2019 = vmatmul.f32.vlgmr.msrb.gmra.mxu3 %v1938_v42  ;;  %v4752_v42 = vld [vmem:[#allocation9 + $0x228] sm:$0xff] }
 0x728   :  { %2147 = vmatpush.msrb.mxu0 %v4581_v22  ;;  %2167 = vmatpush.msrb.mxu1 %v4584_v16  ;;  %5507 = vst [vmem:[#allocation53_spill] sm:$0xff] %v4752_v42 }
 0x729   :  { %2187 = vmatpush.msrb.mxu2 %v4587_v58  ;;  %2207 = vmatpush.msrb.mxu3 %v4590_v45 }
 0x72a   :  { %2148 = vmatpush.msrb.mxu0 %v4593_v28  ;;  %2168 = vmatpush.msrb.mxu1 %v4596_v26 }
 0x72b   :  { %2188 = vmatpush.msrb.mxu2 %v4599_v19  ;;  %2208 = vmatpush.msrb.mxu3 %v4602_v39 }
 0x72c   :  { %2149 = vmatpush.msrb.mxu0 %v4605_v57  ;;  %2169 = vmatpush.msrb.mxu1 %v4608_v17 }
 0x72d   :  { %2189 = vmatpush.msrb.mxu2 %v4611_v49  ;;  %2209 = vmatpush.msrb.mxu3 %v4614_v15 }
 0x72e   :  { %2150 = vmatpush.msrb.mxu0 %v4617_v24  ;;  %2170 = vmatpush.msrb.mxu1 %v4620_v14 }
 0x72f   :  { %2190 = vmatpush.msrb.mxu2 %v4623_v11  ;;  %2210 = vmatpush.msrb.mxu3 %v4626_v62 }
 0x730   :  { %2151 = vmatpush.msrb.mxu0 %v4629_v60  ;;  %2171 = vmatpush.msrb.mxu1 %v4632_v23 }
 0x731   :  { %2191 = vmatpush.msrb.mxu2 %v4635_v52  ;;  %2211 = vmatpush.msrb.mxu3 %v4638_v21 }
 0x732   :  { %2152 = vmatpush.msrb.mxu0 %v4641_v61  ;;  %2172 = vmatpush.msrb.mxu1 %v4644_v47 }
 0x733   :  { %2192 = vmatpush.msrb.mxu2 %v4647_v56  ;;  %2212 = vmatpush.msrb.mxu3 %v4650_v1 }
 0x734   :  { %2153 = vmatpush.msrb.mxu0 %v4653_v2  ;;  %2173 = vmatpush.msrb.mxu1 %v4656_v5 }
 0x735   :  { %2193 = vmatpush.msrb.mxu2 %v4659_v6  ;;  %2213 = vmatpush.msrb.mxu3 %v4662_v8 }
 0x736   :  { %2154 = vmatpush.msrb.mxu0 %v4665_v20  ;;  %2174 = vmatpush.msrb.mxu1 %v4668_v9 }
 0x737   :  { %2194 = vmatpush.msrb.mxu2 %v4671_v10  ;;  %2214 = vmatpush.msrb.mxu3 %v4674_v25 }
 0x738   :  { %2155 = vmatpush.msrb.mxu0 %v4677_v18  ;;  %2175 = vmatpush.msrb.mxu1 %v4680_v27 }
 0x739   :  { %2195 = vmatpush.msrb.mxu2 %v4683_v29  ;;  %2215 = vmatpush.msrb.mxu3 %v4686_v30 }
 0x73a   :  { %2156 = vmatpush.msrb.mxu0 %v4689_v31  ;;  %2176 = vmatpush.msrb.mxu1 %v4692_v32 }
 0x73b   :  { %2196 = vmatpush.msrb.mxu2 %v4695_v33  ;;  %2216 = vmatpush.msrb.mxu3 %v4698_v34 }
 0x73c   :  { %2157 = vmatpush.msrb.mxu0 %v4701_v35  ;;  %2177 = vmatpush.msrb.mxu1 %v4704_v37 }
 0x73d   :  { %2197 = vmatpush.msrb.mxu2 %v4707_v38  ;;  %2217 = vmatpush.msrb.mxu3 %v4710_v41 }
 0x73e   :  { %2158 = vmatpush.msrb.mxu0 %v4713_v13  ;;  %2178 = vmatpush.msrb.mxu1 %v4716_v59 }
 0x73f   :  { %2198 = vmatpush.msrb.mxu2 %v4719_v46  ;;  %2218 = vmatpush.msrb.mxu3 %v4722_v44 }
 0x740   :  { %2159 = vmatpush.msrb.mxu0 %v4725_v40  ;;  %2179 = vmatpush.msrb.mxu1 %v4728_v63 }
 0x741   :  { %2199 = vmatpush.msrb.mxu2 %v4731_v48  ;;  %2219 = vmatpush.msrb.mxu3 %v4734_v51  ;;  %v5514_v51 = vld [vmem:[#allocation33_spill] sm:$0xff] }
 0x742   :  { %2160 = vmatpush.msrb.mxu0 %v4737_v55  ;;  %2180 = vmatpush.msrb.mxu1 %v4740_v12  ;;  %v4755_v55 = vld [vmem:[#allocation9 + $0x230] sm:$0xff]  ;;  %v4758_v12 = vld [vmem:[#allocation9 + $0x238] sm:$0xff] }
 0x743   :  { %2200 = vmatpush.msrb.mxu2 %v4743_v36  ;;  %2220 = vmatpush.msrb.mxu3 %v4746_v53  ;;  %5508 = vst [vmem:[#allocation69_spill] sm:$0xff] %v4755_v55  ;;  %v4761_v36 = vld [vmem:[#allocation9 + $0x200] sm:$0xff]  ;;  %v4764_v53 = vld [vmem:[#allocation9 + $0x208] sm:$0xff] }
 0x744   :  { %2161 = vmatpush.msrb.mxu0 %v4749_v50  ;;  %2181 = vmatpush.msrb.mxu1 %v4752_v42  ;;  %5509 = vst [vmem:[#allocation51_spill] sm:$0xff] %v4758_v12  ;;  %v4767_v50 = vld [vmem:[#allocation9 + $0x210] sm:$0xff] }
 0x745   :  { %2201 = vmatpush.msrb.mxu2 %v4755_v55  ;;  %2221 = vmatpush.msrb.mxu3 %v4758_v12  ;;  %5510 = vst [vmem:[#allocation52_spill] sm:$0xff] %v4761_v36  ;;  %v5513_v55 = vld [vmem:[#allocation32_spill] sm:$0xff]  ;;  %v1505_v12 = vadd.f32 %v5514_v51, %v5488_v7 }
 0x746   :  { %2162 = vmatpush.msrb.mxu0 %v4761_v36  ;;  %5511 = vst [vmem:[#allocation17_spill] sm:$0xff] %v4764_v53  ;;  %2182 = vmatpush.msrb.mxu1 %v4764_v53  ;;  %v1464_v42 = vadd.f32 %v5513_v55, %v5486_v4  ;;  %v5515_v53 = vld [vmem:[#allocation34_spill] sm:$0xff] }
 0x747   :  { %5512 = vst [vmem:[#allocation54_spill] sm:$0xff] %v4767_v50  ;;  %2202 = vmatpush.msrb.mxu2 %v4767_v50  ;;  %2222 = vmatpush.msrb.mxu3 %v5485_v3  ;;  %v1546_v59 = vadd.f32 %v5515_v53, %v5461_v54  ;;  %v5516_v50 = vld [vmem:[#allocation35_spill] sm:$0xff] }
 0x748   :  { %v1587_v13 = vadd.f32 %v5516_v50, %v4422_v43 }
 0x7a3   :  { %v1960_v48 = vpop.f32.mrf.mxu0  ;;  %v1980_v63 = vpop.f32.mrf.mxu1 }
 0x7a4   :  { %v1961_v40 = vadd.f32 %v1960_v48, %v1464_v42  ;;  %v1981_v36 = vadd.f32 %v1980_v63, %v1505_v12 }
 0x7a6   :  { %v2023_v44 = vmul.f32 0.5, %v1961_v40  ;;  %v2027_v46 = vmul.f32 0.5, %v1981_v36 }
 0x7a8   :  { %2637 = vtanh.f32 %v2023_v44 }
 0x7a9   :  { %2639 = vtanh.f32 %v2027_v46  ;;  %v5520_v46 = vld [vmem:[#allocation67_spill] sm:$0xff] }
 0x7aa   :  { %v2000_v3 = vpop.f32.mrf.mxu2  ;;  %v2020_v41 = vpop.f32.mrf.mxu3 }
 0x7ab   :  { %v2001_v55 = vadd.f32 %v2000_v3, %v1546_v59  ;;  %v2021_v4 = vadd.f32 %v2020_v41, %v1587_v13  ;;  %v5521_v3 = vld [vmem:[#allocation26_spill] sm:$0xff] }
 0x7ad   :  { %2641 = vtanh.f32 %v2001_v55  ;;  %v2032_v51 = vmul.f32 0.5, %v2021_v4  ;;  %v5522_v55 = vld [vmem:[#allocation27_spill] sm:$0xff] }
 0x7ae   :  { %v2638_v7 = vpop.eup %2637 }
 0x7af   :  { %v2640_v38 = vpop.eup %2639  ;;  %v2025_v48 = vmul.f32 0.5, %v2638_v7  ;;  %2643 = vtanh.f32 %v2032_v51  ;;  %v5517_v7 = vld [vmem:[#allocation68_spill] sm:$0xff]  ;;  %v5523_v51 = vld [vmem:[#allocation38_spill] sm:$0xff] }
 0x7b0   :  { %v2029_v63 = vmul.f32 0.5, %v2640_v38  ;;  %v5519_v38 = vld [vmem:[#allocation24_spill] sm:$0xff] }
 0x7b1   :  { %v2026_v40 = vadd.f32 0.5, %v2025_v48  ;;  %v5524_v48 = vld [vmem:[#allocation43_spill] sm:$0xff] }
 0x7b2   :  { %v2030_v44 = vadd.f32 0.5, %v2029_v63  ;;  %v5525_v63 = vld [vmem:[#allocation44_spill] sm:$0xff] }
 0x7b3   :  { %v2642_v12 = vpop.eup %2641 }
 0x7b4   :  { %v2036_v36 = vmul.f32 %v2030_v44, %v4578_v0  ;;  %v2037_v53 = vmul.f32 %v2642_v12, %v2026_v40  ;;  %v5518_v0 = vld [vmem:[#allocation23_spill] sm:$0xff]  ;;  %v5526_v40 = vld [vmem:[#allocation45_spill] sm:$0xff]  ;;  %v5527_v44 = vld [vmem:[#allocation46_spill] sm:$0xff] }
 0x7b5   :  { %v2644_v42 = vpop.eup %2643  ;;  %v5528_v12 = vld [vmem:[#allocation50_spill] sm:$0xff] }
 0x7b6   :  { %v4780_v50 = vadd.f32 %v2037_v53, %v2036_v36  ;;  %v2034_v59 = vmul.f32 0.5, %v2644_v42  ;;  %v5529_v36 = vld [vmem:[#allocation47_spill] sm:$0xff]  ;;  %v5530_v53 = vld [vmem:[#allocation48_spill] sm:$0xff]  ;;  %v5531_v42 = vld [vmem:[#allocation49_spill] sm:$0xff] }
 0x7b8   :  { %2645 = vtanh.f32 %v4780_v50  ;;  %v2035_v41 = vadd.f32 0.5, %v2034_v59  ;;  %v5532_v59 = vld [vmem:[#allocation53_spill] sm:$0xff] }
 0x7be   :  { %v2646_v13 = vpop.eup %2645 }
 0x7bf   :  { %v2040_v4 = vmul.f32 %v2646_v13, %v2035_v41  ;;  %v5533_v41 = vld [vmem:[#allocation69_spill] sm:$0xff]  ;;  %v5534_v13 = vld [vmem:[#allocation51_spill] sm:$0xff] }
 0x7c1   :  { %2061 = vmatmul.f32.vlgmr.msra.gmra.mxu0 %v2040_v4  ;;  %2081 = vmatmul.f32.vlgmr.msra.gmra.mxu1 %v2040_v4 }
 0x7c2   :  { %2101 = vmatmul.f32.vlgmr.msra.gmra.mxu2 %v2040_v4  ;;  %2121 = vmatmul.f32.vlgmr.msra.gmra.mxu3 %v2040_v4  ;;  %v5535_v4 = vld [vmem:[#allocation52_spill] sm:$0xff] }
 0x7c3   :  { %2249 = vmatpush.msra.mxu0 %v4581_v22  ;;  %2269 = vmatpush.msra.mxu1 %v4584_v16 }
 0x7c4   :  { %2289 = vmatpush.msra.mxu2 %v4587_v58  ;;  %2309 = vmatpush.msra.mxu3 %v4590_v45 }
 0x7c5   :  { %2250 = vmatpush.msra.mxu0 %v4593_v28  ;;  %2270 = vmatpush.msra.mxu1 %v4596_v26 }
 0x7c6   :  { %2290 = vmatpush.msra.mxu2 %v4599_v19  ;;  %2310 = vmatpush.msra.mxu3 %v4602_v39 }
 0x7c7   :  { %2251 = vmatpush.msra.mxu0 %v4605_v57  ;;  %2271 = vmatpush.msra.mxu1 %v4608_v17 }
 0x7c8   :  { %2291 = vmatpush.msra.mxu2 %v4611_v49  ;;  %2311 = vmatpush.msra.mxu3 %v4614_v15 }
 0x7c9   :  { %2252 = vmatpush.msra.mxu0 %v4617_v24  ;;  %2272 = vmatpush.msra.mxu1 %v4620_v14 }
 0x7ca   :  { %2292 = vmatpush.msra.mxu2 %v4623_v11  ;;  %2312 = vmatpush.msra.mxu3 %v4626_v62 }
 0x7cb   :  { %2253 = vmatpush.msra.mxu0 %v4629_v60  ;;  %2273 = vmatpush.msra.mxu1 %v4632_v23 }
 0x7cc   :  { %2293 = vmatpush.msra.mxu2 %v4635_v52  ;;  %2313 = vmatpush.msra.mxu3 %v4638_v21 }
 0x7cd   :  { %2254 = vmatpush.msra.mxu0 %v4641_v61  ;;  %2274 = vmatpush.msra.mxu1 %v4644_v47 }
 0x7ce   :  { %2294 = vmatpush.msra.mxu2 %v4647_v56  ;;  %2314 = vmatpush.msra.mxu3 %v4650_v1 }
 0x7cf   :  { %2255 = vmatpush.msra.mxu0 %v4653_v2  ;;  %2275 = vmatpush.msra.mxu1 %v4656_v5 }
 0x7d0   :  { %2295 = vmatpush.msra.mxu2 %v4659_v6  ;;  %2315 = vmatpush.msra.mxu3 %v4662_v8 }
 0x7d1   :  { %2256 = vmatpush.msra.mxu0 %v4665_v20  ;;  %2276 = vmatpush.msra.mxu1 %v4668_v9 }
 0x7d2   :  { %2296 = vmatpush.msra.mxu2 %v4671_v10  ;;  %2316 = vmatpush.msra.mxu3 %v4674_v25 }
 0x7d3   :  { %2257 = vmatpush.msra.mxu0 %v4677_v18  ;;  %2277 = vmatpush.msra.mxu1 %v4680_v27 }
 0x7d4   :  { %2297 = vmatpush.msra.mxu2 %v4683_v29  ;;  %2317 = vmatpush.msra.mxu3 %v4686_v30 }
 0x7d5   :  { %2258 = vmatpush.msra.mxu0 %v4689_v31  ;;  %2278 = vmatpush.msra.mxu1 %v4692_v32 }
 0x7d6   :  { %2298 = vmatpush.msra.mxu2 %v4695_v33  ;;  %2318 = vmatpush.msra.mxu3 %v4698_v34 }
 0x7d7   :  { %2259 = vmatpush.msra.mxu0 %v4701_v35  ;;  %2279 = vmatpush.msra.mxu1 %v4704_v37 }
 0x7d8   :  { %2299 = vmatpush.msra.mxu2 %v5517_v7  ;;  %2319 = vmatpush.msra.mxu3 %v5518_v0 }
 0x7d9   :  { %2260 = vmatpush.msra.mxu0 %v5519_v38  ;;  %2280 = vmatpush.msra.mxu1 %v5520_v46  ;;  %v5544_v46 = vld [vmem:[#allocation55_spill] sm:$0xff] }
 0x7da   :  { %2300 = vmatpush.msra.mxu2 %v5521_v3  ;;  %2320 = vmatpush.msra.mxu3 %v5522_v55  ;;  %v1590_v38 = vadd.f32 %v5544_v46, %v4422_v43 }
 0x7db   :  { %2261 = vmatpush.msra.mxu0 %v5523_v51  ;;  %2281 = vmatpush.msra.mxu1 %v5524_v48  ;;  %v5542_v48 = vld [vmem:[#allocation37_spill] sm:$0xff] }
 0x7dc   :  { %2301 = vmatpush.msra.mxu2 %v5525_v63  ;;  %2321 = vmatpush.msra.mxu3 %v5526_v40  ;;  %v5536_v63 = vld [vmem:[#allocation17_spill] sm:$0xff]  ;;  %v5537_v40 = vld [vmem:[#allocation54_spill] sm:$0xff] }
 0x7dd   :  { %2262 = vmatpush.msra.mxu0 %v5527_v44  ;;  %2282 = vmatpush.msra.mxu1 %v5528_v12  ;;  %v4846_v44 = vld [vmem:[#allocation9 + $0x218] sm:$0xff] }
 0x7de   :  { %2302 = vmatpush.msra.mxu2 %v5529_v36  ;;  %2322 = vmatpush.msra.mxu3 %v5530_v53  ;;  %5538 = vst [vmem:[#allocation41_spill] sm:$0xff] %v4846_v44  ;;  %v5539_v36 = vld [vmem:[#allocation40_spill] sm:$0xff] }
 0x7df   :  { %2263 = vmatpush.msra.mxu0 %v5531_v42  ;;  %2283 = vmatpush.msra.mxu1 %v5532_v59  ;;  %v5540_v53 = vld [vmem:[#allocation36_spill] sm:$0xff]  ;;  %v5541_v42 = vld [vmem:[#allocation25_spill] sm:$0xff] }
 0x7e0   :  { %2303 = vmatpush.msra.mxu2 %v5533_v41  ;;  %2323 = vmatpush.msra.mxu3 %v5534_v13  ;;  %v1467_v12 = vadd.f32 %v5540_v53, %v5539_v36  ;;  %v1508_v59 = vadd.f32 %v5542_v48, %v5541_v42 }
 0x7e1   :  { %2264 = vmatpush.msra.mxu0 %v5535_v4  ;;  %2284 = vmatpush.msra.mxu1 %v5536_v63  ;;  %v5543_v63 = vld [vmem:[#allocation65_spill] sm:$0xff] }
 0x7e2   :  { %2304 = vmatpush.msra.mxu2 %v5537_v40  ;;  %2324 = vmatpush.msra.mxu3 %v4846_v44  ;;  %v1549_v40 = vadd.f32 %v5543_v63, %v5461_v54 }
 0x83e   :  { %v2062_v51 = vpop.f32.mrf.mxu0  ;;  %v2082_v41 = vpop.f32.mrf.mxu1 }
 0x83f   :  { %v2063_v55 = vadd.f32 %v2062_v51, %v1467_v12  ;;  %v2083_v13 = vadd.f32 %v2082_v41, %v1508_v59 }
 0x841   :  { %v2125_v3 = vmul.f32 0.5, %v2063_v55  ;;  %v2129_v4 = vmul.f32 0.5, %v2083_v13 }
 0x843   :  { %2647 = vtanh.f32 %v2125_v3 }
 0x844   :  { %2649 = vtanh.f32 %v2129_v4 }
 0x845   :  { %v2102_v44 = vpop.f32.mrf.mxu2  ;;  %v2122_v0 = vpop.f32.mrf.mxu3 }
 0x846   :  { %v2103_v53 = vadd.f32 %v2102_v44, %v1549_v40  ;;  %v2123_v36 = vadd.f32 %v2122_v0, %v1590_v38 }
 0x848   :  { %2651 = vtanh.f32 %v2103_v53  ;;  %v2134_v48 = vmul.f32 0.5, %v2123_v36 }
 0x849   :  { %v2648_v42 = vpop.eup %2647 }
 0x84a   :  { %v2650_v7 = vpop.eup %2649  ;;  %v2127_v51 = vmul.f32 0.5, %v2648_v42  ;;  %2653 = vtanh.f32 %v2134_v48 }
 0x84b   :  { %v2131_v12 = vmul.f32 0.5, %v2650_v7 }
 0x84c   :  { %v2128_v55 = vadd.f32 0.5, %v2127_v51 }
 0x84d   :  { %v2132_v3 = vadd.f32 0.5, %v2131_v12 }
 0x84e   :  { %v2652_v59 = vpop.eup %2651 }
 0x84f   :  { %v2138_v63 = vmul.f32 %v2132_v3, %v4780_v50  ;;  %v2139_v41 = vmul.f32 %v2652_v59, %v2128_v55 }
 0x850   :  { %v2654_v13 = vpop.eup %2653 }
 0x851   :  { %v4858_v46 = vadd.f32 %v2139_v41, %v2138_v63  ;;  %v2136_v40 = vmul.f32 0.5, %v2654_v13 }
 0x853   :  { %2655 = vtanh.f32 %v4858_v46  ;;  %v2137_v0 = vadd.f32 0.5, %v2136_v40 }
 0x859   :  { %v2656_v38 = vpop.eup %2655 }
 0x85a   :  { %v2142_v44 = vmul.f32 %v2656_v38, %v2137_v0  ;;  %v5573_v0 = vld [vmem:[#allocation59_spill] sm:$0xff] }
 0x85c   :  { %2163 = vmatmul.f32.vlgmr.msrb.gmra.mxu0 %v2142_v44  ;;  %2183 = vmatmul.f32.vlgmr.msrb.gmra.mxu1 %v2142_v44 }
 0x85d   :  { %2203 = vmatmul.f32.vlgmr.msrb.gmra.mxu2 %v2142_v44  ;;  %2223 = vmatmul.f32.vlgmr.msrb.gmra.mxu3 %v2142_v44  ;;  %v5574_v44 = vld [vmem:[#allocation60_spill] sm:$0xff] }
 0x85e   :  { %2351 = vmatpush.msrb.mxu0 %v4581_v22  ;;  %2371 = vmatpush.msrb.mxu1 %v4584_v16  ;;  %v5545_v22 = vld [vmem:[#allocation68_spill] sm:$0xff]  ;;  %v5546_v16 = vld [vmem:[#allocation23_spill] sm:$0xff] }
 0x85f   :  { %2391 = vmatpush.msrb.mxu2 %v4587_v58  ;;  %2411 = vmatpush.msrb.mxu3 %v4590_v45  ;;  %v5547_v58 = vld [vmem:[#allocation24_spill] sm:$0xff]  ;;  %v5548_v45 = vld [vmem:[#allocation67_spill] sm:$0xff] }
 0x860   :  { %2352 = vmatpush.msrb.mxu0 %v4593_v28  ;;  %2372 = vmatpush.msrb.mxu1 %v4596_v26  ;;  %v5549_v28 = vld [vmem:[#allocation26_spill] sm:$0xff]  ;;  %v5550_v26 = vld [vmem:[#allocation27_spill] sm:$0xff] }
 0x861   :  { %2392 = vmatpush.msrb.mxu2 %v4599_v19  ;;  %2412 = vmatpush.msrb.mxu3 %v4602_v39  ;;  %v5551_v19 = vld [vmem:[#allocation38_spill] sm:$0xff]  ;;  %v5552_v39 = vld [vmem:[#allocation43_spill] sm:$0xff] }
 0x862   :  { %2353 = vmatpush.msrb.mxu0 %v4605_v57  ;;  %2373 = vmatpush.msrb.mxu1 %v4608_v17  ;;  %v5553_v57 = vld [vmem:[#allocation44_spill] sm:$0xff]  ;;  %v5554_v17 = vld [vmem:[#allocation45_spill] sm:$0xff] }
 0x863   :  { %2393 = vmatpush.msrb.mxu2 %v4611_v49  ;;  %2413 = vmatpush.msrb.mxu3 %v4614_v15  ;;  %v5555_v49 = vld [vmem:[#allocation46_spill] sm:$0xff] }
 0x864   :  { %2354 = vmatpush.msrb.mxu0 %v4617_v24  ;;  %2374 = vmatpush.msrb.mxu1 %v4620_v14  ;;  %v5556_v15 = vld [vmem:[#allocation50_spill] sm:$0xff]  ;;  %v5557_v24 = vld [vmem:[#allocation47_spill] sm:$0xff]  ;;  %v5558_v14 = vld [vmem:[#allocation48_spill] sm:$0xff] }
 0x865   :  { %2394 = vmatpush.msrb.mxu2 %v4623_v11  ;;  %2414 = vmatpush.msrb.mxu3 %v4626_v62  ;;  %v5559_v11 = vld [vmem:[#allocation49_spill] sm:$0xff] }
 0x866   :  { %2355 = vmatpush.msrb.mxu0 %v4629_v60  ;;  %2375 = vmatpush.msrb.mxu1 %v4632_v23  ;;  %v5560_v62 = vld [vmem:[#allocation53_spill] sm:$0xff]  ;;  %v5562_v23 = vld [vmem:[#allocation51_spill] sm:$0xff] }
 0x867   :  { %2395 = vmatpush.msrb.mxu2 %v4635_v52  ;;  %2415 = vmatpush.msrb.mxu3 %v4638_v21  ;;  %v5561_v60 = vld [vmem:[#allocation69_spill] sm:$0xff]  ;;  %v5563_v52 = vld [vmem:[#allocation52_spill] sm:$0xff] }
 0x868   :  { %2356 = vmatpush.msrb.mxu0 %v4641_v61  ;;  %2376 = vmatpush.msrb.mxu1 %v4644_v47  ;;  %v5564_v21 = vld [vmem:[#allocation17_spill] sm:$0xff]  ;;  %v5565_v61 = vld [vmem:[#allocation54_spill] sm:$0xff] }
 0x869   :  { %2396 = vmatpush.msrb.mxu2 %v4647_v56  ;;  %2416 = vmatpush.msrb.mxu3 %v4650_v1  ;;  %v5566_v47 = vld [vmem:[#allocation41_spill] sm:$0xff]  ;;  %v5567_v56 = vld [vmem:[#allocation40_spill] sm:$0xff]  ;;  %v5568_v1 = vld [vmem:[#allocation66_spill] sm:$0xff] }
 0x86a   :  { %2357 = vmatpush.msrb.mxu0 %v4653_v2  ;;  %2377 = vmatpush.msrb.mxu1 %v4656_v5  ;;  %v1470_v2 = vadd.f32 %v5568_v1, %v5567_v56  ;;  %v5569_v5 = vld [vmem:[#allocation25_spill] sm:$0xff]  ;;  %v1473_v38 = vadd.f32 %v5573_v0, %v5567_v56  ;;  %v5579_v0 = vld [vmem:[#allocation63_spill] sm:$0xff] }
 0x86b   :  { %2397 = vmatpush.msrb.mxu2 %v4659_v6  ;;  %2417 = vmatpush.msrb.mxu3 %v4662_v8  ;;  %v5570_v6 = vld [vmem:[#allocation56_spill] sm:$0xff] }
 0x86c   :  { %2358 = vmatpush.msrb.mxu0 %v4665_v20  ;;  %2378 = vmatpush.msrb.mxu1 %v4668_v9  ;;  %v1511_v8 = vadd.f32 %v5570_v6, %v5569_v5 }
 0x86d   :  { %2398 = vmatpush.msrb.mxu2 %v4671_v10  ;;  %2418 = vmatpush.msrb.mxu3 %v4674_v25 }
 0x86e   :  { %2359 = vmatpush.msrb.mxu0 %v4677_v18  ;;  %2379 = vmatpush.msrb.mxu1 %v4680_v27 }
 0x86f   :  { %2399 = vmatpush.msrb.mxu2 %v4683_v29  ;;  %2419 = vmatpush.msrb.mxu3 %v4686_v30  ;;  %v5571_v29 = vld [vmem:[#allocation57_spill] sm:$0xff] }
 0x870   :  { %2360 = vmatpush.msrb.mxu0 %v4689_v31  ;;  %2380 = vmatpush.msrb.mxu1 %v4692_v32  ;;  %v1552_v30 = vadd.f32 %v5571_v29, %v5461_v54  ;;  %v5572_v31 = vld [vmem:[#allocation58_spill] sm:$0xff]  ;;  %v2462_v29 = vld [vmem:[#allocation10 + $0x68] sm:$0xff] }
 0x871   :  { %2400 = vmatpush.msrb.mxu2 %v4695_v33  ;;  %2420 = vmatpush.msrb.mxu3 %v4698_v34  ;;  %v1593_v32 = vadd.f32 %v5572_v31, %v4422_v43  ;;  %v2460_v31 = vld [vmem:[#allocation10 + $0x58] sm:$0xff] }
 0x872   :  { %2361 = vmatpush.msrb.mxu0 %v4701_v35  ;;  %2381 = vmatpush.msrb.mxu1 %v4704_v37 }
 0x873   :  { %2401 = vmatpush.msrb.mxu2 %v5545_v22  ;;  %2421 = vmatpush.msrb.mxu3 %v5546_v16  ;;  %v1514_v22 = vadd.f32 %v5574_v44, %v5569_v5  ;;  %v2464_v16 = vld [vmem:[#allocation10 + $0x78] sm:$0xff]  ;;  %v5580_v44 = vld [vmem:[#allocation64_spill] sm:$0xff] }
 0x874   :  { %2362 = vmatpush.msrb.mxu0 %v5547_v58  ;;  %2382 = vmatpush.msrb.mxu1 %v5548_v45 }
 0x875   :  { %2402 = vmatpush.msrb.mxu2 %v5549_v28  ;;  %2422 = vmatpush.msrb.mxu3 %v5550_v26 }
 0x876   :  { %2363 = vmatpush.msrb.mxu0 %v5551_v19  ;;  %2383 = vmatpush.msrb.mxu1 %v5552_v39  ;;  %v5575_v39 = vld [vmem:[#allocation61_spill] sm:$0xff] }
 0x877   :  { %2403 = vmatpush.msrb.mxu2 %v5553_v57  ;;  %2423 = vmatpush.msrb.mxu3 %v5554_v17  ;;  %v1555_v57 = vadd.f32 %v5575_v39, %v5461_v54  ;;  %v5576_v17 = vld [vmem:[#allocation62_spill] sm:$0xff] }
 0x878   :  { %2364 = vmatpush.msrb.mxu0 %v5555_v49  ;;  %2384 = vmatpush.msrb.mxu1 %v5556_v15  ;;  %v1596_v49 = vadd.f32 %v5576_v17, %v4422_v43 }
 0x879   :  { %2404 = vmatpush.msrb.mxu2 %v5557_v24  ;;  %2424 = vmatpush.msrb.mxu3 %v5558_v14 }
 0x87a   :  { %2365 = vmatpush.msrb.mxu0 %v5559_v11  ;;  %2385 = vmatpush.msrb.mxu1 %v5560_v62 }
 0x87b   :  { %2405 = vmatpush.msrb.mxu2 %v5561_v60  ;;  %2425 = vmatpush.msrb.mxu3 %v5562_v23 }
 0x87c   :  { %2366 = vmatpush.msrb.mxu0 %v5563_v52  ;;  %2386 = vmatpush.msrb.mxu1 %v5564_v21 }
 0x87d   :  { %2406 = vmatpush.msrb.mxu2 %v5565_v61  ;;  %2426 = vmatpush.msrb.mxu3 %v5566_v47 }
 0x8d9   :  { %v2164_v20 = vpop.f32.mrf.mxu0  ;;  %v2184_v9 = vpop.f32.mrf.mxu1 }
 0x8da   :  { %v2165_v10 = vadd.f32 %v2164_v20, %v1470_v2  ;;  %v2185_v25 = vadd.f32 %v2184_v9, %v1511_v8 }
 0x8dc   :  { %v2227_v18 = vmul.f32 0.5, %v2165_v10  ;;  %v2231_v27 = vmul.f32 0.5, %v2185_v25 }
 0x8de   :  { %2657 = vtanh.f32 %v2227_v18 }
 0x8df   :  { %2659 = vtanh.f32 %v2231_v27  ;;  %v2463_v27 = vld [vmem:[#allocation10 + $0x70] sm:$0xff] }
 0x8e0   :  { %v2204_v33 = vpop.f32.mrf.mxu2  ;;  %v2224_v34 = vpop.f32.mrf.mxu3 }
 0x8e1   :  { %v2205_v35 = vadd.f32 %v2204_v33, %v1552_v30  ;;  %v2225_v37 = vadd.f32 %v2224_v34, %v1593_v32  ;;  %v2461_v30 = vld [vmem:[#allocation10 + $0x60] sm:$0xff]  ;;  %v2459_v32 = vld [vmem:[#allocation10 + $0x50] sm:$0xff]  ;;  %v2458_v33 = vld [vmem:[#allocation10 + $0x48] sm:$0xff] }
 0x8e2   :  { %v2457_v34 = vld [vmem:[#allocation10 + $0x40] sm:$0xff] }
 0x8e3   :  { %2661 = vtanh.f32 %v2205_v35  ;;  %v2236_v50 = vmul.f32 0.5, %v2225_v37  ;;  %v2456_v35 = vld [vmem:[#allocation10 + $0x38] sm:$0xff]  ;;  %v2455_v37 = vld [vmem:[#allocation10 + $0x30] sm:$0xff] }
 0x8e4   :  { %v2658_v7 = vpop.eup %2657 }
 0x8e5   :  { %v2660_v36 = vpop.eup %2659  ;;  %v2229_v42 = vmul.f32 0.5, %v2658_v7  ;;  %2663 = vtanh.f32 %v2236_v50  ;;  %v2454_v50 = vld [vmem:[#allocation10 + $0x28] sm:$0xff]  ;;  %v2453_v7 = vld [vmem:[#allocation10 + $0x20] sm:$0xff] }
 0x8e6   :  { %v2233_v4 = vmul.f32 0.5, %v2660_v36  ;;  %v2452_v36 = vld [vmem:[#allocation10 + $0x18] sm:$0xff] }
 0x8e7   :  { %v2230_v53 = vadd.f32 0.5, %v2229_v42  ;;  %v2451_v42 = vld [vmem:[#allocation10 + $0x10] sm:$0xff] }
 0x8e8   :  { %v2234_v48 = vadd.f32 0.5, %v2233_v4  ;;  %v2450_v4 = vld [vmem:[#allocation10 + $0x8] sm:$0xff] }
 0x8e9   :  { %v2662_v51 = vpop.eup %2661 }
 0x8ea   :  { %v2240_v12 = vmul.f32 %v2234_v48, %v4858_v46  ;;  %v2241_v55 = vmul.f32 %v2662_v51, %v2230_v53  ;;  %v2449_v53 = vld [vmem:[#allocation10] sm:$0xff]  ;;  %v5577_v48 = vld [vmem:[#allocation70_spill] sm:$0xff] }
 0x8eb   :  { %v2664_v3 = vpop.eup %2663  ;;  %v1476_v51 = vadd.f32 %v5577_v48, %v5567_v56 }
 0x8ec   :  { %v2242_v59 = vadd.f32 %v2241_v55, %v2240_v12  ;;  %v2238_v63 = vmul.f32 0.5, %v2664_v3  ;;  %v5578_v12 = vld [vmem:[#allocation39_spill] sm:$0xff] }
 0x8ed   :  { %v1517_v55 = vadd.f32 %v5578_v12, %v5569_v5 }
 0x8ee   :  { %2665 = vtanh.f32 %v2242_v59  ;;  %v2239_v41 = vadd.f32 0.5, %v2238_v63 }
 0x8f4   :  { %v2666_v13 = vpop.eup %2665 }
 0x8f5   :  { %v2244_v40 = vmul.f32 %v2666_v13, %v2239_v41 }
 0x8f7   :  { %2265 = vmatmul.f32.vlgmr.msra.gmra.mxu0 %v2244_v40  ;;  %2285 = vmatmul.f32.vlgmr.msra.gmra.mxu1 %v2244_v40 }
 0x8f8   :  { %2305 = vmatmul.f32.vlgmr.msra.gmra.mxu2 %v2244_v40  ;;  %2325 = vmatmul.f32.vlgmr.msra.gmra.mxu3 %v2244_v40 }
 0x8f9   :  { %2469 = vmatpush.msra.mxu0 %v2464_v16 }
 0x8fb   :  { %2470 = vmatpush.msra.mxu0 %v2463_v27 }
 0x8fd   :  { %2471 = vmatpush.msra.mxu0 %v2462_v29 }
 0x8ff   :  { %2472 = vmatpush.msra.mxu0 %v2461_v30 }
 0x901   :  { %2473 = vmatpush.msra.mxu0 %v2460_v31 }
 0x903   :  { %2474 = vmatpush.msra.mxu0 %v2459_v32 }
 0x905   :  { %2475 = vmatpush.msra.mxu0 %v2458_v33 }
 0x907   :  { %2476 = vmatpush.msra.mxu0 %v2457_v34 }
 0x909   :  { %2477 = vmatpush.msra.mxu0 %v2456_v35 }
 0x90b   :  { %2478 = vmatpush.msra.mxu0 %v2455_v37 }
 0x90d   :  { %2479 = vmatpush.msra.mxu0 %v2454_v50 }
 0x90f   :  { %2480 = vmatpush.msra.mxu0 %v2453_v7 }
 0x911   :  { %2481 = vmatpush.msra.mxu0 %v2452_v36 }
 0x913   :  { %2482 = vmatpush.msra.mxu0 %v2451_v42 }
 0x915   :  { %2483 = vmatpush.msra.mxu0 %v2450_v4 }
 0x917   :  { %2484 = vmatpush.msra.mxu0 %v2449_v53 }
 0x974   :  { %v2266_v46 = vpop.f32.mrf.mxu0  ;;  %v2286_v58 = vpop.f32.mrf.mxu1 }
 0x975   :  { %v2267_v45 = vadd.f32 %v2266_v46, %v1473_v38  ;;  %v2287_v28 = vadd.f32 %v2286_v58, %v1514_v22  ;;  %v1558_v38 = vadd.f32 %v5579_v0, %v5461_v54  ;;  %v1599_v22 = vadd.f32 %v5580_v44, %v4422_v43 }
 0x977   :  { %v2329_v26 = vmul.f32 0.5, %v2267_v45  ;;  %v2333_v19 = vmul.f32 0.5, %v2287_v28 }
 0x979   :  { %2667 = vtanh.f32 %v2329_v26 }
 0x97a   :  { %2669 = vtanh.f32 %v2333_v19 }
 0x97b   :  { %v2306_v15 = vpop.f32.mrf.mxu2  ;;  %v2326_v24 = vpop.f32.mrf.mxu3 }
 0x97c   :  { %v2307_v14 = vadd.f32 %v2306_v15, %v1555_v57  ;;  %v2327_v11 = vadd.f32 %v2326_v24, %v1596_v49 }
 0x97e   :  { %2671 = vtanh.f32 %v2307_v14  ;;  %v2338_v62 = vmul.f32 0.5, %v2327_v11 }
 0x97f   :  { %v2668_v60 = vpop.eup %2667 }
 0x980   :  { %v2670_v23 = vpop.eup %2669  ;;  %v2331_v52 = vmul.f32 0.5, %v2668_v60  ;;  %2673 = vtanh.f32 %v2338_v62  ;;  %v2526_v60 = vld [vmem:[%s4967_s7] ss:$0 sm:$0xff] }
 0x981   :  { %v2335_v21 = vmul.f32 0.5, %v2670_v23 }
 0x982   :  { %v2332_v61 = vadd.f32 0.5, %v2331_v52 }
 0x983   :  { %v2336_v47 = vadd.f32 0.5, %v2335_v21 }
 0x984   :  { %v2672_v1 = vpop.eup %2671 }
 0x985   :  { %v2342_v2 = vmul.f32 %v2336_v47, %v2242_v59  ;;  %v2343_v6 = vmul.f32 %v2672_v1, %v2332_v61 }
 0x986   :  { %v2674_v8 = vpop.eup %2673 }
 0x987   :  { %v4942_v20 = vadd.f32 %v2343_v6, %v2342_v2  ;;  %v2340_v9 = vmul.f32 0.5, %v2674_v8 }
 0x989   :  { %2675 = vtanh.f32 %v4942_v20  ;;  %v2341_v10 = vadd.f32 0.5, %v2340_v9 }
 0x98f   :  { %v2676_v25 = vpop.eup %2675 }
 0x990   :  { %v2346_v18 = vmul.f32 %v2676_v25, %v2341_v10 }
 0x992   :  { %2367 = vmatmul.f32.vlgmr.msrb.gmra.mxu0 %v2346_v18  ;;  %2387 = vmatmul.f32.vlgmr.msrb.gmra.mxu1 %v2346_v18 }
 0x993   :  { %2407 = vmatmul.f32.vlgmr.msrb.gmra.mxu2 %v2346_v18  ;;  %2427 = vmatmul.f32.vlgmr.msrb.gmra.mxu3 %v2346_v18 }
 0xa0f   :  { %v2368_v3 = vpop.f32.mrf.mxu0  ;;  %v2388_v59 = vpop.f32.mrf.mxu1 }
 0xa10   :  { %v2369_v63 = vadd.f32 %v2368_v3, %v1476_v51  ;;  %v2389_v41 = vadd.f32 %v2388_v59, %v1517_v55 }
 0xa12   :  { %v2431_v13 = vmul.f32 0.5, %v2369_v63  ;;  %v2435_v40 = vmul.f32 0.5, %v2389_v41 }
 0xa14   :  { %2677 = vtanh.f32 %v2431_v13 }
 0xa15   :  { %2679 = vtanh.f32 %v2435_v40 }
 0xa16   :  { %v2408_v16 = vpop.f32.mrf.mxu2  ;;  %v2428_v46 = vpop.f32.mrf.mxu3 }
 0xa17   :  { %v2409_v56 = vadd.f32 %v2408_v16, %v1558_v38  ;;  %v2429_v58 = vadd.f32 %v2428_v46, %v1599_v22 }
 0xa19   :  { %2681 = vtanh.f32 %v2409_v56  ;;  %v2440_v5 = vmul.f32 0.5, %v2429_v58 }
 0xa1a   :  { %v2678_v45 = vpop.eup %2677 }
 0xa1b   :  { %v2680_v28 = vpop.eup %2679  ;;  %v2433_v26 = vmul.f32 0.5, %v2678_v45  ;;  %2683 = vtanh.f32 %v2440_v5 }
 0xa1c   :  { %v2437_v19 = vmul.f32 0.5, %v2680_v28 }
 0xa1d   :  { %v2434_v39 = vadd.f32 0.5, %v2433_v26 }
 0xa1e   :  { %v2438_v57 = vadd.f32 0.5, %v2437_v19 }
 0xa1f   :  { %v2682_v17 = vpop.eup %2681 }
 0xa20   :  { %v2444_v54 = vmul.f32 %v2438_v57, %v4942_v20  ;;  %v2445_v49 = vmul.f32 %v2682_v17, %v2434_v39 }
 0xa21   :  { %v2684_v15 = vpop.eup %2683 }
 0xa22   :  { %v2446_v43 = vadd.f32 %v2445_v49, %v2444_v54  ;;  %v2442_v24 = vmul.f32 0.5, %v2684_v15 }
 0xa24   :  { %2685 = vtanh.f32 %v2446_v43  ;;  %v2443_v14 = vadd.f32 0.5, %v2442_v24 }
 0xa2a   :  { %v2686_v11 = vpop.eup %2685 }
 0xa2b   :  { %v2448_v62 = vmul.f32 %v2686_v11, %v2443_v14 }
 0xa2d   :  { %2485 = vmatmul.f32.vlgmr.msra.gmra.mxu0 %v2448_v62 }
 0xaaa   :  { %v2486_v23 = vpop.f32.mrf.mxu0 }
 0xaab   :  { %v2487_v52 = vadd.f32 %v2526_v60, %v2486_v23 }
 0xaad   :  { %2489 = vst [vmem:[#allocation12] sm:$0xff] %v2487_v52 }
 0xaae   :  { %2500 = dma.vmem_to_hbm [thread:$0]  %s2496_s22, 128, %s2498_s24, [#allocation6]  }
 0xaaf   :  { %2941 = dma.done.wait [#allocation6], 128  }
 0xab0   :  { %2942 = vsyncadd [#allocation6], 4294967168 }
 0xab1   :  { %2505 = vsyncpa [#allocation5], 1 }
 0xab2   :  { %2506 = vsyncpa [#allocation8], 1 }
 0xab3   :  { %2507 = vsyncpa [#allocation11], 1 }
 0xab4   :  { %2508 = vsyncpa [#allocation6], 1 }

</bundles_post_ra>
